<compile_context>
chip_gen: v6e
topology: v6e:2x2x1
jax: 0.10.0
libtpu: 0.0.40
codegen_flags: <defaults>
</compile_context>

<pallas_src>
import numpy as np
import jax
import jax.numpy as jnp
from jax import lax
from jax.experimental import pallas as pl
from jax.experimental.pallas import tpu as pltpu


# ----------------------------------------------------------------------------
# Host-side helpers: selection matrices for pooling / decimation dots.
# ----------------------------------------------------------------------------
def _pool_select(Ho, W_in, Hp, Wp, extra_cols=0):
    """0/1 matrix selecting the stride-2 2x2-max-pool origins out of the flat
    shift-maxed conv map (length (Ho-1)*W_in - 1).  `extra_cols` appends zero
    columns so the next stage's im2col lane padding is built in for free."""
    L = (Ho - 1) * W_in - 1
    S = np.zeros((L, Hp * Wp + extra_cols), np.float32)
    for py in range(Hp):
        for px in range(Wp):
            S[(2 * py) * W_in + 2 * px, py * Wp + px] = 1.0
    return S


# ----------------------------------------------------------------------------
# Fused localization kernel:
#   x block (Nb, Cin, H*W)  ->  theta block (Nb, 6, 1)
# ----------------------------------------------------------------------------
def _make_loc_kernel(Nb, Cin, H, W, C1, k1, C2, k2, use_bf16):
    HW = H * W
    Ho1 = H - k1 + 1
    Hp1, Wp1 = Ho1 // 2, (W - k1 + 1) // 2
    HoW1 = Ho1 * W
    Lcm1 = (Ho1 - 1) * W - 1
    Ho2 = Hp1 - k2 + 1
    HoW2 = Ho2 * Wp1
    Lcm2 = (Ho2 - 1) * Wp1 - 1
    mdt = jnp.bfloat16 if use_bf16 else jnp.float32

    def kernel(x_ref, w1_ref, b1_ref, s1_ref, w2_ref, b2_ref, sa_ref,
               f1w_ref, f1b_ref, f2w_ref, f2b_ref, th_ref,
               xs_ref, sc1_ref, sc2_ref):
        # Hoist the (tiny) parameter loads out of the per-sample loop.
        w1, b1, s1 = w1_ref[...], b1_ref[...], s1_ref[...]
        w2, b2, sa = w2_ref[...], b2_ref[...], sa_ref[...]
        f1w, f1b = f1w_ref[...], f1b_ref[...]
        f2w, f2b = f2w_ref[...], f2b_ref[...]

        # Zero the conv-1 lane tail once; the [:, :HW] region is rewritten per
        # sample.  (Replaces the old wrapper-side jnp.pad -> no extra HBM pass.)
        xs_ref[:, HW:] = jnp.zeros((Cin, k1 - 1), jnp.float32)

        for s in range(Nb):                       # Nb samples per grid step
            xs_ref[:, :HW] = x_ref[s]
            xsv = xs_ref[...]

            # --- conv1: in-VMEM im2col (one lane-shifted slice per tap) + ONE
            #     full-depth MXU dot (K = k1*k1*Cin).
            for t in range(k1 * k1):
                off = (t // k1) * W + (t % k1)
                sc1_ref[t * Cin:(t + 1) * Cin, :] = xsv[:, off:off + HoW1]
            acc1 = jnp.dot(w1, sc1_ref[...].astype(mdt),
                           preferred_element_type=jnp.float32) + b1

            # --- MaxPool(2,2) as two flat shift-maxes, ReLU, and stride-2
            #     decimation as a single 0/1 selection dot (cm stays in VMEM).
            rm1 = jnp.maximum(acc1[:, :HoW1 - W], acc1[:, W:])
            cm1 = jnp.maximum(jnp.maximum(rm1[:, :Lcm1], rm1[:, 1:]), 0.0)
            pooled1 = jnp.dot(cm1.astype(mdt), s1,
                              preferred_element_type=jnp.float32)
            # pooled1: (C1, Hp1*Wp1 + k2-1), zero lane tail built into S1.

            # --- conv2: same im2col + single-dot scheme (K = k2*k2*C1).
            for t in range(k2 * k2):
                off = (t // k2) * Wp1 + (t % k2)
                sc2_ref[t * C1:(t + 1) * C1, :] = pooled1[:, off:off + HoW2]
            acc2 = jnp.dot(w2, sc2_ref[...].astype(mdt),
                           preferred_element_type=jnp.float32) + b2

            rm2 = jnp.maximum(acc2[:, :HoW2 - Wp1], acc2[:, Wp1:])
            cm2 = jnp.maximum(jnp.maximum(rm2[:, :Lcm2], rm2[:, 1:]), 0.0)

            # --- AdaptiveAvgPool2d(1) as one averaging selection dot (no lane
            #     loops), then Linear(C2,32) + ReLU + Linear(32,6).
            pooled2 = jnp.dot(cm2, sa, preferred_element_type=jnp.float32)
            hid = jnp.maximum(
                jnp.dot(f1w, pooled2, preferred_element_type=jnp.float32) + f1b,
                0.0)
            th_ref[s] = jnp.dot(f2w, hid,
                                preferred_element_type=jnp.float32) + f2b

    return kernel


def localization_theta_pallas(x, params, batch_block=4, use_bf16_mxu=True):
    N, Cin, H, W = x.shape
    c1w, c1b = params["conv1_w"], params["conv1_b"]
    c2w, c2b = params["conv2_w"], params["conv2_b"]
    f1w, f1b = params["fc1_w"], params["fc1_b"]
    f2w, f2b = params["fc2_w"], params["fc2_b"]
    C1, _, k1, _ = c1w.shape
    C2, _, k2, _ = c2w.shape
    hidden = f1w.shape[0]

    HW = H * W
    Ho1, Wo1 = H - k1 + 1, W - k1 + 1
    Hp1, Wp1 = Ho1 // 2, Wo1 // 2
    Lcm1 = (Ho1 - 1) * W - 1
    Ho2, Wo2 = Hp1 - k2 + 1, Wp1 - k2 + 1
    Hp2, Wp2 = Ho2 // 2, Wo2 // 2
    Lcm2 = (Ho2 - 1) * Wp1 - 1
    K1 = k1 * k1 * Cin
    K2 = k2 * k2 * C1
    P1p = Hp1 * Wp1 + (k2 - 1)

    mxu_dtype = jnp.bfloat16 if use_bf16_mxu else jnp.float32

    # Stacked conv weights, tap-major rows matching the in-kernel im2col layout.
    w1s = c1w.transpose(0, 2, 3, 1).reshape(C1, K1).astype(mxu_dtype)
    w2s = c2w.transpose(0, 2, 3, 1).reshape(C2, K2).astype(mxu_dtype)

    # Stride-2 decimation matrix (stage 1) and averaging vector (stage 2).
    S1 = jnp.asarray(_pool_select(Ho1, W, Hp1, Wp1, extra_cols=k2 - 1),
                     dtype=mxu_dtype)
    sel2 = _pool_select(Ho2, Wp1, Hp2, Wp2)
    Sa = jnp.asarray(sel2.sum(axis=1, keepdims=True) / float(Hp2 * Wp2),
                     dtype=jnp.float32)

    # Batch blocking: Nb samples per grid step.
    Nb = max(1, min(batch_block, N))
    G = -(-N // Nb)
    N_pad = G * Nb
    x_flat = x.reshape(N, Cin, HW).astype(jnp.float32)
    if N_pad != N:
        x_flat = jnp.concatenate(
            [x_flat, jnp.zeros((N_pad - N, Cin, HW), jnp.float32)], axis=0)

    theta = pl.pallas_call(
        _make_loc_kernel(Nb, Cin, H, W, C1, k1, C2, k2, use_bf16_mxu),
        out_shape=jax.ShapeDtypeStruct((N_pad, 6, 1), jnp.float32),
        grid=(G,),
        in_specs=[
            pl.BlockSpec((Nb, Cin, HW), lambda g: (g, 0, 0)),
            pl.BlockSpec((C1, K1), lambda g: (0, 0)),
            pl.BlockSpec((C1, 1), lambda g: (0, 0)),
            pl.BlockSpec((Lcm1, P1p), lambda g: (0, 0)),
            pl.BlockSpec((C2, K2), lambda g: (0, 0)),
            pl.BlockSpec((C2, 1), lambda g: (0, 0)),
            pl.BlockSpec((Lcm2, 1), lambda g: (0, 0)),
            pl.BlockSpec((hidden, C2), lambda g: (0, 0)),
            pl.BlockSpec((hidden, 1), lambda g: (0, 0)),
            pl.BlockSpec((6, hidden), lambda g: (0, 0)),
            pl.BlockSpec((6, 1), lambda g: (0, 0)),
        ],
        out_specs=pl.BlockSpec((Nb, 6, 1), lambda g: (g, 0, 0)),
        scratch_shapes=[
            pltpu.VMEM((Cin, HW + k1 - 1), jnp.float32),   # padded sample copy
            pltpu.VMEM((K1, Ho1 * W), jnp.float32),        # conv1 im2col
            pltpu.VMEM((K2, Ho2 * Wp1), jnp.float32),      # conv2 im2col
        ],
        compiler_params=pltpu.CompilerParams(
            dimension_semantics=("parallel",),
            vmem_limit_bytes=32 * 1024 * 1024),
    )(x_flat, w1s, c1b.reshape(C1, 1).astype(jnp.float32), S1,
      w2s, c2b.reshape(C2, 1).astype(jnp.float32), Sa,
      f1w.astype(jnp.float32), f1b.reshape(hidden, 1).astype(jnp.float32),
      f2w.astype(jnp.float32), f2b.reshape(6, 1).astype(jnp.float32))
    return theta.reshape(N_pad, 6)[:N]


# ----------------------------------------------------------------------------
# affine_grid + grid_sample (bilinear, zeros padding, align_corners=False).
# One-hot interpolation built in K-chunks + MXU dots against the resident image.
# ----------------------------------------------------------------------------
def _make_grid_sample_kernel(H, W, P, tile_p, k_chunk):
    Wf, Hf = float(W), float(H)

    def kernel(theta_ref, x_ref, o_ref):
        n = pl.program_id(0)
        t = pl.program_id(1)
        t00 = theta_ref[n, 0]
        t01 = theta_ref[n, 1]
        t02 = theta_ref[n, 2]
        t10 = theta_ref[n, 3]
        t11 = theta_ref[n, 4]
        t12 = theta_ref[n, 5]

        # Output pixel indices of this lane-dense tile -> (oy, ox).
        p_i = lax.broadcasted_iota(jnp.int32, (1, tile_p), 1) + t * tile_p
        pf = p_i.astype(jnp.float32)
        oy = jnp.floor(pf / Wf)
        ox = pf - oy * Wf

        # affine_grid base coords (align_corners=False) + theta transform.
        xn = (2.0 * ox + 1.0) / Wf - 1.0
        yn = (2.0 * oy + 1.0) / Hf - 1.0
        gx = t00 * xn + t01 * yn + t02
        gy = t10 * xn + t11 * yn + t12

        # Unnormalize to input pixel coords (align_corners=False).
        ix = ((gx + 1.0) * Wf - 1.0) * 0.5
        iy = ((gy + 1.0) * Hf - 1.0) * 0.5
        x0f = jnp.floor(ix)
        y0f = jnp.floor(iy)
        wx1 = ix - x0f
        wx0 = 1.0 - wx1
        wy1 = iy - y0f
        wy0 = 1.0 - wy1
        x0 = x0f.astype(jnp.int32)
        y0 = y0f.astype(jnp.int32)

        vx0 = (x0 >= 0) & (x0 < W)
        vx1 = (x0 + 1 >= 0) & (x0 + 1 < W)
        vy0 = (y0 >= 0) & (y0 < H)
        vy1 = (y0 + 1 >= 0) & (y0 + 1 < H)
        w00 = jnp.where(vy0 & vx0, wy0 * wx0, 0.0)
        w01 = jnp.where(vy0 & vx1, wy0 * wx1, 0.0)
        w10 = jnp.where(vy1 & vx0, wy1 * wx0, 0.0)
        w11 = jnp.where(vy1 & vx1, wy1 * wx1, 0.0)
        i00 = y0 * W + x0                            # (1, tile_p) int32

        # K-chunked one-hot build + dot-accumulate (bounds VMEM regardless of P).
        # NOTE: d==1 / d==W+1 can alias a row-wrapped pixel when the corner is
        # out of bounds, but those corners have weight 0 (zeros padding), so the
        # contribution is exactly 0.
        C = x_ref.shape[1]
        xv = x_ref[0]
        acc = jnp.zeros((C, tile_p), jnp.float32)
        for c0 in range(0, P, k_chunk):
            ck = min(k_chunk, P - c0)
            q = lax.broadcasted_iota(jnp.int32, (ck, tile_p), 0) + c0
            d = q - i00
            m = jnp.where(d == 0, w00,
                jnp.where(d == 1, w01,
                jnp.where(d == W, w10,
                jnp.where(d == W + 1, w11, 0.0))))
            acc = acc + jnp.dot(xv[:, c0:c0 + ck], m,
                                preferred_element_type=jnp.float32)
        o_ref[0] = acc

    return kernel


def grid_sample_pallas(x, theta, k_chunk=256):
    N, C, H, W = x.shape
    P = H * W
    Ppad = ((P + 127) // 128) * 128            # lane-dense output tiles
    tile_p = Ppad
    for cand in (512, 256, 128):
        if Ppad % cand == 0:
            tile_p = cand
            break
    num_tiles = Ppad // tile_p

    xf = x.reshape(N, C, P).astype(jnp.float32)
    out = pl.pallas_call(
        _make_grid_sample_kernel(H, W, P, tile_p, k_chunk),
        out_shape=jax.ShapeDtypeStruct((N, C, Ppad), jnp.float32),
        grid=(N, num_tiles),
        in_specs=[
            pl.BlockSpec(memory_space=pltpu.MemorySpace.SMEM),   # theta scalars
            pl.BlockSpec((1, C, P), lambda n, t: (n, 0, 0)),     # image resident
        ],
        out_specs=pl.BlockSpec((1, C, tile_p), lambda n, t: (n, 0, t)),
        compiler_params=pltpu.CompilerParams(
            dimension_semantics=("parallel", "parallel"),
            vmem_limit_bytes=32 * 1024 * 1024),
    )(theta.astype(jnp.float32), xf)
    return out[:, :, :P].reshape(N, C, H, W)


# ----------------------------------------------------------------------------
# Full forward
# ----------------------------------------------------------------------------
def stn_forward(x, params, batch_block=4, use_bf16_mxu=True):
    theta = localization_theta_pallas(x, params, batch_block, use_bf16_mxu)
    return grid_sample_pallas(x, theta)


def init_params(key, in_channels):
    k1, k2, k3, k4, k5, k6 = jax.random.split(key, 6)
    f32 = jnp.float32
    return {
        "conv1_w": 0.05 * jax.random.normal(k1, (8, in_channels, 7, 7), f32),
        "conv1_b": 0.05 * jax.random.normal(k2, (8,), f32),
        "conv2_w": 0.05 * jax.random.normal(k3, (10, 8, 5, 5), f32),
        "conv2_b": 0.05 * jax.random.normal(k4, (10,), f32),
        "fc1_w": 0.05 * jax.random.normal(k5, (32, 10), f32),
        "fc1_b": 0.05 * jax.random.normal(k6, (32,), f32),
        # as in the torch module's __init__: final linear = identity transform
        "fc2_w": jnp.zeros((6, 32), f32),
        "fc2_b": jnp.array([1, 0, 0, 0, 1, 0], f32),
    }


if __name__ == "__main__":
    # 24x24 keeps the conv(7)->pool->conv(5)->pool localization chain non-degenerate.
    N, C, H, W = 2, 3, 24, 24
    key = jax.random.PRNGKey(0)
    pkey, xkey = jax.random.split(key)
    params = init_params(pkey, C)
    x = jax.random.normal(xkey, (N, C, H, W), jnp.float32)

    fwd = jax.jit(stn_forward)
    out = jax.block_until_ready(fwd(x, params))

    assert out.shape == (N, C, H, W)
    # final linear is zero-weight + identity bias -> theta is the identity
    # transform, so grid_sample reproduces the input (up to fp rounding); the
    # sampler itself is pure f32, so bf16 in the localization convs cannot
    # affect this check (fc2 weights are zero).
    assert float(jnp.max(jnp.abs(out - x))) < 1e-2

    print("KERNEL_OK")
</pallas_src>

<mosaic_0001>
module attributes {stable_mosaic.version = 11 : i64} {
  func.func @kernel(%arg0: i32, %arg1: i32, %arg2: memref<2x6xf32, #tpu.memory_space<smem>>, %arg3: memref<1x3x576xf32, #tpu.memory_space<vmem>>, %arg4: memref<1x3x128xf32, #tpu.memory_space<vmem>>) attributes {dimension_semantics = [#tpu.dimension_semantics<parallel>, #tpu.dimension_semantics<parallel>], iteration_bounds = array<i64: 2, 5>, scalar_prefetch = 0 : i64, scratch_operands = 0 : i64, tpu.core_type = #tpu.core_type<tc>, window_params = [{transform_indices = @transform_0, window_bounds = array<i64: 2, 6>}, {transform_indices = @transform_1, window_bounds = array<i64: 1, 3, 576>}, {transform_indices = @transform_2, window_bounds = array<i64: 1, 3, 128>}]} {
    %0 = arith.index_cast %arg0 : i32 to index
    %c0 = arith.constant 0 : index
    %1 = memref.load %arg2[%0, %c0] : memref<2x6xf32, #tpu.memory_space<smem>>
    %2 = arith.index_cast %arg0 : i32 to index
    %c1 = arith.constant 1 : index
    %3 = memref.load %arg2[%2, %c1] : memref<2x6xf32, #tpu.memory_space<smem>>
    %4 = arith.index_cast %arg0 : i32 to index
    %c2 = arith.constant 2 : index
    %5 = memref.load %arg2[%4, %c2] : memref<2x6xf32, #tpu.memory_space<smem>>
    %6 = arith.index_cast %arg0 : i32 to index
    %c3 = arith.constant 3 : index
    %7 = memref.load %arg2[%6, %c3] : memref<2x6xf32, #tpu.memory_space<smem>>
    %8 = arith.index_cast %arg0 : i32 to index
    %c4 = arith.constant 4 : index
    %9 = memref.load %arg2[%8, %c4] : memref<2x6xf32, #tpu.memory_space<smem>>
    %10 = arith.index_cast %arg0 : i32 to index
    %c5 = arith.constant 5 : index
    %11 = memref.load %arg2[%10, %c5] : memref<2x6xf32, #tpu.memory_space<smem>>
    %12 = tpu.iota {dimensions = array<i32: 1>} : vector<1x128xi32>
    %c128_i32 = arith.constant 128 : i32
    %13 = arith.muli %arg1, %c128_i32 : i32
    %14 = vector.broadcast %13 : i32 to vector<1x128xi32>
    %15 = arith.addi %12, %14 : vector<1x128xi32>
    %16 = arith.sitofp %15 : vector<1x128xi32> to vector<1x128xf32>
    %cst = arith.constant 2.400000e+01 : f32
    %17 = vector.broadcast %cst : f32 to vector<1x128xf32>
    %18 = arith.divf %16, %17 : vector<1x128xf32>
    %19 = math.floor %18 : vector<1x128xf32>
    %cst_0 = arith.constant 2.400000e+01 : f32
    %20 = vector.broadcast %cst_0 : f32 to vector<1x128xf32>
    %21 = arith.mulf %19, %20 : vector<1x128xf32>
    %22 = arith.subf %16, %21 : vector<1x128xf32>
    %cst_1 = arith.constant 2.000000e+00 : f32
    %23 = vector.broadcast %cst_1 : f32 to vector<1x128xf32>
    %24 = arith.mulf %23, %22 : vector<1x128xf32>
    %cst_2 = arith.constant 1.000000e+00 : f32
    %25 = vector.broadcast %cst_2 : f32 to vector<1x128xf32>
    %26 = arith.addf %24, %25 : vector<1x128xf32>
    %cst_3 = arith.constant 2.400000e+01 : f32
    %27 = vector.broadcast %cst_3 : f32 to vector<1x128xf32>
    %28 = arith.divf %26, %27 : vector<1x128xf32>
    %cst_4 = arith.constant 1.000000e+00 : f32
    %29 = vector.broadcast %cst_4 : f32 to vector<1x128xf32>
    %30 = arith.subf %28, %29 : vector<1x128xf32>
    %cst_5 = arith.constant 2.000000e+00 : f32
    %31 = vector.broadcast %cst_5 : f32 to vector<1x128xf32>
    %32 = arith.mulf %31, %19 : vector<1x128xf32>
    %cst_6 = arith.constant 1.000000e+00 : f32
    %33 = vector.broadcast %cst_6 : f32 to vector<1x128xf32>
    %34 = arith.addf %32, %33 : vector<1x128xf32>
    %cst_7 = arith.constant 2.400000e+01 : f32
    %35 = vector.broadcast %cst_7 : f32 to vector<1x128xf32>
    %36 = arith.divf %34, %35 : vector<1x128xf32>
    %cst_8 = arith.constant 1.000000e+00 : f32
    %37 = vector.broadcast %cst_8 : f32 to vector<1x128xf32>
    %38 = arith.subf %36, %37 : vector<1x128xf32>
    %39 = vector.broadcast %1 : f32 to vector<1x128xf32>
    %40 = arith.mulf %39, %30 : vector<1x128xf32>
    %41 = vector.broadcast %3 : f32 to vector<1x128xf32>
    %42 = arith.mulf %41, %38 : vector<1x128xf32>
    %43 = arith.addf %40, %42 : vector<1x128xf32>
    %44 = vector.broadcast %5 : f32 to vector<1x128xf32>
    %45 = arith.addf %43, %44 : vector<1x128xf32>
    %46 = vector.broadcast %7 : f32 to vector<1x128xf32>
    %47 = arith.mulf %46, %30 : vector<1x128xf32>
    %48 = vector.broadcast %9 : f32 to vector<1x128xf32>
    %49 = arith.mulf %48, %38 : vector<1x128xf32>
    %50 = arith.addf %47, %49 : vector<1x128xf32>
    %51 = vector.broadcast %11 : f32 to vector<1x128xf32>
    %52 = arith.addf %50, %51 : vector<1x128xf32>
    %cst_9 = arith.constant 1.000000e+00 : f32
    %53 = vector.broadcast %cst_9 : f32 to vector<1x128xf32>
    %54 = arith.addf %45, %53 : vector<1x128xf32>
    %cst_10 = arith.constant 2.400000e+01 : f32
    %55 = vector.broadcast %cst_10 : f32 to vector<1x128xf32>
    %56 = arith.mulf %54, %55 : vector<1x128xf32>
    %cst_11 = arith.constant 1.000000e+00 : f32
    %57 = vector.broadcast %cst_11 : f32 to vector<1x128xf32>
    %58 = arith.subf %56, %57 : vector<1x128xf32>
    %cst_12 = arith.constant 5.000000e-01 : f32
    %59 = vector.broadcast %cst_12 : f32 to vector<1x128xf32>
    %60 = arith.mulf %58, %59 : vector<1x128xf32>
    %cst_13 = arith.constant 1.000000e+00 : f32
    %61 = vector.broadcast %cst_13 : f32 to vector<1x128xf32>
    %62 = arith.addf %52, %61 : vector<1x128xf32>
    %cst_14 = arith.constant 2.400000e+01 : f32
    %63 = vector.broadcast %cst_14 : f32 to vector<1x128xf32>
    %64 = arith.mulf %62, %63 : vector<1x128xf32>
    %cst_15 = arith.constant 1.000000e+00 : f32
    %65 = vector.broadcast %cst_15 : f32 to vector<1x128xf32>
    %66 = arith.subf %64, %65 : vector<1x128xf32>
    %cst_16 = arith.constant 5.000000e-01 : f32
    %67 = vector.broadcast %cst_16 : f32 to vector<1x128xf32>
    %68 = arith.mulf %66, %67 : vector<1x128xf32>
    %69 = math.floor %60 : vector<1x128xf32>
    %70 = math.floor %68 : vector<1x128xf32>
    %71 = arith.subf %60, %69 : vector<1x128xf32>
    %cst_17 = arith.constant 1.000000e+00 : f32
    %72 = vector.broadcast %cst_17 : f32 to vector<1x128xf32>
    %73 = arith.subf %72, %71 : vector<1x128xf32>
    %74 = arith.subf %68, %70 : vector<1x128xf32>
    %cst_18 = arith.constant 1.000000e+00 : f32
    %75 = vector.broadcast %cst_18 : f32 to vector<1x128xf32>
    %76 = arith.subf %75, %74 : vector<1x128xf32>
    %77 = arith.fptosi %69 : vector<1x128xf32> to vector<1x128xi32>
    %78 = arith.fptosi %70 : vector<1x128xf32> to vector<1x128xi32>
    %c0_i32 = arith.constant 0 : i32
    %79 = vector.broadcast %c0_i32 : i32 to vector<1x128xi32>
    %80 = arith.cmpi sge, %77, %79 : vector<1x128xi32>
    %c24_i32 = arith.constant 24 : i32
    %81 = vector.broadcast %c24_i32 : i32 to vector<1x128xi32>
    %82 = arith.cmpi slt, %77, %81 : vector<1x128xi32>
    %83 = arith.andi %80, %82 : vector<1x128xi1>
    %c1_i32 = arith.constant 1 : i32
    %84 = vector.broadcast %c1_i32 : i32 to vector<1x128xi32>
    %85 = arith.addi %77, %84 : vector<1x128xi32>
    %c0_i32_19 = arith.constant 0 : i32
    %86 = vector.broadcast %c0_i32_19 : i32 to vector<1x128xi32>
    %87 = arith.cmpi sge, %85, %86 : vector<1x128xi32>
    %c1_i32_20 = arith.constant 1 : i32
    %88 = vector.broadcast %c1_i32_20 : i32 to vector<1x128xi32>
    %89 = arith.addi %77, %88 : vector<1x128xi32>
    %c24_i32_21 = arith.constant 24 : i32
    %90 = vector.broadcast %c24_i32_21 : i32 to vector<1x128xi32>
    %91 = arith.cmpi slt, %89, %90 : vector<1x128xi32>
    %92 = arith.andi %87, %91 : vector<1x128xi1>
    %c0_i32_22 = arith.constant 0 : i32
    %93 = vector.broadcast %c0_i32_22 : i32 to vector<1x128xi32>
    %94 = arith.cmpi sge, %78, %93 : vector<1x128xi32>
    %c24_i32_23 = arith.constant 24 : i32
    %95 = vector.broadcast %c24_i32_23 : i32 to vector<1x128xi32>
    %96 = arith.cmpi slt, %78, %95 : vector<1x128xi32>
    %97 = arith.andi %94, %96 : vector<1x128xi1>
    %c1_i32_24 = arith.constant 1 : i32
    %98 = vector.broadcast %c1_i32_24 : i32 to vector<1x128xi32>
    %99 = arith.addi %78, %98 : vector<1x128xi32>
    %c0_i32_25 = arith.constant 0 : i32
    %100 = vector.broadcast %c0_i32_25 : i32 to vector<1x128xi32>
    %101 = arith.cmpi sge, %99, %100 : vector<1x128xi32>
    %c1_i32_26 = arith.constant 1 : i32
    %102 = vector.broadcast %c1_i32_26 : i32 to vector<1x128xi32>
    %103 = arith.addi %78, %102 : vector<1x128xi32>
    %c24_i32_27 = arith.constant 24 : i32
    %104 = vector.broadcast %c24_i32_27 : i32 to vector<1x128xi32>
    %105 = arith.cmpi slt, %103, %104 : vector<1x128xi32>
    %106 = arith.andi %101, %105 : vector<1x128xi1>
    %107 = arith.andi %97, %83 : vector<1x128xi1>
    %108 = arith.mulf %76, %73 : vector<1x128xf32>
    %cst_28 = arith.constant 0.000000e+00 : f32
    %109 = vector.broadcast %cst_28 : f32 to vector<1x128xf32>
    %110 = arith.select %107, %108, %109 : vector<1x128xi1>, vector<1x128xf32>
    %111 = arith.andi %97, %92 : vector<1x128xi1>
    %112 = arith.mulf %76, %71 : vector<1x128xf32>
    %cst_29 = arith.constant 0.000000e+00 : f32
    %113 = vector.broadcast %cst_29 : f32 to vector<1x128xf32>
    %114 = arith.select %111, %112, %113 : vector<1x128xi1>, vector<1x128xf32>
    %115 = arith.andi %106, %83 : vector<1x128xi1>
    %116 = arith.mulf %74, %73 : vector<1x128xf32>
    %cst_30 = arith.constant 0.000000e+00 : f32
    %117 = vector.broadcast %cst_30 : f32 to vector<1x128xf32>
    %118 = arith.select %115, %116, %117 : vector<1x128xi1>, vector<1x128xf32>
    %119 = arith.andi %106, %92 : vector<1x128xi1>
    %120 = arith.mulf %74, %71 : vector<1x128xf32>
    %cst_31 = arith.constant 0.000000e+00 : f32
    %121 = vector.broadcast %cst_31 : f32 to vector<1x128xf32>
    %122 = arith.select %119, %120, %121 : vector<1x128xi1>, vector<1x128xf32>
    %c24_i32_32 = arith.constant 24 : i32
    %123 = vector.broadcast %c24_i32_32 : i32 to vector<1x128xi32>
    %124 = arith.muli %78, %123 : vector<1x128xi32>
    %125 = arith.addi %124, %77 : vector<1x128xi32>
    %c0_33 = arith.constant 0 : index
    %c0_34 = arith.constant 0 : index
    %c0_35 = arith.constant 0 : index
    %126 = vector.load %arg3[%c0_33, %c0_34, %c0_35] : memref<1x3x576xf32, #tpu.memory_space<vmem>>, vector<1x3x576xf32>
    %127 = vector.shape_cast %126 : vector<1x3x576xf32> to vector<3x576xf32>
    %cst_36 = arith.constant 0.000000e+00 : f32
    %128 = vector.broadcast %cst_36 : f32 to vector<3x128xf32>
    %129 = tpu.iota {dimensions = array<i32: 0>} : vector<256x128xi32>
    %c0_i32_37 = arith.constant 0 : i32
    %130 = vector.broadcast %c0_i32_37 : i32 to vector<256x128xi32>
    %131 = arith.addi %129, %130 : vector<256x128xi32>
    %132 = vector.broadcast %125 : vector<1x128xi32> to vector<256x128xi32>
    %133 = arith.subi %131, %132 : vector<256x128xi32>
    %c0_i32_38 = arith.constant 0 : i32
    %134 = vector.broadcast %c0_i32_38 : i32 to vector<256x128xi32>
    %135 = arith.cmpi eq, %133, %134 : vector<256x128xi32>
    %c1_i32_39 = arith.constant 1 : i32
    %136 = vector.broadcast %c1_i32_39 : i32 to vector<256x128xi32>
    %137 = arith.cmpi eq, %133, %136 : vector<256x128xi32>
    %c24_i32_40 = arith.constant 24 : i32
    %138 = vector.broadcast %c24_i32_40 : i32 to vector<256x128xi32>
    %139 = arith.cmpi eq, %133, %138 : vector<256x128xi32>
    %c25_i32 = arith.constant 25 : i32
    %140 = vector.broadcast %c25_i32 : i32 to vector<256x128xi32>
    %141 = arith.cmpi eq, %133, %140 : vector<256x128xi32>
    %cst_41 = arith.constant 0.000000e+00 : f32
    %142 = vector.shape_cast %122 : vector<1x128xf32> to vector<1x128xf32>
    %143 = vector.broadcast %142 : vector<1x128xf32> to vector<256x128xf32>
    %144 = vector.broadcast %cst_41 : f32 to vector<256x128xf32>
    %145 = arith.select %141, %143, %144 : vector<256x128xi1>, vector<256x128xf32>
    %146 = vector.shape_cast %118 : vector<1x128xf32> to vector<1x128xf32>
    %147 = vector.broadcast %146 : vector<1x128xf32> to vector<256x128xf32>
    %148 = arith.select %139, %147, %145 : vector<256x128xi1>, vector<256x128xf32>
    %149 = vector.shape_cast %114 : vector<1x128xf32> to vector<1x128xf32>
    %150 = vector.broadcast %149 : vector<1x128xf32> to vector<256x128xf32>
    %151 = arith.select %137, %150, %148 : vector<256x128xi1>, vector<256x128xf32>
    %152 = vector.shape_cast %110 : vector<1x128xf32> to vector<1x128xf32>
    %153 = vector.broadcast %152 : vector<1x128xf32> to vector<256x128xf32>
    %154 = arith.select %135, %153, %151 : vector<256x128xi1>, vector<256x128xf32>
    %155 = vector.extract_strided_slice %127 {offsets = [0, 0], sizes = [3, 256], strides = [1, 1]} : vector<3x576xf32> to vector<3x256xf32>
    %cst_42 = arith.constant dense<0.000000e+00> : vector<3x128xf32>
    %156 = tpu.matmul %155, %154, %cst_42 {dimension_numbers = #tpu.dot_dimension_numbers<[1], [0], [0], [1], [0, 0, 1, 1], [], []>} : vector<3x256xf32>, vector<256x128xf32>, vector<3x128xf32> -> vector<3x128xf32>
    %157 = arith.addf %128, %156 : vector<3x128xf32>
    %158 = tpu.iota {dimensions = array<i32: 0>} : vector<256x128xi32>
    %c256_i32 = arith.constant 256 : i32
    %159 = vector.broadcast %c256_i32 : i32 to vector<256x128xi32>
    %160 = arith.addi %158, %159 : vector<256x128xi32>
    %161 = vector.broadcast %125 : vector<1x128xi32> to vector<256x128xi32>
    %162 = arith.subi %160, %161 : vector<256x128xi32>
    %c0_i32_43 = arith.constant 0 : i32
    %163 = vector.broadcast %c0_i32_43 : i32 to vector<256x128xi32>
    %164 = arith.cmpi eq, %162, %163 : vector<256x128xi32>
    %c1_i32_44 = arith.constant 1 : i32
    %165 = vector.broadcast %c1_i32_44 : i32 to vector<256x128xi32>
    %166 = arith.cmpi eq, %162, %165 : vector<256x128xi32>
    %c24_i32_45 = arith.constant 24 : i32
    %167 = vector.broadcast %c24_i32_45 : i32 to vector<256x128xi32>
    %168 = arith.cmpi eq, %162, %167 : vector<256x128xi32>
    %c25_i32_46 = arith.constant 25 : i32
    %169 = vector.broadcast %c25_i32_46 : i32 to vector<256x128xi32>
    %170 = arith.cmpi eq, %162, %169 : vector<256x128xi32>
    %cst_47 = arith.constant 0.000000e+00 : f32
    %171 = vector.shape_cast %122 : vector<1x128xf32> to vector<1x128xf32>
    %172 = vector.broadcast %171 : vector<1x128xf32> to vector<256x128xf32>
    %173 = vector.broadcast %cst_47 : f32 to vector<256x128xf32>
    %174 = arith.select %170, %172, %173 : vector<256x128xi1>, vector<256x128xf32>
    %175 = vector.shape_cast %118 : vector<1x128xf32> to vector<1x128xf32>
    %176 = vector.broadcast %175 : vector<1x128xf32> to vector<256x128xf32>
    %177 = arith.select %168, %176, %174 : vector<256x128xi1>, vector<256x128xf32>
    %178 = vector.shape_cast %114 : vector<1x128xf32> to vector<1x128xf32>
    %179 = vector.broadcast %178 : vector<1x128xf32> to vector<256x128xf32>
    %180 = arith.select %166, %179, %177 : vector<256x128xi1>, vector<256x128xf32>
    %181 = vector.shape_cast %110 : vector<1x128xf32> to vector<1x128xf32>
    %182 = vector.broadcast %181 : vector<1x128xf32> to vector<256x128xf32>
    %183 = arith.select %164, %182, %180 : vector<256x128xi1>, vector<256x128xf32>
    %184 = vector.extract_strided_slice %127 {offsets = [0, 256], sizes = [3, 256], strides = [1, 1]} : vector<3x576xf32> to vector<3x256xf32>
    %cst_48 = arith.constant dense<0.000000e+00> : vector<3x128xf32>
    %185 = tpu.matmul %184, %183, %cst_48 {dimension_numbers = #tpu.dot_dimension_numbers<[1], [0], [0], [1], [0, 0, 1, 1], [], []>} : vector<3x256xf32>, vector<256x128xf32>, vector<3x128xf32> -> vector<3x128xf32>
    %186 = arith.addf %157, %185 : vector<3x128xf32>
    %187 = tpu.iota {dimensions = array<i32: 0>} : vector<64x128xi32>
    %c512_i32 = arith.constant 512 : i32
    %188 = vector.broadcast %c512_i32 : i32 to vector<64x128xi32>
    %189 = arith.addi %187, %188 : vector<64x128xi32>
    %190 = vector.broadcast %125 : vector<1x128xi32> to vector<64x128xi32>
    %191 = arith.subi %189, %190 : vector<64x128xi32>
    %c0_i32_49 = arith.constant 0 : i32
    %192 = vector.broadcast %c0_i32_49 : i32 to vector<64x128xi32>
    %193 = arith.cmpi eq, %191, %192 : vector<64x128xi32>
    %c1_i32_50 = arith.constant 1 : i32
    %194 = vector.broadcast %c1_i32_50 : i32 to vector<64x128xi32>
    %195 = arith.cmpi eq, %191, %194 : vector<64x128xi32>
    %c24_i32_51 = arith.constant 24 : i32
    %196 = vector.broadcast %c24_i32_51 : i32 to vector<64x128xi32>
    %197 = arith.cmpi eq, %191, %196 : vector<64x128xi32>
    %c25_i32_52 = arith.constant 25 : i32
    %198 = vector.broadcast %c25_i32_52 : i32 to vector<64x128xi32>
    %199 = arith.cmpi eq, %191, %198 : vector<64x128xi32>
    %cst_53 = arith.constant 0.000000e+00 : f32
    %200 = vector.shape_cast %122 : vector<1x128xf32> to vector<1x128xf32>
    %201 = vector.broadcast %200 : vector<1x128xf32> to vector<64x128xf32>
    %202 = vector.broadcast %cst_53 : f32 to vector<64x128xf32>
    %203 = arith.select %199, %201, %202 : vector<64x128xi1>, vector<64x128xf32>
    %204 = vector.shape_cast %118 : vector<1x128xf32> to vector<1x128xf32>
    %205 = vector.broadcast %204 : vector<1x128xf32> to vector<64x128xf32>
    %206 = arith.select %197, %205, %203 : vector<64x128xi1>, vector<64x128xf32>
    %207 = vector.shape_cast %114 : vector<1x128xf32> to vector<1x128xf32>
    %208 = vector.broadcast %207 : vector<1x128xf32> to vector<64x128xf32>
    %209 = arith.select %195, %208, %206 : vector<64x128xi1>, vector<64x128xf32>
    %210 = vector.shape_cast %110 : vector<1x128xf32> to vector<1x128xf32>
    %211 = vector.broadcast %210 : vector<1x128xf32> to vector<64x128xf32>
    %212 = arith.select %193, %211, %209 : vector<64x128xi1>, vector<64x128xf32>
    %213 = vector.extract_strided_slice %127 {offsets = [0, 512], sizes = [3, 64], strides = [1, 1]} : vector<3x576xf32> to vector<3x64xf32>
    %cst_54 = arith.constant dense<0.000000e+00> : vector<3x128xf32>
    %214 = tpu.matmul %213, %212, %cst_54 {dimension_numbers = #tpu.dot_dimension_numbers<[1], [0], [0], [1], [0, 0, 1, 1], [], []>} : vector<3x64xf32>, vector<64x128xf32>, vector<3x128xf32> -> vector<3x128xf32>
    %215 = arith.addf %186, %214 : vector<3x128xf32>
    %c0_55 = arith.constant 0 : index
    %c0_56 = arith.constant 0 : index
    %c0_57 = arith.constant 0 : index
    %216 = vector.load %arg4[%c0_55, %c0_56, %c0_57] : memref<1x3x128xf32, #tpu.memory_space<vmem>>, vector<1x3x128xf32>
    %217 = vector.shape_cast %216 : vector<1x3x128xf32> to vector<3x128xf32>
    %218 = vector.shape_cast %215 : vector<3x128xf32> to vector<1x3x128xf32>
    tpu.vector_store %arg4[%c0_55, %c0_56, %c0_57], %218 {strides = array<i32>} : memref<1x3x128xf32, #tpu.memory_space<vmem>>, vector<1x3x128xf32>,
    return
  }
  func.func @transform_0(%arg0: i32, %arg1: i32) -> (i32, i32) {
    %c0_i32 = arith.constant 0 : i32
    %c0_i32_0 = arith.constant 0 : i32
    %c0_i32_1 = arith.constant 0 : i32
    return %c0_i32, %c0_i32_0 : i32, i32
  }
  func.func @transform_1(%arg0: i32, %arg1: i32) -> (i32, i32, i32) {
    %c0_i32 = arith.constant 0 : i32
    %c0_i32_0 = arith.constant 0 : i32
    %c0_i32_1 = arith.constant 0 : i32
    return %arg0, %c0_i32, %c0_i32_0 : i32, i32, i32
  }
  func.func @transform_2(%arg0: i32, %arg1: i32) -> (i32, i32, i32) {
    %c0_i32 = arith.constant 0 : i32
    %c0_i32_0 = arith.constant 0 : i32
    return %arg0, %c0_i32, %arg1 : i32, i32, i32
  }
}

module attributes {stable_mosaic.version = 11 : i64} {
  func.func @kernel(%arg0: i32, %arg1: memref<2x3x576xf32, #tpu.memory_space<vmem>>, %arg2: memref<8x147xbf16, #tpu.memory_space<vmem>>, %arg3: memref<8x1xf32, #tpu.memory_space<vmem>>, %arg4: memref<407x85xbf16, #tpu.memory_space<vmem>>, %arg5: memref<10x200xbf16, #tpu.memory_space<vmem>>, %arg6: memref<10x1xf32, #tpu.memory_space<vmem>>, %arg7: memref<35x1xf32, #tpu.memory_space<vmem>>, %arg8: memref<32x10xf32, #tpu.memory_space<vmem>>, %arg9: memref<32x1xf32, #tpu.memory_space<vmem>>, %arg10: memref<6x32xf32, #tpu.memory_space<vmem>>, %arg11: memref<6x1xf32, #tpu.memory_space<vmem>>, %arg12: memref<2x6x1xf32, #tpu.memory_space<vmem>>, %arg13: memref<3x582xf32, #tpu.memory_space<vmem>>, %arg14: memref<147x432xf32, #tpu.memory_space<vmem>>, %arg15: memref<200x45xf32, #tpu.memory_space<vmem>>) attributes {dimension_semantics = [#tpu.dimension_semantics<parallel>], iteration_bounds = array<i64: 1>, scalar_prefetch = 0 : i64, scratch_operands = 3 : i64, tpu.core_type = #tpu.core_type<tc>, window_params = [{transform_indices = @transform_0, window_bounds = array<i64: 2, 3, 576>}, {pipeline_mode = #tpu.pipeline_mode<synchronous>, transform_indices = @transform_1, window_bounds = array<i64: 8, 147>}, {pipeline_mode = #tpu.pipeline_mode<synchronous>, transform_indices = @transform_2, window_bounds = array<i64: 8, 1>}, {pipeline_mode = #tpu.pipeline_mode<synchronous>, transform_indices = @transform_3, window_bounds = array<i64: 407, 85>}, {pipeline_mode = #tpu.pipeline_mode<synchronous>, transform_indices = @transform_4, window_bounds = array<i64: 10, 200>}, {pipeline_mode = #tpu.pipeline_mode<synchronous>, transform_indices = @transform_5, window_bounds = array<i64: 10, 1>}, {pipeline_mode = #tpu.pipeline_mode<synchronous>, transform_indices = @transform_6, window_bounds = array<i64: 35, 1>}, {pipeline_mode = #tpu.pipeline_mode<synchronous>, transform_indices = @transform_7, window_bounds = array<i64: 32, 10>}, {pipeline_mode = #tpu.pipeline_mode<synchronous>, transform_indices = @transform_8, window_bounds = array<i64: 32, 1>}, {pipeline_mode = #tpu.pipeline_mode<synchronous>, transform_indices = @transform_9, window_bounds = array<i64: 6, 32>}, {pipeline_mode = #tpu.pipeline_mode<synchronous>, transform_indices = @transform_10, window_bounds = array<i64: 6, 1>}, {transform_indices = @transform_11, window_bounds = array<i64: 2, 6, 1>}]} {
    %c0 = arith.constant 0 : index
    %c0_0 = arith.constant 0 : index
    %0 = vector.load %arg2[%c0, %c0_0] : memref<8x147xbf16, #tpu.memory_space<vmem>>, vector<8x147xbf16>
    %c0_1 = arith.constant 0 : index
    %c0_2 = arith.constant 0 : index
    %1 = vector.load %arg3[%c0_1, %c0_2] : memref<8x1xf32, #tpu.memory_space<vmem>>, vector<8x1xf32>
    %c0_3 = arith.constant 0 : index
    %c0_4 = arith.constant 0 : index
    %2 = vector.load %arg4[%c0_3, %c0_4] : memref<407x85xbf16, #tpu.memory_space<vmem>>, vector<407x85xbf16>
    %c0_5 = arith.constant 0 : index
    %c0_6 = arith.constant 0 : index
    %3 = vector.load %arg5[%c0_5, %c0_6] : memref<10x200xbf16, #tpu.memory_space<vmem>>, vector<10x200xbf16>
    %c0_7 = arith.constant 0 : index
    %c0_8 = arith.constant 0 : index
    %4 = vector.load %arg6[%c0_7, %c0_8] : memref<10x1xf32, #tpu.memory_space<vmem>>, vector<10x1xf32>
    %c0_9 = arith.constant 0 : index
    %c0_10 = arith.constant 0 : index
    %5 = vector.load %arg7[%c0_9, %c0_10] : memref<35x1xf32, #tpu.memory_space<vmem>>, vector<35x1xf32>
    %c0_11 = arith.constant 0 : index
    %c0_12 = arith.constant 0 : index
    %6 = vector.load %arg8[%c0_11, %c0_12] : memref<32x10xf32, #tpu.memory_space<vmem>>, vector<32x10xf32>
    %c0_13 = arith.constant 0 : index
    %c0_14 = arith.constant 0 : index
    %7 = vector.load %arg9[%c0_13, %c0_14] : memref<32x1xf32, #tpu.memory_space<vmem>>, vector<32x1xf32>
    %c0_15 = arith.constant 0 : index
    %c0_16 = arith.constant 0 : index
    %8 = vector.load %arg10[%c0_15, %c0_16] : memref<6x32xf32, #tpu.memory_space<vmem>>, vector<6x32xf32>
    %c0_17 = arith.constant 0 : index
    %c0_18 = arith.constant 0 : index
    %9 = vector.load %arg11[%c0_17, %c0_18] : memref<6x1xf32, #tpu.memory_space<vmem>>, vector<6x1xf32>
    %cst = arith.constant 0.000000e+00 : f32
    %10 = vector.broadcast %cst : f32 to vector<3x6xf32>
    %c0_19 = arith.constant 0 : index
    %c576 = arith.constant 576 : index
    %11 = vector.load %arg13[%c0_19, %c576] : memref<3x582xf32, #tpu.memory_space<vmem>>, vector<3x6xf32>
    tpu.vector_store %arg13[%c0_19, %c576], %10 {strides = array<i32>} : memref<3x582xf32, #tpu.memory_space<vmem>>, vector<3x6xf32>,
    %c0_20 = arith.constant 0 : index
    %c0_21 = arith.constant 0 : index
    %c0_22 = arith.constant 0 : index
    %12 = vector.load %arg1[%c0_20, %c0_21, %c0_22] : memref<2x3x576xf32, #tpu.memory_space<vmem>>, vector<1x3x576xf32>
    %13 = vector.shape_cast %12 : vector<1x3x576xf32> to vector<3x576xf32>
    %c0_23 = arith.constant 0 : index
    %c0_24 = arith.constant 0 : index
    %14 = vector.load %arg13[%c0_23, %c0_24] : memref<3x582xf32, #tpu.memory_space<vmem>>, vector<3x576xf32>
    tpu.vector_store %arg13[%c0_23, %c0_24], %13 {strides = array<i32>} : memref<3x582xf32, #tpu.memory_space<vmem>>, vector<3x576xf32>,
    %c0_25 = arith.constant 0 : index
    %c0_26 = arith.constant 0 : index
    %15 = vector.load %arg13[%c0_25, %c0_26] : memref<3x582xf32, #tpu.memory_space<vmem>>, vector<3x582xf32>
    %16 = vector.extract_strided_slice %15 {offsets = [0, 0], sizes = [3, 432], strides = [1, 1]} : vector<3x582xf32> to vector<3x432xf32>
    %c0_27 = arith.constant 0 : index
    %c0_28 = arith.constant 0 : index
    %17 = vector.load %arg14[%c0_27, %c0_28] : memref<147x432xf32, #tpu.memory_space<vmem>>, vector<3x432xf32>
    tpu.vector_store %arg14[%c0_27, %c0_28], %16 {strides = array<i32>} : memref<147x432xf32, #tpu.memory_space<vmem>>, vector<3x432xf32>,
    %18 = vector.extract_strided_slice %15 {offsets = [0, 1], sizes = [3, 432], strides = [1, 1]} : vector<3x582xf32> to vector<3x432xf32>
    %c3 = arith.constant 3 : index
    %c0_29 = arith.constant 0 : index
    %19 = vector.load %arg14[%c3, %c0_29] : memref<147x432xf32, #tpu.memory_space<vmem>>, vector<3x432xf32>
    tpu.vector_store %arg14[%c3, %c0_29], %18 {strides = array<i32>} : memref<147x432xf32, #tpu.memory_space<vmem>>, vector<3x432xf32>,
    %20 = vector.extract_strided_slice %15 {offsets = [0, 2], sizes = [3, 432], strides = [1, 1]} : vector<3x582xf32> to vector<3x432xf32>
    %c6 = arith.constant 6 : index
    %c0_30 = arith.constant 0 : index
    %21 = vector.load %arg14[%c6, %c0_30] : memref<147x432xf32, #tpu.memory_space<vmem>>, vector<3x432xf32>
    tpu.vector_store %arg14[%c6, %c0_30], %20 {strides = array<i32>} : memref<147x432xf32, #tpu.memory_space<vmem>>, vector<3x432xf32>,
    %22 = vector.extract_strided_slice %15 {offsets = [0, 3], sizes = [3, 432], strides = [1, 1]} : vector<3x582xf32> to vector<3x432xf32>
    %c9 = arith.constant 9 : index
    %c0_31 = arith.constant 0 : index
    %23 = vector.load %arg14[%c9, %c0_31] : memref<147x432xf32, #tpu.memory_space<vmem>>, vector<3x432xf32>
    tpu.vector_store %arg14[%c9, %c0_31], %22 {strides = array<i32>} : memref<147x432xf32, #tpu.memory_space<vmem>>, vector<3x432xf32>,
    %24 = vector.extract_strided_slice %15 {offsets = [0, 4], sizes = [3, 432], strides = [1, 1]} : vector<3x582xf32> to vector<3x432xf32>
    %c12 = arith.constant 12 : index
    %c0_32 = arith.constant 0 : index
    %25 = vector.load %arg14[%c12, %c0_32] : memref<147x432xf32, #tpu.memory_space<vmem>>, vector<3x432xf32>
    tpu.vector_store %arg14[%c12, %c0_32], %24 {strides = array<i32>} : memref<147x432xf32, #tpu.memory_space<vmem>>, vector<3x432xf32>,
    %26 = vector.extract_strided_slice %15 {offsets = [0, 5], sizes = [3, 432], strides = [1, 1]} : vector<3x582xf32> to vector<3x432xf32>
    %c15 = arith.constant 15 : index
    %c0_33 = arith.constant 0 : index
    %27 = vector.load %arg14[%c15, %c0_33] : memref<147x432xf32, #tpu.memory_space<vmem>>, vector<3x432xf32>
    tpu.vector_store %arg14[%c15, %c0_33], %26 {strides = array<i32>} : memref<147x432xf32, #tpu.memory_space<vmem>>, vector<3x432xf32>,
    %28 = vector.extract_strided_slice %15 {offsets = [0, 6], sizes = [3, 432], strides = [1, 1]} : vector<3x582xf32> to vector<3x432xf32>
    %c18 = arith.constant 18 : index
    %c0_34 = arith.constant 0 : index
    %29 = vector.load %arg14[%c18, %c0_34] : memref<147x432xf32, #tpu.memory_space<vmem>>, vector<3x432xf32>
    tpu.vector_store %arg14[%c18, %c0_34], %28 {strides = array<i32>} : memref<147x432xf32, #tpu.memory_space<vmem>>, vector<3x432xf32>,
    %30 = vector.extract_strided_slice %15 {offsets = [0, 24], sizes = [3, 432], strides = [1, 1]} : vector<3x582xf32> to vector<3x432xf32>
    %c21 = arith.constant 21 : index
    %c0_35 = arith.constant 0 : index
    %31 = vector.load %arg14[%c21, %c0_35] : memref<147x432xf32, #tpu.memory_space<vmem>>, vector<3x432xf32>
    tpu.vector_store %arg14[%c21, %c0_35], %30 {strides = array<i32>} : memref<147x432xf32, #tpu.memory_space<vmem>>, vector<3x432xf32>,
    %32 = vector.extract_strided_slice %15 {offsets = [0, 25], sizes = [3, 432], strides = [1, 1]} : vector<3x582xf32> to vector<3x432xf32>
    %c24 = arith.constant 24 : index
    %c0_36 = arith.constant 0 : index
    %33 = vector.load %arg14[%c24, %c0_36] : memref<147x432xf32, #tpu.memory_space<vmem>>, vector<3x432xf32>
    tpu.vector_store %arg14[%c24, %c0_36], %32 {strides = array<i32>} : memref<147x432xf32, #tpu.memory_space<vmem>>, vector<3x432xf32>,
    %34 = vector.extract_strided_slice %15 {offsets = [0, 26], sizes = [3, 432], strides = [1, 1]} : vector<3x582xf32> to vector<3x432xf32>
    %c27 = arith.constant 27 : index
    %c0_37 = arith.constant 0 : index
    %35 = vector.load %arg14[%c27, %c0_37] : memref<147x432xf32, #tpu.memory_space<vmem>>, vector<3x432xf32>
    tpu.vector_store %arg14[%c27, %c0_37], %34 {strides = array<i32>} : memref<147x432xf32, #tpu.memory_space<vmem>>, vector<3x432xf32>,
    %36 = vector.extract_strided_slice %15 {offsets = [0, 27], sizes = [3, 432], strides = [1, 1]} : vector<3x582xf32> to vector<3x432xf32>
    %c30 = arith.constant 30 : index
    %c0_38 = arith.constant 0 : index
    %37 = vector.load %arg14[%c30, %c0_38] : memref<147x432xf32, #tpu.memory_space<vmem>>, vector<3x432xf32>
    tpu.vector_store %arg14[%c30, %c0_38], %36 {strides = array<i32>} : memref<147x432xf32, #tpu.memory_space<vmem>>, vector<3x432xf32>,
    %38 = vector.extract_strided_slice %15 {offsets = [0, 28], sizes = [3, 432], strides = [1, 1]} : vector<3x582xf32> to vector<3x432xf32>
    %c33 = arith.constant 33 : index
    %c0_39 = arith.constant 0 : index
    %39 = vector.load %arg14[%c33, %c0_39] : memref<147x432xf32, #tpu.memory_space<vmem>>, vector<3x432xf32>
    tpu.vector_store %arg14[%c33, %c0_39], %38 {strides = array<i32>} : memref<147x432xf32, #tpu.memory_space<vmem>>, vector<3x432xf32>,
    %40 = vector.extract_strided_slice %15 {offsets = [0, 29], sizes = [3, 432], strides = [1, 1]} : vector<3x582xf32> to vector<3x432xf32>
    %c36 = arith.constant 36 : index
    %c0_40 = arith.constant 0 : index
    %41 = vector.load %arg14[%c36, %c0_40] : memref<147x432xf32, #tpu.memory_space<vmem>>, vector<3x432xf32>
    tpu.vector_store %arg14[%c36, %c0_40], %40 {strides = array<i32>} : memref<147x432xf32, #tpu.memory_space<vmem>>, vector<3x432xf32>,
    %42 = vector.extract_strided_slice %15 {offsets = [0, 30], sizes = [3, 432], strides = [1, 1]} : vector<3x582xf32> to vector<3x432xf32>
    %c39 = arith.constant 39 : index
    %c0_41 = arith.constant 0 : index
    %43 = vector.load %arg14[%c39, %c0_41] : memref<147x432xf32, #tpu.memory_space<vmem>>, vector<3x432xf32>
    tpu.vector_store %arg14[%c39, %c0_41], %42 {strides = array<i32>} : memref<147x432xf32, #tpu.memory_space<vmem>>, vector<3x432xf32>,
    %44 = vector.extract_strided_slice %15 {offsets = [0, 48], sizes = [3, 432], strides = [1, 1]} : vector<3x582xf32> to vector<3x432xf32>
    %c42 = arith.constant 42 : index
    %c0_42 = arith.constant 0 : index
    %45 = vector.load %arg14[%c42, %c0_42] : memref<147x432xf32, #tpu.memory_space<vmem>>, vector<3x432xf32>
    tpu.vector_store %arg14[%c42, %c0_42], %44 {strides = array<i32>} : memref<147x432xf32, #tpu.memory_space<vmem>>, vector<3x432xf32>,
    %46 = vector.extract_strided_slice %15 {offsets = [0, 49], sizes = [3, 432], strides = [1, 1]} : vector<3x582xf32> to vector<3x432xf32>
    %c45 = arith.constant 45 : index
    %c0_43 = arith.constant 0 : index
    %47 = vector.load %arg14[%c45, %c0_43] : memref<147x432xf32, #tpu.memory_space<vmem>>, vector<3x432xf32>
    tpu.vector_store %arg14[%c45, %c0_43], %46 {strides = array<i32>} : memref<147x432xf32, #tpu.memory_space<vmem>>, vector<3x432xf32>,
    %48 = vector.extract_strided_slice %15 {offsets = [0, 50], sizes = [3, 432], strides = [1, 1]} : vector<3x582xf32> to vector<3x432xf32>
    %c48 = arith.constant 48 : index
    %c0_44 = arith.constant 0 : index
    %49 = vector.load %arg14[%c48, %c0_44] : memref<147x432xf32, #tpu.memory_space<vmem>>, vector<3x432xf32>
    tpu.vector_store %arg14[%c48, %c0_44], %48 {strides = array<i32>} : memref<147x432xf32, #tpu.memory_space<vmem>>, vector<3x432xf32>,
    %50 = vector.extract_strided_slice %15 {offsets = [0, 51], sizes = [3, 432], strides = [1, 1]} : vector<3x582xf32> to vector<3x432xf32>
    %c51 = arith.constant 51 : index
    %c0_45 = arith.constant 0 : index
    %51 = vector.load %arg14[%c51, %c0_45] : memref<147x432xf32, #tpu.memory_space<vmem>>, vector<3x432xf32>
    tpu.vector_store %arg14[%c51, %c0_45], %50 {strides = array<i32>} : memref<147x432xf32, #tpu.memory_space<vmem>>, vector<3x432xf32>,
    %52 = vector.extract_strided_slice %15 {offsets = [0, 52], sizes = [3, 432], strides = [1, 1]} : vector<3x582xf32> to vector<3x432xf32>
    %c54 = arith.constant 54 : index
    %c0_46 = arith.constant 0 : index
    %53 = vector.load %arg14[%c54, %c0_46] : memref<147x432xf32, #tpu.memory_space<vmem>>, vector<3x432xf32>
    tpu.vector_store %arg14[%c54, %c0_46], %52 {strides = array<i32>} : memref<147x432xf32, #tpu.memory_space<vmem>>, vector<3x432xf32>,
    %54 = vector.extract_strided_slice %15 {offsets = [0, 53], sizes = [3, 432], strides = [1, 1]} : vector<3x582xf32> to vector<3x432xf32>
    %c57 = arith.constant 57 : index
    %c0_47 = arith.constant 0 : index
    %55 = vector.load %arg14[%c57, %c0_47] : memref<147x432xf32, #tpu.memory_space<vmem>>, vector<3x432xf32>
    tpu.vector_store %arg14[%c57, %c0_47], %54 {strides = array<i32>} : memref<147x432xf32, #tpu.memory_space<vmem>>, vector<3x432xf32>,
    %56 = vector.extract_strided_slice %15 {offsets = [0, 54], sizes = [3, 432], strides = [1, 1]} : vector<3x582xf32> to vector<3x432xf32>
    %c60 = arith.constant 60 : index
    %c0_48 = arith.constant 0 : index
    %57 = vector.load %arg14[%c60, %c0_48] : memref<147x432xf32, #tpu.memory_space<vmem>>, vector<3x432xf32>
    tpu.vector_store %arg14[%c60, %c0_48], %56 {strides = array<i32>} : memref<147x432xf32, #tpu.memory_space<vmem>>, vector<3x432xf32>,
    %58 = vector.extract_strided_slice %15 {offsets = [0, 72], sizes = [3, 432], strides = [1, 1]} : vector<3x582xf32> to vector<3x432xf32>
    %c63 = arith.constant 63 : index
    %c0_49 = arith.constant 0 : index
    %59 = vector.load %arg14[%c63, %c0_49] : memref<147x432xf32, #tpu.memory_space<vmem>>, vector<3x432xf32>
    tpu.vector_store %arg14[%c63, %c0_49], %58 {strides = array<i32>} : memref<147x432xf32, #tpu.memory_space<vmem>>, vector<3x432xf32>,
    %60 = vector.extract_strided_slice %15 {offsets = [0, 73], sizes = [3, 432], strides = [1, 1]} : vector<3x582xf32> to vector<3x432xf32>
    %c66 = arith.constant 66 : index
    %c0_50 = arith.constant 0 : index
    %61 = vector.load %arg14[%c66, %c0_50] : memref<147x432xf32, #tpu.memory_space<vmem>>, vector<3x432xf32>
    tpu.vector_store %arg14[%c66, %c0_50], %60 {strides = array<i32>} : memref<147x432xf32, #tpu.memory_space<vmem>>, vector<3x432xf32>,
    %62 = vector.extract_strided_slice %15 {offsets = [0, 74], sizes = [3, 432], strides = [1, 1]} : vector<3x582xf32> to vector<3x432xf32>
    %c69 = arith.constant 69 : index
    %c0_51 = arith.constant 0 : index
    %63 = vector.load %arg14[%c69, %c0_51] : memref<147x432xf32, #tpu.memory_space<vmem>>, vector<3x432xf32>
    tpu.vector_store %arg14[%c69, %c0_51], %62 {strides = array<i32>} : memref<147x432xf32, #tpu.memory_space<vmem>>, vector<3x432xf32>,
    %64 = vector.extract_strided_slice %15 {offsets = [0, 75], sizes = [3, 432], strides = [1, 1]} : vector<3x582xf32> to vector<3x432xf32>
    %c72 = arith.constant 72 : index
    %c0_52 = arith.constant 0 : index
    %65 = vector.load %arg14[%c72, %c0_52] : memref<147x432xf32, #tpu.memory_space<vmem>>, vector<3x432xf32>
    tpu.vector_store %arg14[%c72, %c0_52], %64 {strides = array<i32>} : memref<147x432xf32, #tpu.memory_space<vmem>>, vector<3x432xf32>,
    %66 = vector.extract_strided_slice %15 {offsets = [0, 76], sizes = [3, 432], strides = [1, 1]} : vector<3x582xf32> to vector<3x432xf32>
    %c75 = arith.constant 75 : index
    %c0_53 = arith.constant 0 : index
    %67 = vector.load %arg14[%c75, %c0_53] : memref<147x432xf32, #tpu.memory_space<vmem>>, vector<3x432xf32>
    tpu.vector_store %arg14[%c75, %c0_53], %66 {strides = array<i32>} : memref<147x432xf32, #tpu.memory_space<vmem>>, vector<3x432xf32>,
    %68 = vector.extract_strided_slice %15 {offsets = [0, 77], sizes = [3, 432], strides = [1, 1]} : vector<3x582xf32> to vector<3x432xf32>
    %c78 = arith.constant 78 : index
    %c0_54 = arith.constant 0 : index
    %69 = vector.load %arg14[%c78, %c0_54] : memref<147x432xf32, #tpu.memory_space<vmem>>, vector<3x432xf32>
    tpu.vector_store %arg14[%c78, %c0_54], %68 {strides = array<i32>} : memref<147x432xf32, #tpu.memory_space<vmem>>, vector<3x432xf32>,
    %70 = vector.extract_strided_slice %15 {offsets = [0, 78], sizes = [3, 432], strides = [1, 1]} : vector<3x582xf32> to vector<3x432xf32>
    %c81 = arith.constant 81 : index
    %c0_55 = arith.constant 0 : index
    %71 = vector.load %arg14[%c81, %c0_55] : memref<147x432xf32, #tpu.memory_space<vmem>>, vector<3x432xf32>
    tpu.vector_store %arg14[%c81, %c0_55], %70 {strides = array<i32>} : memref<147x432xf32, #tpu.memory_space<vmem>>, vector<3x432xf32>,
    %72 = vector.extract_strided_slice %15 {offsets = [0, 96], sizes = [3, 432], strides = [1, 1]} : vector<3x582xf32> to vector<3x432xf32>
    %c84 = arith.constant 84 : index
    %c0_56 = arith.constant 0 : index
    %73 = vector.load %arg14[%c84, %c0_56] : memref<147x432xf32, #tpu.memory_space<vmem>>, vector<3x432xf32>
    tpu.vector_store %arg14[%c84, %c0_56], %72 {strides = array<i32>} : memref<147x432xf32, #tpu.memory_space<vmem>>, vector<3x432xf32>,
    %74 = vector.extract_strided_slice %15 {offsets = [0, 97], sizes = [3, 432], strides = [1, 1]} : vector<3x582xf32> to vector<3x432xf32>
    %c87 = arith.constant 87 : index
    %c0_57 = arith.constant 0 : index
    %75 = vector.load %arg14[%c87, %c0_57] : memref<147x432xf32, #tpu.memory_space<vmem>>, vector<3x432xf32>
    tpu.vector_store %arg14[%c87, %c0_57], %74 {strides = array<i32>} : memref<147x432xf32, #tpu.memory_space<vmem>>, vector<3x432xf32>,
    %76 = vector.extract_strided_slice %15 {offsets = [0, 98], sizes = [3, 432], strides = [1, 1]} : vector<3x582xf32> to vector<3x432xf32>
    %c90 = arith.constant 90 : index
    %c0_58 = arith.constant 0 : index
    %77 = vector.load %arg14[%c90, %c0_58] : memref<147x432xf32, #tpu.memory_space<vmem>>, vector<3x432xf32>
    tpu.vector_store %arg14[%c90, %c0_58], %76 {strides = array<i32>} : memref<147x432xf32, #tpu.memory_space<vmem>>, vector<3x432xf32>,
    %78 = vector.extract_strided_slice %15 {offsets = [0, 99], sizes = [3, 432], strides = [1, 1]} : vector<3x582xf32> to vector<3x432xf32>
    %c93 = arith.constant 93 : index
    %c0_59 = arith.constant 0 : index
    %79 = vector.load %arg14[%c93, %c0_59] : memref<147x432xf32, #tpu.memory_space<vmem>>, vector<3x432xf32>
    tpu.vector_store %arg14[%c93, %c0_59], %78 {strides = array<i32>} : memref<147x432xf32, #tpu.memory_space<vmem>>, vector<3x432xf32>,
    %80 = vector.extract_strided_slice %15 {offsets = [0, 100], sizes = [3, 432], strides = [1, 1]} : vector<3x582xf32> to vector<3x432xf32>
    %c96 = arith.constant 96 : index
    %c0_60 = arith.constant 0 : index
    %81 = vector.load %arg14[%c96, %c0_60] : memref<147x432xf32, #tpu.memory_space<vmem>>, vector<3x432xf32>
    tpu.vector_store %arg14[%c96, %c0_60], %80 {strides = array<i32>} : memref<147x432xf32, #tpu.memory_space<vmem>>, vector<3x432xf32>,
    %82 = vector.extract_strided_slice %15 {offsets = [0, 101], sizes = [3, 432], strides = [1, 1]} : vector<3x582xf32> to vector<3x432xf32>
    %c99 = arith.constant 99 : index
    %c0_61 = arith.constant 0 : index
    %83 = vector.load %arg14[%c99, %c0_61] : memref<147x432xf32, #tpu.memory_space<vmem>>, vector<3x432xf32>
    tpu.vector_store %arg14[%c99, %c0_61], %82 {strides = array<i32>} : memref<147x432xf32, #tpu.memory_space<vmem>>, vector<3x432xf32>,
    %84 = vector.extract_strided_slice %15 {offsets = [0, 102], sizes = [3, 432], strides = [1, 1]} : vector<3x582xf32> to vector<3x432xf32>
    %c102 = arith.constant 102 : index
    %c0_62 = arith.constant 0 : index
    %85 = vector.load %arg14[%c102, %c0_62] : memref<147x432xf32, #tpu.memory_space<vmem>>, vector<3x432xf32>
    tpu.vector_store %arg14[%c102, %c0_62], %84 {strides = array<i32>} : memref<147x432xf32, #tpu.memory_space<vmem>>, vector<3x432xf32>,
    %86 = vector.extract_strided_slice %15 {offsets = [0, 120], sizes = [3, 432], strides = [1, 1]} : vector<3x582xf32> to vector<3x432xf32>
    %c105 = arith.constant 105 : index
    %c0_63 = arith.constant 0 : index
    %87 = vector.load %arg14[%c105, %c0_63] : memref<147x432xf32, #tpu.memory_space<vmem>>, vector<3x432xf32>
    tpu.vector_store %arg14[%c105, %c0_63], %86 {strides = array<i32>} : memref<147x432xf32, #tpu.memory_space<vmem>>, vector<3x432xf32>,
    %88 = vector.extract_strided_slice %15 {offsets = [0, 121], sizes = [3, 432], strides = [1, 1]} : vector<3x582xf32> to vector<3x432xf32>
    %c108 = arith.constant 108 : index
    %c0_64 = arith.constant 0 : index
    %89 = vector.load %arg14[%c108, %c0_64] : memref<147x432xf32, #tpu.memory_space<vmem>>, vector<3x432xf32>
    tpu.vector_store %arg14[%c108, %c0_64], %88 {strides = array<i32>} : memref<147x432xf32, #tpu.memory_space<vmem>>, vector<3x432xf32>,
    %90 = vector.extract_strided_slice %15 {offsets = [0, 122], sizes = [3, 432], strides = [1, 1]} : vector<3x582xf32> to vector<3x432xf32>
    %c111 = arith.constant 111 : index
    %c0_65 = arith.constant 0 : index
    %91 = vector.load %arg14[%c111, %c0_65] : memref<147x432xf32, #tpu.memory_space<vmem>>, vector<3x432xf32>
    tpu.vector_store %arg14[%c111, %c0_65], %90 {strides = array<i32>} : memref<147x432xf32, #tpu.memory_space<vmem>>, vector<3x432xf32>,
    %92 = vector.extract_strided_slice %15 {offsets = [0, 123], sizes = [3, 432], strides = [1, 1]} : vector<3x582xf32> to vector<3x432xf32>
    %c114 = arith.constant 114 : index
    %c0_66 = arith.constant 0 : index
    %93 = vector.load %arg14[%c114, %c0_66] : memref<147x432xf32, #tpu.memory_space<vmem>>, vector<3x432xf32>
    tpu.vector_store %arg14[%c114, %c0_66], %92 {strides = array<i32>} : memref<147x432xf32, #tpu.memory_space<vmem>>, vector<3x432xf32>,
    %94 = vector.extract_strided_slice %15 {offsets = [0, 124], sizes = [3, 432], strides = [1, 1]} : vector<3x582xf32> to vector<3x432xf32>
    %c117 = arith.constant 117 : index
    %c0_67 = arith.constant 0 : index
    %95 = vector.load %arg14[%c117, %c0_67] : memref<147x432xf32, #tpu.memory_space<vmem>>, vector<3x432xf32>
    tpu.vector_store %arg14[%c117, %c0_67], %94 {strides = array<i32>} : memref<147x432xf32, #tpu.memory_space<vmem>>, vector<3x432xf32>,
    %96 = vector.extract_strided_slice %15 {offsets = [0, 125], sizes = [3, 432], strides = [1, 1]} : vector<3x582xf32> to vector<3x432xf32>
    %c120 = arith.constant 120 : index
    %c0_68 = arith.constant 0 : index
    %97 = vector.load %arg14[%c120, %c0_68] : memref<147x432xf32, #tpu.memory_space<vmem>>, vector<3x432xf32>
    tpu.vector_store %arg14[%c120, %c0_68], %96 {strides = array<i32>} : memref<147x432xf32, #tpu.memory_space<vmem>>, vector<3x432xf32>,
    %98 = vector.extract_strided_slice %15 {offsets = [0, 126], sizes = [3, 432], strides = [1, 1]} : vector<3x582xf32> to vector<3x432xf32>
    %c123 = arith.constant 123 : index
    %c0_69 = arith.constant 0 : index
    %99 = vector.load %arg14[%c123, %c0_69] : memref<147x432xf32, #tpu.memory_space<vmem>>, vector<3x432xf32>
    tpu.vector_store %arg14[%c123, %c0_69], %98 {strides = array<i32>} : memref<147x432xf32, #tpu.memory_space<vmem>>, vector<3x432xf32>,
    %100 = vector.extract_strided_slice %15 {offsets = [0, 144], sizes = [3, 432], strides = [1, 1]} : vector<3x582xf32> to vector<3x432xf32>
    %c126 = arith.constant 126 : index
    %c0_70 = arith.constant 0 : index
    %101 = vector.load %arg14[%c126, %c0_70] : memref<147x432xf32, #tpu.memory_space<vmem>>, vector<3x432xf32>
    tpu.vector_store %arg14[%c126, %c0_70], %100 {strides = array<i32>} : memref<147x432xf32, #tpu.memory_space<vmem>>, vector<3x432xf32>,
    %102 = vector.extract_strided_slice %15 {offsets = [0, 145], sizes = [3, 432], strides = [1, 1]} : vector<3x582xf32> to vector<3x432xf32>
    %c129 = arith.constant 129 : index
    %c0_71 = arith.constant 0 : index
    %103 = vector.load %arg14[%c129, %c0_71] : memref<147x432xf32, #tpu.memory_space<vmem>>, vector<3x432xf32>
    tpu.vector_store %arg14[%c129, %c0_71], %102 {strides = array<i32>} : memref<147x432xf32, #tpu.memory_space<vmem>>, vector<3x432xf32>,
    %104 = vector.extract_strided_slice %15 {offsets = [0, 146], sizes = [3, 432], strides = [1, 1]} : vector<3x582xf32> to vector<3x432xf32>
    %c132 = arith.constant 132 : index
    %c0_72 = arith.constant 0 : index
    %105 = vector.load %arg14[%c132, %c0_72] : memref<147x432xf32, #tpu.memory_space<vmem>>, vector<3x432xf32>
    tpu.vector_store %arg14[%c132, %c0_72], %104 {strides = array<i32>} : memref<147x432xf32, #tpu.memory_space<vmem>>, vector<3x432xf32>,
    %106 = vector.extract_strided_slice %15 {offsets = [0, 147], sizes = [3, 432], strides = [1, 1]} : vector<3x582xf32> to vector<3x432xf32>
    %c135 = arith.constant 135 : index
    %c0_73 = arith.constant 0 : index
    %107 = vector.load %arg14[%c135, %c0_73] : memref<147x432xf32, #tpu.memory_space<vmem>>, vector<3x432xf32>
    tpu.vector_store %arg14[%c135, %c0_73], %106 {strides = array<i32>} : memref<147x432xf32, #tpu.memory_space<vmem>>, vector<3x432xf32>,
    %108 = vector.extract_strided_slice %15 {offsets = [0, 148], sizes = [3, 432], strides = [1, 1]} : vector<3x582xf32> to vector<3x432xf32>
    %c138 = arith.constant 138 : index
    %c0_74 = arith.constant 0 : index
    %109 = vector.load %arg14[%c138, %c0_74] : memref<147x432xf32, #tpu.memory_space<vmem>>, vector<3x432xf32>
    tpu.vector_store %arg14[%c138, %c0_74], %108 {strides = array<i32>} : memref<147x432xf32, #tpu.memory_space<vmem>>, vector<3x432xf32>,
    %110 = vector.extract_strided_slice %15 {offsets = [0, 149], sizes = [3, 432], strides = [1, 1]} : vector<3x582xf32> to vector<3x432xf32>
    %c141 = arith.constant 141 : index
    %c0_75 = arith.constant 0 : index
    %111 = vector.load %arg14[%c141, %c0_75] : memref<147x432xf32, #tpu.memory_space<vmem>>, vector<3x432xf32>
    tpu.vector_store %arg14[%c141, %c0_75], %110 {strides = array<i32>} : memref<147x432xf32, #tpu.memory_space<vmem>>, vector<3x432xf32>,
    %112 = vector.extract_strided_slice %15 {offsets = [0, 150], sizes = [3, 432], strides = [1, 1]} : vector<3x582xf32> to vector<3x432xf32>
    %c144 = arith.constant 144 : index
    %c0_76 = arith.constant 0 : index
    %113 = vector.load %arg14[%c144, %c0_76] : memref<147x432xf32, #tpu.memory_space<vmem>>, vector<3x432xf32>
    tpu.vector_store %arg14[%c144, %c0_76], %112 {strides = array<i32>} : memref<147x432xf32, #tpu.memory_space<vmem>>, vector<3x432xf32>,
    %c0_77 = arith.constant 0 : index
    %c0_78 = arith.constant 0 : index
    %114 = vector.load %arg14[%c0_77, %c0_78] : memref<147x432xf32, #tpu.memory_space<vmem>>, vector<147x432xf32>
    %115 = arith.truncf %114 : vector<147x432xf32> to vector<147x432xbf16>
    %cst_79 = arith.constant dense<0.000000e+00> : vector<8x432xf32>
    %116 = tpu.matmul %0, %115, %cst_79 {dimension_numbers = #tpu.dot_dimension_numbers<[1], [0], [0], [1], [0, 0, 1, 1], [], []>} : vector<8x147xbf16>, vector<147x432xbf16>, vector<8x432xf32> -> vector<8x432xf32>
    %117 = vector.broadcast %1 : vector<8x1xf32> to vector<8x432xf32>
    %118 = arith.addf %116, %117 : vector<8x432xf32>
    %119 = vector.extract_strided_slice %118 {offsets = [0, 0], sizes = [8, 408], strides = [1, 1]} : vector<8x432xf32> to vector<8x408xf32>
    %120 = vector.extract_strided_slice %118 {offsets = [0, 24], sizes = [8, 408], strides = [1, 1]} : vector<8x432xf32> to vector<8x408xf32>
    %121 = arith.maximumf %119, %120 : vector<8x408xf32>
    %122 = vector.extract_strided_slice %121 {offsets = [0, 0], sizes = [8, 407], strides = [1, 1]} : vector<8x408xf32> to vector<8x407xf32>
    %123 = vector.extract_strided_slice %121 {offsets = [0, 1], sizes = [8, 407], strides = [1, 1]} : vector<8x408xf32> to vector<8x407xf32>
    %124 = arith.maximumf %122, %123 : vector<8x407xf32>
    %cst_80 = arith.constant 0.000000e+00 : f32
    %125 = vector.broadcast %cst_80 : f32 to vector<8x407xf32>
    %126 = arith.maximumf %124, %125 : vector<8x407xf32>
    %127 = arith.truncf %126 : vector<8x407xf32> to vector<8x407xbf16>
    %cst_81 = arith.constant dense<0.000000e+00> : vector<8x85xf32>
    %128 = tpu.matmul %127, %2, %cst_81 {dimension_numbers = #tpu.dot_dimension_numbers<[1], [0], [0], [1], [0, 0, 1, 1], [], []>} : vector<8x407xbf16>, vector<407x85xbf16>, vector<8x85xf32> -> vector<8x85xf32>
    %129 = vector.extract_strided_slice %128 {offsets = [0, 0], sizes = [8, 45], strides = [1, 1]} : vector<8x85xf32> to vector<8x45xf32>
    %c0_82 = arith.constant 0 : index
    %c0_83 = arith.constant 0 : index
    %130 = vector.load %arg15[%c0_82, %c0_83] : memref<200x45xf32, #tpu.memory_space<vmem>>, vector<8x45xf32>
    tpu.vector_store %arg15[%c0_82, %c0_83], %129 {strides = array<i32>} : memref<200x45xf32, #tpu.memory_space<vmem>>, vector<8x45xf32>,
    %131 = vector.extract_strided_slice %128 {offsets = [0, 1], sizes = [8, 45], strides = [1, 1]} : vector<8x85xf32> to vector<8x45xf32>
    %c8 = arith.constant 8 : index
    %c0_84 = arith.constant 0 : index
    %132 = vector.load %arg15[%c8, %c0_84] : memref<200x45xf32, #tpu.memory_space<vmem>>, vector<8x45xf32>
    tpu.vector_store %arg15[%c8, %c0_84], %131 {strides = array<i32>} : memref<200x45xf32, #tpu.memory_space<vmem>>, vector<8x45xf32>,
    %133 = vector.extract_strided_slice %128 {offsets = [0, 2], sizes = [8, 45], strides = [1, 1]} : vector<8x85xf32> to vector<8x45xf32>
    %c16 = arith.constant 16 : index
    %c0_85 = arith.constant 0 : index
    %134 = vector.load %arg15[%c16, %c0_85] : memref<200x45xf32, #tpu.memory_space<vmem>>, vector<8x45xf32>
    tpu.vector_store %arg15[%c16, %c0_85], %133 {strides = array<i32>} : memref<200x45xf32, #tpu.memory_space<vmem>>, vector<8x45xf32>,
    %135 = vector.extract_strided_slice %128 {offsets = [0, 3], sizes = [8, 45], strides = [1, 1]} : vector<8x85xf32> to vector<8x45xf32>
    %c24_86 = arith.constant 24 : index
    %c0_87 = arith.constant 0 : index
    %136 = vector.load %arg15[%c24_86, %c0_87] : memref<200x45xf32, #tpu.memory_space<vmem>>, vector<8x45xf32>
    tpu.vector_store %arg15[%c24_86, %c0_87], %135 {strides = array<i32>} : memref<200x45xf32, #tpu.memory_space<vmem>>, vector<8x45xf32>,
    %137 = vector.extract_strided_slice %128 {offsets = [0, 4], sizes = [8, 45], strides = [1, 1]} : vector<8x85xf32> to vector<8x45xf32>
    %c32 = arith.constant 32 : index
    %c0_88 = arith.constant 0 : index
    %138 = vector.load %arg15[%c32, %c0_88] : memref<200x45xf32, #tpu.memory_space<vmem>>, vector<8x45xf32>
    tpu.vector_store %arg15[%c32, %c0_88], %137 {strides = array<i32>} : memref<200x45xf32, #tpu.memory_space<vmem>>, vector<8x45xf32>,
    %139 = vector.extract_strided_slice %128 {offsets = [0, 9], sizes = [8, 45], strides = [1, 1]} : vector<8x85xf32> to vector<8x45xf32>
    %c40 = arith.constant 40 : index
    %c0_89 = arith.constant 0 : index
    %140 = vector.load %arg15[%c40, %c0_89] : memref<200x45xf32, #tpu.memory_space<vmem>>, vector<8x45xf32>
    tpu.vector_store %arg15[%c40, %c0_89], %139 {strides = array<i32>} : memref<200x45xf32, #tpu.memory_space<vmem>>, vector<8x45xf32>,
    %141 = vector.extract_strided_slice %128 {offsets = [0, 10], sizes = [8, 45], strides = [1, 1]} : vector<8x85xf32> to vector<8x45xf32>
    %c48_90 = arith.constant 48 : index
    %c0_91 = arith.constant 0 : index
    %142 = vector.load %arg15[%c48_90, %c0_91] : memref<200x45xf32, #tpu.memory_space<vmem>>, vector<8x45xf32>
    tpu.vector_store %arg15[%c48_90, %c0_91], %141 {strides = array<i32>} : memref<200x45xf32, #tpu.memory_space<vmem>>, vector<8x45xf32>,
    %143 = vector.extract_strided_slice %128 {offsets = [0, 11], sizes = [8, 45], strides = [1, 1]} : vector<8x85xf32> to vector<8x45xf32>
    %c56 = arith.constant 56 : index
    %c0_92 = arith.constant 0 : index
    %144 = vector.load %arg15[%c56, %c0_92] : memref<200x45xf32, #tpu.memory_space<vmem>>, vector<8x45xf32>
    tpu.vector_store %arg15[%c56, %c0_92], %143 {strides = array<i32>} : memref<200x45xf32, #tpu.memory_space<vmem>>, vector<8x45xf32>,
    %145 = vector.extract_strided_slice %128 {offsets = [0, 12], sizes = [8, 45], strides = [1, 1]} : vector<8x85xf32> to vector<8x45xf32>
    %c64 = arith.constant 64 : index
    %c0_93 = arith.constant 0 : index
    %146 = vector.load %arg15[%c64, %c0_93] : memref<200x45xf32, #tpu.memory_space<vmem>>, vector<8x45xf32>
    tpu.vector_store %arg15[%c64, %c0_93], %145 {strides = array<i32>} : memref<200x45xf32, #tpu.memory_space<vmem>>, vector<8x45xf32>,
    %147 = vector.extract_strided_slice %128 {offsets = [0, 13], sizes = [8, 45], strides = [1, 1]} : vector<8x85xf32> to vector<8x45xf32>
    %c72_94 = arith.constant 72 : index
    %c0_95 = arith.constant 0 : index
    %148 = vector.load %arg15[%c72_94, %c0_95] : memref<200x45xf32, #tpu.memory_space<vmem>>, vector<8x45xf32>
    tpu.vector_store %arg15[%c72_94, %c0_95], %147 {strides = array<i32>} : memref<200x45xf32, #tpu.memory_space<vmem>>, vector<8x45xf32>,
    %149 = vector.extract_strided_slice %128 {offsets = [0, 18], sizes = [8, 45], strides = [1, 1]} : vector<8x85xf32> to vector<8x45xf32>
    %c80 = arith.constant 80 : index
    %c0_96 = arith.constant 0 : index
    %150 = vector.load %arg15[%c80, %c0_96] : memref<200x45xf32, #tpu.memory_space<vmem>>, vector<8x45xf32>
    tpu.vector_store %arg15[%c80, %c0_96], %149 {strides = array<i32>} : memref<200x45xf32, #tpu.memory_space<vmem>>, vector<8x45xf32>,
    %151 = vector.extract_strided_slice %128 {offsets = [0, 19], sizes = [8, 45], strides = [1, 1]} : vector<8x85xf32> to vector<8x45xf32>
    %c88 = arith.constant 88 : index
    %c0_97 = arith.constant 0 : index
    %152 = vector.load %arg15[%c88, %c0_97] : memref<200x45xf32, #tpu.memory_space<vmem>>, vector<8x45xf32>
    tpu.vector_store %arg15[%c88, %c0_97], %151 {strides = array<i32>} : memref<200x45xf32, #tpu.memory_space<vmem>>, vector<8x45xf32>,
    %153 = vector.extract_strided_slice %128 {offsets = [0, 20], sizes = [8, 45], strides = [1, 1]} : vector<8x85xf32> to vector<8x45xf32>
    %c96_98 = arith.constant 96 : index
    %c0_99 = arith.constant 0 : index
    %154 = vector.load %arg15[%c96_98, %c0_99] : memref<200x45xf32, #tpu.memory_space<vmem>>, vector<8x45xf32>
    tpu.vector_store %arg15[%c96_98, %c0_99], %153 {strides = array<i32>} : memref<200x45xf32, #tpu.memory_space<vmem>>, vector<8x45xf32>,
    %155 = vector.extract_strided_slice %128 {offsets = [0, 21], sizes = [8, 45], strides = [1, 1]} : vector<8x85xf32> to vector<8x45xf32>
    %c104 = arith.constant 104 : index
    %c0_100 = arith.constant 0 : index
    %156 = vector.load %arg15[%c104, %c0_100] : memref<200x45xf32, #tpu.memory_space<vmem>>, vector<8x45xf32>
    tpu.vector_store %arg15[%c104, %c0_100], %155 {strides = array<i32>} : memref<200x45xf32, #tpu.memory_space<vmem>>, vector<8x45xf32>,
    %157 = vector.extract_strided_slice %128 {offsets = [0, 22], sizes = [8, 45], strides = [1, 1]} : vector<8x85xf32> to vector<8x45xf32>
    %c112 = arith.constant 112 : index
    %c0_101 = arith.constant 0 : index
    %158 = vector.load %arg15[%c112, %c0_101] : memref<200x45xf32, #tpu.memory_space<vmem>>, vector<8x45xf32>
    tpu.vector_store %arg15[%c112, %c0_101], %157 {strides = array<i32>} : memref<200x45xf32, #tpu.memory_space<vmem>>, vector<8x45xf32>,
    %159 = vector.extract_strided_slice %128 {offsets = [0, 27], sizes = [8, 45], strides = [1, 1]} : vector<8x85xf32> to vector<8x45xf32>
    %c120_102 = arith.constant 120 : index
    %c0_103 = arith.constant 0 : index
    %160 = vector.load %arg15[%c120_102, %c0_103] : memref<200x45xf32, #tpu.memory_space<vmem>>, vector<8x45xf32>
    tpu.vector_store %arg15[%c120_102, %c0_103], %159 {strides = array<i32>} : memref<200x45xf32, #tpu.memory_space<vmem>>, vector<8x45xf32>,
    %161 = vector.extract_strided_slice %128 {offsets = [0, 28], sizes = [8, 45], strides = [1, 1]} : vector<8x85xf32> to vector<8x45xf32>
    %c128 = arith.constant 128 : index
    %c0_104 = arith.constant 0 : index
    %162 = vector.load %arg15[%c128, %c0_104] : memref<200x45xf32, #tpu.memory_space<vmem>>, vector<8x45xf32>
    tpu.vector_store %arg15[%c128, %c0_104], %161 {strides = array<i32>} : memref<200x45xf32, #tpu.memory_space<vmem>>, vector<8x45xf32>,
    %163 = vector.extract_strided_slice %128 {offsets = [0, 29], sizes = [8, 45], strides = [1, 1]} : vector<8x85xf32> to vector<8x45xf32>
    %c136 = arith.constant 136 : index
    %c0_105 = arith.constant 0 : index
    %164 = vector.load %arg15[%c136, %c0_105] : memref<200x45xf32, #tpu.memory_space<vmem>>, vector<8x45xf32>
    tpu.vector_store %arg15[%c136, %c0_105], %163 {strides = array<i32>} : memref<200x45xf32, #tpu.memory_space<vmem>>, vector<8x45xf32>,
    %165 = vector.extract_strided_slice %128 {offsets = [0, 30], sizes = [8, 45], strides = [1, 1]} : vector<8x85xf32> to vector<8x45xf32>
    %c144_106 = arith.constant 144 : index
    %c0_107 = arith.constant 0 : index
    %166 = vector.load %arg15[%c144_106, %c0_107] : memref<200x45xf32, #tpu.memory_space<vmem>>, vector<8x45xf32>
    tpu.vector_store %arg15[%c144_106, %c0_107], %165 {strides = array<i32>} : memref<200x45xf32, #tpu.memory_space<vmem>>, vector<8x45xf32>,
    %167 = vector.extract_strided_slice %128 {offsets = [0, 31], sizes = [8, 45], strides = [1, 1]} : vector<8x85xf32> to vector<8x45xf32>
    %c152 = arith.constant 152 : index
    %c0_108 = arith.constant 0 : index
    %168 = vector.load %arg15[%c152, %c0_108] : memref<200x45xf32, #tpu.memory_space<vmem>>, vector<8x45xf32>
    tpu.vector_store %arg15[%c152, %c0_108], %167 {strides = array<i32>} : memref<200x45xf32, #tpu.memory_space<vmem>>, vector<8x45xf32>,
    %169 = vector.extract_strided_slice %128 {offsets = [0, 36], sizes = [8, 45], strides = [1, 1]} : vector<8x85xf32> to vector<8x45xf32>
    %c160 = arith.constant 160 : index
    %c0_109 = arith.constant 0 : index
    %170 = vector.load %arg15[%c160, %c0_109] : memref<200x45xf32, #tpu.memory_space<vmem>>, vector<8x45xf32>
    tpu.vector_store %arg15[%c160, %c0_109], %169 {strides = array<i32>} : memref<200x45xf32, #tpu.memory_space<vmem>>, vector<8x45xf32>,
    %171 = vector.extract_strided_slice %128 {offsets = [0, 37], sizes = [8, 45], strides = [1, 1]} : vector<8x85xf32> to vector<8x45xf32>
    %c168 = arith.constant 168 : index
    %c0_110 = arith.constant 0 : index
    %172 = vector.load %arg15[%c168, %c0_110] : memref<200x45xf32, #tpu.memory_space<vmem>>, vector<8x45xf32>
    tpu.vector_store %arg15[%c168, %c0_110], %171 {strides = array<i32>} : memref<200x45xf32, #tpu.memory_space<vmem>>, vector<8x45xf32>,
    %173 = vector.extract_strided_slice %128 {offsets = [0, 38], sizes = [8, 45], strides = [1, 1]} : vector<8x85xf32> to vector<8x45xf32>
    %c176 = arith.constant 176 : index
    %c0_111 = arith.constant 0 : index
    %174 = vector.load %arg15[%c176, %c0_111] : memref<200x45xf32, #tpu.memory_space<vmem>>, vector<8x45xf32>
    tpu.vector_store %arg15[%c176, %c0_111], %173 {strides = array<i32>} : memref<200x45xf32, #tpu.memory_space<vmem>>, vector<8x45xf32>,
    %175 = vector.extract_strided_slice %128 {offsets = [0, 39], sizes = [8, 45], strides = [1, 1]} : vector<8x85xf32> to vector<8x45xf32>
    %c184 = arith.constant 184 : index
    %c0_112 = arith.constant 0 : index
    %176 = vector.load %arg15[%c184, %c0_112] : memref<200x45xf32, #tpu.memory_space<vmem>>, vector<8x45xf32>
    tpu.vector_store %arg15[%c184, %c0_112], %175 {strides = array<i32>} : memref<200x45xf32, #tpu.memory_space<vmem>>, vector<8x45xf32>,
    %177 = vector.extract_strided_slice %128 {offsets = [0, 40], sizes = [8, 45], strides = [1, 1]} : vector<8x85xf32> to vector<8x45xf32>
    %c192 = arith.constant 192 : index
    %c0_113 = arith.constant 0 : index
    %178 = vector.load %arg15[%c192, %c0_113] : memref<200x45xf32, #tpu.memory_space<vmem>>, vector<8x45xf32>
    tpu.vector_store %arg15[%c192, %c0_113], %177 {strides = array<i32>} : memref<200x45xf32, #tpu.memory_space<vmem>>, vector<8x45xf32>,
    %c0_114 = arith.constant 0 : index
    %c0_115 = arith.constant 0 : index
    %179 = vector.load %arg15[%c0_114, %c0_115] : memref<200x45xf32, #tpu.memory_space<vmem>>, vector<200x45xf32>
    %180 = arith.truncf %179 : vector<200x45xf32> to vector<200x45xbf16>
    %cst_116 = arith.constant dense<0.000000e+00> : vector<10x45xf32>
    %181 = tpu.matmul %3, %180, %cst_116 {dimension_numbers = #tpu.dot_dimension_numbers<[1], [0], [0], [1], [0, 0, 1, 1], [], []>} : vector<10x200xbf16>, vector<200x45xbf16>, vector<10x45xf32> -> vector<10x45xf32>
    %182 = vector.broadcast %4 : vector<10x1xf32> to vector<10x45xf32>
    %183 = arith.addf %181, %182 : vector<10x45xf32>
    %184 = vector.extract_strided_slice %183 {offsets = [0, 0], sizes = [10, 36], strides = [1, 1]} : vector<10x45xf32> to vector<10x36xf32>
    %185 = vector.extract_strided_slice %183 {offsets = [0, 9], sizes = [10, 36], strides = [1, 1]} : vector<10x45xf32> to vector<10x36xf32>
    %186 = arith.maximumf %184, %185 : vector<10x36xf32>
    %187 = vector.extract_strided_slice %186 {offsets = [0, 0], sizes = [10, 35], strides = [1, 1]} : vector<10x36xf32> to vector<10x35xf32>
    %188 = vector.extract_strided_slice %186 {offsets = [0, 1], sizes = [10, 35], strides = [1, 1]} : vector<10x36xf32> to vector<10x35xf32>
    %189 = arith.maximumf %187, %188 : vector<10x35xf32>
    %cst_117 = arith.constant 0.000000e+00 : f32
    %190 = vector.broadcast %cst_117 : f32 to vector<10x35xf32>
    %191 = arith.maximumf %189, %190 : vector<10x35xf32>
    %cst_118 = arith.constant dense<0.000000e+00> : vector<10x1xf32>
    %192 = tpu.matmul %191, %5, %cst_118 {dimension_numbers = #tpu.dot_dimension_numbers<[1], [0], [0], [1], [0, 0, 1, 1], [], []>} : vector<10x35xf32>, vector<35x1xf32>, vector<10x1xf32> -> vector<10x1xf32>
    %cst_119 = arith.constant dense<0.000000e+00> : vector<32x1xf32>
    %193 = tpu.matmul %6, %192, %cst_119 {dimension_numbers = #tpu.dot_dimension_numbers<[1], [0], [0], [1], [0, 0, 1, 1], [], []>} : vector<32x10xf32>, vector<10x1xf32>, vector<32x1xf32> -> vector<32x1xf32>
    %194 = arith.addf %193, %7 : vector<32x1xf32>
    %cst_120 = arith.constant 0.000000e+00 : f32
    %195 = vector.broadcast %cst_120 : f32 to vector<32x1xf32>
    %196 = arith.maximumf %194, %195 : vector<32x1xf32>
    %cst_121 = arith.constant dense<0.000000e+00> : vector<6x1xf32>
    %197 = tpu.matmul %8, %196, %cst_121 {dimension_numbers = #tpu.dot_dimension_numbers<[1], [0], [0], [1], [0, 0, 1, 1], [], []>} : vector<6x32xf32>, vector<32x1xf32>, vector<6x1xf32> -> vector<6x1xf32>
    %198 = arith.addf %197, %9 : vector<6x1xf32>
    %c0_122 = arith.constant 0 : index
    %c0_123 = arith.constant 0 : index
    %c0_124 = arith.constant 0 : index
    %199 = vector.load %arg12[%c0_122, %c0_123, %c0_124] : memref<2x6x1xf32, #tpu.memory_space<vmem>>, vector<1x6x1xf32>
    %200 = vector.shape_cast %199 : vector<1x6x1xf32> to vector<6x1xf32>
    %201 = vector.shape_cast %198 : vector<6x1xf32> to vector<1x6x1xf32>
    tpu.vector_store %arg12[%c0_122, %c0_123, %c0_124], %201 {strides = array<i32>} : memref<2x6x1xf32, #tpu.memory_space<vmem>>, vector<1x6x1xf32>,
    %c1 = arith.constant 1 : index
    %c0_125 = arith.constant 0 : index
    %c0_126 = arith.constant 0 : index
    %202 = vector.load %arg1[%c1, %c0_125, %c0_126] : memref<2x3x576xf32, #tpu.memory_space<vmem>>, vector<1x3x576xf32>
    %203 = vector.shape_cast %202 : vector<1x3x576xf32> to vector<3x576xf32>
    %c0_127 = arith.constant 0 : index
    %c0_128 = arith.constant 0 : index
    %204 = vector.load %arg13[%c0_127, %c0_128] : memref<3x582xf32, #tpu.memory_space<vmem>>, vector<3x576xf32>
    tpu.vector_store %arg13[%c0_127, %c0_128], %203 {strides = array<i32>} : memref<3x582xf32, #tpu.memory_space<vmem>>, vector<3x576xf32>,
    %c0_129 = arith.constant 0 : index
    %c0_130 = arith.constant 0 : index
    %205 = vector.load %arg13[%c0_129, %c0_130] : memref<3x582xf32, #tpu.memory_space<vmem>>, vector<3x582xf32>
    %206 = vector.extract_strided_slice %205 {offsets = [0, 0], sizes = [3, 432], strides = [1, 1]} : vector<3x582xf32> to vector<3x432xf32>
    %c0_131 = arith.constant 0 : index
    %c0_132 = arith.constant 0 : index
    %207 = vector.load %arg14[%c0_131, %c0_132] : memref<147x432xf32, #tpu.memory_space<vmem>>, vector<3x432xf32>
    tpu.vector_store %arg14[%c0_131, %c0_132], %206 {strides = array<i32>} : memref<147x432xf32, #tpu.memory_space<vmem>>, vector<3x432xf32>,
    %208 = vector.extract_strided_slice %205 {offsets = [0, 1], sizes = [3, 432], strides = [1, 1]} : vector<3x582xf32> to vector<3x432xf32>
    %c3_133 = arith.constant 3 : index
    %c0_134 = arith.constant 0 : index
    %209 = vector.load %arg14[%c3_133, %c0_134] : memref<147x432xf32, #tpu.memory_space<vmem>>, vector<3x432xf32>
    tpu.vector_store %arg14[%c3_133, %c0_134], %208 {strides = array<i32>} : memref<147x432xf32, #tpu.memory_space<vmem>>, vector<3x432xf32>,
    %210 = vector.extract_strided_slice %205 {offsets = [0, 2], sizes = [3, 432], strides = [1, 1]} : vector<3x582xf32> to vector<3x432xf32>
    %c6_135 = arith.constant 6 : index
    %c0_136 = arith.constant 0 : index
    %211 = vector.load %arg14[%c6_135, %c0_136] : memref<147x432xf32, #tpu.memory_space<vmem>>, vector<3x432xf32>
    tpu.vector_store %arg14[%c6_135, %c0_136], %210 {strides = array<i32>} : memref<147x432xf32, #tpu.memory_space<vmem>>, vector<3x432xf32>,
    %212 = vector.extract_strided_slice %205 {offsets = [0, 3], sizes = [3, 432], strides = [1, 1]} : vector<3x582xf32> to vector<3x432xf32>
    %c9_137 = arith.constant 9 : index
    %c0_138 = arith.constant 0 : index
    %213 = vector.load %arg14[%c9_137, %c0_138] : memref<147x432xf32, #tpu.memory_space<vmem>>, vector<3x432xf32>
    tpu.vector_store %arg14[%c9_137, %c0_138], %212 {strides = array<i32>} : memref<147x432xf32, #tpu.memory_space<vmem>>, vector<3x432xf32>,
    %214 = vector.extract_strided_slice %205 {offsets = [0, 4], sizes = [3, 432], strides = [1, 1]} : vector<3x582xf32> to vector<3x432xf32>
    %c12_139 = arith.constant 12 : index
    %c0_140 = arith.constant 0 : index
    %215 = vector.load %arg14[%c12_139, %c0_140] : memref<147x432xf32, #tpu.memory_space<vmem>>, vector<3x432xf32>
    tpu.vector_store %arg14[%c12_139, %c0_140], %214 {strides = array<i32>} : memref<147x432xf32, #tpu.memory_space<vmem>>, vector<3x432xf32>,
    %216 = vector.extract_strided_slice %205 {offsets = [0, 5], sizes = [3, 432], strides = [1, 1]} : vector<3x582xf32> to vector<3x432xf32>
    %c15_141 = arith.constant 15 : index
    %c0_142 = arith.constant 0 : index
    %217 = vector.load %arg14[%c15_141, %c0_142] : memref<147x432xf32, #tpu.memory_space<vmem>>, vector<3x432xf32>
    tpu.vector_store %arg14[%c15_141, %c0_142], %216 {strides = array<i32>} : memref<147x432xf32, #tpu.memory_space<vmem>>, vector<3x432xf32>,
    %218 = vector.extract_strided_slice %205 {offsets = [0, 6], sizes = [3, 432], strides = [1, 1]} : vector<3x582xf32> to vector<3x432xf32>
    %c18_143 = arith.constant 18 : index
    %c0_144 = arith.constant 0 : index
    %219 = vector.load %arg14[%c18_143, %c0_144] : memref<147x432xf32, #tpu.memory_space<vmem>>, vector<3x432xf32>
    tpu.vector_store %arg14[%c18_143, %c0_144], %218 {strides = array<i32>} : memref<147x432xf32, #tpu.memory_space<vmem>>, vector<3x432xf32>,
    %220 = vector.extract_strided_slice %205 {offsets = [0, 24], sizes = [3, 432], strides = [1, 1]} : vector<3x582xf32> to vector<3x432xf32>
    %c21_145 = arith.constant 21 : index
    %c0_146 = arith.constant 0 : index
    %221 = vector.load %arg14[%c21_145, %c0_146] : memref<147x432xf32, #tpu.memory_space<vmem>>, vector<3x432xf32>
    tpu.vector_store %arg14[%c21_145, %c0_146], %220 {strides = array<i32>} : memref<147x432xf32, #tpu.memory_space<vmem>>, vector<3x432xf32>,
    %222 = vector.extract_strided_slice %205 {offsets = [0, 25], sizes = [3, 432], strides = [1, 1]} : vector<3x582xf32> to vector<3x432xf32>
    %c24_147 = arith.constant 24 : index
    %c0_148 = arith.constant 0 : index
    %223 = vector.load %arg14[%c24_147, %c0_148] : memref<147x432xf32, #tpu.memory_space<vmem>>, vector<3x432xf32>
    tpu.vector_store %arg14[%c24_147, %c0_148], %222 {strides = array<i32>} : memref<147x432xf32, #tpu.memory_space<vmem>>, vector<3x432xf32>,
    %224 = vector.extract_strided_slice %205 {offsets = [0, 26], sizes = [3, 432], strides = [1, 1]} : vector<3x582xf32> to vector<3x432xf32>
    %c27_149 = arith.constant 27 : index
    %c0_150 = arith.constant 0 : index
    %225 = vector.load %arg14[%c27_149, %c0_150] : memref<147x432xf32, #tpu.memory_space<vmem>>, vector<3x432xf32>
    tpu.vector_store %arg14[%c27_149, %c0_150], %224 {strides = array<i32>} : memref<147x432xf32, #tpu.memory_space<vmem>>, vector<3x432xf32>,
    %226 = vector.extract_strided_slice %205 {offsets = [0, 27], sizes = [3, 432], strides = [1, 1]} : vector<3x582xf32> to vector<3x432xf32>
    %c30_151 = arith.constant 30 : index
    %c0_152 = arith.constant 0 : index
    %227 = vector.load %arg14[%c30_151, %c0_152] : memref<147x432xf32, #tpu.memory_space<vmem>>, vector<3x432xf32>
    tpu.vector_store %arg14[%c30_151, %c0_152], %226 {strides = array<i32>} : memref<147x432xf32, #tpu.memory_space<vmem>>, vector<3x432xf32>,
    %228 = vector.extract_strided_slice %205 {offsets = [0, 28], sizes = [3, 432], strides = [1, 1]} : vector<3x582xf32> to vector<3x432xf32>
    %c33_153 = arith.constant 33 : index
    %c0_154 = arith.constant 0 : index
    %229 = vector.load %arg14[%c33_153, %c0_154] : memref<147x432xf32, #tpu.memory_space<vmem>>, vector<3x432xf32>
    tpu.vector_store %arg14[%c33_153, %c0_154], %228 {strides = array<i32>} : memref<147x432xf32, #tpu.memory_space<vmem>>, vector<3x432xf32>,
    %230 = vector.extract_strided_slice %205 {offsets = [0, 29], sizes = [3, 432], strides = [1, 1]} : vector<3x582xf32> to vector<3x432xf32>
    %c36_155 = arith.constant 36 : index
    %c0_156 = arith.constant 0 : index
    %231 = vector.load %arg14[%c36_155, %c0_156] : memref<147x432xf32, #tpu.memory_space<vmem>>, vector<3x432xf32>
    tpu.vector_store %arg14[%c36_155, %c0_156], %230 {strides = array<i32>} : memref<147x432xf32, #tpu.memory_space<vmem>>, vector<3x432xf32>,
    %232 = vector.extract_strided_slice %205 {offsets = [0, 30], sizes = [3, 432], strides = [1, 1]} : vector<3x582xf32> to vector<3x432xf32>
    %c39_157 = arith.constant 39 : index
    %c0_158 = arith.constant 0 : index
    %233 = vector.load %arg14[%c39_157, %c0_158] : memref<147x432xf32, #tpu.memory_space<vmem>>, vector<3x432xf32>
    tpu.vector_store %arg14[%c39_157, %c0_158], %232 {strides = array<i32>} : memref<147x432xf32, #tpu.memory_space<vmem>>, vector<3x432xf32>,
    %234 = vector.extract_strided_slice %205 {offsets = [0, 48], sizes = [3, 432], strides = [1, 1]} : vector<3x582xf32> to vector<3x432xf32>
    %c42_159 = arith.constant 42 : index
    %c0_160 = arith.constant 0 : index
    %235 = vector.load %arg14[%c42_159, %c0_160] : memref<147x432xf32, #tpu.memory_space<vmem>>, vector<3x432xf32>
    tpu.vector_store %arg14[%c42_159, %c0_160], %234 {strides = array<i32>} : memref<147x432xf32, #tpu.memory_space<vmem>>, vector<3x432xf32>,
    %236 = vector.extract_strided_slice %205 {offsets = [0, 49], sizes = [3, 432], strides = [1, 1]} : vector<3x582xf32> to vector<3x432xf32>
    %c45_161 = arith.constant 45 : index
    %c0_162 = arith.constant 0 : index
    %237 = vector.load %arg14[%c45_161, %c0_162] : memref<147x432xf32, #tpu.memory_space<vmem>>, vector<3x432xf32>
    tpu.vector_store %arg14[%c45_161, %c0_162], %236 {strides = array<i32>} : memref<147x432xf32, #tpu.memory_space<vmem>>, vector<3x432xf32>,
    %238 = vector.extract_strided_slice %205 {offsets = [0, 50], sizes = [3, 432], strides = [1, 1]} : vector<3x582xf32> to vector<3x432xf32>
    %c48_163 = arith.constant 48 : index
    %c0_164 = arith.constant 0 : index
    %239 = vector.load %arg14[%c48_163, %c0_164] : memref<147x432xf32, #tpu.memory_space<vmem>>, vector<3x432xf32>
    tpu.vector_store %arg14[%c48_163, %c0_164], %238 {strides = array<i32>} : memref<147x432xf32, #tpu.memory_space<vmem>>, vector<3x432xf32>,
    %240 = vector.extract_strided_slice %205 {offsets = [0, 51], sizes = [3, 432], strides = [1, 1]} : vector<3x582xf32> to vector<3x432xf32>
    %c51_165 = arith.constant 51 : index
    %c0_166 = arith.constant 0 : index
    %241 = vector.load %arg14[%c51_165, %c0_166] : memref<147x432xf32, #tpu.memory_space<vmem>>, vector<3x432xf32>
    tpu.vector_store %arg14[%c51_165, %c0_166], %240 {strides = array<i32>} : memref<147x432xf32, #tpu.memory_space<vmem>>, vector<3x432xf32>,
    %242 = vector.extract_strided_slice %205 {offsets = [0, 52], sizes = [3, 432], strides = [1, 1]} : vector<3x582xf32> to vector<3x432xf32>
    %c54_167 = arith.constant 54 : index
    %c0_168 = arith.constant 0 : index
    %243 = vector.load %arg14[%c54_167, %c0_168] : memref<147x432xf32, #tpu.memory_space<vmem>>, vector<3x432xf32>
    tpu.vector_store %arg14[%c54_167, %c0_168], %242 {strides = array<i32>} : memref<147x432xf32, #tpu.memory_space<vmem>>, vector<3x432xf32>,
    %244 = vector.extract_strided_slice %205 {offsets = [0, 53], sizes = [3, 432], strides = [1, 1]} : vector<3x582xf32> to vector<3x432xf32>
    %c57_169 = arith.constant 57 : index
    %c0_170 = arith.constant 0 : index
    %245 = vector.load %arg14[%c57_169, %c0_170] : memref<147x432xf32, #tpu.memory_space<vmem>>, vector<3x432xf32>
    tpu.vector_store %arg14[%c57_169, %c0_170], %244 {strides = array<i32>} : memref<147x432xf32, #tpu.memory_space<vmem>>, vector<3x432xf32>,
    %246 = vector.extract_strided_slice %205 {offsets = [0, 54], sizes = [3, 432], strides = [1, 1]} : vector<3x582xf32> to vector<3x432xf32>
    %c60_171 = arith.constant 60 : index
    %c0_172 = arith.constant 0 : index
    %247 = vector.load %arg14[%c60_171, %c0_172] : memref<147x432xf32, #tpu.memory_space<vmem>>, vector<3x432xf32>
    tpu.vector_store %arg14[%c60_171, %c0_172], %246 {strides = array<i32>} : memref<147x432xf32, #tpu.memory_space<vmem>>, vector<3x432xf32>,
    %248 = vector.extract_strided_slice %205 {offsets = [0, 72], sizes = [3, 432], strides = [1, 1]} : vector<3x582xf32> to vector<3x432xf32>
    %c63_173 = arith.constant 63 : index
    %c0_174 = arith.constant 0 : index
    %249 = vector.load %arg14[%c63_173, %c0_174] : memref<147x432xf32, #tpu.memory_space<vmem>>, vector<3x432xf32>
    tpu.vector_store %arg14[%c63_173, %c0_174], %248 {strides = array<i32>} : memref<147x432xf32, #tpu.memory_space<vmem>>, vector<3x432xf32>,
    %250 = vector.extract_strided_slice %205 {offsets = [0, 73], sizes = [3, 432], strides = [1, 1]} : vector<3x582xf32> to vector<3x432xf32>
    %c66_175 = arith.constant 66 : index
    %c0_176 = arith.constant 0 : index
    %251 = vector.load %arg14[%c66_175, %c0_176] : memref<147x432xf32, #tpu.memory_space<vmem>>, vector<3x432xf32>
    tpu.vector_store %arg14[%c66_175, %c0_176], %250 {strides = array<i32>} : memref<147x432xf32, #tpu.memory_space<vmem>>, vector<3x432xf32>,
    %252 = vector.extract_strided_slice %205 {offsets = [0, 74], sizes = [3, 432], strides = [1, 1]} : vector<3x582xf32> to vector<3x432xf32>
    %c69_177 = arith.constant 69 : index
    %c0_178 = arith.constant 0 : index
    %253 = vector.load %arg14[%c69_177, %c0_178] : memref<147x432xf32, #tpu.memory_space<vmem>>, vector<3x432xf32>
    tpu.vector_store %arg14[%c69_177, %c0_178], %252 {strides = array<i32>} : memref<147x432xf32, #tpu.memory_space<vmem>>, vector<3x432xf32>,
    %254 = vector.extract_strided_slice %205 {offsets = [0, 75], sizes = [3, 432], strides = [1, 1]} : vector<3x582xf32> to vector<3x432xf32>
    %c72_179 = arith.constant 72 : index
    %c0_180 = arith.constant 0 : index
    %255 = vector.load %arg14[%c72_179, %c0_180] : memref<147x432xf32, #tpu.memory_space<vmem>>, vector<3x432xf32>
    tpu.vector_store %arg14[%c72_179, %c0_180], %254 {strides = array<i32>} : memref<147x432xf32, #tpu.memory_space<vmem>>, vector<3x432xf32>,
    %256 = vector.extract_strided_slice %205 {offsets = [0, 76], sizes = [3, 432], strides = [1, 1]} : vector<3x582xf32> to vector<3x432xf32>
    %c75_181 = arith.constant 75 : index
    %c0_182 = arith.constant 0 : index
    %257 = vector.load %arg14[%c75_181, %c0_182] : memref<147x432xf32, #tpu.memory_space<vmem>>, vector<3x432xf32>
    tpu.vector_store %arg14[%c75_181, %c0_182], %256 {strides = array<i32>} : memref<147x432xf32, #tpu.memory_space<vmem>>, vector<3x432xf32>,
    %258 = vector.extract_strided_slice %205 {offsets = [0, 77], sizes = [3, 432], strides = [1, 1]} : vector<3x582xf32> to vector<3x432xf32>
    %c78_183 = arith.constant 78 : index
    %c0_184 = arith.constant 0 : index
    %259 = vector.load %arg14[%c78_183, %c0_184] : memref<147x432xf32, #tpu.memory_space<vmem>>, vector<3x432xf32>
    tpu.vector_store %arg14[%c78_183, %c0_184], %258 {strides = array<i32>} : memref<147x432xf32, #tpu.memory_space<vmem>>, vector<3x432xf32>,
    %260 = vector.extract_strided_slice %205 {offsets = [0, 78], sizes = [3, 432], strides = [1, 1]} : vector<3x582xf32> to vector<3x432xf32>
    %c81_185 = arith.constant 81 : index
    %c0_186 = arith.constant 0 : index
    %261 = vector.load %arg14[%c81_185, %c0_186] : memref<147x432xf32, #tpu.memory_space<vmem>>, vector<3x432xf32>
    tpu.vector_store %arg14[%c81_185, %c0_186], %260 {strides = array<i32>} : memref<147x432xf32, #tpu.memory_space<vmem>>, vector<3x432xf32>,
    %262 = vector.extract_strided_slice %205 {offsets = [0, 96], sizes = [3, 432], strides = [1, 1]} : vector<3x582xf32> to vector<3x432xf32>
    %c84_187 = arith.constant 84 : index
    %c0_188 = arith.constant 0 : index
    %263 = vector.load %arg14[%c84_187, %c0_188] : memref<147x432xf32, #tpu.memory_space<vmem>>, vector<3x432xf32>
    tpu.vector_store %arg14[%c84_187, %c0_188], %262 {strides = array<i32>} : memref<147x432xf32, #tpu.memory_space<vmem>>, vector<3x432xf32>,
    %264 = vector.extract_strided_slice %205 {offsets = [0, 97], sizes = [3, 432], strides = [1, 1]} : vector<3x582xf32> to vector<3x432xf32>
    %c87_189 = arith.constant 87 : index
    %c0_190 = arith.constant 0 : index
    %265 = vector.load %arg14[%c87_189, %c0_190] : memref<147x432xf32, #tpu.memory_space<vmem>>, vector<3x432xf32>
    tpu.vector_store %arg14[%c87_189, %c0_190], %264 {strides = array<i32>} : memref<147x432xf32, #tpu.memory_space<vmem>>, vector<3x432xf32>,
    %266 = vector.extract_strided_slice %205 {offsets = [0, 98], sizes = [3, 432], strides = [1, 1]} : vector<3x582xf32> to vector<3x432xf32>
    %c90_191 = arith.constant 90 : index
    %c0_192 = arith.constant 0 : index
    %267 = vector.load %arg14[%c90_191, %c0_192] : memref<147x432xf32, #tpu.memory_space<vmem>>, vector<3x432xf32>
    tpu.vector_store %arg14[%c90_191, %c0_192], %266 {strides = array<i32>} : memref<147x432xf32, #tpu.memory_space<vmem>>, vector<3x432xf32>,
    %268 = vector.extract_strided_slice %205 {offsets = [0, 99], sizes = [3, 432], strides = [1, 1]} : vector<3x582xf32> to vector<3x432xf32>
    %c93_193 = arith.constant 93 : index
    %c0_194 = arith.constant 0 : index
    %269 = vector.load %arg14[%c93_193, %c0_194] : memref<147x432xf32, #tpu.memory_space<vmem>>, vector<3x432xf32>
    tpu.vector_store %arg14[%c93_193, %c0_194], %268 {strides = array<i32>} : memref<147x432xf32, #tpu.memory_space<vmem>>, vector<3x432xf32>,
    %270 = vector.extract_strided_slice %205 {offsets = [0, 100], sizes = [3, 432], strides = [1, 1]} : vector<3x582xf32> to vector<3x432xf32>
    %c96_195 = arith.constant 96 : index
    %c0_196 = arith.constant 0 : index
    %271 = vector.load %arg14[%c96_195, %c0_196] : memref<147x432xf32, #tpu.memory_space<vmem>>, vector<3x432xf32>
    tpu.vector_store %arg14[%c96_195, %c0_196], %270 {strides = array<i32>} : memref<147x432xf32, #tpu.memory_space<vmem>>, vector<3x432xf32>,
    %272 = vector.extract_strided_slice %205 {offsets = [0, 101], sizes = [3, 432], strides = [1, 1]} : vector<3x582xf32> to vector<3x432xf32>
    %c99_197 = arith.constant 99 : index
    %c0_198 = arith.constant 0 : index
    %273 = vector.load %arg14[%c99_197, %c0_198] : memref<147x432xf32, #tpu.memory_space<vmem>>, vector<3x432xf32>
    tpu.vector_store %arg14[%c99_197, %c0_198], %272 {strides = array<i32>} : memref<147x432xf32, #tpu.memory_space<vmem>>, vector<3x432xf32>,
    %274 = vector.extract_strided_slice %205 {offsets = [0, 102], sizes = [3, 432], strides = [1, 1]} : vector<3x582xf32> to vector<3x432xf32>
    %c102_199 = arith.constant 102 : index
    %c0_200 = arith.constant 0 : index
    %275 = vector.load %arg14[%c102_199, %c0_200] : memref<147x432xf32, #tpu.memory_space<vmem>>, vector<3x432xf32>
    tpu.vector_store %arg14[%c102_199, %c0_200], %274 {strides = array<i32>} : memref<147x432xf32, #tpu.memory_space<vmem>>, vector<3x432xf32>,
    %276 = vector.extract_strided_slice %205 {offsets = [0, 120], sizes = [3, 432], strides = [1, 1]} : vector<3x582xf32> to vector<3x432xf32>
    %c105_201 = arith.constant 105 : index
    %c0_202 = arith.constant 0 : index
    %277 = vector.load %arg14[%c105_201, %c0_202] : memref<147x432xf32, #tpu.memory_space<vmem>>, vector<3x432xf32>
    tpu.vector_store %arg14[%c105_201, %c0_202], %276 {strides = array<i32>} : memref<147x432xf32, #tpu.memory_space<vmem>>, vector<3x432xf32>,
    %278 = vector.extract_strided_slice %205 {offsets = [0, 121], sizes = [3, 432], strides = [1, 1]} : vector<3x582xf32> to vector<3x432xf32>
    %c108_203 = arith.constant 108 : index
    %c0_204 = arith.constant 0 : index
    %279 = vector.load %arg14[%c108_203, %c0_204] : memref<147x432xf32, #tpu.memory_space<vmem>>, vector<3x432xf32>
    tpu.vector_store %arg14[%c108_203, %c0_204], %278 {strides = array<i32>} : memref<147x432xf32, #tpu.memory_space<vmem>>, vector<3x432xf32>,
    %280 = vector.extract_strided_slice %205 {offsets = [0, 122], sizes = [3, 432], strides = [1, 1]} : vector<3x582xf32> to vector<3x432xf32>
    %c111_205 = arith.constant 111 : index
    %c0_206 = arith.constant 0 : index
    %281 = vector.load %arg14[%c111_205, %c0_206] : memref<147x432xf32, #tpu.memory_space<vmem>>, vector<3x432xf32>
    tpu.vector_store %arg14[%c111_205, %c0_206], %280 {strides = array<i32>} : memref<147x432xf32, #tpu.memory_space<vmem>>, vector<3x432xf32>,
    %282 = vector.extract_strided_slice %205 {offsets = [0, 123], sizes = [3, 432], strides = [1, 1]} : vector<3x582xf32> to vector<3x432xf32>
    %c114_207 = arith.constant 114 : index
    %c0_208 = arith.constant 0 : index
    %283 = vector.load %arg14[%c114_207, %c0_208] : memref<147x432xf32, #tpu.memory_space<vmem>>, vector<3x432xf32>
    tpu.vector_store %arg14[%c114_207, %c0_208], %282 {strides = array<i32>} : memref<147x432xf32, #tpu.memory_space<vmem>>, vector<3x432xf32>,
    %284 = vector.extract_strided_slice %205 {offsets = [0, 124], sizes = [3, 432], strides = [1, 1]} : vector<3x582xf32> to vector<3x432xf32>
    %c117_209 = arith.constant 117 : index
    %c0_210 = arith.constant 0 : index
    %285 = vector.load %arg14[%c117_209, %c0_210] : memref<147x432xf32, #tpu.memory_space<vmem>>, vector<3x432xf32>
    tpu.vector_store %arg14[%c117_209, %c0_210], %284 {strides = array<i32>} : memref<147x432xf32, #tpu.memory_space<vmem>>, vector<3x432xf32>,
    %286 = vector.extract_strided_slice %205 {offsets = [0, 125], sizes = [3, 432], strides = [1, 1]} : vector<3x582xf32> to vector<3x432xf32>
    %c120_211 = arith.constant 120 : index
    %c0_212 = arith.constant 0 : index
    %287 = vector.load %arg14[%c120_211, %c0_212] : memref<147x432xf32, #tpu.memory_space<vmem>>, vector<3x432xf32>
    tpu.vector_store %arg14[%c120_211, %c0_212], %286 {strides = array<i32>} : memref<147x432xf32, #tpu.memory_space<vmem>>, vector<3x432xf32>,
    %288 = vector.extract_strided_slice %205 {offsets = [0, 126], sizes = [3, 432], strides = [1, 1]} : vector<3x582xf32> to vector<3x432xf32>
    %c123_213 = arith.constant 123 : index
    %c0_214 = arith.constant 0 : index
    %289 = vector.load %arg14[%c123_213, %c0_214] : memref<147x432xf32, #tpu.memory_space<vmem>>, vector<3x432xf32>
    tpu.vector_store %arg14[%c123_213, %c0_214], %288 {strides = array<i32>} : memref<147x432xf32, #tpu.memory_space<vmem>>, vector<3x432xf32>,
    %290 = vector.extract_strided_slice %205 {offsets = [0, 144], sizes = [3, 432], strides = [1, 1]} : vector<3x582xf32> to vector<3x432xf32>
    %c126_215 = arith.constant 126 : index
    %c0_216 = arith.constant 0 : index
    %291 = vector.load %arg14[%c126_215, %c0_216] : memref<147x432xf32, #tpu.memory_space<vmem>>, vector<3x432xf32>
    tpu.vector_store %arg14[%c126_215, %c0_216], %290 {strides = array<i32>} : memref<147x432xf32, #tpu.memory_space<vmem>>, vector<3x432xf32>,
    %292 = vector.extract_strided_slice %205 {offsets = [0, 145], sizes = [3, 432], strides = [1, 1]} : vector<3x582xf32> to vector<3x432xf32>
    %c129_217 = arith.constant 129 : index
    %c0_218 = arith.constant 0 : index
    %293 = vector.load %arg14[%c129_217, %c0_218] : memref<147x432xf32, #tpu.memory_space<vmem>>, vector<3x432xf32>
    tpu.vector_store %arg14[%c129_217, %c0_218], %292 {strides = array<i32>} : memref<147x432xf32, #tpu.memory_space<vmem>>, vector<3x432xf32>,
    %294 = vector.extract_strided_slice %205 {offsets = [0, 146], sizes = [3, 432], strides = [1, 1]} : vector<3x582xf32> to vector<3x432xf32>
    %c132_219 = arith.constant 132 : index
    %c0_220 = arith.constant 0 : index
    %295 = vector.load %arg14[%c132_219, %c0_220] : memref<147x432xf32, #tpu.memory_space<vmem>>, vector<3x432xf32>
    tpu.vector_store %arg14[%c132_219, %c0_220], %294 {strides = array<i32>} : memref<147x432xf32, #tpu.memory_space<vmem>>, vector<3x432xf32>,
    %296 = vector.extract_strided_slice %205 {offsets = [0, 147], sizes = [3, 432], strides = [1, 1]} : vector<3x582xf32> to vector<3x432xf32>
    %c135_221 = arith.constant 135 : index
    %c0_222 = arith.constant 0 : index
    %297 = vector.load %arg14[%c135_221, %c0_222] : memref<147x432xf32, #tpu.memory_space<vmem>>, vector<3x432xf32>
    tpu.vector_store %arg14[%c135_221, %c0_222], %296 {strides = array<i32>} : memref<147x432xf32, #tpu.memory_space<vmem>>, vector<3x432xf32>,
    %298 = vector.extract_strided_slice %205 {offsets = [0, 148], sizes = [3, 432], strides = [1, 1]} : vector<3x582xf32> to vector<3x432xf32>
    %c138_223 = arith.constant 138 : index
    %c0_224 = arith.constant 0 : index
    %299 = vector.load %arg14[%c138_223, %c0_224] : memref<147x432xf32, #tpu.memory_space<vmem>>, vector<3x432xf32>
    tpu.vector_store %arg14[%c138_223, %c0_224], %298 {strides = array<i32>} : memref<147x432xf32, #tpu.memory_space<vmem>>, vector<3x432xf32>,
    %300 = vector.extract_strided_slice %205 {offsets = [0, 149], sizes = [3, 432], strides = [1, 1]} : vector<3x582xf32> to vector<3x432xf32>
    %c141_225 = arith.constant 141 : index
    %c0_226 = arith.constant 0 : index
    %301 = vector.load %arg14[%c141_225, %c0_226] : memref<147x432xf32, #tpu.memory_space<vmem>>, vector<3x432xf32>
    tpu.vector_store %arg14[%c141_225, %c0_226], %300 {strides = array<i32>} : memref<147x432xf32, #tpu.memory_space<vmem>>, vector<3x432xf32>,
    %302 = vector.extract_strided_slice %205 {offsets = [0, 150], sizes = [3, 432], strides = [1, 1]} : vector<3x582xf32> to vector<3x432xf32>
    %c144_227 = arith.constant 144 : index
    %c0_228 = arith.constant 0 : index
    %303 = vector.load %arg14[%c144_227, %c0_228] : memref<147x432xf32, #tpu.memory_space<vmem>>, vector<3x432xf32>
    tpu.vector_store %arg14[%c144_227, %c0_228], %302 {strides = array<i32>} : memref<147x432xf32, #tpu.memory_space<vmem>>, vector<3x432xf32>,
    %c0_229 = arith.constant 0 : index
    %c0_230 = arith.constant 0 : index
    %304 = vector.load %arg14[%c0_229, %c0_230] : memref<147x432xf32, #tpu.memory_space<vmem>>, vector<147x432xf32>
    %305 = arith.truncf %304 : vector<147x432xf32> to vector<147x432xbf16>
    %cst_231 = arith.constant dense<0.000000e+00> : vector<8x432xf32>
    %306 = tpu.matmul %0, %305, %cst_231 {dimension_numbers = #tpu.dot_dimension_numbers<[1], [0], [0], [1], [0, 0, 1, 1], [], []>} : vector<8x147xbf16>, vector<147x432xbf16>, vector<8x432xf32> -> vector<8x432xf32>
    %307 = vector.broadcast %1 : vector<8x1xf32> to vector<8x432xf32>
    %308 = arith.addf %306, %307 : vector<8x432xf32>
    %309 = vector.extract_strided_slice %308 {offsets = [0, 0], sizes = [8, 408], strides = [1, 1]} : vector<8x432xf32> to vector<8x408xf32>
    %310 = vector.extract_strided_slice %308 {offsets = [0, 24], sizes = [8, 408], strides = [1, 1]} : vector<8x432xf32> to vector<8x408xf32>
    %311 = arith.maximumf %309, %310 : vector<8x408xf32>
    %312 = vector.extract_strided_slice %311 {offsets = [0, 0], sizes = [8, 407], strides = [1, 1]} : vector<8x408xf32> to vector<8x407xf32>
    %313 = vector.extract_strided_slice %311 {offsets = [0, 1], sizes = [8, 407], strides = [1, 1]} : vector<8x408xf32> to vector<8x407xf32>
    %314 = arith.maximumf %312, %313 : vector<8x407xf32>
    %cst_232 = arith.constant 0.000000e+00 : f32
    %315 = vector.broadcast %cst_232 : f32 to vector<8x407xf32>
    %316 = arith.maximumf %314, %315 : vector<8x407xf32>
    %317 = arith.truncf %316 : vector<8x407xf32> to vector<8x407xbf16>
    %cst_233 = arith.constant dense<0.000000e+00> : vector<8x85xf32>
    %318 = tpu.matmul %317, %2, %cst_233 {dimension_numbers = #tpu.dot_dimension_numbers<[1], [0], [0], [1], [0, 0, 1, 1], [], []>} : vector<8x407xbf16>, vector<407x85xbf16>, vector<8x85xf32> -> vector<8x85xf32>
    %319 = vector.extract_strided_slice %318 {offsets = [0, 0], sizes = [8, 45], strides = [1, 1]} : vector<8x85xf32> to vector<8x45xf32>
    %c0_234 = arith.constant 0 : index
    %c0_235 = arith.constant 0 : index
    %320 = vector.load %arg15[%c0_234, %c0_235] : memref<200x45xf32, #tpu.memory_space<vmem>>, vector<8x45xf32>
    tpu.vector_store %arg15[%c0_234, %c0_235], %319 {strides = array<i32>} : memref<200x45xf32, #tpu.memory_space<vmem>>, vector<8x45xf32>,
    %321 = vector.extract_strided_slice %318 {offsets = [0, 1], sizes = [8, 45], strides = [1, 1]} : vector<8x85xf32> to vector<8x45xf32>
    %c8_236 = arith.constant 8 : index
    %c0_237 = arith.constant 0 : index
    %322 = vector.load %arg15[%c8_236, %c0_237] : memref<200x45xf32, #tpu.memory_space<vmem>>, vector<8x45xf32>
    tpu.vector_store %arg15[%c8_236, %c0_237], %321 {strides = array<i32>} : memref<200x45xf32, #tpu.memory_space<vmem>>, vector<8x45xf32>,
    %323 = vector.extract_strided_slice %318 {offsets = [0, 2], sizes = [8, 45], strides = [1, 1]} : vector<8x85xf32> to vector<8x45xf32>
    %c16_238 = arith.constant 16 : index
    %c0_239 = arith.constant 0 : index
    %324 = vector.load %arg15[%c16_238, %c0_239] : memref<200x45xf32, #tpu.memory_space<vmem>>, vector<8x45xf32>
    tpu.vector_store %arg15[%c16_238, %c0_239], %323 {strides = array<i32>} : memref<200x45xf32, #tpu.memory_space<vmem>>, vector<8x45xf32>,
    %325 = vector.extract_strided_slice %318 {offsets = [0, 3], sizes = [8, 45], strides = [1, 1]} : vector<8x85xf32> to vector<8x45xf32>
    %c24_240 = arith.constant 24 : index
    %c0_241 = arith.constant 0 : index
    %326 = vector.load %arg15[%c24_240, %c0_241] : memref<200x45xf32, #tpu.memory_space<vmem>>, vector<8x45xf32>
    tpu.vector_store %arg15[%c24_240, %c0_241], %325 {strides = array<i32>} : memref<200x45xf32, #tpu.memory_space<vmem>>, vector<8x45xf32>,
    %327 = vector.extract_strided_slice %318 {offsets = [0, 4], sizes = [8, 45], strides = [1, 1]} : vector<8x85xf32> to vector<8x45xf32>
    %c32_242 = arith.constant 32 : index
    %c0_243 = arith.constant 0 : index
    %328 = vector.load %arg15[%c32_242, %c0_243] : memref<200x45xf32, #tpu.memory_space<vmem>>, vector<8x45xf32>
    tpu.vector_store %arg15[%c32_242, %c0_243], %327 {strides = array<i32>} : memref<200x45xf32, #tpu.memory_space<vmem>>, vector<8x45xf32>,
    %329 = vector.extract_strided_slice %318 {offsets = [0, 9], sizes = [8, 45], strides = [1, 1]} : vector<8x85xf32> to vector<8x45xf32>
    %c40_244 = arith.constant 40 : index
    %c0_245 = arith.constant 0 : index
    %330 = vector.load %arg15[%c40_244, %c0_245] : memref<200x45xf32, #tpu.memory_space<vmem>>, vector<8x45xf32>
    tpu.vector_store %arg15[%c40_244, %c0_245], %329 {strides = array<i32>} : memref<200x45xf32, #tpu.memory_space<vmem>>, vector<8x45xf32>,
    %331 = vector.extract_strided_slice %318 {offsets = [0, 10], sizes = [8, 45], strides = [1, 1]} : vector<8x85xf32> to vector<8x45xf32>
    %c48_246 = arith.constant 48 : index
    %c0_247 = arith.constant 0 : index
    %332 = vector.load %arg15[%c48_246, %c0_247] : memref<200x45xf32, #tpu.memory_space<vmem>>, vector<8x45xf32>
    tpu.vector_store %arg15[%c48_246, %c0_247], %331 {strides = array<i32>} : memref<200x45xf32, #tpu.memory_space<vmem>>, vector<8x45xf32>,
    %333 = vector.extract_strided_slice %318 {offsets = [0, 11], sizes = [8, 45], strides = [1, 1]} : vector<8x85xf32> to vector<8x45xf32>
    %c56_248 = arith.constant 56 : index
    %c0_249 = arith.constant 0 : index
    %334 = vector.load %arg15[%c56_248, %c0_249] : memref<200x45xf32, #tpu.memory_space<vmem>>, vector<8x45xf32>
    tpu.vector_store %arg15[%c56_248, %c0_249], %333 {strides = array<i32>} : memref<200x45xf32, #tpu.memory_space<vmem>>, vector<8x45xf32>,
    %335 = vector.extract_strided_slice %318 {offsets = [0, 12], sizes = [8, 45], strides = [1, 1]} : vector<8x85xf32> to vector<8x45xf32>
    %c64_250 = arith.constant 64 : index
    %c0_251 = arith.constant 0 : index
    %336 = vector.load %arg15[%c64_250, %c0_251] : memref<200x45xf32, #tpu.memory_space<vmem>>, vector<8x45xf32>
    tpu.vector_store %arg15[%c64_250, %c0_251], %335 {strides = array<i32>} : memref<200x45xf32, #tpu.memory_space<vmem>>, vector<8x45xf32>,
    %337 = vector.extract_strided_slice %318 {offsets = [0, 13], sizes = [8, 45], strides = [1, 1]} : vector<8x85xf32> to vector<8x45xf32>
    %c72_252 = arith.constant 72 : index
    %c0_253 = arith.constant 0 : index
    %338 = vector.load %arg15[%c72_252, %c0_253] : memref<200x45xf32, #tpu.memory_space<vmem>>, vector<8x45xf32>
    tpu.vector_store %arg15[%c72_252, %c0_253], %337 {strides = array<i32>} : memref<200x45xf32, #tpu.memory_space<vmem>>, vector<8x45xf32>,
    %339 = vector.extract_strided_slice %318 {offsets = [0, 18], sizes = [8, 45], strides = [1, 1]} : vector<8x85xf32> to vector<8x45xf32>
    %c80_254 = arith.constant 80 : index
    %c0_255 = arith.constant 0 : index
    %340 = vector.load %arg15[%c80_254, %c0_255] : memref<200x45xf32, #tpu.memory_space<vmem>>, vector<8x45xf32>
    tpu.vector_store %arg15[%c80_254, %c0_255], %339 {strides = array<i32>} : memref<200x45xf32, #tpu.memory_space<vmem>>, vector<8x45xf32>,
    %341 = vector.extract_strided_slice %318 {offsets = [0, 19], sizes = [8, 45], strides = [1, 1]} : vector<8x85xf32> to vector<8x45xf32>
    %c88_256 = arith.constant 88 : index
    %c0_257 = arith.constant 0 : index
    %342 = vector.load %arg15[%c88_256, %c0_257] : memref<200x45xf32, #tpu.memory_space<vmem>>, vector<8x45xf32>
    tpu.vector_store %arg15[%c88_256, %c0_257], %341 {strides = array<i32>} : memref<200x45xf32, #tpu.memory_space<vmem>>, vector<8x45xf32>,
    %343 = vector.extract_strided_slice %318 {offsets = [0, 20], sizes = [8, 45], strides = [1, 1]} : vector<8x85xf32> to vector<8x45xf32>
    %c96_258 = arith.constant 96 : index
    %c0_259 = arith.constant 0 : index
    %344 = vector.load %arg15[%c96_258, %c0_259] : memref<200x45xf32, #tpu.memory_space<vmem>>, vector<8x45xf32>
    tpu.vector_store %arg15[%c96_258, %c0_259], %343 {strides = array<i32>} : memref<200x45xf32, #tpu.memory_space<vmem>>, vector<8x45xf32>,
    %345 = vector.extract_strided_slice %318 {offsets = [0, 21], sizes = [8, 45], strides = [1, 1]} : vector<8x85xf32> to vector<8x45xf32>
    %c104_260 = arith.constant 104 : index
    %c0_261 = arith.constant 0 : index
    %346 = vector.load %arg15[%c104_260, %c0_261] : memref<200x45xf32, #tpu.memory_space<vmem>>, vector<8x45xf32>
    tpu.vector_store %arg15[%c104_260, %c0_261], %345 {strides = array<i32>} : memref<200x45xf32, #tpu.memory_space<vmem>>, vector<8x45xf32>,
    %347 = vector.extract_strided_slice %318 {offsets = [0, 22], sizes = [8, 45], strides = [1, 1]} : vector<8x85xf32> to vector<8x45xf32>
    %c112_262 = arith.constant 112 : index
    %c0_263 = arith.constant 0 : index
    %348 = vector.load %arg15[%c112_262, %c0_263] : memref<200x45xf32, #tpu.memory_space<vmem>>, vector<8x45xf32>
    tpu.vector_store %arg15[%c112_262, %c0_263], %347 {strides = array<i32>} : memref<200x45xf32, #tpu.memory_space<vmem>>, vector<8x45xf32>,
    %349 = vector.extract_strided_slice %318 {offsets = [0, 27], sizes = [8, 45], strides = [1, 1]} : vector<8x85xf32> to vector<8x45xf32>
    %c120_264 = arith.constant 120 : index
    %c0_265 = arith.constant 0 : index
    %350 = vector.load %arg15[%c120_264, %c0_265] : memref<200x45xf32, #tpu.memory_space<vmem>>, vector<8x45xf32>
    tpu.vector_store %arg15[%c120_264, %c0_265], %349 {strides = array<i32>} : memref<200x45xf32, #tpu.memory_space<vmem>>, vector<8x45xf32>,
    %351 = vector.extract_strided_slice %318 {offsets = [0, 28], sizes = [8, 45], strides = [1, 1]} : vector<8x85xf32> to vector<8x45xf32>
    %c128_266 = arith.constant 128 : index
    %c0_267 = arith.constant 0 : index
    %352 = vector.load %arg15[%c128_266, %c0_267] : memref<200x45xf32, #tpu.memory_space<vmem>>, vector<8x45xf32>
    tpu.vector_store %arg15[%c128_266, %c0_267], %351 {strides = array<i32>} : memref<200x45xf32, #tpu.memory_space<vmem>>, vector<8x45xf32>,
    %353 = vector.extract_strided_slice %318 {offsets = [0, 29], sizes = [8, 45], strides = [1, 1]} : vector<8x85xf32> to vector<8x45xf32>
    %c136_268 = arith.constant 136 : index
    %c0_269 = arith.constant 0 : index
    %354 = vector.load %arg15[%c136_268, %c0_269] : memref<200x45xf32, #tpu.memory_space<vmem>>, vector<8x45xf32>
    tpu.vector_store %arg15[%c136_268, %c0_269], %353 {strides = array<i32>} : memref<200x45xf32, #tpu.memory_space<vmem>>, vector<8x45xf32>,
    %355 = vector.extract_strided_slice %318 {offsets = [0, 30], sizes = [8, 45], strides = [1, 1]} : vector<8x85xf32> to vector<8x45xf32>
    %c144_270 = arith.constant 144 : index
    %c0_271 = arith.constant 0 : index
    %356 = vector.load %arg15[%c144_270, %c0_271] : memref<200x45xf32, #tpu.memory_space<vmem>>, vector<8x45xf32>
    tpu.vector_store %arg15[%c144_270, %c0_271], %355 {strides = array<i32>} : memref<200x45xf32, #tpu.memory_space<vmem>>, vector<8x45xf32>,
    %357 = vector.extract_strided_slice %318 {offsets = [0, 31], sizes = [8, 45], strides = [1, 1]} : vector<8x85xf32> to vector<8x45xf32>
    %c152_272 = arith.constant 152 : index
    %c0_273 = arith.constant 0 : index
    %358 = vector.load %arg15[%c152_272, %c0_273] : memref<200x45xf32, #tpu.memory_space<vmem>>, vector<8x45xf32>
    tpu.vector_store %arg15[%c152_272, %c0_273], %357 {strides = array<i32>} : memref<200x45xf32, #tpu.memory_space<vmem>>, vector<8x45xf32>,
    %359 = vector.extract_strided_slice %318 {offsets = [0, 36], sizes = [8, 45], strides = [1, 1]} : vector<8x85xf32> to vector<8x45xf32>
    %c160_274 = arith.constant 160 : index
    %c0_275 = arith.constant 0 : index
    %360 = vector.load %arg15[%c160_274, %c0_275] : memref<200x45xf32, #tpu.memory_space<vmem>>, vector<8x45xf32>
    tpu.vector_store %arg15[%c160_274, %c0_275], %359 {strides = array<i32>} : memref<200x45xf32, #tpu.memory_space<vmem>>, vector<8x45xf32>,
    %361 = vector.extract_strided_slice %318 {offsets = [0, 37], sizes = [8, 45], strides = [1, 1]} : vector<8x85xf32> to vector<8x45xf32>
    %c168_276 = arith.constant 168 : index
    %c0_277 = arith.constant 0 : index
    %362 = vector.load %arg15[%c168_276, %c0_277] : memref<200x45xf32, #tpu.memory_space<vmem>>, vector<8x45xf32>
    tpu.vector_store %arg15[%c168_276, %c0_277], %361 {strides = array<i32>} : memref<200x45xf32, #tpu.memory_space<vmem>>, vector<8x45xf32>,
    %363 = vector.extract_strided_slice %318 {offsets = [0, 38], sizes = [8, 45], strides = [1, 1]} : vector<8x85xf32> to vector<8x45xf32>
    %c176_278 = arith.constant 176 : index
    %c0_279 = arith.constant 0 : index
    %364 = vector.load %arg15[%c176_278, %c0_279] : memref<200x45xf32, #tpu.memory_space<vmem>>, vector<8x45xf32>
    tpu.vector_store %arg15[%c176_278, %c0_279], %363 {strides = array<i32>} : memref<200x45xf32, #tpu.memory_space<vmem>>, vector<8x45xf32>,
    %365 = vector.extract_strided_slice %318 {offsets = [0, 39], sizes = [8, 45], strides = [1, 1]} : vector<8x85xf32> to vector<8x45xf32>
    %c184_280 = arith.constant 184 : index
    %c0_281 = arith.constant 0 : index
    %366 = vector.load %arg15[%c184_280, %c0_281] : memref<200x45xf32, #tpu.memory_space<vmem>>, vector<8x45xf32>
    tpu.vector_store %arg15[%c184_280, %c0_281], %365 {strides = array<i32>} : memref<200x45xf32, #tpu.memory_space<vmem>>, vector<8x45xf32>,
    %367 = vector.extract_strided_slice %318 {offsets = [0, 40], sizes = [8, 45], strides = [1, 1]} : vector<8x85xf32> to vector<8x45xf32>
    %c192_282 = arith.constant 192 : index
    %c0_283 = arith.constant 0 : index
    %368 = vector.load %arg15[%c192_282, %c0_283] : memref<200x45xf32, #tpu.memory_space<vmem>>, vector<8x45xf32>
    tpu.vector_store %arg15[%c192_282, %c0_283], %367 {strides = array<i32>} : memref<200x45xf32, #tpu.memory_space<vmem>>, vector<8x45xf32>,
    %c0_284 = arith.constant 0 : index
    %c0_285 = arith.constant 0 : index
    %369 = vector.load %arg15[%c0_284, %c0_285] : memref<200x45xf32, #tpu.memory_space<vmem>>, vector<200x45xf32>
    %370 = arith.truncf %369 : vector<200x45xf32> to vector<200x45xbf16>
    %cst_286 = arith.constant dense<0.000000e+00> : vector<10x45xf32>
    %371 = tpu.matmul %3, %370, %cst_286 {dimension_numbers = #tpu.dot_dimension_numbers<[1], [0], [0], [1], [0, 0, 1, 1], [], []>} : vector<10x200xbf16>, vector<200x45xbf16>, vector<10x45xf32> -> vector<10x45xf32>
    %372 = vector.broadcast %4 : vector<10x1xf32> to vector<10x45xf32>
    %373 = arith.addf %371, %372 : vector<10x45xf32>
    %374 = vector.extract_strided_slice %373 {offsets = [0, 0], sizes = [10, 36], strides = [1, 1]} : vector<10x45xf32> to vector<10x36xf32>
    %375 = vector.extract_strided_slice %373 {offsets = [0, 9], sizes = [10, 36], strides = [1, 1]} : vector<10x45xf32> to vector<10x36xf32>
    %376 = arith.maximumf %374, %375 : vector<10x36xf32>
    %377 = vector.extract_strided_slice %376 {offsets = [0, 0], sizes = [10, 35], strides = [1, 1]} : vector<10x36xf32> to vector<10x35xf32>
    %378 = vector.extract_strided_slice %376 {offsets = [0, 1], sizes = [10, 35], strides = [1, 1]} : vector<10x36xf32> to vector<10x35xf32>
    %379 = arith.maximumf %377, %378 : vector<10x35xf32>
    %cst_287 = arith.constant 0.000000e+00 : f32
    %380 = vector.broadcast %cst_287 : f32 to vector<10x35xf32>
    %381 = arith.maximumf %379, %380 : vector<10x35xf32>
    %cst_288 = arith.constant dense<0.000000e+00> : vector<10x1xf32>
    %382 = tpu.matmul %381, %5, %cst_288 {dimension_numbers = #tpu.dot_dimension_numbers<[1], [0], [0], [1], [0, 0, 1, 1], [], []>} : vector<10x35xf32>, vector<35x1xf32>, vector<10x1xf32> -> vector<10x1xf32>
    %cst_289 = arith.constant dense<0.000000e+00> : vector<32x1xf32>
    %383 = tpu.matmul %6, %382, %cst_289 {dimension_numbers = #tpu.dot_dimension_numbers<[1], [0], [0], [1], [0, 0, 1, 1], [], []>} : vector<32x10xf32>, vector<10x1xf32>, vector<32x1xf32> -> vector<32x1xf32>
    %384 = arith.addf %383, %7 : vector<32x1xf32>
    %cst_290 = arith.constant 0.000000e+00 : f32
    %385 = vector.broadcast %cst_290 : f32 to vector<32x1xf32>
    %386 = arith.maximumf %384, %385 : vector<32x1xf32>
    %cst_291 = arith.constant dense<0.000000e+00> : vector<6x1xf32>
    %387 = tpu.matmul %8, %386, %cst_291 {dimension_numbers = #tpu.dot_dimension_numbers<[1], [0], [0], [1], [0, 0, 1, 1], [], []>} : vector<6x32xf32>, vector<32x1xf32>, vector<6x1xf32> -> vector<6x1xf32>
    %388 = arith.addf %387, %9 : vector<6x1xf32>
    %c1_292 = arith.constant 1 : index
    %c0_293 = arith.constant 0 : index
    %c0_294 = arith.constant 0 : index
    %389 = vector.load %arg12[%c1_292, %c0_293, %c0_294] : memref<2x6x1xf32, #tpu.memory_space<vmem>>, vector<1x6x1xf32>
    %390 = vector.shape_cast %389 : vector<1x6x1xf32> to vector<6x1xf32>
    %391 = vector.shape_cast %388 : vector<6x1xf32> to vector<1x6x1xf32>
    tpu.vector_store %arg12[%c1_292, %c0_293, %c0_294], %391 {strides = array<i32>} : memref<2x6x1xf32, #tpu.memory_space<vmem>>, vector<1x6x1xf32>,
    return
  }
  func.func @transform_0(%arg0: i32) -> (i32, i32, i32) {
    %c0_i32 = arith.constant 0 : i32
    %c0_i32_0 = arith.constant 0 : i32
    %c0_i32_1 = arith.constant 0 : i32
    return %arg0, %c0_i32, %c0_i32_0 : i32, i32, i32
  }
  func.func @transform_1(%arg0: i32) -> (i32, i32) {
    %c0_i32 = arith.constant 0 : i32
    %c0_i32_0 = arith.constant 0 : i32
    %c0_i32_1 = arith.constant 0 : i32
    return %c0_i32, %c0_i32_0 : i32, i32
  }
  func.func @transform_2(%arg0: i32) -> (i32, i32) {
    %c0_i32 = arith.constant 0 : i32
    %c0_i32_0 = arith.constant 0 : i32
    %c0_i32_1 = arith.constant 0 : i32
    return %c0_i32, %c0_i32_0 : i32, i32
  }
  func.func @transform_3(%arg0: i32) -> (i32, i32) {
    %c0_i32 = arith.constant 0 : i32
    %c0_i32_0 = arith.constant 0 : i32
    %c0_i32_1 = arith.constant 0 : i32
    return %c0_i32, %c0_i32_0 : i32, i32
  }
  func.func @transform_4(%arg0: i32) -> (i32, i32) {
    %c0_i32 = arith.constant 0 : i32
    %c0_i32_0 = arith.constant 0 : i32
    %c0_i32_1 = arith.constant 0 : i32
    return %c0_i32, %c0_i32_0 : i32, i32
  }
  func.func @transform_5(%arg0: i32) -> (i32, i32) {
    %c0_i32 = arith.constant 0 : i32
    %c0_i32_0 = arith.constant 0 : i32
    %c0_i32_1 = arith.constant 0 : i32
    return %c0_i32, %c0_i32_0 : i32, i32
  }
  func.func @transform_6(%arg0: i32) -> (i32, i32) {
    %c0_i32 = arith.constant 0 : i32
    %c0_i32_0 = arith.constant 0 : i32
    %c0_i32_1 = arith.constant 0 : i32
    return %c0_i32, %c0_i32_0 : i32, i32
  }
  func.func @transform_7(%arg0: i32) -> (i32, i32) {
    %c0_i32 = arith.constant 0 : i32
    %c0_i32_0 = arith.constant 0 : i32
    %c0_i32_1 = arith.constant 0 : i32
    return %c0_i32, %c0_i32_0 : i32, i32
  }
  func.func @transform_8(%arg0: i32) -> (i32, i32) {
    %c0_i32 = arith.constant 0 : i32
    %c0_i32_0 = arith.constant 0 : i32
    %c0_i32_1 = arith.constant 0 : i32
    return %c0_i32, %c0_i32_0 : i32, i32
  }
  func.func @transform_9(%arg0: i32) -> (i32, i32) {
    %c0_i32 = arith.constant 0 : i32
    %c0_i32_0 = arith.constant 0 : i32
    %c0_i32_1 = arith.constant 0 : i32
    return %c0_i32, %c0_i32_0 : i32, i32
  }
  func.func @transform_10(%arg0: i32) -> (i32, i32) {
    %c0_i32 = arith.constant 0 : i32
    %c0_i32_0 = arith.constant 0 : i32
    %c0_i32_1 = arith.constant 0 : i32
    return %c0_i32, %c0_i32_0 : i32, i32
  }
  func.func @transform_11(%arg0: i32) -> (i32, i32, i32) {
    %c0_i32 = arith.constant 0 : i32
    %c0_i32_0 = arith.constant 0 : i32
    %c0_i32_1 = arith.constant 0 : i32
    return %arg0, %c0_i32, %c0_i32_0 : i32, i32, i32
  }
}

</mosaic_0001>

<bundles_post_ra>
// kernel: stn_forward.3
= control target key start
LH: loop header
LB: loop body
LE: loop exit
PB: predicated region body
PF: predicated region fallthrough
CT: control target
= control target key end

     0   :  { %7 = vsyncpa [#allocation3], 0  ;;  %s1560_s9 = smov 0   ;;  %s1562_s10 = smov 0   ;;  %s2439_s0 = inlined_call_operand.vmem [shape: f32[2,6], index: 0, kind: input, shape index: {}]   ;;  %s2440_s1 = inlined_call_operand.vmem [shape: f32[2,3,576], index: 1, kind: input, shape index: {}]   ;;  %s2441_s2 = inlined_call_operand.vmem [shape: f32[2,3,640], index: 2, kind: output, shape index: {}]  }
   0x1   :  { %s1564_s11 = smov 0   ;;  %s1566_s12 = smov 0  }
   0x2   :  { %s1568_s13 = smov 0  }
   0x3 LB: > { %s1306_s14 = sadd.s32 4294967295, %s1540_s13   ;;  %s22_s15 = sadd.s32 1, %s1532_s11  ;;  %s1540_s13 = sphi %s1568_s13, %s13_s13   ;;  %s1536_s12 = sphi %s1566_s12, %s2487_s12   ;;  %s1532_s11 = sphi %s1564_s11, %s2486_s11   ;;  %s1528_s10 = sphi %s1562_s10, %s2485_s10   ;;  %s1524_s9 = sphi %s1560_s9, %s2484_s9  }
   0x4   : > { %p23_p0 = scmp.ge.s32.totalorder %s22_s15, 5  ;;  %s25_s16 = sadd.s32 1, %s1536_s12 }
   0x5   : > { %p1308_p1 = scmp.ge.s32.totalorder %s1540_s13, 1  ;;  %p105_p2 = scmp.lt.s32.totalorder %s1540_s13, 11 }
   0x6   : > { %s2489_s15 = smov (%p23_p0, %s22_s15), 0  ;;  %s2491_s16 = smov (!%p23_p0, %s25_s16), %s1536_s12 }
   0x7   : > { %p1593_p3 = pnand %p1308_p1, %p105_p2  ;;  %p27_p4 = scmp.ge.s32.totalorder %s2491_s16, 2 }
   0x8   : > { %p1597_p5 = scmp.eq.s32.totalorder %s1306_s14, 0  ;;  %s118_s21 = sshll.u32 %s2439_s0, 4  ;;  %s119_s21 = int_to_ptr.vmem [resolvable:$true] %s118_s21 }
   0x9   : > { %p1432_p6 = pneg %p1593_p3  ;;  %s2493_s16 = smov (%p27_p4, %s2491_s16), 0 }
   0xa   : > { %s1483_s22 = scalar_lea.vmem %s119_s21, 32  ;;  %p1491_p12 = scmp.lt.s32.totalorder %s119_s21, %s119_s21 }
   0xb   : > { %p1433_p7 = pnand %p1597_p5, %p1432_p6  ;;  %p1484_p8 = scmp.ne.s32.totalorder %s119_s21, %s1483_s22 }
   0xc   : > { %p1492_p13 = scmp.lt.s32.totalorder %s1483_s22, %s1483_s22 }
   0xd   : > { %p1485_p9 = pneg %p1433_p7 }
   0xe   : > { %p1493_p0 = por %p1492_p13, %p1491_p12 }
   0xf   : > { %p1486_p10 = pnand %p1485_p9, %p1484_p8 }
  0x11   : > { %p1487_p11 = pneg %p1486_p10 }
  0x13   : > { %p1494_p1 = pnand %p1493_p0, %p1487_p11 }
  0x15   : > { %1497 = shalt.err (!%p1494_p1)
}
  0x16   : > { %s1542_s23 = smov [#allocation2]   ;;  %139 = sbr.rel (%p1593_p3) target bundleno = 446 (0x1be), region = 28 }
  0x17   : > { %1435 = dma.vmem_to_smem (!%p1433_p7), %s119_s21, 32, %s1542_s23, [#allocation3]  }
  0x1b   : > { %1519 = dma.done.wait (%p1597_p5), [#allocation3], 32  }
  0x1c   : > { %1521 = vsyncadd (%p1597_p5), [#allocation3], 4294967264 }
  0x1d   : > { %145 = sfence }
  0x1e   : > { %v190_v0 = vlaneseq  ;;  %s1316_s24 = sshll.u32 %s1524_s9, 7  ;;  %s1315_s25 = sshll.u32 %s1528_s10, 7 }
  0x1f   : > { %v193_v1 = vstv %s1316_s24  ;;  %s180_s26 = sadd.s32 1, %s1315_s25  ;;  %s186_s27 = sadd.s32 4, %s1315_s25 }
  0x20   : > { %v191_v2 = vand.u32 127, %v190_v0  ;;  %s181_s28 = sld [smem:[#allocation2 + %s180_s26]]  ;;  %s184_s29 = sadd.s32 3, %s1315_s25  ;;  %v1618_v17 = vshrl.u32 %v190_v0, 7 }
  0x21   : > { %s187_s30 = sld [smem:[#allocation2 + %s186_s27]]  ;;  %s182_s4 = sadd.s32 2, %s1315_s25 }
  0x22   : > { %v194_v3 = vadd.s32 %v193_v1, %v191_v2  ;;  %s179_s3 = sld [smem:[#allocation2 + %s1315_s25]]  ;;  %s188_s6 = sadd.s32 5, %s1315_s25  ;;  %2454 = vst [vmem:[#allocation5_spill] sm:$0xff] %v1618_v17  ;;  %v1621_v24 = vadd.s32 248, %v1618_v17  ;;  %v1624_v27 = vadd.s32 120, %v1618_v17  ;;  %v1627_v28 = vadd.s32 240, %v1618_v17 }
  0x23   : > { %s185_s5 = sld [smem:[#allocation2 + %s184_s29]]  ;;  %v1630_v33 = vadd.s32 112, %v1618_v17  ;;  %v1636_v35 = vadd.s32 232, %v1618_v17  ;;  %v1639_v36 = vadd.s32 104, %v1618_v17  ;;  %v1642_v37 = vadd.s32 224, %v1618_v17  ;;  %p165_p2 = scmp.lt.s32.totalorder %s1528_s10, 1 }
  0x24   : > { %v195_v4 = vcvt.s32.f32 %v194_v3  ;;  %s183_s7 = sld [smem:[#allocation2 + %s182_s4]]  ;;  %v1633_v34 = vadd.s32 256, %v1621_v24  ;;  %v1645_v40 = vadd.s32 256, %v1624_v27  ;;  %v1648_v41 = vadd.s32 256, %v1627_v28  ;;  %p172_p3 = scmp.lt.s32.totalorder %s1524_s9, 4 }
  0x25   : > { %s189_s8 = sld [smem:[#allocation2 + %s188_s6]]  ;;  %v1651_v42 = vadd.s32 96, %v1618_v17  ;;  %v1654_v43 = vadd.s32 216, %v1618_v17  ;;  %v1657_v44 = vadd.s32 88, %v1618_v17  ;;  %v1660_v45 = vadd.s32 208, %v1618_v17  ;;  %s2495_s10 = smov (!%p165_p2, %s1528_s10), 1 }
  0x26   : > { %v197_v5 = vmul.f32 0.041666668, %v195_v4  ;;  %v211_v15 = vstv %s181_s28  ;;  %v1663_v48 = vadd.s32 256, %v1630_v33  ;;  %v1666_v49 = vadd.s32 80, %v1618_v17  ;;  %s1422_s14 = smul.u32 20, %s2495_s10  ;;  %s2497_s9 = smov (!%p172_p3, %s1524_s9), 4 }
  0x27   : > { %v218_v16 = vstv %s187_s30  ;;  %v1669_v50 = vadd.s32 256, %v1636_v35  ;;  %v1672_v51 = vadd.s32 256, %v1639_v36  ;;  %v1675_v52 = vadd.s32 256, %v1642_v37  ;;  %s1423_s20 = smul.u32 5, %s2495_s10 }
  0x28   : > { %v198_v6 = vfloor.f32 %v197_v5  ;;  %v209_v19 = vstv %s179_s3  ;;  %v1678_v53 = vadd.s32 200, %v1618_v17  ;;  %v1681_v56 = vadd.s32 72, %v1618_v17  ;;  %s2293_s19 = scalar_lea.vmem %s2440_s1, %s1422_s14 }
  0x29   : > { %v216_v20 = vstv %s185_s5  ;;  %v1684_v57 = vadd.s32 192, %v1618_v17  ;;  %v1687_v58 = vadd.s32 256, %v1651_v42  ;;  %v1690_v59 = vadd.s32 256, %v1654_v43  ;;  %s175_s21 = sadd.s32 %s1423_s20, %s2497_s9 }
  0x2a   : > { %v199_v7 = vmul.f32 24.0, %v198_v6  ;;  %v205_v8 = vmul.f32 2.0, %v198_v6  ;;  %v214_v29 = vstv %s183_s7  ;;  %v1693_v60 = vadd.s32 256, %v1657_v44  ;;  %s1314_s22 = sshll.u32 %s175_s21, 2 }
  0x2b   : > { %v221_v30 = vstv %s189_s8  ;;  %v1696_v61 = vadd.s32 256, %v1660_v45  ;;  %v1699_v0 = vadd.s32 256, %v1666_v49  ;;  %v1702_v1 = vadd.s32 64, %v1618_v17  ;;  %s177_s25 = scalar_lea.vmem %s2441_s2, %s1314_s22 }
  0x2c   : > { %v200_v9 = vsub.f32 %v195_v4, %v199_v7  ;;  %v206_v10 = vadd.f32 1.0, %v205_v8  ;;  %v1705_v2 = vadd.s32 256, %v1678_v53  ;;  %v1708_v3 = vadd.s32 184, %v1618_v17 }
  0x2d   : > { %v1711_v4 = vadd.s32 56, %v1618_v17  ;;  %v1714_v5 = vadd.s32 176, %v1618_v17  ;;  %v1717_v8 = vadd.s32 256, %v1681_v56 }
  0x2e   : > { %v201_v11 = vmul.f32 2.0, %v200_v9  ;;  %v207_v12 = vmul.f32 0.041666668, %v206_v10  ;;  %v1720_v9 = vadd.s32 256, %v1684_v57  ;;  %v1723_v10 = vadd.s32 48, %v1618_v17 }
  0x30   : > { %v202_v13 = vadd.f32 1.0, %v201_v11  ;;  %v1318_v14 = vadd.f32 -1.0, %v207_v12  ;;  %v1726_v11 = vadd.s32 168, %v1618_v17  ;;  %v1729_v12 = vadd.s32 40, %v1618_v17 }
  0x32   : > { %v203_v18 = vmul.f32 0.041666668, %v202_v13  ;;  %v212_v22 = vmul.f32 %v1318_v14, %v211_v15  ;;  %v219_v23 = vmul.f32 %v1318_v14, %v218_v16  ;;  %2455 = vst [vmem:[#allocation6_spill] sm:$0xff] %v1726_v11  ;;  %2456 = vst [vmem:[#allocation7_spill] sm:$0xff] %v1729_v12  ;;  %v1732_v13 = vadd.s32 160, %v1618_v17 }
  0x33   : > { %v1735_v16 = vadd.s32 256, %v1702_v1 }
  0x34   : > { %v1317_v21 = vadd.f32 -1.0, %v203_v18  ;;  %2457 = vst [vmem:[#allocation8_spill] sm:$0xff] %v1732_v13  ;;  %v1738_v18 = vadd.s32 32, %v1618_v17 }
  0x36   : > { %v210_v25 = vmul.f32 %v1317_v21, %v209_v19  ;;  %v217_v26 = vmul.f32 %v1317_v21, %v216_v20  ;;  %2458 = vst [vmem:[#allocation9_spill] sm:$0xff] %v1738_v18  ;;  %v1741_v19 = vadd.s32 256, %v1708_v3  ;;  %v1744_v20 = vadd.s32 256, %v1711_v4 }
  0x37   : > { %v1747_v21 = vadd.s32 256, %v1714_v5 }
  0x38   : > { %v213_v31 = vadd.f32 %v212_v22, %v210_v25  ;;  %v220_v32 = vadd.f32 %v219_v23, %v217_v26  ;;  %v1750_v22 = vadd.s32 152, %v1618_v17 }
  0x3a   : > { %v215_v38 = vadd.f32 %v214_v29, %v213_v31  ;;  %v222_v39 = vadd.f32 %v221_v30, %v220_v32  ;;  %2459 = vst [vmem:[#allocation10_spill] sm:$0xff] %v1750_v22  ;;  %v1753_v30 = vadd.s32 256, %v1723_v10  ;;  %v1756_v31 = vadd.s32 256, %v1726_v11 }
  0x3b   : > { %v1759_v32 = vadd.s32 256, %v1729_v12 }
  0x3c   : > { %v223_v46 = vadd.f32 1.0, %v215_v38  ;;  %v227_v47 = vadd.f32 1.0, %v222_v39  ;;  %v1762_v38 = vadd.s32 256, %v1732_v13 }
  0x3d   : > { %2460 = vst [vmem:[#allocation11_spill] sm:$0xff] %v1759_v32 }
  0x3e   : > { %v224_v54 = vmul.f32 24.0, %v223_v46  ;;  %v228_v55 = vmul.f32 24.0, %v227_v47  ;;  %2461 = vst [vmem:[#allocation12_spill] sm:$0xff] %v1762_v38  ;;  %v1795_v38 = vadd.s32 8, %v1618_v17 }
  0x40   : > { %v1319_v62 = vadd.f32 -1.0, %v224_v54  ;;  %v1320_v63 = vadd.f32 -1.0, %v228_v55  ;;  %v1765_v54 = vadd.s32 256, %v1738_v18 }
  0x42   : > { %v226_v6 = vmul.f32 0.5, %v1319_v62  ;;  %v230_v7 = vmul.f32 0.5, %v1320_v63  ;;  %2462 = vst [vmem:[#allocation13_spill] sm:$0xff] %v1765_v54  ;;  %v1768_v62 = vadd.s32 256, %v1750_v22  ;;  %v1771_v63 = vadd.s32 24, %v1618_v17 }
  0x44   : > { %v231_v14 = vfloor.f32 %v226_v6  ;;  %v232_v15 = vfloor.f32 %v230_v7  ;;  %2463 = vst [vmem:[#allocation14_spill] sm:$0xff] %v1768_v62  ;;  %v1804_v11 = vadd.s32 256, %v1771_v63 }
  0x46   : > { %v233_v23 = vsub.f32 %v226_v6, %v231_v14  ;;  %v235_v25 = vsub.f32 %v230_v7, %v232_v15  ;;  %v1424_v26 = vtrunc.f32 %v231_v14  ;;  %v1426_v29 = vtrunc.f32 %v232_v15 }
  0x47   : > { %v1774_v6 = vadd.s32 144, %v1618_v17 }
  0x48   : > { %v236_v39 = vsub.f32 1.0, %v235_v25  ;;  %v1425_v46 = vcvt.f32.s32 %v1424_v26  ;;  %v1427_v47 = vcvt.f32.s32 %v1426_v29  ;;  %v234_v55 = vsub.f32 1.0, %v233_v23 }
  0x49   : > { %v1781_v26 = vadd.s32 16, %v1618_v17  ;;  %v1784_v29 = vadd.s32 136, %v1618_v17 }
  0x4a   : > { %vm239_vm0 = vcmp.ge.s32.totalorder %v1425_v46, 0  ;;  %vm240_vm1 = vcmp.lt.s32.totalorder %v1425_v46, 24  ;;  %v242_v7 = vadd.s32 1, %v1425_v46  ;;  %vm246_vm2 = vcmp.ge.s32.totalorder %v1427_v47, 0 }
  0x4b   : > { %vm1776_vm3 = vmand %vm239_vm0, %vm240_vm1  ;;  %vm247_vm4 = vcmp.lt.s32.totalorder %v1427_v47, 24  ;;  %v249_v15 = vadd.s32 1, %v1427_v47  ;;  %2466 = vst [vmem:[#allocation15_spill] sm:$0xff] %v1784_v29  ;;  %v254_v62 = vmul.f32 %v236_v39, %v234_v55  ;;  %v265_v18 = vmul.u32 24, %v1427_v47 }
  0x4c   : > { %vm243_vm5 = vcmp.ge.s32.totalorder %v242_v7, 0  ;;  %vm244_vm6 = vcmp.lt.s32.totalorder %v242_v7, 24  ;;  %vm1786_vm7 = vmand %vm246_vm2, %vm247_vm4  ;;  %v257_v13 = vmul.f32 %v236_v39, %v233_v23  ;;  %v260_v7 = vmul.f32 %v235_v25, %v234_v55 }
  0x4d   : > { %vm1790_vm8 = vmand %vm243_vm5, %vm244_vm6  ;;  %vm250_vm9 = vcmp.ge.s32.totalorder %v249_v15, 0  ;;  %vm251_vm10 = vcmp.lt.s32.totalorder %v249_v15, 24  ;;  %v1801_v32 = vadd.s32 %v1425_v46, %v265_v18  ;;  %v1807_v47 = vadd.s32 256, %v1774_v6 }
  0x4e   : > { %vm1797_vm11 = vmand %vm250_vm9, %vm251_vm10  ;;  %v263_v39 = vmul.f32 %v235_v25, %v233_v23  ;;  %v1814_v15 = vadd.s32 256, %v1781_v26  ;;  %v1817_v17 = vadd.s32 256, %v1784_v29  ;;  %v1820_v18 = vadd.s32 256, %v1795_v38 }
  0x4f   : > { %vm253_vm12 = vmand %vm1786_vm7, %vm1776_vm3  ;;  %v654_v55 = vsub.s32 %v1633_v34, %v1801_v32  ;;  %v334_v23 = vsub.s32 %v1621_v24, %v1801_v32  ;;  %v638_v25 = vsub.s32 %v1645_v40, %v1801_v32  ;;  %v318_v22 = vsub.s32 %v1624_v27, %v1801_v32 }
  0x50   : > { %v1822_v46 = vsel %vm253_vm12, %v254_v62, 0.0  ;;  %vm256_vm13 = vmand %vm1786_vm7, %vm1790_vm8  ;;  %v653_v62 = vsub.s32 %v1648_v41, %v1801_v32  ;;  %v1846_v34 = vsub.s32 %v1627_v28, %v1801_v32 }
  0x51   : > { %v1834_v29 = vsel %vm256_vm13, %v257_v13, 0.0  ;;  %vm259_vm14 = vmand %vm1797_vm11, %vm1776_vm3  ;;  %vm686_vm0 = vcmp.eq.s32.totalorder %v654_v55, 0  ;;  %vm718_vm1 = vcmp.eq.s32.totalorder %v654_v55, 1  ;;  %vm750_vm2 = vcmp.eq.s32.totalorder %v654_v55, 24 }
  0x52   : > { %v1848_v24 = vsel %vm259_vm14, %v260_v7, 0.0  ;;  %vm262_vm15 = vmand %vm1797_vm11, %vm1790_vm8  ;;  %vm782_vm3 = vcmp.eq.s32.totalorder %v654_v55, 25  ;;  %vm366_vm4 = vcmp.eq.s32.totalorder %v334_v23, 0  ;;  %vm398_vm5 = vcmp.eq.s32.totalorder %v334_v23, 1 }
  0x53   : > { %v1854_v40 = vsel %vm262_vm15, %v263_v39, 0.0  ;;  %vm430_vm6 = vcmp.eq.s32.totalorder %v334_v23, 24  ;;  %vm462_vm7 = vcmp.eq.s32.totalorder %v334_v23, 25  ;;  %vm670_vm9 = vcmp.eq.s32.totalorder %v638_v25, 0 }
  0x54   : > { %v814_v27 = vsel %vm782_vm3, %v1854_v40, 0.0  ;;  %v494_v41 = vsel %vm462_vm7, %v1854_v40, 0.0  ;;  %vm702_vm10 = vcmp.eq.s32.totalorder %v638_v25, 1  ;;  %vm734_vm12 = vcmp.eq.s32.totalorder %v638_v25, 24 }
  0x55   : > { %v846_v28 = vsel %vm750_vm2, %v1848_v24, %v814_v27  ;;  %v526_v13 = vsel %vm430_vm6, %v1848_v24, %v494_v41  ;;  %vm766_vm8 = vcmp.eq.s32.totalorder %v638_v25, 25  ;;  %vm350_vm11 = vcmp.eq.s32.totalorder %v318_v22, 0 }
  0x56   : > { %v878_v12 = vsel %vm718_vm1, %v1834_v29, %v846_v28  ;;  %v558_v14 = vsel %vm398_vm5, %v1834_v29, %v526_v13  ;;  %v798_v7 = vsel %vm766_vm8, %v1854_v40, 0.0  ;;  %vm382_vm13 = vcmp.eq.s32.totalorder %v318_v22, 1 }
  0x57   : > { %v910_v54 = vsel %vm686_vm0, %v1822_v46, %v878_v12  ;;  %v590_v39 = vsel %vm366_vm4, %v1822_v46, %v558_v14  ;;  %v830_v27 = vsel %vm734_vm12, %v1848_v24, %v798_v7  ;;  %vm414_vm14 = vcmp.eq.s32.totalorder %v318_v22, 24 }
  0x58   : > { %1324 = vmatprep.subr.mxu0 %v910_v54  ;;  %vm446_vm15 = vcmp.eq.s32.totalorder %v318_v22, 25  ;;  %1359 = vmatprep.subr.mxu1 %v590_v39  ;;  %v862_v28 = vsel %vm702_vm10, %v1834_v29, %v830_v27  ;;  %vm685_vm0 = vcmp.eq.s32.totalorder %v653_v62, 0  ;;  %vm717_vm1 = vcmp.eq.s32.totalorder %v653_v62, 1 }
  0x59   : > { %v478_v55 = vsel %vm446_vm15, %v1854_v40, 0.0  ;;  %v894_v41 = vsel %vm670_vm9, %v1822_v46, %v862_v28  ;;  %vm749_vm2 = vcmp.eq.s32.totalorder %v653_v62, 24  ;;  %vm781_vm3 = vcmp.eq.s32.totalorder %v653_v62, 25 }
  0x5a   : > { %v510_v12 = vsel %vm414_vm14, %v1848_v24, %v478_v55  ;;  %1325 = vmatpush3.msra.mxu0 %v894_v41  ;;  %v813_v13 = vsel %vm781_vm3, %v1854_v40, 0.0  ;;  %vm365_vm4 = vcmp.eq.s32.totalorder %v1846_v34, 0  ;;  %vm397_vm5 = vcmp.eq.s32.totalorder %v1846_v34, 1 }
  0x5b   : > { %v542_v23 = vsel %vm382_vm13, %v1834_v29, %v510_v12  ;;  %v845_v25 = vsel %vm749_vm2, %v1848_v24, %v813_v13  ;;  %vm429_vm6 = vcmp.eq.s32.totalorder %v1846_v34, 24  ;;  %vm461_vm7 = vcmp.eq.s32.totalorder %v1846_v34, 25 }
  0x5c   : > { %v574_v54 = vsel %vm350_vm11, %v1822_v46, %v542_v23  ;;  %v877_v14 = vsel %vm717_vm1, %v1834_v29, %v845_v25  ;;  %v493_v7 = vsel %vm461_vm7, %v1854_v40, 0.0  ;;  %v637_v39 = vsub.s32 %v1663_v48, %v1801_v32 }
  0x5d   : > { %1360 = vmatpush3.msra.mxu1 %v574_v54  ;;  %v317_v27 = vsub.s32 %v1630_v33, %v1801_v32  ;;  %v909_v22 = vsel %vm685_vm0, %v1822_v46, %v877_v14  ;;  %v525_v28 = vsel %vm429_vm6, %v1848_v24, %v493_v7  ;;  %v652_v55 = vsub.s32 %v1669_v50, %v1801_v32 }
  0x5e   : > { %v332_v41 = vsub.s32 %v1636_v35, %v1801_v32  ;;  %1326 = vmatprep.subr.mxu0 %v909_v22  ;;  %v557_v12 = vsel %vm397_vm5, %v1834_v29, %v525_v28  ;;  %vm669_vm9 = vcmp.eq.s32.totalorder %v637_v39, 0  ;;  %vm701_vm10 = vcmp.eq.s32.totalorder %v637_v39, 1 }
  0x5f   : > { %vm733_vm12 = vcmp.eq.s32.totalorder %v637_v39, 24  ;;  %v589_v33 = vsel %vm365_vm4, %v1822_v46, %v557_v12  ;;  %vm765_vm8 = vcmp.eq.s32.totalorder %v637_v39, 25  ;;  %vm349_vm11 = vcmp.eq.s32.totalorder %v317_v27, 0 }
  0x60   : > { %vm381_vm13 = vcmp.eq.s32.totalorder %v317_v27, 1  ;;  %1361 = vmatprep.subr.mxu1 %v589_v33  ;;  %v797_v48 = vsel %vm765_vm8, %v1854_v40, 0.0  ;;  %vm413_vm14 = vcmp.eq.s32.totalorder %v317_v27, 24  ;;  %vm445_vm15 = vcmp.eq.s32.totalorder %v317_v27, 25 }
  0x61   : > { %vm684_vm0 = vcmp.eq.s32.totalorder %v652_v55, 0  ;;  %v829_v35 = vsel %vm733_vm12, %v1848_v24, %v797_v48  ;;  %v477_v50 = vsel %vm445_vm15, %v1854_v40, 0.0  ;;  %vm716_vm1 = vcmp.eq.s32.totalorder %v652_v55, 1 }
  0x62   : > { %vm748_vm2 = vcmp.eq.s32.totalorder %v652_v55, 24  ;;  %v861_v62 = vsel %vm701_vm10, %v1834_v29, %v829_v35  ;;  %v509_v34 = vsel %vm413_vm14, %v1848_v24, %v477_v50  ;;  %vm780_vm3 = vcmp.eq.s32.totalorder %v652_v55, 25 }
  0x63   : > { %vm364_vm4 = vcmp.eq.s32.totalorder %v332_v41, 0  ;;  %v893_v23 = vsel %vm669_vm9, %v1822_v46, %v861_v62  ;;  %v541_v13 = vsel %vm381_vm13, %v1834_v29, %v509_v34  ;;  %v812_v54 = vsel %vm780_vm3, %v1854_v40, 0.0 }
  0x64   : > { %vm396_vm5 = vcmp.eq.s32.totalorder %v332_v41, 1  ;;  %1327 = vmatpush3.msra.mxu0 %v893_v23  ;;  %v573_v25 = vsel %vm349_vm11, %v1822_v46, %v541_v13  ;;  %v844_v14 = vsel %vm748_vm2, %v1848_v24, %v812_v54  ;;  %vm428_vm6 = vcmp.eq.s32.totalorder %v332_v41, 24 }
  0x65   : > { %vm460_vm7 = vcmp.eq.s32.totalorder %v332_v41, 25  ;;  %1362 = vmatpush3.msra.mxu1 %v573_v25  ;;  %v876_v7 = vsel %vm716_vm1, %v1834_v29, %v844_v14  ;;  %v636_v22 = vsub.s32 %v1672_v51, %v1801_v32  ;;  %v316_v28 = vsub.s32 %v1639_v36, %v1801_v32 }
  0x66   : > { %v492_v39 = vsel %vm460_vm7, %v1854_v40, 0.0  ;;  %v908_v27 = vsel %vm684_vm0, %v1822_v46, %v876_v7  ;;  %v651_v33 = vsub.s32 %v1675_v52, %v1801_v32  ;;  %v331_v48 = vsub.s32 %v1642_v37, %v1801_v32 }
  0x67   : > { %v524_v12 = vsel %vm428_vm6, %v1848_v24, %v492_v39  ;;  %1328 = vmatprep.subr.mxu0 %v908_v27  ;;  %vm668_vm9 = vcmp.eq.s32.totalorder %v636_v22, 0  ;;  %vm700_vm10 = vcmp.eq.s32.totalorder %v636_v22, 1  ;;  %vm732_vm12 = vcmp.eq.s32.totalorder %v636_v22, 24 }
  0x68   : > { %v556_v35 = vsel %vm396_vm5, %v1834_v29, %v524_v12  ;;  %vm764_vm8 = vcmp.eq.s32.totalorder %v636_v22, 25  ;;  %vm348_vm11 = vcmp.eq.s32.totalorder %v316_v28, 0  ;;  %vm380_vm13 = vcmp.eq.s32.totalorder %v316_v28, 1 }
  0x69   : > { %v588_v36 = vsel %vm364_vm4, %v1822_v46, %v556_v35  ;;  %v796_v51 = vsel %vm764_vm8, %v1854_v40, 0.0  ;;  %vm412_vm14 = vcmp.eq.s32.totalorder %v316_v28, 24  ;;  %vm444_vm15 = vcmp.eq.s32.totalorder %v316_v28, 25 }
  0x6a   : > { %1363 = vmatprep.subr.mxu1 %v588_v36  ;;  %vm683_vm0 = vcmp.eq.s32.totalorder %v651_v33, 0  ;;  %v828_v37 = vsel %vm732_vm12, %v1848_v24, %v796_v51  ;;  %v476_v52 = vsel %vm444_vm15, %v1854_v40, 0.0  ;;  %vm715_vm1 = vcmp.eq.s32.totalorder %v651_v33, 1 }
  0x6b   : > { %vm747_vm2 = vcmp.eq.s32.totalorder %v651_v33, 24  ;;  %v860_v55 = vsel %vm700_vm10, %v1834_v29, %v828_v37  ;;  %v508_v41 = vsel %vm412_vm14, %v1848_v24, %v476_v52  ;;  %vm779_vm3 = vcmp.eq.s32.totalorder %v651_v33, 25 }
  0x6c   : > { %vm363_vm4 = vcmp.eq.s32.totalorder %v331_v48, 0  ;;  %v892_v50 = vsel %vm668_vm9, %v1822_v46, %v860_v55  ;;  %v540_v62 = vsel %vm380_vm13, %v1834_v29, %v508_v41  ;;  %v811_v34 = vsel %vm779_vm3, %v1854_v40, 0.0 }
  0x6d   : > { %vm395_vm5 = vcmp.eq.s32.totalorder %v331_v48, 1  ;;  %1329 = vmatpush3.msra.mxu0 %v892_v50  ;;  %v572_v23 = vsel %vm348_vm11, %v1822_v46, %v540_v62  ;;  %v843_v13 = vsel %vm747_vm2, %v1848_v24, %v811_v34  ;;  %vm427_vm6 = vcmp.eq.s32.totalorder %v331_v48, 24 }
  0x6e   : > { %vm459_vm7 = vcmp.eq.s32.totalorder %v331_v48, 25  ;;  %1364 = vmatpush3.msra.mxu1 %v572_v23  ;;  %v875_v54 = vsel %vm715_vm1, %v1834_v29, %v843_v13  ;;  %v635_v14 = vsub.s32 %v1687_v58, %v1801_v32  ;;  %v315_v7 = vsub.s32 %v1651_v42, %v1801_v32 }
  0x6f   : > { %v491_v25 = vsel %vm459_vm7, %v1854_v40, 0.0  ;;  %v907_v39 = vsel %vm683_vm0, %v1822_v46, %v875_v54  ;;  %v650_v28 = vsub.s32 %v1690_v59, %v1801_v32  ;;  %v330_v27 = vsub.s32 %v1654_v43, %v1801_v32 }
  0x70   : > { %v523_v22 = vsel %vm427_vm6, %v1848_v24, %v491_v25  ;;  %1330 = vmatprep.subr.mxu0 %v907_v39  ;;  %vm667_vm9 = vcmp.eq.s32.totalorder %v635_v14, 0  ;;  %vm699_vm10 = vcmp.eq.s32.totalorder %v635_v14, 1  ;;  %vm731_vm12 = vcmp.eq.s32.totalorder %v635_v14, 24 }
  0x71   : > { %v555_v12 = vsel %vm395_vm5, %v1834_v29, %v523_v22  ;;  %vm763_vm8 = vcmp.eq.s32.totalorder %v635_v14, 25  ;;  %vm347_vm11 = vcmp.eq.s32.totalorder %v315_v7, 0  ;;  %vm379_vm13 = vcmp.eq.s32.totalorder %v315_v7, 1 }
  0x72   : > { %v587_v42 = vsel %vm363_vm4, %v1822_v46, %v555_v12  ;;  %v795_v58 = vsel %vm763_vm8, %v1854_v40, 0.0  ;;  %vm411_vm14 = vcmp.eq.s32.totalorder %v315_v7, 24  ;;  %vm443_vm15 = vcmp.eq.s32.totalorder %v315_v7, 25 }
  0x73   : > { %1365 = vmatprep.subr.mxu1 %v587_v42  ;;  %vm682_vm0 = vcmp.eq.s32.totalorder %v650_v28, 0  ;;  %v827_v43 = vsel %vm731_vm12, %v1848_v24, %v795_v58  ;;  %v475_v59 = vsel %vm443_vm15, %v1854_v40, 0.0  ;;  %vm714_vm1 = vcmp.eq.s32.totalorder %v650_v28, 1 }
  0x74   : > { %vm746_vm2 = vcmp.eq.s32.totalorder %v650_v28, 24  ;;  %v859_v33 = vsel %vm699_vm10, %v1834_v29, %v827_v43  ;;  %v507_v48 = vsel %vm411_vm14, %v1848_v24, %v475_v59  ;;  %vm778_vm3 = vcmp.eq.s32.totalorder %v650_v28, 25 }
  0x75   : > { %vm362_vm4 = vcmp.eq.s32.totalorder %v330_v27, 0  ;;  %v891_v35 = vsel %vm667_vm9, %v1822_v46, %v859_v33  ;;  %v539_v36 = vsel %vm379_vm13, %v1834_v29, %v507_v48  ;;  %v810_v51 = vsel %vm778_vm3, %v1854_v40, 0.0 }
  0x76   : > { %vm394_vm5 = vcmp.eq.s32.totalorder %v330_v27, 1  ;;  %1331 = vmatpush3.msra.mxu0 %v891_v35  ;;  %v571_v37 = vsel %vm347_vm11, %v1822_v46, %v539_v36  ;;  %v842_v52 = vsel %vm746_vm2, %v1848_v24, %v810_v51  ;;  %vm426_vm6 = vcmp.eq.s32.totalorder %v330_v27, 24 }
  0x77   : > { %vm458_vm7 = vcmp.eq.s32.totalorder %v330_v27, 25  ;;  %1366 = vmatpush3.msra.mxu1 %v571_v37  ;;  %v874_v55 = vsel %vm714_vm1, %v1834_v29, %v842_v52  ;;  %v634_v50 = vsub.s32 %v1693_v60, %v1801_v32  ;;  %v314_v62 = vsub.s32 %v1657_v44, %v1801_v32 }
  0x78   : > { %v490_v41 = vsel %vm458_vm7, %v1854_v40, 0.0  ;;  %v906_v34 = vsel %vm682_vm0, %v1822_v46, %v874_v55  ;;  %v649_v13 = vsub.s32 %v1696_v61, %v1801_v32  ;;  %v329_v54 = vsub.s32 %v1660_v45, %v1801_v32 }
  0x79   : > { %v522_v23 = vsel %vm426_vm6, %v1848_v24, %v490_v41  ;;  %1332 = vmatprep.subr.mxu0 %v906_v34  ;;  %vm666_vm9 = vcmp.eq.s32.totalorder %v634_v50, 0  ;;  %vm698_vm10 = vcmp.eq.s32.totalorder %v634_v50, 1  ;;  %vm730_vm12 = vcmp.eq.s32.totalorder %v634_v50, 24 }
  0x7a   : > { %v554_v25 = vsel %vm394_vm5, %v1834_v29, %v522_v23  ;;  %vm762_vm8 = vcmp.eq.s32.totalorder %v634_v50, 25  ;;  %vm346_vm11 = vcmp.eq.s32.totalorder %v314_v62, 0  ;;  %vm378_vm13 = vcmp.eq.s32.totalorder %v314_v62, 1 }
  0x7b   : > { %v586_v44 = vsel %vm362_vm4, %v1822_v46, %v554_v25  ;;  %v794_v60 = vsel %vm762_vm8, %v1854_v40, 0.0  ;;  %vm410_vm14 = vcmp.eq.s32.totalorder %v314_v62, 24  ;;  %vm442_vm15 = vcmp.eq.s32.totalorder %v314_v62, 25 }
  0x7c   : > { %1367 = vmatprep.subr.mxu1 %v586_v44  ;;  %vm681_vm0 = vcmp.eq.s32.totalorder %v649_v13, 0  ;;  %v826_v45 = vsel %vm730_vm12, %v1848_v24, %v794_v60  ;;  %v474_v61 = vsel %vm442_vm15, %v1854_v40, 0.0  ;;  %vm713_vm1 = vcmp.eq.s32.totalorder %v649_v13, 1 }
  0x7d   : > { %vm745_vm2 = vcmp.eq.s32.totalorder %v649_v13, 24  ;;  %v858_v14 = vsel %vm698_vm10, %v1834_v29, %v826_v45  ;;  %v506_v7 = vsel %vm410_vm14, %v1848_v24, %v474_v61  ;;  %vm777_vm3 = vcmp.eq.s32.totalorder %v649_v13, 25 }
  0x7e   : > { %vm361_vm4 = vcmp.eq.s32.totalorder %v329_v54, 0  ;;  %v890_v39 = vsel %vm666_vm9, %v1822_v46, %v858_v14  ;;  %v538_v22 = vsel %vm378_vm13, %v1834_v29, %v506_v7  ;;  %v809_v28 = vsel %vm777_vm3, %v1854_v40, 0.0 }
  0x7f   : > { %vm393_vm5 = vcmp.eq.s32.totalorder %v329_v54, 1  ;;  %1333 = vmatpush3.msra.mxu0 %v890_v39  ;;  %v570_v27 = vsel %vm346_vm11, %v1822_v46, %v538_v22  ;;  %v841_v12 = vsel %vm745_vm2, %v1848_v24, %v809_v28  ;;  %vm425_vm6 = vcmp.eq.s32.totalorder %v329_v54, 24 }
  0x80   : > { %vm457_vm7 = vcmp.eq.s32.totalorder %v329_v54, 25  ;;  %1368 = vmatpush3.msra.mxu1 %v570_v27  ;;  %v873_v42 = vsel %vm713_vm1, %v1834_v29, %v841_v12  ;;  %v633_v43 = vsub.s32 %v1699_v0, %v1801_v32  ;;  %v313_v59 = vsub.s32 %v1666_v49, %v1801_v32 }
  0x81   : > { %v489_v58 = vsel %vm457_vm7, %v1854_v40, 0.0  ;;  %v905_v33 = vsel %vm681_vm0, %v1822_v46, %v873_v42  ;;  %v648_v35 = vsub.s32 %v1705_v2, %v1801_v32  ;;  %v328_v36 = vsub.s32 %v1678_v53, %v1801_v32 }
  0x82   : > { %v521_v48 = vsel %vm425_vm6, %v1848_v24, %v489_v58  ;;  %1334 = vmatprep.subr.mxu0 %v905_v33  ;;  %vm665_vm9 = vcmp.eq.s32.totalorder %v633_v43, 0  ;;  %vm697_vm10 = vcmp.eq.s32.totalorder %v633_v43, 1  ;;  %vm729_vm12 = vcmp.eq.s32.totalorder %v633_v43, 24 }
  0x83   : > { %v553_v51 = vsel %vm393_vm5, %v1834_v29, %v521_v48  ;;  %vm761_vm8 = vcmp.eq.s32.totalorder %v633_v43, 25  ;;  %vm345_vm11 = vcmp.eq.s32.totalorder %v313_v59, 0  ;;  %vm377_vm13 = vcmp.eq.s32.totalorder %v313_v59, 1 }
  0x84   : > { %v585_v49 = vsel %vm361_vm4, %v1822_v46, %v553_v51  ;;  %v793_v0 = vsel %vm761_vm8, %v1854_v40, 0.0  ;;  %vm409_vm14 = vcmp.eq.s32.totalorder %v313_v59, 24  ;;  %vm441_vm15 = vcmp.eq.s32.totalorder %v313_v59, 25 }
  0x85   : > { %1369 = vmatprep.subr.mxu1 %v585_v49  ;;  %vm680_vm0 = vcmp.eq.s32.totalorder %v648_v35, 0  ;;  %v825_v53 = vsel %vm729_vm12, %v1848_v24, %v793_v0  ;;  %v473_v2 = vsel %vm441_vm15, %v1854_v40, 0.0  ;;  %vm712_vm1 = vcmp.eq.s32.totalorder %v648_v35, 1 }
  0x86   : > { %vm744_vm2 = vcmp.eq.s32.totalorder %v648_v35, 24  ;;  %v857_v37 = vsel %vm697_vm10, %v1834_v29, %v825_v53  ;;  %v505_v52 = vsel %vm409_vm14, %v1848_v24, %v473_v2  ;;  %vm776_vm3 = vcmp.eq.s32.totalorder %v648_v35, 25 }
  0x87   : > { %vm360_vm4 = vcmp.eq.s32.totalorder %v328_v36, 0  ;;  %v889_v55 = vsel %vm665_vm9, %v1822_v46, %v857_v37  ;;  %v537_v41 = vsel %vm377_vm13, %v1834_v29, %v505_v52  ;;  %v808_v50 = vsel %vm776_vm3, %v1854_v40, 0.0 }
  0x88   : > { %vm392_vm5 = vcmp.eq.s32.totalorder %v328_v36, 1  ;;  %1335 = vmatpush3.msra.mxu0 %v889_v55  ;;  %v569_v62 = vsel %vm345_vm11, %v1822_v46, %v537_v41  ;;  %v840_v34 = vsel %vm744_vm2, %v1848_v24, %v808_v50  ;;  %vm424_vm6 = vcmp.eq.s32.totalorder %v328_v36, 24 }
  0x89   : > { %vm456_vm7 = vcmp.eq.s32.totalorder %v328_v36, 25  ;;  %1370 = vmatpush3.msra.mxu1 %v569_v62  ;;  %v872_v23 = vsel %vm712_vm1, %v1834_v29, %v840_v34  ;;  %v632_v54 = vsub.s32 %v1717_v8, %v1801_v32  ;;  %v312_v25 = vsub.s32 %v1681_v56, %v1801_v32 }
  0x8a   : > { %v488_v13 = vsel %vm456_vm7, %v1854_v40, 0.0  ;;  %v904_v44 = vsel %vm680_vm0, %v1822_v46, %v872_v23  ;;  %v647_v45 = vsub.s32 %v1720_v9, %v1801_v32  ;;  %v327_v61 = vsub.s32 %v1684_v57, %v1801_v32 }
  0x8b   : > { %v520_v60 = vsel %vm424_vm6, %v1848_v24, %v488_v13  ;;  %1336 = vmatprep.subr.mxu0 %v904_v44  ;;  %vm664_vm9 = vcmp.eq.s32.totalorder %v632_v54, 0  ;;  %vm696_vm10 = vcmp.eq.s32.totalorder %v632_v54, 1  ;;  %vm728_vm12 = vcmp.eq.s32.totalorder %v632_v54, 24 }
  0x8c   : > { %v552_v14 = vsel %vm392_vm5, %v1834_v29, %v520_v60  ;;  %vm760_vm8 = vcmp.eq.s32.totalorder %v632_v54, 25  ;;  %vm344_vm11 = vcmp.eq.s32.totalorder %v312_v25, 0  ;;  %vm376_vm13 = vcmp.eq.s32.totalorder %v312_v25, 1 }
  0x8d   : > { %v584_v56 = vsel %vm360_vm4, %v1822_v46, %v552_v14  ;;  %v792_v8 = vsel %vm760_vm8, %v1854_v40, 0.0  ;;  %vm408_vm14 = vcmp.eq.s32.totalorder %v312_v25, 24  ;;  %vm440_vm15 = vcmp.eq.s32.totalorder %v312_v25, 25 }
  0x8e   : > { %1371 = vmatprep.subr.mxu1 %v584_v56  ;;  %vm679_vm0 = vcmp.eq.s32.totalorder %v647_v45, 0  ;;  %v824_v57 = vsel %vm728_vm12, %v1848_v24, %v792_v8  ;;  %v472_v9 = vsel %vm440_vm15, %v1854_v40, 0.0  ;;  %vm711_vm1 = vcmp.eq.s32.totalorder %v647_v45, 1 }
  0x8f   : > { %vm743_vm2 = vcmp.eq.s32.totalorder %v647_v45, 24  ;;  %v856_v7 = vsel %vm696_vm10, %v1834_v29, %v824_v57  ;;  %v504_v39 = vsel %vm408_vm14, %v1848_v24, %v472_v9  ;;  %vm775_vm3 = vcmp.eq.s32.totalorder %v647_v45, 25 }
  0x90   : > { %vm359_vm4 = vcmp.eq.s32.totalorder %v327_v61, 0  ;;  %v888_v22 = vsel %vm664_vm9, %v1822_v46, %v856_v7  ;;  %v536_v28 = vsel %vm376_vm13, %v1834_v29, %v504_v39  ;;  %v807_v27 = vsel %vm775_vm3, %v1854_v40, 0.0 }
  0x91   : > { %vm391_vm5 = vcmp.eq.s32.totalorder %v327_v61, 1  ;;  %1337 = vmatpush3.msra.mxu0 %v888_v22  ;;  %v568_v12 = vsel %vm344_vm11, %v1822_v46, %v536_v28  ;;  %v839_v42 = vsel %vm743_vm2, %v1848_v24, %v807_v27  ;;  %vm423_vm6 = vcmp.eq.s32.totalorder %v327_v61, 24 }
  0x92   : > { %vm455_vm7 = vcmp.eq.s32.totalorder %v327_v61, 25  ;;  %1372 = vmatpush3.msra.mxu1 %v568_v12  ;;  %v871_v58 = vsel %vm711_vm1, %v1834_v29, %v839_v42  ;;  %v631_v59 = vsub.s32 %v1735_v16, %v1801_v32  ;;  %v311_v33 = vsub.s32 %v1702_v1, %v1801_v32 }
  0x93   : > { %v487_v43 = vsel %vm455_vm7, %v1854_v40, 0.0  ;;  %v903_v48 = vsel %vm679_vm0, %v1822_v46, %v871_v58  ;;  %v646_v36 = vsub.s32 %v1741_v19, %v1801_v32  ;;  %v326_v51 = vsub.s32 %v1708_v3, %v1801_v32 }
  0x94   : > { %v519_v35 = vsel %vm423_vm6, %v1848_v24, %v487_v43  ;;  %1338 = vmatprep.subr.mxu0 %v903_v48  ;;  %vm663_vm9 = vcmp.eq.s32.totalorder %v631_v59, 0  ;;  %vm695_vm10 = vcmp.eq.s32.totalorder %v631_v59, 1  ;;  %vm727_vm12 = vcmp.eq.s32.totalorder %v631_v59, 24  ;;  %v2473_v43 = vld [vmem:[#allocation6_spill] sm:$0xff] }
  0x95   : > { %v551_v49 = vsel %vm391_vm5, %v1834_v29, %v519_v35  ;;  %vm759_vm8 = vcmp.eq.s32.totalorder %v631_v59, 25  ;;  %vm343_vm11 = vcmp.eq.s32.totalorder %v311_v33, 0  ;;  %vm375_vm13 = vcmp.eq.s32.totalorder %v311_v33, 1 }
  0x96   : > { %v583_v1 = vsel %vm359_vm4, %v1822_v46, %v551_v49  ;;  %v791_v16 = vsel %vm759_vm8, %v1854_v40, 0.0  ;;  %vm407_vm14 = vcmp.eq.s32.totalorder %v311_v33, 24  ;;  %vm439_vm15 = vcmp.eq.s32.totalorder %v311_v33, 25 }
  0x97   : > { %1373 = vmatprep.subr.mxu1 %v583_v1  ;;  %vm678_vm0 = vcmp.eq.s32.totalorder %v646_v36, 0  ;;  %v823_v3 = vsel %vm727_vm12, %v1848_v24, %v791_v16  ;;  %v471_v19 = vsel %vm439_vm15, %v1854_v40, 0.0  ;;  %vm710_vm1 = vcmp.eq.s32.totalorder %v646_v36, 1 }
  0x98   : > { %vm742_vm2 = vcmp.eq.s32.totalorder %v646_v36, 24  ;;  %v855_v0 = vsel %vm695_vm10, %v1834_v29, %v823_v3  ;;  %v503_v53 = vsel %vm407_vm14, %v1848_v24, %v471_v19  ;;  %vm774_vm3 = vcmp.eq.s32.totalorder %v646_v36, 25 }
  0x99   : > { %vm358_vm4 = vcmp.eq.s32.totalorder %v326_v51, 0  ;;  %v887_v2 = vsel %vm663_vm9, %v1822_v46, %v855_v0  ;;  %v535_v37 = vsel %vm375_vm13, %v1834_v29, %v503_v53  ;;  %v806_v52 = vsel %vm774_vm3, %v1854_v40, 0.0 }
  0x9a   : > { %vm390_vm5 = vcmp.eq.s32.totalorder %v326_v51, 1  ;;  %1339 = vmatpush3.msra.mxu0 %v887_v2  ;;  %v567_v55 = vsel %vm343_vm11, %v1822_v46, %v535_v37  ;;  %v838_v41 = vsel %vm742_vm2, %v1848_v24, %v806_v52  ;;  %vm422_vm6 = vcmp.eq.s32.totalorder %v326_v51, 24  ;;  %v2474_v2 = vld [vmem:[#allocation11_spill] sm:$0xff] }
  0x9b   : > { %vm454_vm7 = vcmp.eq.s32.totalorder %v326_v51, 25  ;;  %1374 = vmatpush3.msra.mxu1 %v567_v55  ;;  %v870_v50 = vsel %vm710_vm1, %v1834_v29, %v838_v41  ;;  %v630_v34 = vsub.s32 %v1744_v20, %v1801_v32  ;;  %v310_v23 = vsub.s32 %v1711_v4, %v1801_v32  ;;  %v2475_v52 = vld [vmem:[#allocation7_spill] sm:$0xff] }
  0x9c   : > { %v486_v62 = vsel %vm454_vm7, %v1854_v40, 0.0  ;;  %v902_v13 = vsel %vm678_vm0, %v1822_v46, %v870_v50  ;;  %v645_v25 = vsub.s32 %v1747_v21, %v1801_v32  ;;  %v325_v44 = vsub.s32 %v1714_v5, %v1801_v32 }
  0x9d   : > { %v518_v54 = vsel %vm422_vm6, %v1848_v24, %v486_v62  ;;  %1340 = vmatprep.subr.mxu0 %v902_v13  ;;  %vm662_vm9 = vcmp.eq.s32.totalorder %v630_v34, 0  ;;  %vm694_vm10 = vcmp.eq.s32.totalorder %v630_v34, 1  ;;  %vm726_vm12 = vcmp.eq.s32.totalorder %v630_v34, 24  ;;  %v2476_v62 = vld [vmem:[#allocation12_spill] sm:$0xff] }
  0x9e   : > { %v550_v60 = vsel %vm390_vm5, %v1834_v29, %v518_v54  ;;  %vm758_vm8 = vcmp.eq.s32.totalorder %v630_v34, 25  ;;  %vm342_vm11 = vcmp.eq.s32.totalorder %v310_v23, 0  ;;  %vm374_vm13 = vcmp.eq.s32.totalorder %v310_v23, 1 }
  0x9f   : > { %v582_v20 = vsel %vm358_vm4, %v1822_v46, %v550_v60  ;;  %v790_v45 = vsel %vm758_vm8, %v1854_v40, 0.0  ;;  %vm406_vm14 = vcmp.eq.s32.totalorder %v310_v23, 24  ;;  %vm438_vm15 = vcmp.eq.s32.totalorder %v310_v23, 25  ;;  %v2477_v23 = vld [vmem:[#allocation8_spill] sm:$0xff] }
  0xa0   : > { %1375 = vmatprep.subr.mxu1 %v582_v20  ;;  %vm677_vm0 = vcmp.eq.s32.totalorder %v645_v25, 0  ;;  %v822_v5 = vsel %vm726_vm12, %v1848_v24, %v790_v45  ;;  %v470_v21 = vsel %vm438_vm15, %v1854_v40, 0.0  ;;  %vm709_vm1 = vcmp.eq.s32.totalorder %v645_v25, 1 }
  0xa1   : > { %vm741_vm2 = vcmp.eq.s32.totalorder %v645_v25, 24  ;;  %v854_v61 = vsel %vm694_vm10, %v1834_v29, %v822_v5  ;;  %v502_v14 = vsel %vm406_vm14, %v1848_v24, %v470_v21  ;;  %vm773_vm3 = vcmp.eq.s32.totalorder %v645_v25, 25 }
  0xa2   : > { %vm357_vm4 = vcmp.eq.s32.totalorder %v325_v44, 0  ;;  %v886_v56 = vsel %vm662_vm9, %v1822_v46, %v854_v61  ;;  %v534_v8 = vsel %vm374_vm13, %v1834_v29, %v502_v14  ;;  %v805_v57 = vsel %vm773_vm3, %v1854_v40, 0.0 }
  0xa3   : > { %vm389_vm5 = vcmp.eq.s32.totalorder %v325_v44, 1  ;;  %1341 = vmatpush3.msra.mxu0 %v886_v56  ;;  %v566_v9 = vsel %vm342_vm11, %v1822_v46, %v534_v8  ;;  %v837_v7 = vsel %vm741_vm2, %v1848_v24, %v805_v57  ;;  %vm421_vm6 = vcmp.eq.s32.totalorder %v325_v44, 24 }
  0xa4   : > { %vm453_vm7 = vcmp.eq.s32.totalorder %v325_v44, 25  ;;  %1376 = vmatpush3.msra.mxu1 %v566_v9  ;;  %v869_v39 = vsel %vm709_vm1, %v1834_v29, %v837_v7  ;;  %v629_v28 = vsub.s32 %v1753_v30, %v1801_v32  ;;  %v309_v27 = vsub.s32 %v1723_v10, %v1801_v32  ;;  %v2478_v7 = vld [vmem:[#allocation13_spill] sm:$0xff] }
  0xa5   : > { %v485_v22 = vsel %vm453_vm7, %v1854_v40, 0.0  ;;  %v901_v12 = vsel %vm677_vm0, %v1822_v46, %v869_v39  ;;  %v644_v58 = vsub.s32 %v1756_v31, %v1801_v32  ;;  %v324_v59 = vsub.s32 %v2473_v43, %v1801_v32  ;;  %v2481_v43 = vld [vmem:[#allocation10_spill] sm:$0xff] }
  0xa6   : > { %v517_v42 = vsel %vm421_vm6, %v1848_v24, %v485_v22  ;;  %1342 = vmatprep.subr.mxu0 %v901_v12  ;;  %vm661_vm9 = vcmp.eq.s32.totalorder %v629_v28, 0  ;;  %vm693_vm10 = vcmp.eq.s32.totalorder %v629_v28, 1  ;;  %vm725_vm12 = vcmp.eq.s32.totalorder %v629_v28, 24  ;;  %v2479_v22 = vld [vmem:[#allocation9_spill] sm:$0xff] }
  0xa7   : > { %v549_v33 = vsel %vm389_vm5, %v1834_v29, %v517_v42  ;;  %vm757_vm8 = vcmp.eq.s32.totalorder %v629_v28, 25  ;;  %vm341_vm11 = vcmp.eq.s32.totalorder %v309_v27, 0  ;;  %vm373_vm13 = vcmp.eq.s32.totalorder %v309_v27, 1  ;;  %v2480_v42 = vld [vmem:[#allocation14_spill] sm:$0xff] }
  0xa8   : > { %v581_v30 = vsel %vm357_vm4, %v1822_v46, %v549_v33  ;;  %v789_v48 = vsel %vm757_vm8, %v1854_v40, 0.0  ;;  %vm405_vm14 = vcmp.eq.s32.totalorder %v309_v27, 24  ;;  %vm437_vm15 = vcmp.eq.s32.totalorder %v309_v27, 25 }
  0xa9   : > { %1377 = vmatprep.subr.mxu1 %v581_v30  ;;  %vm676_vm0 = vcmp.eq.s32.totalorder %v644_v58, 0  ;;  %v821_v31 = vsel %vm725_vm12, %v1848_v24, %v789_v48  ;;  %v469_v35 = vsel %vm437_vm15, %v1854_v40, 0.0  ;;  %vm708_vm1 = vcmp.eq.s32.totalorder %v644_v58, 1 }
  0xaa   : > { %vm740_vm2 = vcmp.eq.s32.totalorder %v644_v58, 24  ;;  %v853_v36 = vsel %vm693_vm10, %v1834_v29, %v821_v31  ;;  %v501_v51 = vsel %vm405_vm14, %v1848_v24, %v469_v35  ;;  %vm772_vm3 = vcmp.eq.s32.totalorder %v644_v58, 25 }
  0xab   : > { %vm356_vm4 = vcmp.eq.s32.totalorder %v324_v59, 0  ;;  %v885_v49 = vsel %vm661_vm9, %v1822_v46, %v853_v36  ;;  %v533_v1 = vsel %vm373_vm13, %v1834_v29, %v501_v51  ;;  %v804_v16 = vsel %vm772_vm3, %v1854_v40, 0.0 }
  0xac   : > { %vm388_vm5 = vcmp.eq.s32.totalorder %v324_v59, 1  ;;  %1343 = vmatpush3.msra.mxu0 %v885_v49  ;;  %v565_v3 = vsel %vm341_vm11, %v1822_v46, %v533_v1  ;;  %v836_v19 = vsel %vm740_vm2, %v1848_v24, %v804_v16  ;;  %vm420_vm6 = vcmp.eq.s32.totalorder %v324_v59, 24 }
  0xad   : > { %vm452_vm7 = vcmp.eq.s32.totalorder %v324_v59, 25  ;;  %1378 = vmatpush3.msra.mxu1 %v565_v3  ;;  %v868_v0 = vsel %vm708_vm1, %v1834_v29, %v836_v19  ;;  %v628_v37 = vsub.s32 %v2474_v2, %v1801_v32  ;;  %v308_v55 = vsub.s32 %v2475_v52, %v1801_v32 }
  0xae   : > { %v484_v53 = vsel %vm452_vm7, %v1854_v40, 0.0  ;;  %v900_v41 = vsel %vm676_vm0, %v1822_v46, %v868_v0  ;;  %v643_v34 = vsub.s32 %v2476_v62, %v1801_v32  ;;  %v323_v13 = vsub.s32 %v2477_v23, %v1801_v32 }
  0xaf   : > { %v516_v50 = vsel %vm420_vm6, %v1848_v24, %v484_v53  ;;  %1344 = vmatprep.subr.mxu0 %v900_v41  ;;  %vm660_vm9 = vcmp.eq.s32.totalorder %v628_v37, 0  ;;  %vm692_vm10 = vcmp.eq.s32.totalorder %v628_v37, 1  ;;  %vm724_vm12 = vcmp.eq.s32.totalorder %v628_v37, 24 }
  0xb0   : > { %v548_v54 = vsel %vm388_vm5, %v1834_v29, %v516_v50  ;;  %vm756_vm8 = vcmp.eq.s32.totalorder %v628_v37, 25  ;;  %vm340_vm11 = vcmp.eq.s32.totalorder %v308_v55, 0  ;;  %vm372_vm13 = vcmp.eq.s32.totalorder %v308_v55, 1 }
  0xb1   : > { %v580_v25 = vsel %vm356_vm4, %v1822_v46, %v548_v54  ;;  %v788_v44 = vsel %vm756_vm8, %v1854_v40, 0.0  ;;  %vm404_vm14 = vcmp.eq.s32.totalorder %v308_v55, 24  ;;  %vm436_vm15 = vcmp.eq.s32.totalorder %v308_v55, 25 }
  0xb2   : > { %1379 = vmatprep.subr.mxu1 %v580_v25  ;;  %vm675_vm0 = vcmp.eq.s32.totalorder %v643_v34, 0  ;;  %v820_v60 = vsel %vm724_vm12, %v1848_v24, %v788_v44  ;;  %v468_v20 = vsel %vm436_vm15, %v1854_v40, 0.0  ;;  %vm707_vm1 = vcmp.eq.s32.totalorder %v643_v34, 1 }
  0xb3   : > { %vm739_vm2 = vcmp.eq.s32.totalorder %v643_v34, 24  ;;  %v852_v45 = vsel %vm692_vm10, %v1834_v29, %v820_v60  ;;  %v500_v5 = vsel %vm404_vm14, %v1848_v24, %v468_v20  ;;  %vm771_vm3 = vcmp.eq.s32.totalorder %v643_v34, 25 }
  0xb4   : > { %vm355_vm4 = vcmp.eq.s32.totalorder %v323_v13, 0  ;;  %v884_v21 = vsel %vm660_vm9, %v1822_v46, %v852_v45  ;;  %v532_v61 = vsel %vm372_vm13, %v1834_v29, %v500_v5  ;;  %v803_v14 = vsel %vm771_vm3, %v1854_v40, 0.0 }
  0xb5   : > { %vm387_vm5 = vcmp.eq.s32.totalorder %v323_v13, 1  ;;  %1345 = vmatpush3.msra.mxu0 %v884_v21  ;;  %v564_v56 = vsel %vm340_vm11, %v1822_v46, %v532_v61  ;;  %v835_v8 = vsel %vm739_vm2, %v1848_v24, %v803_v14  ;;  %vm419_vm6 = vcmp.eq.s32.totalorder %v323_v13, 24 }
  0xb6   : > { %vm451_vm7 = vcmp.eq.s32.totalorder %v323_v13, 25  ;;  %1380 = vmatpush3.msra.mxu1 %v564_v56  ;;  %v867_v57 = vsel %vm707_vm1, %v1834_v29, %v835_v8  ;;  %v627_v39 = vsub.s32 %v2478_v7, %v1801_v32  ;;  %v307_v28 = vsub.s32 %v2479_v22, %v1801_v32 }
  0xb7   : > { %v483_v9 = vsel %vm451_vm7, %v1854_v40, 0.0  ;;  %v899_v27 = vsel %vm675_vm0, %v1822_v46, %v867_v57  ;;  %v642_v58 = vsub.s32 %v2480_v42, %v1801_v32  ;;  %v322_v59 = vsub.s32 %v2481_v43, %v1801_v32 }
  0xb8   : > { %v515_v12 = vsel %vm419_vm6, %v1848_v24, %v483_v9  ;;  %1346 = vmatprep.subr.mxu0 %v899_v27  ;;  %vm659_vm9 = vcmp.eq.s32.totalorder %v627_v39, 0  ;;  %vm691_vm10 = vcmp.eq.s32.totalorder %v627_v39, 1  ;;  %vm723_vm12 = vcmp.eq.s32.totalorder %v627_v39, 24  ;;  %v2482_v9 = vld [vmem:[#allocation15_spill] sm:$0xff] }
  0xb9   : > { %v547_v33 = vsel %vm387_vm5, %v1834_v29, %v515_v12  ;;  %vm755_vm8 = vcmp.eq.s32.totalorder %v627_v39, 25  ;;  %vm339_vm11 = vcmp.eq.s32.totalorder %v307_v28, 0  ;;  %vm371_vm13 = vcmp.eq.s32.totalorder %v307_v28, 1 }
  0xba   : > { %v579_v30 = vsel %vm355_vm4, %v1822_v46, %v547_v33  ;;  %v787_v48 = vsel %vm755_vm8, %v1854_v40, 0.0  ;;  %vm403_vm14 = vcmp.eq.s32.totalorder %v307_v28, 24  ;;  %vm435_vm15 = vcmp.eq.s32.totalorder %v307_v28, 25 }
  0xbb   : > { %1381 = vmatprep.subr.mxu1 %v579_v30  ;;  %vm674_vm0 = vcmp.eq.s32.totalorder %v642_v58, 0  ;;  %v819_v31 = vsel %vm723_vm12, %v1848_v24, %v787_v48  ;;  %v467_v35 = vsel %vm435_vm15, %v1854_v40, 0.0  ;;  %vm706_vm1 = vcmp.eq.s32.totalorder %v642_v58, 1 }
  0xbc   : > { %vm738_vm2 = vcmp.eq.s32.totalorder %v642_v58, 24  ;;  %v851_v36 = vsel %vm691_vm10, %v1834_v29, %v819_v31  ;;  %v499_v51 = vsel %vm403_vm14, %v1848_v24, %v467_v35  ;;  %vm770_vm3 = vcmp.eq.s32.totalorder %v642_v58, 25 }
  0xbd   : > { %vm354_vm4 = vcmp.eq.s32.totalorder %v322_v59, 0  ;;  %v883_v49 = vsel %vm659_vm9, %v1822_v46, %v851_v36  ;;  %v531_v1 = vsel %vm371_vm13, %v1834_v29, %v499_v51  ;;  %v802_v16 = vsel %vm770_vm3, %v1854_v40, 0.0 }
  0xbe   : > { %vm386_vm5 = vcmp.eq.s32.totalorder %v322_v59, 1  ;;  %1347 = vmatpush3.msra.mxu0 %v883_v49  ;;  %v563_v3 = vsel %vm339_vm11, %v1822_v46, %v531_v1  ;;  %v834_v19 = vsel %vm738_vm2, %v1848_v24, %v802_v16  ;;  %vm418_vm6 = vcmp.eq.s32.totalorder %v322_v59, 24  ;;  %v2483_v1 = vld [vmem:[#allocation5_spill] sm:$0xff] }
  0xbf   : > { %vm450_vm7 = vcmp.eq.s32.totalorder %v322_v59, 25  ;;  %1382 = vmatpush3.msra.mxu1 %v563_v3  ;;  %v866_v0 = vsel %vm706_vm1, %v1834_v29, %v834_v19  ;;  %v626_v2 = vsub.s32 %v1804_v11, %v1801_v32  ;;  %v306_v37 = vsub.s32 %v1771_v63, %v1801_v32 }
  0xc0   : > { %v482_v53 = vsel %vm450_vm7, %v1854_v40, 0.0  ;;  %v898_v55 = vsel %vm674_vm0, %v1822_v46, %v866_v0  ;;  %v641_v50 = vsub.s32 %v1807_v47, %v1801_v32  ;;  %v321_v62 = vsub.s32 %v1774_v6, %v1801_v32  ;;  %v2305_v0 = vld [vmem:[%s2293_s19 + $0x8] sm:$0x77] }
  0xc1   : > { %v514_v41 = vsel %vm418_vm6, %v1848_v24, %v482_v53  ;;  %1348 = vmatprep.subr.mxu0 %v898_v55  ;;  %vm658_vm9 = vcmp.eq.s32.totalorder %v626_v2, 0  ;;  %vm690_vm10 = vcmp.eq.s32.totalorder %v626_v2, 1  ;;  %vm722_vm12 = vcmp.eq.s32.totalorder %v626_v2, 24 }
  0xc2   : > { %v546_v34 = vsel %vm386_vm5, %v1834_v29, %v514_v41  ;;  %vm754_vm8 = vcmp.eq.s32.totalorder %v626_v2, 25  ;;  %vm338_vm11 = vcmp.eq.s32.totalorder %v306_v37, 0  ;;  %vm370_vm13 = vcmp.eq.s32.totalorder %v306_v37, 1 }
  0xc3   : > { %v578_v11 = vsel %vm354_vm4, %v1822_v46, %v546_v34  ;;  %v786_v47 = vsel %vm754_vm8, %v1854_v40, 0.0  ;;  %vm402_vm14 = vcmp.eq.s32.totalorder %v306_v37, 24  ;;  %vm434_vm15 = vcmp.eq.s32.totalorder %v306_v37, 25 }
  0xc4   : > { %1383 = vmatprep.subr.mxu1 %v578_v11  ;;  %vm673_vm0 = vcmp.eq.s32.totalorder %v641_v50, 0  ;;  %v818_v6 = vsel %vm722_vm12, %v1848_v24, %v786_v47  ;;  %v466_v23 = vsel %vm434_vm15, %v1854_v40, 0.0  ;;  %vm705_vm1 = vcmp.eq.s32.totalorder %v641_v50, 1 }
  0xc5   : > { %vm737_vm2 = vcmp.eq.s32.totalorder %v641_v50, 24  ;;  %v850_v13 = vsel %vm690_vm10, %v1834_v29, %v818_v6  ;;  %v498_v54 = vsel %vm402_vm14, %v1848_v24, %v466_v23  ;;  %vm769_vm3 = vcmp.eq.s32.totalorder %v641_v50, 25 }
  0xc6   : > { %vm353_vm4 = vcmp.eq.s32.totalorder %v321_v62, 0  ;;  %v882_v25 = vsel %vm658_vm9, %v1822_v46, %v850_v13  ;;  %v530_v44 = vsel %vm370_vm13, %v1834_v29, %v498_v54  ;;  %v801_v60 = vsel %vm769_vm3, %v1854_v40, 0.0  ;;  %v267_v54 = vld [vmem:[%s2293_s19] sm:$0x77] }
  0xc7   : > { %vm385_vm5 = vcmp.eq.s32.totalorder %v321_v62, 1  ;;  %1349 = vmatpush3.msra.mxu0 %v882_v25  ;;  %v562_v20 = vsel %vm338_vm11, %v1822_v46, %v530_v44  ;;  %v833_v45 = vsel %vm737_vm2, %v1848_v24, %v801_v60  ;;  %vm417_vm6 = vcmp.eq.s32.totalorder %v321_v62, 24 }
  0xc8   : > { %vm449_vm7 = vcmp.eq.s32.totalorder %v321_v62, 25  ;;  %1384 = vmatpush3.msra.mxu1 %v562_v20  ;;  %v865_v5 = vsel %vm705_vm1, %v1834_v29, %v833_v45  ;;  %v625_v61 = vsub.s32 %v1814_v15, %v1801_v32  ;;  %v305_v14 = vsub.s32 %v1781_v26, %v1801_v32 }
  0xc9   : > { %v481_v21 = vsel %vm449_vm7, %v1854_v40, 0.0  ;;  %v897_v56 = vsel %vm673_vm0, %v1822_v46, %v865_v5  ;;  %v640_v57 = vsub.s32 %v1817_v17, %v1801_v32  ;;  %v320_v7 = vsub.s32 %v2482_v9, %v1801_v32 }
  0xca   : > { %v513_v8 = vsel %vm417_vm6, %v1848_v24, %v481_v21  ;;  %1350 = vmatprep.subr.mxu0 %v897_v56  ;;  %vm657_vm9 = vcmp.eq.s32.totalorder %v625_v61, 0  ;;  %vm689_vm10 = vcmp.eq.s32.totalorder %v625_v61, 1  ;;  %vm721_vm12 = vcmp.eq.s32.totalorder %v625_v61, 24 }
  0xcb   : > { %v545_v15 = vsel %vm385_vm5, %v1834_v29, %v513_v8  ;;  %vm753_vm8 = vcmp.eq.s32.totalorder %v625_v61, 25  ;;  %vm337_vm11 = vcmp.eq.s32.totalorder %v305_v14, 0  ;;  %vm369_vm13 = vcmp.eq.s32.totalorder %v305_v14, 1 }
  0xcc   : > { %v577_v39 = vsel %vm353_vm4, %v1822_v46, %v545_v15  ;;  %v785_v17 = vsel %vm753_vm8, %v1854_v40, 0.0  ;;  %vm401_vm14 = vcmp.eq.s32.totalorder %v305_v14, 24  ;;  %vm433_vm15 = vcmp.eq.s32.totalorder %v305_v14, 25 }
  0xcd   : > { %1385 = vmatprep.subr.mxu1 %v577_v39  ;;  %vm672_vm0 = vcmp.eq.s32.totalorder %v640_v57, 0  ;;  %v817_v28 = vsel %vm721_vm12, %v1848_v24, %v785_v17  ;;  %v465_v27 = vsel %vm433_vm15, %v1854_v40, 0.0  ;;  %vm704_vm1 = vcmp.eq.s32.totalorder %v640_v57, 1 }
  0xce   : > { %vm736_vm2 = vcmp.eq.s32.totalorder %v640_v57, 24  ;;  %v849_v12 = vsel %vm689_vm10, %v1834_v29, %v817_v28  ;;  %v497_v42 = vsel %vm401_vm14, %v1848_v24, %v465_v27  ;;  %vm768_vm3 = vcmp.eq.s32.totalorder %v640_v57, 25 }
  0xcf   : > { %vm352_vm4 = vcmp.eq.s32.totalorder %v320_v7, 0  ;;  %v881_v58 = vsel %vm657_vm9, %v1822_v46, %v849_v12  ;;  %v529_v43 = vsel %vm369_vm13, %v1834_v29, %v497_v42  ;;  %v800_v59 = vsel %vm768_vm3, %v1854_v40, 0.0 }
  0xd0   : > { %vm384_vm5 = vcmp.eq.s32.totalorder %v320_v7, 1  ;;  %1351 = vmatpush3.msra.mxu0 %v881_v58  ;;  %v561_v33 = vsel %vm337_vm11, %v1822_v46, %v529_v43  ;;  %v832_v30 = vsel %vm736_vm2, %v1848_v24, %v800_v59  ;;  %vm416_vm6 = vcmp.eq.s32.totalorder %v320_v7, 24 }
  0xd1   : > { %vm448_vm7 = vcmp.eq.s32.totalorder %v320_v7, 25  ;;  %1386 = vmatpush3.msra.mxu1 %v561_v33  ;;  %v864_v48 = vsel %vm704_vm1, %v1834_v29, %v832_v30  ;;  %v624_v35 = vsub.s32 %v1820_v18, %v1801_v32  ;;  %v304_v36 = vsub.s32 %v1795_v38, %v1801_v32 }
  0xd2   : > { %v480_v31 = vsel %vm448_vm7, %v1854_v40, 0.0  ;;  %v896_v51 = vsel %vm672_vm0, %v1822_v46, %v864_v48  ;;  %v287_v16 = vadd.s32 128, %v2483_v1  ;;  %v591_v3 = vadd.s32 256, %v2483_v1 }
  0xd3   : > { %v512_v49 = vsel %vm416_vm6, %v1848_v24, %v480_v31  ;;  %1352 = vmatprep.subr.mxu0 %v896_v51  ;;  %vm656_vm9 = vcmp.eq.s32.totalorder %v624_v35, 0  ;;  %vm688_vm10 = vcmp.eq.s32.totalorder %v624_v35, 1  ;;  %vm720_vm12 = vcmp.eq.s32.totalorder %v624_v35, 24 }
  0xd4   : > { %v544_v18 = vsel %vm384_vm5, %v1834_v29, %v512_v49  ;;  %vm752_vm8 = vcmp.eq.s32.totalorder %v624_v35, 25  ;;  %vm336_vm11 = vcmp.eq.s32.totalorder %v304_v36, 0  ;;  %vm368_vm13 = vcmp.eq.s32.totalorder %v304_v36, 1 }
  0xd5   : > { %v576_v19 = vsel %vm352_vm4, %v1822_v46, %v544_v18  ;;  %v784_v53 = vsel %vm752_vm8, %v1854_v40, 0.0  ;;  %vm400_vm14 = vcmp.eq.s32.totalorder %v304_v36, 24  ;;  %vm432_vm15 = vcmp.eq.s32.totalorder %v304_v36, 25 }
  0xd6   : > { %1387 = vmatprep.subr.mxu1 %v576_v19  ;;  %v607_v2 = vadd.s32 256, %v287_v16  ;;  %v816_v37 = vsel %vm720_vm12, %v1848_v24, %v784_v53  ;;  %v464_v55 = vsel %vm432_vm15, %v1854_v40, 0.0  ;;  %v319_v41 = vsub.s32 %v287_v16, %v1801_v32 }
  0xd7   : > { %v623_v50 = vsub.s32 %v591_v3, %v1801_v32  ;;  %v848_v62 = vsel %vm688_vm10, %v1834_v29, %v816_v37  ;;  %v496_v34 = vsel %vm400_vm14, %v1848_v24, %v464_v55  ;;  %v912_v47 = vcombine.high %v2305_v0, %v2305_v0 }
  0xd8   : > { %v639_v11 = vsub.s32 %v607_v2, %v1801_v32  ;;  %v880_v6 = vsel %vm656_vm9, %v1822_v46, %v848_v62  ;;  %v528_v23 = vsel %vm368_vm13, %v1834_v29, %v496_v34  ;;  %vm351_vm0 = vcmp.eq.s32.totalorder %v319_v41, 0 }
  0xd9   : > { %vm383_vm1 = vcmp.eq.s32.totalorder %v319_v41, 1  ;;  %1353 = vmatpush3.msra.mxu0 %v880_v6  ;;  %v560_v13 = vsel %vm336_vm11, %v1822_v46, %v528_v23  ;;  %978 = vmatprep.mubr.f32.mxu0 %v912_v47  ;;  %vm415_vm6 = vcmp.eq.s32.totalorder %v319_v41, 24  ;;  %vm447_vm7 = vcmp.eq.s32.totalorder %v319_v41, 25 }
  0xda   : > { %vm671_vm2 = vcmp.eq.s32.totalorder %v639_v11, 0  ;;  %vm703_vm3 = vcmp.eq.s32.totalorder %v639_v11, 1  ;;  %vm735_vm4 = vcmp.eq.s32.totalorder %v639_v11, 24  ;;  %1388 = vmatpush3.msra.mxu1 %v560_v13  ;;  %vm767_vm5 = vcmp.eq.s32.totalorder %v639_v11, 25 }
  0xdb   : > { %vm655_vm10 = vcmp.eq.s32.totalorder %v623_v50, 0  ;;  %v799_v25 = vsel %vm767_vm5, %v1854_v40, 0.0  ;;  %v479_v44 = vsel %vm447_vm7, %v1854_v40, 0.0  ;;  %vm687_vm9 = vcmp.eq.s32.totalorder %v623_v50, 1 }
  0xdc   : > { %vm719_vm12 = vcmp.eq.s32.totalorder %v623_v50, 24  ;;  %v831_v60 = vsel %vm735_vm4, %v1848_v24, %v799_v25  ;;  %v511_v20 = vsel %vm415_vm6, %v1848_v24, %v479_v44  ;;  %vm751_vm8 = vcmp.eq.s32.totalorder %v623_v50, 25 }
  0xdd   : > { %v303_v45 = vsub.s32 %v2483_v1, %v1801_v32  ;;  %v863_v5 = vsel %vm703_vm3, %v1834_v29, %v831_v60  ;;  %v543_v21 = vsel %vm383_vm1, %v1834_v29, %v511_v20  ;;  %v783_v61 = vsel %vm751_vm8, %v1854_v40, 0.0 }
  0xde   : > { %v985_v14 = vcombine.high %v267_v54, %v267_v54  ;;  %v895_v56 = vsel %vm671_vm2, %v1822_v46, %v863_v5  ;;  %v575_v8 = vsel %vm351_vm0, %v1822_v46, %v543_v21  ;;  %v815_v57 = vsel %vm719_vm12, %v1848_v24, %v783_v61  ;;  %v269_v5 = vld [vmem:[%s2293_s19 + $0x10] sm:$0x7] }
  0xdf   : > { %vm335_vm11 = vcmp.eq.s32.totalorder %v303_v45, 0  ;;  %1354 = vmatprep.subr.mxu0 %v895_v56  ;;  %1389 = vmatprep.subr.mxu1 %v575_v8  ;;  %v847_v9 = vsel %vm687_vm9, %v1834_v29, %v815_v57  ;;  %vm367_vm13 = vcmp.eq.s32.totalorder %v303_v45, 1  ;;  %vm399_vm14 = vcmp.eq.s32.totalorder %v303_v45, 24 }
  0xe0   : > { %vm431_vm15 = vcmp.eq.s32.totalorder %v303_v45, 25  ;;  %v879_v7 = vsel %vm655_vm10, %v1822_v46, %v847_v9  ;;  %1051 = vmatprep.mubr.f32.mxu1 %v985_v14  ;;  %v1064_v39 = vadd.s32 512, %v1711_v4  ;;  %v1063_v28 = vadd.s32 512, %v1723_v10 }
  0xe1   : > { %v463_v15 = vsel %vm431_vm15, %v1854_v40, 0.0  ;;  %1355 = vmatpush3.msra.mxu0 %v879_v7  ;;  %v1062_v27 = vadd.s32 512, %v2475_v52  ;;  %v1061_v12 = vadd.s32 512, %v2479_v22  ;;  %v1543_v58 = vmov 0.0  }
  0xe2   : > { %v495_v17 = vsel %vm399_vm14, %v1848_v24, %v463_v15  ;;  %979 = vmatmul.mubr.f32.vlgmr.msra.gmra.mxu0 %v2305_v0  ;;  %1403 = vmatprep.subr.mxu0 %v1543_v58  ;;  %v1072_v43 = vsub.s32 %v1064_v39, %v1801_v32  ;;  %v1060_v4 = vadd.s32 512, %v1771_v63  ;;  %v1059_v59 = vadd.s32 512, %v1781_v26 }
  0xe3   : > { %v527_v42 = vsel %vm367_vm13, %v1834_v29, %v495_v17  ;;  %v1071_v52 = vsub.s32 %v1063_v28, %v1801_v32  ;;  %v1070_v22 = vsub.s32 %v1062_v27, %v1801_v32  ;;  %v1069_v33 = vsub.s32 %v1061_v12, %v1801_v32 }
  0xe4   : > { %v559_v10 = vsel %vm335_vm11, %v1822_v46, %v527_v42  ;;  %vm1080_vm0 = vcmp.eq.s32.totalorder %v1072_v43, 0  ;;  %vm1088_vm1 = vcmp.eq.s32.totalorder %v1072_v43, 1  ;;  %vm1096_vm2 = vcmp.eq.s32.totalorder %v1072_v43, 24 }
  0xe5   : > { %1390 = vmatpush3.msra.mxu1 %v559_v10  ;;  %vm1104_vm3 = vcmp.eq.s32.totalorder %v1072_v43, 25  ;;  %vm1079_vm4 = vcmp.eq.s32.totalorder %v1071_v52, 0  ;;  %vm1087_vm5 = vcmp.eq.s32.totalorder %v1071_v52, 1  ;;  %vm1095_vm6 = vcmp.eq.s32.totalorder %v1071_v52, 24 }
  0xe6   : > { %1052 = vmatmul.mubr.f32.vlgmr.msra.gmra.mxu1 %v267_v54  ;;  %v1112_v30 = vsel %vm1104_vm3, %v1854_v40, 0.0  ;;  %vm1103_vm7 = vcmp.eq.s32.totalorder %v1071_v52, 25  ;;  %vm1078_vm10 = vcmp.eq.s32.totalorder %v1070_v22, 0  ;;  %vm1086_vm9 = vcmp.eq.s32.totalorder %v1070_v22, 1 }
  0xe7   : > { %v1120_v63 = vsel %vm1096_vm2, %v1848_v24, %v1112_v30  ;;  %v1111_v48 = vsel %vm1103_vm7, %v1854_v40, 0.0  ;;  %vm1094_vm12 = vcmp.eq.s32.totalorder %v1070_v22, 24  ;;  %vm1102_vm8 = vcmp.eq.s32.totalorder %v1070_v22, 25 }
  0xe8   : > { %v1128_v26 = vsel %vm1088_vm1, %v1834_v29, %v1120_v63  ;;  %v1119_v35 = vsel %vm1095_vm6, %v1848_v24, %v1111_v48  ;;  %v1110_v36 = vsel %vm1102_vm8, %v1854_v40, 0.0  ;;  %vm1077_vm11 = vcmp.eq.s32.totalorder %v1069_v33, 0 }
  0xe9   : > { %v1136_v31 = vsel %vm1080_vm0, %v1822_v46, %v1128_v26  ;;  %v1127_v51 = vsel %vm1087_vm5, %v1834_v29, %v1119_v35  ;;  %v1118_v49 = vsel %vm1094_vm12, %v1848_v24, %v1110_v36  ;;  %vm1085_vm13 = vcmp.eq.s32.totalorder %v1069_v33, 1 }
  0xea   : > { %1404 = vmatpush3.msra.mxu0 %v1136_v31  ;;  %vm1093_vm14 = vcmp.eq.s32.totalorder %v1069_v33, 24  ;;  %v1135_v16 = vsel %vm1079_vm4, %v1822_v46, %v1127_v51  ;;  %v1126_v3 = vsel %vm1086_vm9, %v1834_v29, %v1118_v49  ;;  %vm1101_vm15 = vcmp.eq.s32.totalorder %v1069_v33, 25 }
  0xeb   : > { %1405 = vmatprep.subr.mxu0 %v1543_v58  ;;  %v1068_v18 = vsub.s32 %v1060_v4, %v1801_v32  ;;  %v1134_v19 = vsel %vm1078_vm10, %v1822_v46, %v1126_v3  ;;  %v1109_v0 = vsel %vm1101_vm15, %v1854_v40, 0.0  ;;  %v1067_v53 = vsub.s32 %v1059_v59, %v1801_v32 }
  0xec   : > { %1406 = vmatpush3.msra.mxu0 %v1135_v16  ;;  %v1058_v2 = vadd.s32 512, %v1795_v38  ;;  %v1117_v37 = vsel %vm1093_vm14, %v1848_v24, %v1109_v0  ;;  %v1057_v11 = vadd.s32 512, %v2483_v1  ;;  %vm1544_vm9 = vmmov 0  }
  0xed   : > { %1407 = vmatprep.subr.mxu0 %v1543_v58  ;;  %vm1076_vm0 = vcmp.eq.s32.totalorder %v1068_v18, 0  ;;  %vm1084_vm1 = vcmp.eq.s32.totalorder %v1068_v18, 1  ;;  %vm1092_vm2 = vcmp.eq.s32.totalorder %v1068_v18, 24  ;;  %v1125_v55 = vsel %vm1085_vm13, %v1834_v29, %v1117_v37  ;;  %1419 = vmatprep.mubr.msk.f32.mxu0 %vm1544_vm9, %v1543_v58 }
  0xee   : > { %1408 = vmatpush3.msra.mxu0 %v1134_v19  ;;  %vm1100_vm3 = vcmp.eq.s32.totalorder %v1068_v18, 25  ;;  %vm1075_vm4 = vcmp.eq.s32.totalorder %v1067_v53, 0  ;;  %vm1083_vm5 = vcmp.eq.s32.totalorder %v1067_v53, 1  ;;  %v1133_v41 = vsel %vm1077_vm11, %v1822_v46, %v1125_v55 }
  0xef   : > { %1409 = vmatprep.subr.mxu0 %v1543_v58  ;;  %v1108_v38 = vsel %vm1100_vm3, %v1854_v40, 0.0  ;;  %vm1091_vm6 = vcmp.eq.s32.totalorder %v1067_v53, 24  ;;  %vm1099_vm7 = vcmp.eq.s32.totalorder %v1067_v53, 25  ;;  %v1066_v34 = vsub.s32 %v1058_v2, %v1801_v32 }
  0xf0   : > { %1410 = vmatpush3.msra.mxu0 %v1133_v41  ;;  %v1116_v50 = vsel %vm1092_vm2, %v1848_v24, %v1108_v38  ;;  %v1107_v62 = vsel %vm1099_vm7, %v1854_v40, 0.0  ;;  %v1065_v54 = vsub.s32 %v1057_v11, %v1801_v32 }
  0xf1   : > { %1411 = vmatprep.subr.mxu0 %v1543_v58  ;;  %v1124_v47 = vsel %vm1084_vm1, %v1834_v29, %v1116_v50  ;;  %v1115_v6 = vsel %vm1091_vm6, %v1848_v24, %v1107_v62  ;;  %vm1082_vm10 = vcmp.eq.s32.totalorder %v1066_v34, 1  ;;  %vm1090_vm12 = vcmp.eq.s32.totalorder %v1066_v34, 24 }
  0xf2   : > { %v1132_v23 = vsel %vm1076_vm0, %v1822_v46, %v1124_v47  ;;  %v1123_v13 = vsel %vm1083_vm5, %v1834_v29, %v1115_v6  ;;  %vm1098_vm8 = vcmp.eq.s32.totalorder %v1066_v34, 25  ;;  %vm1074_vm11 = vcmp.eq.s32.totalorder %v1066_v34, 0 }
  0xf3   : > { %1412 = vmatpush3.msra.mxu0 %v1132_v23  ;;  %v1131_v1 = vsel %vm1075_vm4, %v1822_v46, %v1123_v13  ;;  %v1106_v25 = vsel %vm1098_vm8, %v1854_v40, 0.0  ;;  %vm1089_vm13 = vcmp.eq.s32.totalorder %v1065_v54, 24  ;;  %vm1081_vm14 = vcmp.eq.s32.totalorder %v1065_v54, 1 }
  0xf4   : > { %1413 = vmatprep.subr.mxu0 %v1543_v58  ;;  %v1114_v44 = vsel %vm1090_vm12, %v1848_v24, %v1106_v25  ;;  %vm1097_vm15 = vcmp.eq.s32.totalorder %v1065_v54, 25  ;;  %vm1073_vm0 = vcmp.eq.s32.totalorder %v1065_v54, 0  ;;  %vm1137_vm1 = vcmask 523264  }
  0xf5   : > { %1414 = vmatpush3.msra.mxu0 %v1131_v1  ;;  %v1122_v60 = vsel %vm1082_vm10, %v1834_v29, %v1114_v44  ;;  %v1105_v20 = vsel %vm1097_vm15, %v1854_v40, 0.0 }
  0xf6   : > { %1415 = vmatprep.subr.mxu0 %v1543_v58  ;;  %v1130_v32 = vsel %vm1074_vm11, %v1822_v46, %v1122_v60  ;;  %v1113_v45 = vsel %vm1089_vm13, %v1848_v24, %v1105_v20 }
  0xf7   : > { %1416 = vmatpush3.msra.mxu0 %v1130_v32  ;;  %v1121_v21 = vsel %vm1081_vm14, %v1834_v29, %v1113_v45 }
  0xf8   : > { %1417 = vmatprep.subr.mxu0 %v1543_v58  ;;  %v1129_v61 = vsel %vm1073_vm0, %v1822_v46, %v1121_v21 }
  0xf9   : > { %1418 = vmatpush3.msra.mxu0 %v1129_v61 }
  0xfa   : > { %1420 = vmatmul.mubr.msk.f32.vlgmr.msra.gmra.mxu0 %vm1137_vm1, %v269_v5 }
 0x1a2   : > { %v1356_v14 = vpop.f32.mrf.mxu0 }
 0x1a4   : > { %v1357_v8 = vpop.f32.mrf.mxu0 }
 0x1a5   : > { %v1358_v57 = vadd.f32 %v1357_v8, %v1356_v14 }
 0x1a6   : > { %v1391_v56 = vpop.f32.mrf.mxu1 }
 0x1a8   : > { %v1392_v40 = vpop.f32.mrf.mxu1 }
 0x1a9   : > { %v1393_v24 = vadd.f32 %v1392_v40, %v1391_v56 }
 0x1ab   : > { %v1054_v9 = vadd.f32 %v1393_v24, %v1358_v57 }
 0x1ba   : > { %v1207_v29 = vpop.f32.mrf.mxu0 }
 0x1bb   : > { %v1211_v46 = vadd.f32 %v1207_v29, %v1054_v9 }
 0x1bc   : > { %v1421_v7 = vpop.f32.mrf.mxu0 }
 0x1bd   : > { %1212 = vst [vmem:[%s177_s25] sm:$0x7] %v1211_v46 }
 0x1be PF: > { %s13_s13 = sadd.s32 1, %s1540_s13   ;;  %s2484_s9 = smov %s1532_s11 }
 0x1bf   : > { %p10_p4 = scmp.ge.s32.totalorder %s13_s13, 12   ;;  %s2485_s10 = smov %s1536_s12 }
 0x1c0   : > { %s2486_s11 = smov %s2489_s15  ;;  %s2487_s12 = smov %s2493_s16 }
 0x1c1   :  { %12 = sbr.rel (!%p10_p4) target bundleno = 3 (0x3), region = 63 }
 0x1c6   :  { %1240 = vsyncpa [#allocation3], 1 }
 0x1c7   :  { %1242 = vsyncpa [#allocation3 + $0x1], 1 }

// kernel: stn_forward.2
= control target key start
LH: loop header
LB: loop body
LE: loop exit
PB: predicated region body
PF: predicated region fallthrough
CT: control target
= control target key end

     0   :  { %vm111_vm0 = vcmask 567808   ;;  %vm6859_vm1 = vcmask 518144   ;;  %v4473_v0 = vmov 0.0   ;;  %s6937_s27 = smov 6   ;;  %s6935_s28 = smov 5   ;;  %vm132_vm2 = vcmask 387072   ;;  %s6814_s0 = inlined_call_operand.vmem [shape: f32[2,3,576], index: 0, kind: input, shape index: {}]   ;;  %s6815_s1 = inlined_call_operand.vmem [shape: bf16[8,147], index: 1, kind: input, shape index: {}]   ;;  %s6816_s2 = inlined_call_operand.vmem [shape: f32[8,1], index: 2, kind: input, shape index: {}]   ;;  %s6817_s3 = inlined_call_operand.vmem [shape: bf16[407,85], index: 3, kind: input, shape index: {}]   ;;  %s6818_s5 = inlined_call_operand.vmem [shape: f32[10,1], index: 5, kind: input, shape index: {}]   ;;  %s6819_s4 = inlined_call_operand.vmem [shape: bf16[10,200], index: 4, kind: input, shape index: {}]   ;;  %s6820_s6 = inlined_call_operand.vmem [shape: f32[35,1], index: 6, kind: input, shape index: {}]   ;;  %s6821_s7 = inlined_call_operand.vmem [shape: f32[32,10], index: 7, kind: input, shape index: {}]   ;;  %s6822_s8 = inlined_call_operand.vmem [shape: f32[32,1], index: 8, kind: input, shape index: {}]   ;;  %s6823_s9 = inlined_call_operand.vmem [shape: f32[6,32], index: 9, kind: input, shape index: {}]   ;;  %s6824_s10 = inlined_call_operand.vmem [shape: f32[6,1], index: 10, kind: input, shape index: {}]   ;;  %s6825_s11 = inlined_call_operand.vmem [shape: f32[2,6,1], index: 11, kind: output, shape index: {}]  }
   0x1   :  { %112 = vst.msk [vmem:[#allocation2 + $0x10] sm:$0x7] %vm111_vm0, %v4473_v0  ;;  %v115_v1 = vld [vmem:[%s6814_s0 + $0x10] sm:$0x7]  ;;  %v113_v2 = vld [vmem:[%s6814_s0] sm:$0x77] }
   0x2   :  { %119 = vst.msk [vmem:[#allocation2 + $0x10] sm:$0x7] %vm6859_vm1, %v115_v1  ;;  %v114_v3 = vld [vmem:[%s6814_s0 + $0x8] sm:$0x77]  ;;  %116 = vst [vmem:[#allocation2] sm:$0x77] %v113_v2 }
   0x3   :  { %117 = vst [vmem:[#allocation2 + $0x8] sm:$0x77] %v114_v3  ;;  %v4142_v4 = vld [vmem:[%s6814_s0 + $0x14] sm:$0x77]  ;;  %v4143_v5 = vld [vmem:[%s6814_s0 + $0x1c] sm:$0x77] }
   0x4   :  { %s6933_s29 = smov 4   ;;  %s6915_s30 = smov 3   ;;  %vm6841_vm3 = vcmask 48128   ;;  %vm6838_vm4 = vcmask 39936   ;;  %vm260_vm5 = vcmask 392199   ;;  %vm265_vm6 = vcmask 386048  }
   0x5   :  { %s6910_s12 = smov 2   ;;  %s6908_s13 = smov 112   ;;  %vm290_vm7 = vcmask 389122   ;;  %vm6835_vm8 = vcmask 31744   ;;  %vm315_vm9 = vcmask 392197   ;;  %vm6834_vm10 = vcmask 23552  }
   0x6   :  { %s6906_s14 = smov 28   ;;  %s6903_s15 = smov 27   ;;  %vm6833_vm11 = vcmask 15360   ;;  %vm157_vm12 = vcmask 390147   ;;  %vm6832_vm13 = vcmask 916480   ;;  %vm6932_vm14 = vcmask 392198  }
   0x7   :  { %s6900_s16 = smov 26   ;;  %s6896_s17 = smov 8   ;;  %vm6929_vm15 = vcmask 385024   ;;  %vm6854_vm0 = vcmask 228352   ;;  %vm6867_vm1 = vcmask 236544  }
   0x8   :  { %s6879_s18 = smov 7   ;;  %s6877_s19 = smov 51  }
   0x9   :  { %v4613_v6 = vld [vmem:[#allocation2 + $0x10] sm:$0x7]  ;;  %v4618_v8 = vld [vmem:[#allocation2] sm:$0x77]  ;;  %s6873_s20 = smov 50   ;;  %s6864_s21 = smov 32  }
   0xa   :  { %v4616_v7 = vrot.slane %v4613_v6, 1  ;;  %v4620_v9 = vld [vmem:[#allocation2 + $0x8] sm:$0x77]  ;;  %2249 = vst [vmem:[#allocation2] sm:$0x77] %v4142_v4  ;;  %v4629_v11 = vcombine.high %v4618_v8, %v4618_v8  ;;  %v4645_v14 = vrot.slane %v4613_v6, 6  ;;  %v4809_v40 = vcombine.low %v4613_v6, %v4613_v6 }
   0xb   :  { %2250 = vst [vmem:[#allocation2 + $0x8] sm:$0x77] %v4143_v5  ;;  %129 = vst [vmem:[#allocation3] sm:$0x7] %v4618_v8  ;;  %v4625_v10 = vrot.slane %v4620_v9, 1  ;;  %v4634_v12 = vrot.slane %v4620_v9, 6  ;;  %v4649_v15 = vcombine.high %v4620_v9, %v4620_v9  ;;  %v4801_v39 = vcombine.low %v4620_v9, %v4620_v9 }
   0xc   :  { %131 = vst [vmem:[#allocation3 + $0x10] sm:$0x7] %v4620_v9  ;;  %968 = vrot.lane.b32.xlu1 %v4616_v7, %s6937_s27  ;;  %v4639_v13 = vrot.slane %v4629_v11, 1  ;;  %130 = vst [vmem:[#allocation3 + $0x8] sm:$0x7] %v4629_v11  ;;  %v4654_v16 = vrot.slane %v4629_v11, 6  ;;  %v4822_v42 = vcombine.low %v4618_v8, %v4618_v8 }
   0xd   :  { %964 = vrot.lane.b32.xlu0 %v4625_v10, %s6937_s27  ;;  %v4659_v17 = vrot.slane %v4649_v15, 1  ;;  %v4664_v18 = vrot.slane %v4649_v15, 6  ;;  %v4669_v19 = vrot.slane %v4620_v9, 3  ;;  %v4674_v20 = vrot.slane %v4629_v11, 3  ;;  %133 = vst.msk [vmem:[#allocation3 + $0x18] sm:$0x7] %vm132_vm2, %v4649_v15 }
   0xe   :  { %v4681_v21 = vrot.slane %v4613_v6, 3  ;;  %v4686_v22 = vrot.slane %v4649_v15, 3  ;;  %v4699_v23 = vrot.slane %v4620_v9, 5  ;;  %v4704_v24 = vrot.slane %v4629_v11, 5  ;;  %s6830_s22 = smov 31   ;;  %s6828_s23 = smov 30  }
   0xf   :  { %v861_v25 = vrot.slane %v4613_v6, 5  ;;  %v4712_v26 = vrot.slane %v4649_v15, 5  ;;  %v4716_v27 = vrot.slane %v4649_v15, 2  ;;  %v4721_v28 = vrot.slane %v4620_v9, 2  ;;  %s6826_s24 = smov 29   ;;  %s6846_s25 = smov 56  }
  0x10   :  { %991 = vrot.lane.b32.xlu1 %v4634_v12, %s6935_s28  ;;  %v4726_v29 = vrot.slane %v4618_v8, 6  ;;  %v4731_v30 = vrot.slane %v4618_v8, 1  ;;  %v4738_v31 = vrot.slane %v4618_v8, 3  ;;  %v4743_v32 = vrot.slane %v4629_v11, 2  ;;  %s6844_s26 = smov 55  }
  0x11   :  { %962 = vrot.lane.b32.xlu0 %v4639_v13, %s6937_s27  ;;  %v4748_v33 = vrot.slane %v4618_v8, 5  ;;  %v885_v34 = vrot.slane %v4613_v6, 2  ;;  %v4776_v35 = vrot.slane %v4629_v11, 7  ;;  %v4783_v36 = vrot.slane %v4649_v15, 7 }
  0x12   :  { %v4787_v37 = vrot.slane %v4620_v9, 7  ;;  %v913_v38 = vrot.slane %v4613_v6, 7  ;;  %v4814_v41 = vrot.slane %v4618_v8, 2  ;;  %v4827_v43 = vrot.slane %v4618_v8, 7 }
  0x14   :  { %995 = vrot.lane.b32.xlu1 %v4645_v14, %s6935_s28 }
  0x15   :  { %989 = vrot.lane.b32.xlu0 %v4654_v16, %s6935_s28 }
  0x18   :  { %966 = vrot.lane.b32.xlu1 %v4659_v17, %s6937_s27 }
  0x19   :  { %993 = vrot.lane.b32.xlu0 %v4664_v18, %s6935_s28 }
  0x1c   :  { %1014 = vrot.lane.b32.xlu1 %v4669_v19, %s6933_s29 }
  0x1d   :  { %1012 = vrot.lane.b32.xlu0 %v4674_v20, %s6933_s29 }
  0x20   :  { %1018 = vrot.lane.b32.xlu1 %v4681_v21, %s6933_s29 }
  0x21   :  { %1016 = vrot.lane.b32.xlu0 %v4686_v22, %s6933_s29 }
  0x24   :  { %1037 = vrot.lane.b32.xlu1 %v4620_v9, %s6915_s30 }
  0x25   :  { %1035 = vrot.lane.b32.xlu0 %v4629_v11, %s6915_s30 }
  0x28   :  { %1041 = vrot.lane.b32.xlu1 %v4613_v6, %s6915_s30 }
  0x29   :  { %1039 = vrot.lane.b32.xlu0 %v4649_v15, %s6915_s30 }
  0x2c   :  { %1060 = vrot.lane.b32.xlu1 %v4699_v23, %s6910_s12 }
  0x2d   :  { %1058 = vrot.lane.b32.xlu0 %v4704_v24, %s6910_s12 }
  0x30   :  { %1064 = vrot.lane.b32.xlu1 %v861_v25, %s6910_s12 }
  0x31   :  { %1062 = vrot.lane.b32.xlu0 %v4712_v26, %s6910_s12 }
  0x34   :  { %1083 = vrot.lane.b32.xlu1 %v4716_v27, %s6908_s13 }
  0x35   :  { %1081 = vrot.lane.b32.xlu0 %v4721_v28, %s6908_s13 }
  0x38   :  { %987 = vrot.lane.b32.xlu1 %v4726_v29, %s6935_s28  ;;  %s6957_s28 = smov 92  }
  0x39   :  { %960 = vrot.lane.b32.xlu0 %v4731_v30, %s6937_s27  ;;  %s6955_s27 = smov 115  }
  0x3c   :  { %1033 = vrot.lane.b32.xlu1 %v4618_v8, %s6915_s30  ;;  %s4532_s30 = smov 91  }
  0x3d   :  { %1010 = vrot.lane.b32.xlu0 %v4738_v31, %s6933_s29  ;;  %s6952_s29 = smov 116  }
  0x40   :  { %1079 = vrot.lane.b32.xlu1 %v4743_v32, %s6908_s13 }
  0x41   :  { %1056 = vrot.lane.b32.xlu0 %v4748_v33, %s6910_s12  ;;  %s4521_s12 = smov 107  }
  0x44   :  { %840 = vrot.lane.b32.xlu1 %v4629_v11, %s6906_s14 }
  0x45   :  { %1085 = vrot.lane.b32.xlu0 %v885_v34, %s6908_s13  ;;  %s4520_s13 = smov 108  }
  0x48   :  { %844 = vrot.lane.b32.xlu1 %v4649_v15, %s6906_s14 }
  0x49   :  { %842 = vrot.lane.b32.xlu0 %v4620_v9, %s6906_s14 }
  0x4c   :  { %864 = vrot.lane.b32.xlu1 %v4704_v24, %s6903_s15 }
  0x4d   :  { %846 = vrot.lane.b32.xlu0 %v4613_v6, %s6906_s14 }
  0x50   :  { %868 = vrot.lane.b32.xlu1 %v4712_v26, %s6903_s15 }
  0x51   :  { %866 = vrot.lane.b32.xlu0 %v4699_v23, %s6903_s15 }
  0x54   :  { %888 = vrot.lane.b32.xlu1 %v4743_v32, %s6900_s16 }
  0x55   :  { %870 = vrot.lane.b32.xlu0 %v861_v25, %s6903_s15 }
  0x58   :  { %892 = vrot.lane.b32.xlu1 %v4716_v27, %s6900_s16 }
  0x59   :  { %890 = vrot.lane.b32.xlu0 %v4721_v28, %s6900_s16 }
  0x5c   :  { %916 = vrot.lane.b32.xlu1 %v4776_v35, %s6896_s17 }
  0x5d   :  { %894 = vrot.lane.b32.xlu0 %v885_v34, %s6900_s16 }
  0x60   :  { %920 = vrot.lane.b32.xlu1 %v4783_v36, %s6896_s17 }
  0x61   :  { %918 = vrot.lane.b32.xlu0 %v4787_v37, %s6896_s17 }
  0x64   :  { %939 = vrot.lane.b32.xlu1 %v4618_v8, %s6879_s18 }
  0x65   :  { %922 = vrot.lane.b32.xlu0 %v913_v38, %s6896_s17 }
  0x68   :  { %943 = vrot.lane.b32.xlu1 %v4620_v9, %s6879_s18 }
  0x69   :  { %941 = vrot.lane.b32.xlu0 %v4801_v39, %s6879_s18 }
  0x6c   :  { %838 = vrot.lane.b32.xlu1 %v4618_v8, %s6906_s14  ;;  %s4519_s14 = smov 109  }
  0x6d   :  { %945 = vrot.lane.b32.xlu0 %v4809_v40, %s6879_s18 }
  0x70   :  { %886 = vrot.lane.b32.xlu1 %v4814_v41, %s6900_s16  ;;  %s6913_s16 = smov 111  }
  0x71   :  { %862 = vrot.lane.b32.xlu0 %v4748_v33, %s6903_s15  ;;  %s4518_s15 = smov 110  }
  0x74   :  { %937 = vrot.lane.b32.xlu1 %v4822_v42, %s6879_s18  ;;  %s6890_s18 = smov 102  }
  0x75   :  { %914 = vrot.lane.b32.xlu0 %v4827_v43, %s6896_s17  ;;  %s4516_s17 = smov 106  }
  0x78   :  { %697 = vrot.lane.b32.xlu1 %v4721_v28, %s6877_s19 }
  0x79   :  { %695 = vrot.lane.b32.xlu0 %v4743_v32, %s6877_s19 }
  0x7c   :  { %721 = vrot.lane.b32.xlu1 %v4787_v37, %s6873_s20 }
  0x7d   :  { %719 = vrot.lane.b32.xlu0 %v4776_v35, %s6873_s20 }
  0x7e   :  { %v969_v44 = vpop.permute.xlu1 %968 }
  0x7f   :  { %v965_v45 = vpop.permute.xlu0 %964 }
  0x80   :  { %743 = vrot.lane.b32.xlu1 %v4801_v39, %s6864_s21 }
  0x81   :  { %741 = vrot.lane.b32.xlu0 %v4618_v8, %s6864_s21 }
  0x82   :  { %v992_v46 = vpop.permute.xlu1 %991 }
  0x83   :  { %v4845_v47 = vpop.permute.xlu0 %962 }
  0x84   :  { %v972_v48 = vsel %vm6841_vm3, %v4845_v47, %v965_v45  ;;  %747 = vrot.lane.b32.xlu1 %v4809_v40, %s6864_s21 }
  0x85   :  { %980 = vst [vmem:[#allocation3 + $0x1c8] ss:$-28 sps:$4 sm:$0x83] %v972_v48   ;;  %745 = vrot.lane.b32.xlu0 %v4620_v9, %s6864_s21 }
  0x86   :  { %v996_v49 = vpop.permute.xlu1 %995 }
  0x87   :  { %v4853_v50 = vpop.permute.xlu0 %989 }
  0x88   :  { %v999_v51 = vsel %vm6838_vm4, %v4853_v50, %v992_v46  ;;  %767 = vrot.lane.b32.xlu1 %v4625_v10, %s6830_s22 }
  0x89   :  { %1007 = vst [vmem:[#allocation3 + $0x1c8] sm:$0x1c] %v999_v51  ;;  %765 = vrot.lane.b32.xlu0 %v4639_v13, %s6830_s22 }
  0x8a   :  { %v967_v52 = vpop.permute.xlu1 %966 }
  0x8b   :  { %v973_v53 = vsel %vm6841_vm3, %v965_v45, %v967_v52  ;;  %v974_v54 = vsel %vm6841_vm3, %v967_v52, %v969_v44  ;;  %v994_v55 = vpop.permute.xlu0 %993 }
  0x8c   :  { %981 = vst [vmem:[#allocation3 + $0x1d0] ss:$-28 sps:$4 sm:$0x83] %v973_v53   ;;  %982 = vst.msk [vmem:[#allocation3 + $0x1b8] sm:$0x80] %vm260_vm5, %v974_v54  ;;  %v1000_v56 = vsel %vm6838_vm4, %v992_v46, %v994_v55  ;;  %v1001_v57 = vsel %vm6838_vm4, %v994_v55, %v996_v49  ;;  %771 = vrot.lane.b32.xlu1 %v4616_v7, %s6830_s22 }
  0x8d   :  { %986 = vst.msk [vmem:[#allocation3 + $0x1d8] sm:$0x3] %vm265_vm6, %v974_v54  ;;  %1008 = vst [vmem:[#allocation3 + $0x1d0] sm:$0x1c] %v1000_v56  ;;  %769 = vrot.lane.b32.xlu0 %v4659_v17, %s6830_s22 }
  0x8e   :  { %1009 = vst.msk [vmem:[#allocation3 + $0x1d8] sm:$0x1c] %vm290_vm7, %v1001_v57  ;;  %v1015_v58 = vpop.permute.xlu1 %1014 }
  0x8f   :  { %v4872_v59 = vpop.permute.xlu0 %1012 }
  0x90   :  { %v1022_v60 = vsel %vm6835_vm8, %v4872_v59, %v1015_v58  ;;  %795 = vrot.lane.b32.xlu1 %v4634_v12, %s6828_s23 }
  0x91   :  { %1030 = vst [vmem:[#allocation3 + $0x1c8] sm:$0xe0] %v1022_v60  ;;  %793 = vrot.lane.b32.xlu0 %v4654_v16, %s6828_s23 }
  0x92   :  { %v1019_v61 = vpop.permute.xlu1 %1018 }
  0x93   :  { %v1017_v62 = vpop.permute.xlu0 %1016 }
  0x94   :  { %v1023_v63 = vsel %vm6835_vm8, %v1015_v58, %v1017_v62  ;;  %v1024_v1 = vsel %vm6835_vm8, %v1017_v62, %v1019_v61  ;;  %799 = vrot.lane.b32.xlu1 %v4645_v14, %s6828_s23 }
  0x95   :  { %1031 = vst [vmem:[#allocation3 + $0x1d0] sm:$0xe0] %v1023_v63  ;;  %1032 = vst.msk [vmem:[#allocation3 + $0x1d8] sm:$0xe0] %vm315_vm9, %v1024_v1  ;;  %797 = vrot.lane.b32.xlu0 %v4664_v18, %s6828_s23 }
  0x96   :  { %v1038_v2 = vpop.permute.xlu1 %1037 }
  0x97   :  { %v1036_v3 = vpop.permute.xlu0 %1035 }
  0x98   :  { %v1045_v4 = vsel %vm6834_vm10, %v1036_v3, %v1038_v2  ;;  %819 = vrot.lane.b32.xlu1 %v4669_v19, %s6826_s24 }
  0x99   :  { %1053 = vst [vmem:[#allocation3 + $0x1e8] sm:$0x7] %v1045_v4  ;;  %817 = vrot.lane.b32.xlu0 %v4674_v20, %s6826_s24 }
  0x9a   :  { %v1042_v5 = vpop.permute.xlu1 %1041 }
  0x9b   :  { %v1040_v25 = vpop.permute.xlu0 %1039 }
  0x9c   :  { %v1046_v34 = vsel %vm6834_vm10, %v1038_v2, %v1040_v25  ;;  %v1047_v44 = vsel %vm6834_vm10, %v1040_v25, %v1042_v5  ;;  %823 = vrot.lane.b32.xlu1 %v4681_v21, %s6826_s24 }
  0x9d   :  { %1054 = vst [vmem:[#allocation3 + $0x1f0] sm:$0x7] %v1046_v34  ;;  %1055 = vst.msk [vmem:[#allocation3 + $0x1f8] sm:$0x7] %vm132_vm2, %v1047_v44  ;;  %821 = vrot.lane.b32.xlu0 %v4686_v22, %s6826_s24 }
  0x9e   :  { %v1061_v45 = vpop.permute.xlu1 %1060 }
  0x9f   :  { %v1059_v46 = vpop.permute.xlu0 %1058 }
  0xa0   :  { %v1068_v48 = vsel %vm6833_vm11, %v1059_v46, %v1061_v45  ;;  %699 = vrot.lane.b32.xlu1 %v4716_v27, %s6877_s19 }
  0xa1   :  { %1076 = vst [vmem:[#allocation3 + $0x1e8] sm:$0x38] %v1068_v48  ;;  %693 = vrot.lane.b32.xlu0 %v4814_v41, %s6877_s19  ;;  %s6885_s19 = smov 103  }
  0xa2   :  { %v1065_v49 = vpop.permute.xlu1 %1064 }
  0xa3   :  { %v1063_v51 = vpop.permute.xlu0 %1062 }
  0xa4   :  { %v1069_v52 = vsel %vm6833_vm11, %v1061_v45, %v1063_v51  ;;  %v1070_v53 = vsel %vm6833_vm11, %v1063_v51, %v1065_v49  ;;  %723 = vrot.lane.b32.xlu1 %v4783_v36, %s6873_s20 }
  0xa5   :  { %1077 = vst [vmem:[#allocation3 + $0x1f0] sm:$0x38] %v1069_v52  ;;  %1078 = vst.msk [vmem:[#allocation3 + $0x1f8] sm:$0x38] %vm157_vm12, %v1070_v53  ;;  %717 = vrot.lane.b32.xlu0 %v4827_v43, %s6873_s20  ;;  %s6888_s20 = smov 122  }
  0xa6   :  { %v1084_v54 = vpop.permute.xlu1 %1083 }
  0xa7   :  { %v1082_v55 = vpop.permute.xlu0 %1081 }
  0xa8   :  { %v1089_v56 = vsel %vm6832_vm13, %v1082_v55, %v1084_v54  ;;  %763 = vrot.lane.b32.xlu1 %v4731_v30, %s6830_s22  ;;  %s6839_s22 = smov 52  }
  0xa9   :  { %1096 = vst [vmem:[#allocation3 + $0x208] ss:$-28 sps:$4 sm:$0xc1] %v1089_v56   ;;  %739 = vrot.lane.b32.xlu0 %v4822_v42, %s6864_s21  ;;  %s6875_s21 = smov 79  }
  0xaa   :  { %v988_v57 = vpop.permute.xlu1 %987 }
  0xab   :  { %v998_v58 = vsel %vm6838_vm4, %v988_v57, %v4853_v50  ;;  %v961_v60 = vpop.permute.xlu0 %960  ;;  %v1286_v57 = vld [vmem:[#allocation3 + $0x1d8] sm:$0xff]  ;;  %vm6849_vm4 = vcmask 56320  }
  0xac   :  { %1006 = vst [vmem:[#allocation3 + $0x1c0] sm:$0x1c] %v998_v58  ;;  %v971_v61 = vsel %vm6841_vm3, %v961_v60, %v4845_v47  ;;  %815 = vrot.lane.b32.xlu1 %v4738_v31, %s6826_s24  ;;  %v1284_v47 = vld [vmem:[#allocation3 + $0x1c8] sm:$0xff]  ;;  %s6842_s24 = smov 54   ;;  %vm235_vm3 = vcmask 391172  }
  0xad   :  { %979 = vst [vmem:[#allocation3 + $0x1c0] ss:$-28 sps:$4 sm:$0x83] %v971_v61   ;;  %791 = vrot.lane.b32.xlu0 %v4726_v29, %s6828_s23  ;;  %s6836_s23 = smov 53  }
  0xae   :  { %v1034_v62 = vpop.permute.xlu1 %1033 }
  0xaf   :  { %v1044_v63 = vsel %vm6834_vm10, %v1034_v62, %v1036_v3  ;;  %v1011_v1 = vpop.permute.xlu0 %1010  ;;  %v1285_v62 = vld [vmem:[#allocation3 + $0x1d0] sm:$0xff]  ;;  %vm6850_vm10 = vcmask 64512  }
  0xb0   :  { %1052 = vst [vmem:[#allocation3 + $0x1e0] sm:$0x7] %v1044_v63  ;;  %v1021_v50 = vsel %vm6835_vm8, %v1011_v1, %v4872_v59  ;;  %593 = vrot.lane.b32.xlu1 %v4625_v10, %s6846_s25  ;;  %v1288_v2 = vld [vmem:[#allocation3 + $0x1e8] sm:$0xff]  ;;  %vm212_vm8 = vcmask 388097  }
  0xb1   :  { %1029 = vst [vmem:[#allocation3 + $0x1c0] sm:$0xe0] %v1021_v50  ;;  %591 = vrot.lane.b32.xlu0 %v4639_v13, %s6846_s25  ;;  %v1332_v4 = vpack.c.bf16 %v1288_v2, %v1284_v47 }
  0xb2   :  { %v1080_v5 = vpop.permute.xlu1 %1079 }
  0xb3   :  { %v1088_v25 = vsel %vm6832_vm13, %v1080_v5, %v1082_v55  ;;  %1374 = vmatprep.subr.bf16.mxu0 %v1332_v4  ;;  %v1057_v3 = vpop.permute.xlu0 %1056 }
  0xb4   :  { %1095 = vst [vmem:[#allocation3 + $0x200] ss:$-28 sps:$4 sm:$0xc1] %v1088_v25   ;;  %v1067_v34 = vsel %vm6833_vm11, %v1057_v3, %v1059_v46  ;;  %617 = vrot.lane.b32.xlu1 %v4634_v12, %s6844_s26  ;;  %vm6848_vm11 = vcmask 211968  }
  0xb5   :  { %1075 = vst [vmem:[#allocation3 + $0x1e0] sm:$0x38] %v1067_v34  ;;  %615 = vrot.lane.b32.xlu0 %v4654_v16, %s6844_s26 }
  0xb6   :  { %v4937_v59 = vpop.permute.xlu1 %840 }
  0xb7   :  { %v1086_v44 = vpop.permute.xlu0 %1085 }
  0xb8   :  { %v1090_v45 = vsel %vm6832_vm13, %v1084_v54, %v1086_v44  ;;  %1098 = vst.msk [vmem:[#allocation3 + $0x1f8] sm:$0xc0] %vm6932_vm14, %v1086_v44  ;;  %637 = vrot.lane.b32.xlu1 %v4669_v19, %s6842_s24  ;;  %v1283_v52 = vld [vmem:[#allocation3 + $0x1c0] sm:$0xff]  ;;  %vm6851_vm13 = vcmask 220160  }
  0xb9   :  { %1102 = vst.msk [vmem:[#allocation3 + $0x218] sm:$0x1] %vm6929_vm15, %v1086_v44  ;;  %1097 = vst [vmem:[#allocation3 + $0x210] ss:$-28 sps:$4 sm:$0xc1] %v1090_v45   ;;  %635 = vrot.lane.b32.xlu0 %v4674_v20, %s6842_s24 }
  0xba   :  { %v845_v46 = vpop.permute.xlu1 %844 }
  0xbb   :  { %v843_v48 = vpop.permute.xlu0 %842 }
  0xbc   :  { %v850_v49 = vsel %vm6854_vm0, %v4937_v59, %v843_v48  ;;  %v851_v51 = vsel %vm6854_vm0, %v843_v48, %v845_v46  ;;  %657 = vrot.lane.b32.xlu1 %v4620_v9, %s6836_s23  ;;  %v1287_v53 = vld [vmem:[#allocation3 + $0x1e0] sm:$0xff] }
  0xbd   :  { %858 = vst [vmem:[#allocation3 + $0x188] sm:$0x7] %v850_v49  ;;  %859 = vst [vmem:[#allocation3 + $0x190] sm:$0x7] %v851_v51  ;;  %655 = vrot.lane.b32.xlu0 %v4629_v11, %s6836_s23  ;;  %v1331_v54 = vpack.c.bf16 %v1287_v53, %v1283_v52 }
  0xbe   :  { %v4953_v55 = vpop.permute.xlu1 %864 }
  0xbf   :  { %1375 = vmatpush1.bf16.msra.mxu0 %v1331_v54  ;;  %v847_v56 = vpop.permute.xlu0 %846  ;;  %v1290_v58 = vld [vmem:[#allocation3 + $0x1f8] sm:$0xff] }
  0xc0   :  { %v852_v60 = vsel %vm6854_vm0, %v845_v46, %v847_v56  ;;  %677 = vrot.lane.b32.xlu1 %v4699_v23, %s6839_s22  ;;  %v1334_v61 = vpack.c.bf16 %v1290_v58, %v1286_v57  ;;  %v1289_v63 = vld [vmem:[#allocation3 + $0x1f0] sm:$0xff] }
  0xc1   :  { %860 = vst.msk [vmem:[#allocation3 + $0x198] sm:$0x7] %vm132_vm2, %v852_v60  ;;  %675 = vrot.lane.b32.xlu0 %v4704_v24, %s6839_s22  ;;  %v1333_v1 = vpack.c.bf16 %v1289_v63, %v1285_v62 }
  0xc2   :  { %1415 = vmatprep.subr.bf16.mxu1 %v1334_v61  ;;  %v869_v50 = vpop.permute.xlu1 %868 }
  0xc3   :  { %1416 = vmatpush1.bf16.msra.mxu1 %v1333_v1  ;;  %v867_v47 = vpop.permute.xlu0 %866 }
  0xc4   :  { %v874_v2 = vsel %vm6851_vm13, %v4953_v55, %v867_v47  ;;  %v875_v4 = vsel %vm6851_vm13, %v867_v47, %v869_v50  ;;  %595 = vrot.lane.b32.xlu1 %v4659_v17, %s6846_s25 }
  0xc5   :  { %882 = vst [vmem:[#allocation3 + $0x188] sm:$0x38] %v874_v2  ;;  %883 = vst [vmem:[#allocation3 + $0x190] sm:$0x38] %v875_v4  ;;  %589 = vrot.lane.b32.xlu0 %v4731_v30, %s6846_s25  ;;  %s6855_s25 = smov 74  }
  0xc6   :  { %v889_v5 = vpop.permute.xlu1 %888 }
  0xc7   :  { %v871_v25 = vpop.permute.xlu0 %870 }
  0xc8   :  { %v876_v3 = vsel %vm6851_vm13, %v869_v50, %v871_v25  ;;  %619 = vrot.lane.b32.xlu1 %v4664_v18, %s6844_s26 }
  0xc9   :  { %884 = vst.msk [vmem:[#allocation3 + $0x198] sm:$0x38] %vm157_vm12, %v876_v3  ;;  %613 = vrot.lane.b32.xlu0 %v4726_v29, %s6844_s26  ;;  %s6852_s26 = smov 75  }
  0xca   :  { %v893_v34 = vpop.permute.xlu1 %892 }
  0xcb   :  { %v891_v44 = vpop.permute.xlu0 %890 }
  0xcc   :  { %v898_v45 = vsel %vm6848_vm11, %v889_v5, %v891_v44  ;;  %v899_v46 = vsel %vm6848_vm11, %v891_v44, %v893_v34  ;;  %639 = vrot.lane.b32.xlu1 %v4686_v22, %s6842_s24 }
  0xcd   :  { %906 = vst [vmem:[#allocation3 + $0x1a8] ss:$-28 sps:$4 sm:$0xc1] %v898_v45   ;;  %907 = vst [vmem:[#allocation3 + $0x1b0] ss:$-28 sps:$4 sm:$0xc1] %v899_v46   ;;  %633 = vrot.lane.b32.xlu0 %v4738_v31, %s6842_s24 }
  0xce   :  { %v4980_v48 = vpop.permute.xlu1 %916  ;;  %s6857_s24 = smov 76  }
  0xcf   :  { %v895_v49 = vpop.permute.xlu0 %894 }
  0xd0   :  { %v900_v51 = vsel %vm6848_vm11, %v893_v34, %v895_v49  ;;  %659 = vrot.lane.b32.xlu1 %v4649_v15, %s6836_s23 }
  0xd1   :  { %908 = vst.msk [vmem:[#allocation3 + $0x198] sm:$0xc0] %vm6932_vm14, %v900_v51  ;;  %653 = vrot.lane.b32.xlu0 %v4618_v8, %s6836_s23  ;;  %s6862_s23 = smov 78  }
  0xd2   :  { %912 = vst.msk [vmem:[#allocation3 + $0x1b8] sm:$0x1] %vm6929_vm15, %v900_v51  ;;  %v921_v52 = vpop.permute.xlu1 %920 }
  0xd3   :  { %v919_v53 = vpop.permute.xlu0 %918 }
  0xd4   :  { %v926_v54 = vsel %vm6850_vm10, %v4980_v48, %v919_v53  ;;  %v927_v56 = vsel %vm6850_vm10, %v919_v53, %v921_v52  ;;  %679 = vrot.lane.b32.xlu1 %v4712_v26, %s6839_s22  ;;  %v1276_v44 = vld [vmem:[#allocation3 + $0x188] sm:$0xff] }
  0xd5   :  { %934 = vst [vmem:[#allocation3 + $0x1a8] sm:$0xe] %v926_v54  ;;  %935 = vst [vmem:[#allocation3 + $0x1b0] sm:$0xe] %v927_v56  ;;  %673 = vrot.lane.b32.xlu0 %v4748_v33, %s6839_s22  ;;  %s6860_s22 = smov 77  }
  0xd6   :  { %v940_v57 = vpop.permute.xlu1 %939 }
  0xd7   :  { %v923_v58 = vpop.permute.xlu0 %922 }
  0xd8   :  { %v928_v60 = vsel %vm6850_vm10, %v921_v52, %v923_v58  ;;  %489 = vrot.lane.b32.xlu1 %v4620_v9, %s6862_s23  ;;  %v1278_v53 = vld [vmem:[#allocation3 + $0x198] sm:$0xff] }
  0xd9   :  { %936 = vst.msk [vmem:[#allocation3 + $0x1b8] sm:$0xe] %vm212_vm8, %v928_v60  ;;  %487 = vrot.lane.b32.xlu0 %v4629_v11, %s6862_s23 }
  0xda   :  { %v944_v61 = vpop.permute.xlu1 %943 }
  0xdb   :  { %v942_v62 = vpop.permute.xlu0 %941 }
  0xdc   :  { %v949_v63 = vsel %vm6849_vm4, %v940_v57, %v942_v62  ;;  %v950_v1 = vsel %vm6849_vm4, %v942_v62, %v944_v61  ;;  %509 = vrot.lane.b32.xlu1 %v4699_v23, %s6860_s22 }
  0xdd   :  { %957 = vst [vmem:[#allocation3 + $0x1a8] sm:$0x70] %v949_v63  ;;  %958 = vst [vmem:[#allocation3 + $0x1b0] sm:$0x70] %v950_v1  ;;  %507 = vrot.lane.b32.xlu0 %v4704_v24, %s6860_s22 }
  0xde   :  { %v839_v50 = vpop.permute.xlu1 %838 }
  0xdf   :  { %v849_v47 = vsel %vm6854_vm0, %v839_v50, %v4937_v59  ;;  %v946_v2 = vpop.permute.xlu0 %945  ;;  %vm6868_vm0 = vcmask 244736  }
  0xe0   :  { %857 = vst [vmem:[#allocation3 + $0x180] sm:$0x7] %v849_v47  ;;  %v951_v4 = vsel %vm6849_vm4, %v944_v61, %v946_v2  ;;  %529 = vrot.lane.b32.xlu1 %v4721_v28, %s6857_s24 }
  0xe1   :  { %959 = vst.msk [vmem:[#allocation3 + $0x1b8] sm:$0x70] %vm235_vm3, %v951_v4  ;;  %527 = vrot.lane.b32.xlu0 %v4743_v32, %s6857_s24 }
  0xe2   :  { %v887_v25 = vpop.permute.xlu1 %886 }
  0xe3   :  { %v897_v3 = vsel %vm6848_vm11, %v887_v25, %v889_v5  ;;  %v863_v34 = vpop.permute.xlu0 %862  ;;  %vm6905_vm11 = vcmask 416768  }
  0xe4   :  { %905 = vst [vmem:[#allocation3 + $0x1a0] ss:$-28 sps:$4 sm:$0xc1] %v897_v3   ;;  %v873_v59 = vsel %vm6851_vm13, %v863_v34, %v4953_v55  ;;  %553 = vrot.lane.b32.xlu1 %v4787_v37, %s6852_s26  ;;  %v1280_v45 = vld [vmem:[#allocation3 + $0x1a8] sm:$0xff]  ;;  %v1281_v52 = vld [vmem:[#allocation3 + $0x1b0] sm:$0xff]  ;;  %vm6866_vm13 = vcmask 252928  }
  0xe5   :  { %881 = vst [vmem:[#allocation3 + $0x180] sm:$0x38] %v873_v59  ;;  %551 = vrot.lane.b32.xlu0 %v4776_v35, %s6852_s26  ;;  %v1328_v46 = vpack.c.bf16 %v1280_v45, %v1276_v44 }
  0xe6   :  { %v938_v49 = vpop.permute.xlu1 %937 }
  0xe7   :  { %v948_v51 = vsel %vm6849_vm4, %v938_v49, %v940_v57  ;;  %1376 = vmatprep.subr.bf16.mxu0 %v1328_v46  ;;  %v915_v5 = vpop.permute.xlu0 %914  ;;  %v1277_v57 = vld [vmem:[#allocation3 + $0x190] sm:$0xff]  ;;  %vm6872_vm4 = vcmask 408576  }
  0xe8   :  { %956 = vst [vmem:[#allocation3 + $0x1a0] sm:$0x70] %v948_v51  ;;  %v925_v55 = vsel %vm6850_vm10, %v915_v5, %v4980_v48  ;;  %573 = vrot.lane.b32.xlu1 %v4801_v39, %s6855_s25  ;;  %v1282_v54 = vld [vmem:[#allocation3 + $0x1b8] sm:$0xff]  ;;  %v1329_v60 = vpack.c.bf16 %v1281_v52, %v1277_v57  ;;  %vm6869_vm10 = vcmask 261120  }
  0xe9   :  { %933 = vst [vmem:[#allocation3 + $0x1a0] sm:$0xe] %v925_v55  ;;  %571 = vrot.lane.b32.xlu0 %v4618_v8, %s6855_s25  ;;  %v1330_v56 = vpack.c.bf16 %v1282_v54, %v1278_v53 }
  0xea   :  { %v5030_v58 = vpop.permute.xlu1 %697 }
  0xeb   :  { %1417 = vmatprep.subr.bf16.mxu1 %v1330_v56  ;;  %v5032_v61 = vpop.permute.xlu0 %695 }
  0xec   :  { %v703_v48 = vsel %vm6905_vm11, %v5032_v61, %v5030_v58  ;;  %1418 = vmatpush1.bf16.msra.mxu1 %v1329_v60  ;;  %491 = vrot.lane.b32.xlu1 %v4649_v15, %s6862_s23  ;;  %v1275_v50 = vld [vmem:[#allocation3 + $0x180] sm:$0xff] }
  0xed   :  { %710 = vst [vmem:[#allocation3 + $0x148] ss:$-28 sps:$4 sm:$0xc1] %v703_v48   ;;  %485 = vrot.lane.b32.xlu0 %v4618_v8, %s6862_s23  ;;  %s6870_s23 = smov 80  }
  0xee   :  { %v5041_v62 = vpop.permute.xlu1 %721 }
  0xef   :  { %v5043_v63 = vpop.permute.xlu0 %719 }
  0xf0   :  { %v727_v1 = vsel %vm6872_vm4, %v5043_v63, %v5041_v62  ;;  %511 = vrot.lane.b32.xlu1 %v4712_v26, %s6860_s22  ;;  %v1279_v47 = vld [vmem:[#allocation3 + $0x1a0] sm:$0xff] }
  0xf1   :  { %734 = vst [vmem:[#allocation3 + $0x148] sm:$0xe] %v727_v1  ;;  %505 = vrot.lane.b32.xlu0 %v4748_v33, %s6860_s22  ;;  %v1327_v2 = vpack.c.bf16 %v1279_v47, %v1275_v50  ;;  %s6966_s22 = smov 98  }
  0xf2   :  { %v744_v4 = vpop.permute.xlu1 %743 }
  0xf3   :  { %1377 = vmatpush1.bf16.msra.mxu0 %v1327_v2  ;;  %v5052_v25 = vpop.permute.xlu0 %741 }
  0xf4   :  { %v751_v3 = vsel %vm6869_vm10, %v5052_v25, %v744_v4  ;;  %531 = vrot.lane.b32.xlu1 %v4716_v27, %s6857_s24 }
  0xf5   :  { %759 = vst [vmem:[#allocation3 + $0x148] sm:$0x70] %v751_v3  ;;  %525 = vrot.lane.b32.xlu0 %v4814_v41, %s6857_s24  ;;  %s6944_s24 = smov 99  }
  0xf6   :  { %v748_v34 = vpop.permute.xlu1 %747 }
  0xf7   :  { %v746_v59 = vpop.permute.xlu0 %745 }
  0xf8   :  { %v752_v44 = vsel %vm6869_vm10, %v744_v4, %v746_v59  ;;  %v753_v45 = vsel %vm6869_vm10, %v746_v59, %v748_v34  ;;  %555 = vrot.lane.b32.xlu1 %v4783_v36, %s6852_s26 }
  0xf9   :  { %760 = vst [vmem:[#allocation3 + $0x150] sm:$0x70] %v752_v44  ;;  %761 = vst.msk [vmem:[#allocation3 + $0x158] sm:$0x70] %vm235_vm3, %v753_v45  ;;  %549 = vrot.lane.b32.xlu0 %v4827_v43, %s6852_s26  ;;  %s4501_s26 = smov 101  }
  0xfa   :  { %v768_v46 = vpop.permute.xlu1 %767 }
  0xfb   :  { %v5067_v49 = vpop.permute.xlu0 %765 }
  0xfc   :  { %v775_v51 = vsel %vm6866_vm13, %v5067_v49, %v768_v46  ;;  %575 = vrot.lane.b32.xlu1 %v4620_v9, %s6855_s25 }
  0xfd   :  { %783 = vst [vmem:[#allocation3 + $0x168] ss:$-28 sps:$4 sm:$0x83] %v775_v51   ;;  %569 = vrot.lane.b32.xlu0 %v4822_v42, %s6855_s25  ;;  %s6939_s25 = smov 100  }
  0xfe   :  { %v772_v5 = vpop.permute.xlu1 %771 }
  0xff   :  { %v770_v52 = vpop.permute.xlu0 %769 }
 0x100   :  { %v776_v55 = vsel %vm6866_vm13, %v768_v46, %v770_v52  ;;  %v777_v53 = vsel %vm6866_vm13, %v770_v52, %v772_v5  ;;  %361 = vrot.lane.b32.xlu1 %v4721_v28, %s4501_s26 }
 0x101   :  { %784 = vst [vmem:[#allocation3 + $0x170] ss:$-28 sps:$4 sm:$0x83] %v776_v55   ;;  %785 = vst.msk [vmem:[#allocation3 + $0x158] sm:$0x80] %vm260_vm5, %v777_v53  ;;  %359 = vrot.lane.b32.xlu0 %v4743_v32, %s4501_s26 }
 0x102   :  { %789 = vst.msk [vmem:[#allocation3 + $0x178] sm:$0x3] %vm265_vm6, %v777_v53  ;;  %v796_v54 = vpop.permute.xlu1 %795 }
 0x103   :  { %v5083_v56 = vpop.permute.xlu0 %793 }
 0x104   :  { %v803_v57 = vsel %vm6868_vm0, %v5083_v56, %v796_v54  ;;  %385 = vrot.lane.b32.xlu1 %v4787_v37, %s6939_s25  ;;  %v1268_v52 = vld [vmem:[#allocation3 + $0x148] sm:$0xff] }
 0x105   :  { %811 = vst [vmem:[#allocation3 + $0x168] sm:$0x1c] %v803_v57  ;;  %383 = vrot.lane.b32.xlu0 %v4776_v35, %s6939_s25 }
 0x106   :  { %v800_v60 = vpop.permute.xlu1 %799 }
 0x107   :  { %v798_v48 = vpop.permute.xlu0 %797 }
 0x108   :  { %v804_v1 = vsel %vm6868_vm0, %v796_v54, %v798_v48  ;;  %v805_v50 = vsel %vm6868_vm0, %v798_v48, %v800_v60  ;;  %405 = vrot.lane.b32.xlu1 %v4801_v39, %s6944_s24 }
 0x109   :  { %812 = vst [vmem:[#allocation3 + $0x170] sm:$0x1c] %v804_v1  ;;  %813 = vst.msk [vmem:[#allocation3 + $0x178] sm:$0x1c] %vm290_vm7, %v805_v50  ;;  %403 = vrot.lane.b32.xlu0 %v4618_v8, %s6944_s24 }
 0x10a   :  { %v820_v47 = vpop.permute.xlu1 %819 }
 0x10b   :  { %v818_v2 = vpop.permute.xlu0 %817 }
 0x10c   :  { %v827_v4 = vsel %vm6867_vm1, %v818_v2, %v820_v47  ;;  %425 = vrot.lane.b32.xlu1 %v4625_v10, %s6966_s22 }
 0x10d   :  { %835 = vst [vmem:[#allocation3 + $0x168] sm:$0xe0] %v827_v4  ;;  %423 = vrot.lane.b32.xlu0 %v4639_v13, %s6966_s22 }
 0x10e   :  { %v824_v3 = vpop.permute.xlu1 %823 }
 0x10f   :  { %v822_v34 = vpop.permute.xlu0 %821 }
 0x110   :  { %v828_v59 = vsel %vm6867_vm1, %v820_v47, %v822_v34  ;;  %v829_v44 = vsel %vm6867_vm1, %v822_v34, %v824_v3  ;;  %449 = vrot.lane.b32.xlu1 %v4634_v12, %s6870_s23 }
 0x111   :  { %836 = vst [vmem:[#allocation3 + $0x170] sm:$0xe0] %v828_v59  ;;  %837 = vst.msk [vmem:[#allocation3 + $0x178] sm:$0xe0] %vm315_vm9, %v829_v44  ;;  %447 = vrot.lane.b32.xlu0 %v4654_v16, %s6870_s23 }
 0x112   :  { %v700_v45 = vpop.permute.xlu1 %699 }
 0x113   :  { %v704_v46 = vsel %vm6905_vm11, %v5030_v58, %v700_v45  ;;  %712 = vst.msk [vmem:[#allocation3 + $0x138] sm:$0xc0] %vm6932_vm14, %v700_v45  ;;  %v694_v51 = vpop.permute.xlu0 %693 }
 0x114   :  { %716 = vst.msk [vmem:[#allocation3 + $0x158] sm:$0x1] %vm6929_vm15, %v700_v45  ;;  %711 = vst [vmem:[#allocation3 + $0x150] ss:$-28 sps:$4 sm:$0xc1] %v704_v46   ;;  %v702_v5 = vsel %vm6905_vm11, %v694_v51, %v5032_v61  ;;  %469 = vrot.lane.b32.xlu1 %v4669_v19, %s6875_s21  ;;  %v1272_v55 = vld [vmem:[#allocation3 + $0x168] sm:$0xff] }
 0x115   :  { %709 = vst [vmem:[#allocation3 + $0x140] ss:$-28 sps:$4 sm:$0xc1] %v702_v5   ;;  %467 = vrot.lane.b32.xlu0 %v4674_v20, %s6875_s21  ;;  %v1324_v58 = vpack.c.bf16 %v1272_v55, %v1268_v52  ;;  %vm6917_vm11 = vcmask 646144  }
 0x116   :  { %v724_v53 = vpop.permute.xlu1 %723 }
 0x117   :  { %v728_v54 = vsel %vm6872_vm4, %v5041_v62, %v724_v53  ;;  %736 = vst.msk [vmem:[#allocation3 + $0x158] sm:$0xe] %vm212_vm8, %v724_v53  ;;  %1378 = vmatprep.subr.bf16.mxu0 %v1324_v58  ;;  %v718_v57 = vpop.permute.xlu0 %717 }
 0x118   :  { %735 = vst [vmem:[#allocation3 + $0x150] sm:$0xe] %v728_v54  ;;  %v726_v61 = vsel %vm6872_vm4, %v718_v57, %v5043_v63  ;;  %363 = vrot.lane.b32.xlu1 %v4716_v27, %s4501_s26  ;;  %v1274_v47 = vld [vmem:[#allocation3 + $0x178] sm:$0xff]  ;;  %v1273_v59 = vld [vmem:[#allocation3 + $0x170] sm:$0xff]  ;;  %vm6882_vm4 = vcmask 424960  }
 0x119   :  { %733 = vst [vmem:[#allocation3 + $0x140] sm:$0xe] %v726_v61  ;;  %357 = vrot.lane.b32.xlu0 %v4814_v41, %s4501_s26 }
 0x11a   :  { %v764_v60 = vpop.permute.xlu1 %763 }
 0x11b   :  { %v774_v48 = vsel %vm6866_vm13, %v764_v60, %v5067_v49  ;;  %v740_v62 = vpop.permute.xlu0 %739  ;;  %vm6887_vm13 = vcmask 457728  }
 0x11c   :  { %782 = vst [vmem:[#allocation3 + $0x160] ss:$-28 sps:$4 sm:$0x83] %v774_v48   ;;  %v750_v1 = vsel %vm6869_vm10, %v740_v62, %v5052_v25  ;;  %387 = vrot.lane.b32.xlu1 %v4783_v36, %s6939_s25  ;;  %vm6881_vm10 = vcmask 433152  }
 0x11d   :  { %758 = vst [vmem:[#allocation3 + $0x140] sm:$0x70] %v750_v1  ;;  %381 = vrot.lane.b32.xlu0 %v4827_v43, %s6939_s25  ;;  %s6951_s25 = smov 117  }
 0x11e   :  { %v816_v63 = vpop.permute.xlu1 %815  ;;  %v1270_v50 = vld [vmem:[#allocation3 + $0x158] sm:$0xff] }
 0x11f   :  { %v826_v4 = vsel %vm6867_vm1, %v816_v63, %v818_v2  ;;  %v792_v3 = vpop.permute.xlu0 %791  ;;  %v1326_v34 = vpack.c.bf16 %v1274_v47, %v1270_v50  ;;  %v1269_v49 = vld [vmem:[#allocation3 + $0x150] sm:$0xff]  ;;  %vm6884_vm1 = vcmask 449536  }
 0x120   :  { %834 = vst [vmem:[#allocation3 + $0x160] sm:$0xe0] %v826_v4  ;;  %v802_v25 = vsel %vm6868_vm0, %v792_v3, %v5083_v56  ;;  %407 = vrot.lane.b32.xlu1 %v4620_v9, %s6944_s24  ;;  %v1325_v44 = vpack.c.bf16 %v1273_v59, %v1269_v49  ;;  %vm6883_vm0 = vcmask 441344  }
 0x121   :  { %810 = vst [vmem:[#allocation3 + $0x160] sm:$0x1c] %v802_v25  ;;  %401 = vrot.lane.b32.xlu0 %v4822_v42, %s6944_s24  ;;  %1419 = vmatprep.subr.bf16.mxu1 %v1326_v34  ;;  %s4528_s24 = smov 119  }
 0x122   :  { %v594_v45 = vpop.permute.xlu1 %593  ;;  %1420 = vmatpush1.bf16.msra.mxu1 %v1325_v44 }
 0x123   :  { %v592_v2 = vpop.permute.xlu0 %591 }
 0x124   :  { %v599_v46 = vsel %vm6887_vm13, %v592_v2, %v594_v45  ;;  %427 = vrot.lane.b32.xlu1 %v4659_v17, %s6966_s22  ;;  %v1267_v52 = vld [vmem:[#allocation3 + $0x140] sm:$0xff] }
 0x125   :  { %606 = vst [vmem:[#allocation3 + $0x108] ss:$-28 sps:$4 sm:$0x83] %v599_v46   ;;  %421 = vrot.lane.b32.xlu0 %v4731_v30, %s6966_s22 }
 0x126   :  { %v618_v56 = vpop.permute.xlu1 %617 }
 0x127   :  { %v616_v51 = vpop.permute.xlu0 %615 }
 0x128   :  { %v623_v5 = vsel %vm6884_vm1, %v616_v51, %v618_v56  ;;  %451 = vrot.lane.b32.xlu1 %v4664_v18, %s6870_s23  ;;  %v1271_v55 = vld [vmem:[#allocation3 + $0x160] sm:$0xff] }
 0x129   :  { %630 = vst [vmem:[#allocation3 + $0x108] sm:$0x1c] %v623_v5  ;;  %445 = vrot.lane.b32.xlu0 %v4726_v29, %s6870_s23  ;;  %v1323_v58 = vpack.c.bf16 %v1271_v55, %v1267_v52  ;;  %s6892_s23 = smov 123  }
 0x12a   :  { %v638_v53 = vpop.permute.xlu1 %637 }
 0x12b   :  { %1379 = vmatpush1.bf16.msra.mxu0 %v1323_v58  ;;  %v636_v54 = vpop.permute.xlu0 %635 }
 0x12c   :  { %v643_v57 = vsel %vm6883_vm0, %v636_v54, %v638_v53  ;;  %471 = vrot.lane.b32.xlu1 %v4686_v22, %s6875_s21 }
 0x12d   :  { %650 = vst [vmem:[#allocation3 + $0x108] sm:$0xe0] %v643_v57  ;;  %465 = vrot.lane.b32.xlu0 %v4738_v31, %s6875_s21  ;;  %s6941_s21 = smov 104  }
 0x12e   :  { %v658_v61 = vpop.permute.xlu1 %657 }
 0x12f   :  { %v656_v60 = vpop.permute.xlu0 %655 }
 0x130   :  { %v663_v48 = vsel %vm6881_vm10, %v656_v60, %v658_v61  ;;  %245 = vrot.lane.b32.xlu1 %v4625_v10, %s6892_s23 }
 0x131   :  { %670 = vst [vmem:[#allocation3 + $0x128] sm:$0x7] %v663_v48  ;;  %243 = vrot.lane.b32.xlu0 %v4639_v13, %s6892_s23 }
 0x132   :  { %v678_v62 = vpop.permute.xlu1 %677 }
 0x133   :  { %v676_v1 = vpop.permute.xlu0 %675 }
 0x134   :  { %v683_v63 = vsel %vm6882_vm4, %v676_v1, %v678_v62  ;;  %275 = vrot.lane.b32.xlu1 %v4634_v12, %s6888_s20  ;;  %v1260_v44 = vld [vmem:[#allocation3 + $0x108] sm:$0xff] }
 0x135   :  { %690 = vst [vmem:[#allocation3 + $0x128] sm:$0x38] %v683_v63  ;;  %273 = vrot.lane.b32.xlu0 %v4654_v16, %s6888_s20 }
 0x136   :  { %v596_v50 = vpop.permute.xlu1 %595 }
 0x137   :  { %v600_v47 = vsel %vm6887_vm13, %v594_v45, %v596_v50  ;;  %608 = vst.msk [vmem:[#allocation3 + $0xf8] sm:$0x80] %vm260_vm5, %v596_v50  ;;  %v590_v4 = vpop.permute.xlu0 %589 }
 0x138   :  { %612 = vst.msk [vmem:[#allocation3 + $0x118] sm:$0x3] %vm265_vm6, %v596_v50  ;;  %607 = vst [vmem:[#allocation3 + $0x110] ss:$-28 sps:$4 sm:$0x83] %v600_v47   ;;  %v598_v3 = vsel %vm6887_vm13, %v590_v4, %v592_v2  ;;  %300 = vrot.lane.b32.xlu1 %v4669_v19, %s6941_s21  ;;  %vm6895_vm13 = vcmask 605184  }
 0x139   :  { %605 = vst [vmem:[#allocation3 + $0x100] ss:$-28 sps:$4 sm:$0x83] %v598_v3   ;;  %298 = vrot.lane.b32.xlu0 %v4674_v20, %s6941_s21 }
 0x13a   :  { %v620_v34 = vpop.permute.xlu1 %619 }
 0x13b   :  { %v624_v49 = vsel %vm6884_vm1, %v618_v56, %v620_v34  ;;  %632 = vst.msk [vmem:[#allocation3 + $0x118] sm:$0x1c] %vm290_vm7, %v620_v34  ;;  %v614_v59 = vpop.permute.xlu0 %613 }
 0x13c   :  { %631 = vst [vmem:[#allocation3 + $0x110] sm:$0x1c] %v624_v49  ;;  %v622_v25 = vsel %vm6884_vm1, %v614_v59, %v616_v51  ;;  %321 = vrot.lane.b32.xlu1 %v4620_v9, %s6885_s19  ;;  %v1264_v45 = vld [vmem:[#allocation3 + $0x128] sm:$0xff]  ;;  %vm6894_vm1 = vcmask 613376  }
 0x13d   :  { %629 = vst [vmem:[#allocation3 + $0x100] sm:$0x1c] %v622_v25  ;;  %319 = vrot.lane.b32.xlu0 %v4629_v11, %s6885_s19  ;;  %v1320_v2 = vpack.c.bf16 %v1264_v45, %v1260_v44 }
 0x13e   :  { %v640_v46 = vpop.permute.xlu1 %639 }
 0x13f   :  { %v644_v56 = vsel %vm6883_vm0, %v638_v53, %v640_v46  ;;  %652 = vst.msk [vmem:[#allocation3 + $0x118] sm:$0xe0] %vm315_vm9, %v640_v46  ;;  %1380 = vmatprep.subr.bf16.mxu0 %v1320_v2  ;;  %v634_v5 = vpop.permute.xlu0 %633 }
 0x140   :  { %651 = vst [vmem:[#allocation3 + $0x110] sm:$0xe0] %v644_v56  ;;  %v642_v51 = vsel %vm6883_vm0, %v634_v5, %v636_v54  ;;  %341 = vrot.lane.b32.xlu1 %v4699_v23, %s6890_s18  ;;  %vm6898_vm0 = vcmask 621568  }
 0x141   :  { %649 = vst [vmem:[#allocation3 + $0x100] sm:$0xe0] %v642_v51  ;;  %339 = vrot.lane.b32.xlu0 %v4704_v24, %s6890_s18 }
 0x142   :  { %v660_v52 = vpop.permute.xlu1 %659 }
 0x143   :  { %v664_v55 = vsel %vm6881_vm10, %v658_v61, %v660_v52  ;;  %672 = vst.msk [vmem:[#allocation3 + $0x138] sm:$0x7] %vm132_vm2, %v660_v52  ;;  %v654_v58 = vpop.permute.xlu0 %653 }
 0x144   :  { %671 = vst [vmem:[#allocation3 + $0x130] sm:$0x7] %v664_v55  ;;  %v662_v53 = vsel %vm6881_vm10, %v654_v58, %v656_v60  ;;  %247 = vrot.lane.b32.xlu1 %v4659_v17, %s6892_s23  ;;  %vm6902_vm10 = vcmask 637952  }
 0x145   :  { %669 = vst [vmem:[#allocation3 + $0x120] sm:$0x7] %v662_v53  ;;  %241 = vrot.lane.b32.xlu0 %v4731_v30, %s6892_s23  ;;  %s4515_s23 = smov 124  }
 0x146   :  { %v680_v54 = vpop.permute.xlu1 %679 }
 0x147   :  { %v684_v57 = vsel %vm6882_vm4, %v678_v62, %v680_v54  ;;  %692 = vst.msk [vmem:[#allocation3 + $0x138] sm:$0x38] %vm157_vm12, %v680_v54  ;;  %v674_v48 = vpop.permute.xlu0 %673  ;;  %v1261_v3 = vld [vmem:[#allocation3 + $0x110] sm:$0xff] }
 0x148   :  { %691 = vst [vmem:[#allocation3 + $0x130] sm:$0x38] %v684_v57  ;;  %v682_v61 = vsel %vm6882_vm4, %v674_v48, %v676_v1  ;;  %277 = vrot.lane.b32.xlu1 %v4664_v18, %s6888_s20  ;;  %vm6899_vm4 = vcmask 629760   ;;  %v1262_v1 = vld [vmem:[#allocation3 + $0x118] sm:$0xff]  ;;  %v1259_v49 = vld [vmem:[#allocation3 + $0x100] sm:$0xff] }
 0x149   :  { %689 = vst [vmem:[#allocation3 + $0x120] sm:$0x38] %v682_v61  ;;  %271 = vrot.lane.b32.xlu0 %v4726_v29, %s6888_s20  ;;  %s4513_s20 = smov 126  }
 0x14a   :  { %v490_v60 = vpop.permute.xlu1 %489 }
 0x14b   :  { %v488_v63 = vpop.permute.xlu0 %487 }
 0x14c   :  { %v495_v30 = vsel %vm6902_vm10, %v488_v63, %v490_v60  ;;  %302 = vrot.lane.b32.xlu1 %v4686_v22, %s6941_s21 }
 0x14d   :  { %502 = vst [vmem:[#allocation3 + $0xc8] sm:$0x7] %v495_v30  ;;  %296 = vrot.lane.b32.xlu0 %v4738_v31, %s6941_s21 }
 0x14e   :  { %v510_v62 = vpop.permute.xlu1 %509  ;;  %v1266_v50 = vld [vmem:[#allocation3 + $0x138] sm:$0xff] }
 0x14f   :  { %v508_v47 = vpop.permute.xlu0 %507  ;;  %v1322_v4 = vpack.c.bf16 %v1266_v50, %v1262_v1  ;;  %v1265_v29 = vld [vmem:[#allocation3 + $0x130] sm:$0xff] }
 0x150   :  { %v515_v34 = vsel %vm6899_vm4, %v508_v47, %v510_v62  ;;  %323 = vrot.lane.b32.xlu1 %v4649_v15, %s6885_s19  ;;  %v1263_v59 = vld [vmem:[#allocation3 + $0x120] sm:$0xff]  ;;  %v1321_v25 = vpack.c.bf16 %v1265_v29, %v1261_v3 }
 0x151   :  { %522 = vst [vmem:[#allocation3 + $0xc8] sm:$0x38] %v515_v34  ;;  %317 = vrot.lane.b32.xlu0 %v4618_v8, %s6885_s19  ;;  %1421 = vmatprep.subr.bf16.mxu1 %v1322_v4  ;;  %v1319_v31 = vpack.c.bf16 %v1263_v59, %v1259_v49  ;;  %s4512_s19 = smov 127  }
 0x152   :  { %v530_v44 = vpop.permute.xlu1 %529  ;;  %1422 = vmatpush1.bf16.msra.mxu1 %v1321_v25 }
 0x153   :  { %1381 = vmatpush1.bf16.msra.mxu0 %v1319_v31  ;;  %v528_v45 = vpop.permute.xlu0 %527 }
 0x154   :  { %v535_v2 = vsel %vm6898_vm0, %v528_v45, %v530_v44  ;;  %343 = vrot.lane.b32.xlu1 %v4712_v26, %s6890_s18 }
 0x155   :  { %542 = vst [vmem:[#allocation3 + $0xe8] ss:$-28 sps:$4 sm:$0xc1] %v535_v2   ;;  %337 = vrot.lane.b32.xlu0 %v4748_v33, %s6890_s18  ;;  %s4514_s18 = smov 125  }
 0x156   :  { %v554_v46 = vpop.permute.xlu1 %553 }
 0x157   :  { %v552_v56 = vpop.permute.xlu0 %551 }
 0x158   :  { %v559_v5 = vsel %vm6894_vm1, %v552_v56, %v554_v46  ;;  %142 = vrot.lane.b32.xlu1 %v4699_v23, %s4512_s19 }
 0x159   :  { %566 = vst [vmem:[#allocation3 + $0xe8] sm:$0xe] %v559_v5  ;;  %140 = vrot.lane.b32.xlu0 %v4704_v24, %s4512_s19 }
 0x15a   :  { %v574_v51 = vpop.permute.xlu1 %573 }
 0x15b   :  { %v572_v52 = vpop.permute.xlu0 %571 }
 0x15c   :  { %v579_v55 = vsel %vm6895_vm13, %v572_v52, %v574_v51  ;;  %167 = vrot.lane.b32.xlu1 %v4721_v28, %s4513_s20  ;;  %v1252_v48 = vld [vmem:[#allocation3 + $0xc8] sm:$0xff] }
 0x15d   :  { %586 = vst [vmem:[#allocation3 + $0xe8] sm:$0x70] %v579_v55  ;;  %165 = vrot.lane.b32.xlu0 %v4743_v32, %s4513_s20 }
 0x15e   :  { %v492_v58 = vpop.permute.xlu1 %491 }
 0x15f   :  { %v496_v23 = vsel %vm6902_vm10, %v490_v60, %v492_v58  ;;  %504 = vst.msk [vmem:[#allocation3 + $0xd8] sm:$0x7] %vm132_vm2, %v492_v58  ;;  %v486_v53 = vpop.permute.xlu0 %485 }
 0x160   :  { %503 = vst [vmem:[#allocation3 + $0xd0] sm:$0x7] %v496_v23  ;;  %v494_v24 = vsel %vm6902_vm10, %v486_v53, %v488_v63  ;;  %197 = vrot.lane.b32.xlu1 %v4787_v37, %s4514_s18  ;;  %v4435_v23 = vld [vmem:[#allocation2 + $0x10] sm:$0x7]  ;;  %vm6912_vm10 = vcmask 654336  }
 0x161   :  { %501 = vst [vmem:[#allocation3 + $0xc0] sm:$0x7] %v494_v24  ;;  %195 = vrot.lane.b32.xlu0 %v4776_v35, %s4514_s18 }
 0x162   :  { %v512_v28 = vpop.permute.xlu1 %511 }
 0x163   :  { %v516_v32 = vsel %vm6899_vm4, %v510_v62, %v512_v28  ;;  %524 = vst.msk [vmem:[#allocation3 + $0xd8] sm:$0x38] %vm157_vm12, %v512_v28  ;;  %v506_v54 = vpop.permute.xlu0 %505 }
 0x164   :  { %523 = vst [vmem:[#allocation3 + $0xd0] sm:$0x38] %v516_v32  ;;  %v514_v57 = vsel %vm6899_vm4, %v506_v54, %v508_v47  ;;  %220 = vrot.lane.b32.xlu1 %v4801_v39, %s4515_s23  ;;  %v1256_v61 = vld [vmem:[#allocation3 + $0xe8] sm:$0xff]  ;;  %vm6918_vm4 = vcmask 801792  }
 0x165   :  { %521 = vst [vmem:[#allocation3 + $0xc0] sm:$0x38] %v514_v57  ;;  %218 = vrot.lane.b32.xlu0 %v4618_v8, %s4515_s23  ;;  %v1316_v60 = vpack.c.bf16 %v1256_v61, %v1252_v48 }
 0x166   :  { %v532_v63 = vpop.permute.xlu1 %531 }
 0x167   :  { %v536_v30 = vsel %vm6898_vm0, %v530_v44, %v532_v63  ;;  %544 = vst.msk [vmem:[#allocation3 + $0xd8] sm:$0xc0] %vm6932_vm14, %v532_v63  ;;  %1382 = vmatprep.subr.bf16.mxu0 %v1316_v60  ;;  %v526_v62 = vpop.permute.xlu0 %525 }
 0x168   :  { %548 = vst.msk [vmem:[#allocation3 + $0xf8] sm:$0x1] %vm6929_vm15, %v532_v63  ;;  %543 = vst [vmem:[#allocation3 + $0xf0] ss:$-28 sps:$4 sm:$0xc1] %v536_v30   ;;  %v534_v1 = vsel %vm6898_vm0, %v526_v62, %v528_v45  ;;  %144 = vrot.lane.b32.xlu1 %v4712_v26, %s4512_s19  ;;  %vm6919_vm0 = vcmask 809984  }
 0x169   :  { %541 = vst [vmem:[#allocation3 + $0xe0] ss:$-28 sps:$4 sm:$0xc1] %v534_v1   ;;  %138 = vrot.lane.b32.xlu0 %v4748_v33, %s4512_s19 }
 0x16a   :  { %v556_v50 = vpop.permute.xlu1 %555 }
 0x16b   :  { %v560_v47 = vsel %vm6894_vm1, %v554_v46, %v556_v50  ;;  %568 = vst.msk [vmem:[#allocation3 + $0xf8] sm:$0xe] %vm212_vm8, %v556_v50  ;;  %v550_v4 = vpop.permute.xlu0 %549 }
 0x16c   :  { %567 = vst [vmem:[#allocation3 + $0xf0] sm:$0xe] %v560_v47  ;;  %v558_v3 = vsel %vm6894_vm1, %v550_v4, %v552_v56  ;;  %169 = vrot.lane.b32.xlu1 %v4716_v27, %s4513_s20  ;;  %vm6921_vm1 = vcmask 826368  }
 0x16d   :  { %565 = vst [vmem:[#allocation3 + $0xe0] sm:$0xe] %v558_v3  ;;  %163 = vrot.lane.b32.xlu0 %v4814_v41, %s4513_s20 }
 0x16e   :  { %v576_v26 = vpop.permute.xlu1 %575  ;;  %v1254_v25 = vld [vmem:[#allocation3 + $0xd8] sm:$0xff] }
 0x16f   :  { %v580_v29 = vsel %vm6895_vm13, %v574_v51, %v576_v26  ;;  %588 = vst.msk [vmem:[#allocation3 + $0xf8] sm:$0x70] %vm235_vm3, %v576_v26  ;;  %v570_v33 = vpop.permute.xlu0 %569  ;;  %v1253_v45 = vld [vmem:[#allocation3 + $0xd0] sm:$0xff] }
 0x170   :  { %587 = vst [vmem:[#allocation3 + $0xf0] sm:$0x70] %v580_v29  ;;  %v578_v34 = vsel %vm6895_vm13, %v570_v33, %v572_v52  ;;  %199 = vrot.lane.b32.xlu1 %v4783_v36, %s4514_s18  ;;  %vm6920_vm13 = vcmask 818176   ;;  %v1251_v56 = vld [vmem:[#allocation3 + $0xc0] sm:$0xff] }
 0x171   :  { %585 = vst [vmem:[#allocation3 + $0xe0] sm:$0x70] %v578_v34  ;;  %193 = vrot.lane.b32.xlu0 %v4827_v43, %s4514_s18 }
 0x172   :  { %v362_v27 = vpop.permute.xlu1 %361 }
 0x173   :  { %v5266_v49 = vpop.permute.xlu0 %359 }
 0x174   :  { %v367_v41 = vsel %vm6921_vm1, %v5266_v49, %v362_v27  ;;  %222 = vrot.lane.b32.xlu1 %v4620_v9, %s4515_s23 }
 0x175   :  { %374 = vst [vmem:[#allocation3 + $0x88] ss:$-28 sps:$4 sm:$0xc1] %v367_v41   ;;  %216 = vrot.lane.b32.xlu0 %v4822_v42, %s4515_s23 }
 0x176   :  { %v5274_v59 = vpop.permute.xlu1 %385  ;;  %v1258_v31 = vld [vmem:[#allocation3 + $0xf8] sm:$0xff] }
 0x177   :  { %v5276_v43 = vpop.permute.xlu0 %383  ;;  %v1318_v44 = vpack.c.bf16 %v1258_v31, %v1254_v25  ;;  %v1257_v2 = vld [vmem:[#allocation3 + $0xf0] sm:$0xff] }
 0x178   :  { %v391_v46 = vsel %vm6920_vm13, %v5276_v43, %v5274_v59  ;;  %1211 = vrot.lane.b32.xlu1 %v4649_v15, %s4516_s17  ;;  %v1255_v42 = vld [vmem:[#allocation3 + $0xe0] sm:$0xff]  ;;  %v1317_v5 = vpack.c.bf16 %v1257_v2, %v1253_v45 }
 0x179   :  { %398 = vst [vmem:[#allocation3 + $0x88] sm:$0xe] %v391_v46  ;;  %1209 = vrot.lane.b32.xlu0 %v4620_v9, %s4516_s17  ;;  %1423 = vmatprep.subr.bf16.mxu1 %v1318_v44  ;;  %v1315_v51 = vpack.c.bf16 %v1255_v42, %v1251_v56 }
 0x17a   :  { %v406_v52 = vpop.permute.xlu1 %405  ;;  %1424 = vmatpush1.bf16.msra.mxu1 %v1317_v5 }
 0x17b   :  { %1383 = vmatpush1.bf16.msra.mxu0 %v1315_v51  ;;  %v404_v55 = vpop.permute.xlu0 %403 }
 0x17c   :  { %v411_v58 = vsel %vm6919_vm0, %v404_v55, %v406_v52  ;;  %1213 = vrot.lane.b32.xlu1 %v4435_v23, %s4516_s17 }
 0x17d   :  { %418 = vst [vmem:[#allocation3 + $0x88] sm:$0x70] %v411_v58  ;;  %1207 = vrot.lane.b32.xlu0 %v4629_v11, %s4516_s17 }
 0x17e   :  { %v426_v15 = vpop.permute.xlu1 %425 }
 0x17f   :  { %v5289_v53 = vpop.permute.xlu0 %423 }
 0x180   :  { %v431_v24 = vsel %vm6918_vm4, %v5289_v53, %v426_v15  ;;  %1107 = vrot.lane.b32.xlu1 %v4783_v36, %s6913_s16 }
 0x181   :  { %438 = vst [vmem:[#allocation3 + $0xa8] ss:$-28 sps:$4 sm:$0x83] %v431_v24   ;;  %1105 = vrot.lane.b32.xlu0 %v4787_v37, %s6913_s16 }
 0x182   :  { %v450_v28 = vpop.permute.xlu1 %449 }
 0x183   :  { %v5297_v32 = vpop.permute.xlu0 %447 }
 0x184   :  { %v455_v11 = vsel %vm6912_vm10, %v5297_v32, %v450_v28  ;;  %1127 = vrot.lane.b32.xlu1 %v4620_v9, %s4518_s15 }
 0x185   :  { %462 = vst [vmem:[#allocation3 + $0xa8] sm:$0x1c] %v455_v11  ;;  %1125 = vrot.lane.b32.xlu0 %v4801_v39, %s4518_s15 }
 0x186   :  { %v470_v36 = vpop.permute.xlu1 %469 }
 0x187   :  { %v5305_v54 = vpop.permute.xlu0 %467 }
 0x188   :  { %v475_v37 = vsel %vm6917_vm11, %v5305_v54, %v470_v36  ;;  %1147 = vrot.lane.b32.xlu1 %v4659_v17, %s4519_s14 }
 0x189   :  { %482 = vst [vmem:[#allocation3 + $0xa8] sm:$0xe0] %v475_v37  ;;  %1145 = vrot.lane.b32.xlu0 %v4625_v10, %s4519_s14 }
 0x18a   :  { %v364_v9 = vpop.permute.xlu1 %363 }
 0x18b   :  { %v368_v57 = vsel %vm6921_vm1, %v362_v27, %v364_v9  ;;  %376 = vst.msk [vmem:[#allocation3 + $0x78] sm:$0xc0] %vm6932_vm14, %v364_v9  ;;  %v358_v39 = vpop.permute.xlu0 %357 }
 0x18c   :  { %380 = vst.msk [vmem:[#allocation3 + $0x98] sm:$0x1] %vm6929_vm15, %v364_v9  ;;  %375 = vst [vmem:[#allocation3 + $0x90] ss:$-28 sps:$4 sm:$0xc1] %v368_v57   ;;  %v366_v48 = vsel %vm6921_vm1, %v358_v39, %v5266_v49  ;;  %1171 = vrot.lane.b32.xlu1 %v4664_v18, %s4520_s13  ;;  %v1244_v18 = vld [vmem:[#allocation3 + $0x88] sm:$0xff] }
 0x18d   :  { %373 = vst [vmem:[#allocation3 + $0x80] ss:$-28 sps:$4 sm:$0xc1] %v366_v48   ;;  %1169 = vrot.lane.b32.xlu0 %v4634_v12, %s4520_s13  ;;  %vm6924_vm1 = vcmask 834560  }
 0x18e   :  { %v388_v10 = vpop.permute.xlu1 %387 }
 0x18f   :  { %v392_v17 = vsel %vm6920_vm13, %v5274_v59, %v388_v10  ;;  %400 = vst.msk [vmem:[#allocation3 + $0x98] sm:$0xe] %vm212_vm8, %v388_v10  ;;  %v382_v61 = vpop.permute.xlu0 %381 }
 0x190   :  { %399 = vst [vmem:[#allocation3 + $0x90] sm:$0xe] %v392_v17  ;;  %v390_v60 = vsel %vm6920_vm13, %v382_v61, %v5276_v43  ;;  %1191 = vrot.lane.b32.xlu1 %v4686_v22, %s4521_s12  ;;  %v1248_v63 = vld [vmem:[#allocation3 + $0xa8] sm:$0xff]  ;;  %v4522_v43 = vmov 0   ;;  %vm6925_vm13 = vcmask 842752  }
 0x191   :  { %397 = vst [vmem:[#allocation3 + $0x80] sm:$0xe] %v390_v60  ;;  %1189 = vrot.lane.b32.xlu0 %v4669_v19, %s4521_s12  ;;  %v1312_v12 = vpack.c.bf16 %v1248_v63, %v1244_v18  ;;  %4386 = vset.pattern.permute.xlu1 %v4522_v43 }
 0x192   :  { %v408_v30 = vpop.permute.xlu1 %407  ;;  %4370 = vset.pattern.permute.xlu0 %v4522_v43 }
 0x193   :  { %v412_v62 = vsel %vm6919_vm0, %v406_v52, %v408_v30  ;;  %420 = vst.msk [vmem:[#allocation3 + $0x98] sm:$0x70] %vm235_vm3, %v408_v30  ;;  %1384 = vmatprep.subr.bf16.mxu0 %v1312_v12  ;;  %v402_v1 = vpop.permute.xlu0 %401 }
 0x194   :  { %419 = vst [vmem:[#allocation3 + $0x90] sm:$0x70] %v412_v62  ;;  %v410_v50 = vsel %vm6919_vm0, %v402_v1, %v404_v55  ;;  %1109 = vrot.lane.b32.xlu1 %v913_v38, %s6913_s16  ;;  %vm304_vm0 = vcmask 850944  }
 0x195   :  { %417 = vst [vmem:[#allocation3 + $0x80] sm:$0x70] %v410_v50  ;;  %1103 = vrot.lane.b32.xlu0 %v4776_v35, %s6913_s16  ;;  %s6953_s16 = smov 89  }
 0x196   :  { %v428_v19 = vpop.permute.xlu1 %427 }
 0x197   :  { %v432_v22 = vsel %vm6918_vm4, %v426_v15, %v428_v19  ;;  %440 = vst.msk [vmem:[#allocation3 + $0x98] sm:$0x80] %vm260_vm5, %v428_v19  ;;  %v422_v47 = vpop.permute.xlu0 %421 }
 0x198   :  { %444 = vst.msk [vmem:[#allocation3 + $0xb8] sm:$0x3] %vm265_vm6, %v428_v19  ;;  %439 = vst [vmem:[#allocation3 + $0xb0] ss:$-28 sps:$4 sm:$0x83] %v432_v22   ;;  %v430_v4 = vsel %vm6918_vm4, %v422_v47, %v5289_v53  ;;  %1129 = vrot.lane.b32.xlu1 %v4809_v40, %s4518_s15  ;;  %vm6922_vm4 = vcmask 998400  }
 0x199   :  { %437 = vst [vmem:[#allocation3 + $0xa0] ss:$-28 sps:$4 sm:$0x83] %v430_v4   ;;  %1123 = vrot.lane.b32.xlu0 %v4618_v8, %s4518_s15 }
 0x19a   :  { %v452_v6 = vpop.permute.xlu1 %451 }
 0x19b   :  { %v456_v35 = vsel %vm6912_vm10, %v450_v28, %v452_v6  ;;  %464 = vst.msk [vmem:[#allocation3 + $0xb8] sm:$0x1c] %vm290_vm7, %v452_v6  ;;  %v446_v38 = vpop.permute.xlu0 %445 }
 0x19c   :  { %463 = vst [vmem:[#allocation3 + $0xb0] sm:$0x1c] %v456_v35  ;;  %v454_v3 = vsel %vm6912_vm10, %v446_v38, %v5297_v32  ;;  %1149 = vrot.lane.b32.xlu1 %v4616_v7, %s4519_s14  ;;  %vm6923_vm10 = vcmask 1006592  }
 0x19d   :  { %461 = vst [vmem:[#allocation3 + $0xa0] sm:$0x1c] %v454_v3  ;;  %1143 = vrot.lane.b32.xlu0 %v4639_v13, %s4519_s14  ;;  %v5367_v13 = vld [vmem:[%s6815_s1] sm:$0xff]  ;;  %s6954_s1 = smov 90  }
 0x19e   :  { %v472_v40 = vpop.permute.xlu1 %471  ;;  %v5371_v34 = vcombine.high %v5367_v13, %v5367_v13 }
 0x19f   :  { %v476_v8 = vsel %vm6917_vm11, %v470_v36, %v472_v40  ;;  %484 = vst.msk [vmem:[#allocation3 + $0xb8] sm:$0xe0] %vm315_vm9, %v472_v40  ;;  %v466_v26 = vpop.permute.xlu0 %465  ;;  %v1245_v25 = vld [vmem:[#allocation3 + $0x90] sm:$0xff] }
 0x1a0   :  { %483 = vst [vmem:[#allocation3 + $0xb0] sm:$0xe0] %v476_v8  ;;  %v474_v29 = vsel %vm6917_vm11, %v466_v26, %v5305_v54  ;;  %1173 = vrot.lane.b32.xlu1 %v4645_v14, %s4520_s13  ;;  %vm6964_vm11 = vcmask 154624   ;;  %v1243_v44 = vld [vmem:[#allocation3 + $0x80] sm:$0xff] }
 0x1a1   :  { %481 = vst [vmem:[#allocation3 + $0xa0] sm:$0xe0] %v474_v29  ;;  %1167 = vrot.lane.b32.xlu0 %v4654_v16, %s4520_s13  ;;  %4101 = vmatprep.mubr.msk.bf16.mxu0 %vm6964_vm11, %v5371_v34  ;;  %v1246_v16 = vld [vmem:[#allocation3 + $0x98] sm:$0xff] }
 0x1a2   :  { %v246_v7 = vpop.permute.xlu1 %245  ;;  %4102 = vmatprep.mubr.msk.bf16.mxu1 %vm6964_vm11, %v5371_v34 }
 0x1a3   :  { %v244_v33 = vpop.permute.xlu0 %243 }
 0x1a4   :  { %v251_v27 = vsel %vm6923_vm10, %v244_v33, %v246_v7  ;;  %1193 = vrot.lane.b32.xlu1 %v4681_v21, %s4521_s12 }
 0x1a5   :  { %258 = vst [vmem:[#allocation3 + $0x48] ss:$-28 sps:$4 sm:$0x83] %v251_v27   ;;  %1187 = vrot.lane.b32.xlu0 %v4674_v20, %s4521_s12  ;;  %v40_v20 = vld [vmem:[%s6816_s2] sm:$0xff]  ;;  %s6949_s2 = smov 118  }
 0x1a6   :  { %v276_v14 = vpop.permute.xlu1 %275  ;;  %v1250_v49 = vld [vmem:[#allocation3 + $0xb8] sm:$0xff] }
 0x1a7   :  { %v274_v41 = vpop.permute.xlu0 %273  ;;  %v1314_v59 = vpack.c.bf16 %v1250_v49, %v1246_v16  ;;  %v1249_v31 = vld [vmem:[#allocation3 + $0xb0] sm:$0xff] }
 0x1a8   :  { %v281_v21 = vsel %vm6922_vm4, %v274_v41, %v276_v14  ;;  %v1247_v45 = vld [vmem:[#allocation3 + $0xa0] sm:$0xff]  ;;  %v1313_v2 = vpack.c.bf16 %v1249_v31, %v1245_v25  ;;  %v5409_v49 = vld [vmem:[#allocation2] sm:$0x77] }
 0x1a9   :  { %288 = vst [vmem:[#allocation3 + $0x48] sm:$0x1c] %v281_v21  ;;  %1425 = vmatprep.subr.bf16.mxu1 %v1314_v59  ;;  %v1311_v46 = vpack.c.bf16 %v1247_v45, %v1243_v44  ;;  %1345 = vperm.xlu0 %4370, %v40_v20   ;;  %v5414_v31 = vcombine.high %v5409_v49, %v5409_v49 }
 0x1aa   :  { %v301_v56 = vpop.permute.xlu1 %300  ;;  %1426 = vmatpush1.bf16.msra.mxu1 %v1313_v2 }
 0x1ab   :  { %1385 = vmatpush1.bf16.msra.mxu0 %v1311_v46  ;;  %v299_v42 = vpop.permute.xlu0 %298 }
 0x1ac   :  { %v306_v5 = vsel %vm304_vm0, %v299_v42, %v301_v56 }
 0x1ad   :  { %313 = vst [vmem:[#allocation3 + $0x48] sm:$0xe0] %v306_v5 }
 0x1ae   :  { %v322_v51 = vpop.permute.xlu1 %321 }
 0x1af   :  { %v320_v52 = vpop.permute.xlu0 %319 }
 0x1b0   :  { %v327_v55 = vsel %vm6925_vm13, %v320_v52, %v322_v51 }
 0x1b1   :  { %334 = vst [vmem:[#allocation3 + $0x68] sm:$0x7] %v327_v55 }
 0x1b2   :  { %v342_v58 = vpop.permute.xlu1 %341 }
 0x1b3   :  { %v340_v23 = vpop.permute.xlu0 %339 }
 0x1b4   :  { %v347_v15 = vsel %vm6924_vm1, %v340_v23, %v342_v58  ;;  %v1236_v9 = vld [vmem:[#allocation3 + $0x48] sm:$0xff] }
 0x1b5   :  { %354 = vst [vmem:[#allocation3 + $0x68] sm:$0x38] %v347_v15 }
 0x1b6   :  { %v248_v53 = vpop.permute.xlu1 %247 }
 0x1b7   :  { %v252_v24 = vsel %vm6923_vm10, %v246_v7, %v248_v53  ;;  %261 = vst.msk [vmem:[#allocation3 + $0x38] sm:$0x80] %vm260_vm5, %v248_v53  ;;  %v242_v28 = vpop.permute.xlu0 %241 }
 0x1b8   :  { %266 = vst.msk [vmem:[#allocation3 + $0x58] sm:$0x3] %vm265_vm6, %v248_v53  ;;  %259 = vst [vmem:[#allocation3 + $0x50] ss:$-28 sps:$4 sm:$0x83] %v252_v24   ;;  %v250_v32 = vsel %vm6923_vm10, %v242_v28, %v244_v33  ;;  %vm6927_vm10 = vcmask 1031168  }
 0x1b9   :  { %257 = vst [vmem:[#allocation3 + $0x40] ss:$-28 sps:$4 sm:$0x83] %v250_v32  }
 0x1ba   :  { %v278_v11 = vpop.permute.xlu1 %277 }
 0x1bb   :  { %v282_v36 = vsel %vm6922_vm4, %v276_v14, %v278_v11  ;;  %291 = vst.msk [vmem:[#allocation3 + $0x58] sm:$0x1c] %vm290_vm7, %v278_v11  ;;  %v272_v54 = vpop.permute.xlu0 %271 }
 0x1bc   :  { %289 = vst [vmem:[#allocation3 + $0x50] sm:$0x1c] %v282_v36  ;;  %v280_v37 = vsel %vm6922_vm4, %v272_v54, %v274_v41  ;;  %v1240_v57 = vld [vmem:[#allocation3 + $0x68] sm:$0xff]  ;;  %vm146_vm4 = vcmask 1039360  }
 0x1bd   :  { %287 = vst [vmem:[#allocation3 + $0x40] sm:$0x1c] %v280_v37  ;;  %v1308_v39 = vpack.c.bf16 %v1240_v57, %v1236_v9 }
 0x1be   :  { %v303_v48 = vpop.permute.xlu1 %302 }
 0x1bf   :  { %v307_v10 = vsel %vm304_vm0, %v301_v56, %v303_v48  ;;  %316 = vst.msk [vmem:[#allocation3 + $0x58] sm:$0xe0] %vm315_vm9, %v303_v48  ;;  %1386 = vmatprep.subr.bf16.mxu0 %v1308_v39  ;;  %v297_v17 = vpop.permute.xlu0 %296 }
 0x1c0   :  { %314 = vst [vmem:[#allocation3 + $0x50] sm:$0xe0] %v307_v10  ;;  %v305_v61 = vsel %vm304_vm0, %v297_v17, %v299_v42 }
 0x1c1   :  { %312 = vst [vmem:[#allocation3 + $0x40] sm:$0xe0] %v305_v61 }
 0x1c2   :  { %v324_v60 = vpop.permute.xlu1 %323 }
 0x1c3   :  { %v328_v18 = vsel %vm6925_vm13, %v322_v51, %v324_v60  ;;  %336 = vst.msk [vmem:[#allocation3 + $0x78] sm:$0x7] %vm132_vm2, %v324_v60  ;;  %v318_v63 = vpop.permute.xlu0 %317 }
 0x1c4   :  { %335 = vst [vmem:[#allocation3 + $0x70] sm:$0x7] %v328_v18  ;;  %v326_v12 = vsel %vm6925_vm13, %v318_v63, %v320_v52  ;;  %vm6928_vm13 = vcmask 1014784  }
 0x1c5   :  { %333 = vst [vmem:[#allocation3 + $0x60] sm:$0x7] %v326_v12 }
 0x1c6   :  { %v344_v30 = vpop.permute.xlu1 %343  ;;  %v1238_v6 = vld [vmem:[#allocation3 + $0x58] sm:$0xff] }
 0x1c7   :  { %v348_v62 = vsel %vm6924_vm1, %v342_v58, %v344_v30  ;;  %356 = vst.msk [vmem:[#allocation3 + $0x78] sm:$0x38] %vm157_vm12, %v344_v30  ;;  %v338_v1 = vpop.permute.xlu0 %337  ;;  %v1237_v40 = vld [vmem:[#allocation3 + $0x50] sm:$0xff] }
 0x1c8   :  { %355 = vst [vmem:[#allocation3 + $0x70] sm:$0x38] %v348_v62  ;;  %v346_v50 = vsel %vm6924_vm1, %v338_v1, %v340_v23  ;;  %v1235_v29 = vld [vmem:[#allocation3 + $0x40] sm:$0xff]  ;;  %vm6926_vm1 = vcmask 1022976   ;;  %v5425_v58 = vld [vmem:[#allocation2 + $0x8] sm:$0x77] }
 0x1c9   :  { %353 = vst [vmem:[#allocation3 + $0x60] sm:$0x38] %v346_v50  ;;  %v5432_v28 = vcombine.high %v5425_v58, %v5425_v58 }
 0x1ca   :  { %v143_v19 = vpop.permute.xlu1 %142 }
 0x1cb   :  { %v141_v22 = vpop.permute.xlu0 %140 }
 0x1cc   :  { %v148_v47 = vsel %vm146_vm4, %v141_v22, %v143_v19 }
 0x1cd   :  { %155 = vst [vmem:[#allocation3 + $0x8] sm:$0x38] %v148_v47 }
 0x1ce   :  { %v168_v4 = vpop.permute.xlu1 %167  ;;  %v1242_v35 = vld [vmem:[#allocation3 + $0x78] sm:$0xff] }
 0x1cf   :  { %v166_v38 = vpop.permute.xlu0 %165  ;;  %v1310_v3 = vpack.c.bf16 %v1242_v35, %v1238_v6  ;;  %v1241_v8 = vld [vmem:[#allocation3 + $0x70] sm:$0xff] }
 0x1d0   :  { %v173_v26 = vsel %vm6927_vm10, %v166_v38, %v168_v4  ;;  %v1239_v7 = vld [vmem:[#allocation3 + $0x60] sm:$0xff]  ;;  %v1309_v33 = vpack.c.bf16 %v1241_v8, %v1237_v40 }
 0x1d1   :  { %180 = vst [vmem:[#allocation3 + $0x28] ss:$-28 sps:$4 sm:$0xc1] %v173_v26   ;;  %1427 = vmatprep.subr.bf16.mxu1 %v1310_v3  ;;  %v1307_v27 = vpack.c.bf16 %v1239_v7, %v1235_v29 }
 0x1d2   :  { %v198_v14 = vpop.permute.xlu1 %197  ;;  %1428 = vmatpush1.bf16.msra.mxu1 %v1309_v33 }
 0x1d3   :  { %1387 = vmatpush1.bf16.msra.mxu0 %v1307_v27  ;;  %v196_v16 = vpop.permute.xlu0 %195 }
 0x1d4   :  { %v203_v41 = vsel %vm6926_vm1, %v196_v16, %v198_v14 }
 0x1d5   :  { %210 = vst [vmem:[#allocation3 + $0x28] sm:$0xe] %v203_v41 }
 0x1d6   :  { %v221_v59 = vpop.permute.xlu1 %220 }
 0x1d7   :  { %v219_v25 = vpop.permute.xlu0 %218 }
 0x1d8   :  { %v226_v20 = vsel %vm6928_vm13, %v219_v25, %v221_v59  ;;  %v1228_v21 = vld [vmem:[#allocation3 + $0x8] sm:$0xff] }
 0x1d9   :  { %233 = vst [vmem:[#allocation3 + $0x28] sm:$0x70] %v226_v20  ;;  %2262 = vst [vmem:[#allocation3 + $0x8] sm:$0x7] %v5414_v31 }
 0x1da   :  { %v145_v44 = vpop.permute.xlu1 %144 }
 0x1db   :  { %v149_v45 = vsel %vm146_vm4, %v143_v19, %v145_v44  ;;  %158 = vst.msk [vmem:[#allocation3 + $0x18] sm:$0x38] %vm157_vm12, %v145_v44  ;;  %v139_v2 = vpop.permute.xlu0 %138  ;;  %v4523_v19 = vmov 65535  }
 0x1dc   :  { %156 = vst [vmem:[#allocation3 + $0x10] sm:$0x38] %v149_v45  ;;  %v147_v46 = vsel %vm146_vm4, %v139_v2, %v141_v22 }
 0x1dd   :  { %154 = vst [vmem:[#allocation3] sm:$0x38] %v147_v46 }
 0x1de   :  { %v170_v56 = vpop.permute.xlu1 %169 }
 0x1df   :  { %v174_v42 = vsel %vm6927_vm10, %v168_v4, %v170_v56  ;;  %183 = vst.msk [vmem:[#allocation3 + $0x18] sm:$0xc0] %vm6932_vm14, %v170_v56  ;;  %v164_v5 = vpop.permute.xlu0 %163  ;;  %vm6943_vm14 = vcmask 875520  }
 0x1e0   :  { %188 = vst.msk [vmem:[#allocation3 + $0x38] sm:$0x1] %vm6929_vm15, %v170_v56  ;;  %181 = vst [vmem:[#allocation3 + $0x30] ss:$-28 sps:$4 sm:$0xc1] %v174_v42   ;;  %v172_v51 = vsel %vm6927_vm10, %v164_v5, %v166_v38  ;;  %v1232_v52 = vld [vmem:[#allocation3 + $0x28] sm:$0xff] }
 0x1e1   :  { %179 = vst [vmem:[#allocation3 + $0x20] ss:$-28 sps:$4 sm:$0xc1] %v172_v51   ;;  %v1304_v55 = vpack.c.bf16 %v1232_v52, %v1228_v21  ;;  %vm1358_vm10 = vcmask 1040384   ;;  %vm6931_vm15 = vcmask 1041408  }
 0x1e2   :  { %v200_v23 = vpop.permute.xlu1 %199  ;;  %v1360_v22 = vsel %vm1358_vm10, 4294967295, %v4523_v19  ;;  %vm6947_vm10 = vcmask 891904  }
 0x1e3   :  { %v204_v15 = vsel %vm6926_vm1, %v198_v14, %v200_v23  ;;  %213 = vst.msk [vmem:[#allocation3 + $0x38] sm:$0xe] %vm212_vm8, %v200_v23  ;;  %v194_v53 = vpop.permute.xlu0 %193  ;;  %1388 = vmatprep.subr.bf16.mxu0 %v1304_v55  ;;  %v5449_v38 = vsel %vm6931_vm15, %v1360_v22, 0  ;;  %vm6946_vm15 = vcmask 883712  }
 0x1e4   :  { %211 = vst [vmem:[#allocation3 + $0x30] sm:$0xe] %v204_v15  ;;  %v202_v24 = vsel %vm6926_vm1, %v194_v53, %v196_v16  ;;  %vm6930_vm1 = vcmask 867328  }
 0x1e5   :  { %209 = vst [vmem:[#allocation3 + $0x20] sm:$0xe] %v202_v24 }
 0x1e6   :  { %v223_v32 = vpop.permute.xlu1 %222  ;;  %v1230_v11 = vld [vmem:[#allocation3 + $0x18] sm:$0xff] }
 0x1e7   :  { %v227_v36 = vsel %vm6928_vm13, %v221_v59, %v223_v32  ;;  %236 = vst.msk [vmem:[#allocation3 + $0x38] sm:$0x70] %vm235_vm3, %v223_v32  ;;  %v217_v54 = vpop.permute.xlu0 %216  ;;  %v1229_v37 = vld [vmem:[#allocation3 + $0x10] sm:$0xff] }
 0x1e8   :  { %2264 = vst.msk [vmem:[#allocation3 + $0x18] sm:$0x7] %vm132_vm2, %v5432_v28  ;;  %234 = vst [vmem:[#allocation3 + $0x30] sm:$0x70] %v227_v36  ;;  %v225_v9 = vsel %vm6928_vm13, %v217_v54, %v219_v25  ;;  %v1227_v57 = vld [vmem:[#allocation3] sm:$0xff]  ;;  %vm6965_vm13 = vcmask 908288  }
 0x1e9   :  { %2263 = vst [vmem:[#allocation3 + $0x10] sm:$0x7] %v5425_v58  ;;  %232 = vst [vmem:[#allocation3 + $0x20] sm:$0x70] %v225_v9 }
 0x1ea   :  { %2261 = vst [vmem:[#allocation3] sm:$0x7] %v5409_v49  ;;  %v1212_v39 = vpop.permute.xlu1 %1211 }
 0x1eb   :  { %v1210_v48 = vpop.permute.xlu0 %1209 }
 0x1ec   :  { %v1217_v10 = vsel %vm6930_vm1, %v1210_v48, %v1212_v39 }
 0x1ed   :  { %1224 = vst [vmem:[#allocation3 + $0x248] sm:$0x7] %v1217_v10 }
 0x1ee   :  { %v1214_v17 = vpop.permute.xlu1 %1213  ;;  %v1234_v61 = vld [vmem:[#allocation3 + $0x38] sm:$0xff] }
 0x1ef   :  { %v1218_v60 = vsel %vm6930_vm1, %v1212_v39, %v1214_v17  ;;  %1226 = vst.msk [vmem:[#allocation3 + $0x258] sm:$0x7] %vm132_vm2, %v1214_v17  ;;  %v1208_v18 = vpop.permute.xlu0 %1207  ;;  %v1306_v63 = vpack.c.bf16 %v1234_v61, %v1230_v11  ;;  %v1233_v12 = vld [vmem:[#allocation3 + $0x30] sm:$0xff] }
 0x1f0   :  { %1225 = vst [vmem:[#allocation3 + $0x250] sm:$0x7] %v1218_v60  ;;  %v1216_v30 = vsel %vm6930_vm1, %v1208_v18, %v1210_v48  ;;  %v1305_v62 = vpack.c.bf16 %v1233_v12, %v1229_v37  ;;  %v1231_v1 = vld [vmem:[#allocation3 + $0x20] sm:$0xff]  ;;  %vm6948_vm1 = vcmask 900096  }
 0x1f1   :  { %1223 = vst [vmem:[#allocation3 + $0x240] sm:$0x7] %v1216_v30  ;;  %1429 = vmatprep.subr.bf16.mxu1 %v1306_v63  ;;  %v1303_v50 = vpack.c.bf16 %v1231_v1, %v1227_v57 }
 0x1f2   :  { %v1108_v47 = vpop.permute.xlu1 %1107  ;;  %1430 = vmatpush1.bf16.msra.mxu1 %v1305_v62 }
 0x1f3   :  { %v1106_v4 = vpop.permute.xlu0 %1105  ;;  %1389 = vmatpush1.bf16.msra.mxu0 %v1303_v50 }
 0x1f4   :  { %v1113_v6 = vsel %vm6965_vm13, %v1106_v4, %v1108_v47  ;;  %v1300_v35 = vld [vmem:[#allocation3 + $0x248] sm:$0x7] }
 0x1f5   :  { %1120 = vst [vmem:[#allocation3 + $0x208] sm:$0xe] %v1113_v6  ;;  %v1340_v3 = vpack.c.bf16 %v1300_v35, %v1300_v35 }
 0x1f6   :  { %v1128_v40 = vpop.permute.xlu1 %1127  ;;  %v1302_v8 = vld [vmem:[#allocation3 + $0x258] sm:$0x7] }
 0x1f7   :  { %v1126_v26 = vpop.permute.xlu0 %1125  ;;  %v1366_v29 = vand.u32 %v5449_v38, %v1340_v3  ;;  %v1342_v7 = vpack.c.bf16 %v1302_v8, %v1302_v8  ;;  %v1301_v33 = vld [vmem:[#allocation3 + $0x250] sm:$0x7] }
 0x1f8   :  { %v1133_v27 = vsel %vm6948_vm1, %v1126_v26, %v1128_v40  ;;  %v1299_v14 = vld [vmem:[#allocation3 + $0x240] sm:$0x7]  ;;  %v1341_v16 = vpack.c.bf16 %v1301_v33, %v1301_v33 }
 0x1f9   :  { %1140 = vst [vmem:[#allocation3 + $0x208] sm:$0x70] %v1133_v27  ;;  %1402 = vmatprep.subr.bf16.mxu0 %v1366_v29  ;;  %v1372_v41 = vand.u32 %v5449_v38, %v1342_v7  ;;  %v1339_v59 = vpack.c.bf16 %v1299_v14, %v1299_v14 }
 0x1fa   :  { %v1148_v25 = vpop.permute.xlu1 %1147  ;;  %v1369_v20 = vand.u32 %v5449_v38, %v1341_v16 }
 0x1fb   :  { %v1146_v21 = vpop.permute.xlu0 %1145  ;;  %1443 = vmatprep.subr.bf16.mxu1 %v1372_v41  ;;  %v1363_v44 = vand.u32 %v5449_v38, %v1339_v59 }
 0x1fc   :  { %v1153_v45 = vsel %vm6947_vm10, %v1146_v21, %v1148_v25  ;;  %1444 = vmatpush2.bf16.msra.mxu1 %v1369_v20 }
 0x1fd   :  { %1160 = vst [vmem:[#allocation3 + $0x228] ss:$-28 sps:$4 sm:$0x83] %v1153_v45   ;;  %1403 = vmatpush2.bf16.msra.mxu0 %v1363_v44  ;;  %v4405_v45 = vld [vmem:[%s6817_s3 + $0xb8] sm:$0xff]  }
 0x1fe   :  { %v1172_v2 = vpop.permute.xlu1 %1171 }
 0x1ff   :  { %v1170_v46 = vpop.permute.xlu0 %1169 }
 0x200   :  { %v1177_v56 = vsel %vm6946_vm15, %v1170_v46, %v1172_v2 }
 0x201   :  { %1184 = vst [vmem:[#allocation3 + $0x228] sm:$0x1c] %v1177_v56  ;;  %v4408_v56 = vld [vmem:[%s6817_s3 + $0x38] sm:$0xff]  }
 0x202   :  { %v1192_v42 = vpop.permute.xlu1 %1191 }
 0x203   :  { %v1190_v5 = vpop.permute.xlu0 %1189 }
 0x204   :  { %v1197_v51 = vsel %vm6943_vm14, %v1190_v5, %v1192_v42  ;;  %v1292_v36 = vld [vmem:[#allocation3 + $0x208] sm:$0xff] }
 0x205   :  { %1204 = vst [vmem:[#allocation3 + $0x228] sm:$0xe0] %v1197_v51  ;;  %v4411_v51 = vld [vmem:[%s6817_s3 + $0x30] sm:$0xff]  }
 0x206   :  { %v1110_v52 = vpop.permute.xlu1 %1109 }
 0x207   :  { %v1114_v55 = vsel %vm6965_vm13, %v1108_v47, %v1110_v52  ;;  %1122 = vst.msk [vmem:[#allocation3 + $0x218] sm:$0xe] %vm212_vm8, %v1110_v52  ;;  %v1104_v23 = vpop.permute.xlu0 %1103  ;;  %v4413_v52 = vld [vmem:[%s6817_s3 + $0x68] sm:$0xff]  }
 0x208   :  { %1121 = vst [vmem:[#allocation3 + $0x210] sm:$0xe] %v1114_v55  ;;  %v1112_v15 = vsel %vm6965_vm13, %v1104_v23, %v1106_v4  ;;  %v4414_v55 = vld [vmem:[%s6817_s3 + $0x28] sm:$0xff]   ;;  %v4412_v23 = vld [vmem:[%s6817_s3 + $0xa0] sm:$0xff]   ;;  %vm7015_vm13 = vcmask 385024  }
 0x209   :  { %1119 = vst [vmem:[#allocation3 + $0x200] sm:$0xe] %v1112_v15  ;;  %v4416_v15 = vld [vmem:[%s6817_s3 + $0x60] sm:$0xff]  }
 0x20a   :  { %v1130_v53 = vpop.permute.xlu1 %1129 }
 0x20b   :  { %v1134_v24 = vsel %vm6948_vm1, %v1128_v40, %v1130_v53  ;;  %1142 = vst.msk [vmem:[#allocation3 + $0x218] sm:$0x70] %vm235_vm3, %v1130_v53  ;;  %v1124_v32 = vpop.permute.xlu0 %1123  ;;  %v5477_v40 = vcombine.low %v5367_v13, %v5367_v13  ;;  %v4415_v53 = vld [vmem:[%s6817_s3 + $0x98] sm:$0xff]  }
 0x20c   :  { %1141 = vst [vmem:[#allocation3 + $0x210] sm:$0x70] %v1134_v24  ;;  %v1132_v11 = vsel %vm6948_vm1, %v1124_v32, %v1126_v26  ;;  %v1296_v54 = vld [vmem:[#allocation3 + $0x228] sm:$0xff]  ;;  %vm6960_vm1 = vcmask 367616  }
 0x20d   :  { %1139 = vst [vmem:[#allocation3 + $0x200] sm:$0x70] %v1132_v11  ;;  %v1336_v37 = vpack.c.bf16 %v1296_v54, %v1292_v36  ;;  %v4417_v24 = vld [vmem:[%s6817_s3 + $0x20] sm:$0xff]   ;;  %v4419_v32 = vld [vmem:[%s6817_s3 + $0x58] sm:$0xff]   ;;  %v4418_v11 = vld [vmem:[%s6817_s3 + $0x90] sm:$0xff]  }
 0x20e   :  { %v1150_v9 = vpop.permute.xlu1 %1149  ;;  %v4420_v36 = vld [vmem:[%s6817_s3 + $0x18] sm:$0xff]   ;;  %v4421_v54 = vld [vmem:[%s6817_s3 + $0x88] sm:$0xff]  }
 0x20f   :  { %v1154_v57 = vsel %vm6947_vm10, %v1148_v25, %v1150_v9  ;;  %1162 = vst.msk [vmem:[#allocation3 + $0x218] sm:$0x80] %vm260_vm5, %v1150_v9  ;;  %v1144_v39 = vpop.permute.xlu0 %1143  ;;  %1404 = vmatprep.subr.bf16.mxu0 %v1336_v37  ;;  %v4422_v37 = vld [vmem:[%s6817_s3 + $0x50] sm:$0xff]  }
 0x210   :  { %1166 = vst.msk [vmem:[#allocation3 + $0x238] sm:$0x3] %vm265_vm6, %v1150_v9  ;;  %1161 = vst [vmem:[#allocation3 + $0x230] ss:$-28 sps:$4 sm:$0x83] %v1154_v57   ;;  %v1152_v48 = vsel %vm6947_vm10, %v1144_v39, %v1146_v21  ;;  %v4423_v9 = vld [vmem:[%s6817_s3 + $0x10] sm:$0xff]  }
 0x211   :  { %1159 = vst [vmem:[#allocation3 + $0x220] ss:$-28 sps:$4 sm:$0x83] %v1152_v48   ;;  %v4424_v57 = vld [vmem:[%s6817_s3 + $0x80] sm:$0xff]   ;;  %v4425_v39 = vld [vmem:[%s6817_s3 + $0x48] sm:$0xff]   ;;  %vm6956_vm10 = vcmask 187392  }
 0x212   :  { %v1174_v10 = vpop.permute.xlu1 %1173  ;;  %v4427_v48 = vld [vmem:[%s6817_s3 + $0xc8] ss:$0 sps:$4 sm:$0xff]  }
 0x213   :  { %v1178_v17 = vsel %vm6946_vm15, %v1172_v2, %v1174_v10  ;;  %1186 = vst.msk [vmem:[#allocation3 + $0x238] sm:$0x1c] %vm290_vm7, %v1174_v10  ;;  %v1168_v61 = vpop.permute.xlu0 %1167  ;;  %v4406_v2 = vld [vmem:[%s6817_s3 + $0xb0] sm:$0xff]  }
 0x214   :  { %1185 = vst [vmem:[#allocation3 + $0x230] sm:$0x1c] %v1178_v17  ;;  %v1176_v60 = vsel %vm6946_vm15, %v1168_v61, %v1170_v46  ;;  %v4407_v46 = vld [vmem:[%s6817_s3 + $0x78] sm:$0xff]   ;;  %vm6959_vm15 = vcmask 1043456   ;;  %v4426_v61 = vld [vmem:[%s6817_s3 + $0x8] sm:$0xff]  }
 0x215   :  { %1183 = vst [vmem:[#allocation3 + $0x220] sm:$0x1c] %v1176_v60 }
 0x216   :  { %v1194_v18 = vpop.permute.xlu1 %1193  ;;  %v1294_v62 = vld [vmem:[#allocation3 + $0x218] sm:$0xff] }
 0x217   :  { %v1198_v63 = vsel %vm6943_vm14, %v1192_v42, %v1194_v18  ;;  %1206 = vst.msk [vmem:[#allocation3 + $0x238] sm:$0xe0] %vm315_vm9, %v1194_v18  ;;  %v1188_v12 = vpop.permute.xlu0 %1187  ;;  %v1293_v22 = vld [vmem:[#allocation3 + $0x210] sm:$0xff] }
 0x218   :  { %1205 = vst [vmem:[#allocation3 + $0x230] sm:$0xe0] %v1198_v63  ;;  %v1196_v30 = vsel %vm6943_vm14, %v1188_v12, %v1190_v5  ;;  %v1291_v4 = vld [vmem:[#allocation3 + $0x200] sm:$0xff]  ;;  %v4409_v42 = vld [vmem:[%s6817_s3 + $0xa8] sm:$0xff]   ;;  %vm6962_vm14 = vcmask 1042432  }
 0x219   :  { %1203 = vst [vmem:[#allocation3 + $0x220] sm:$0xe0] %v1196_v30  ;;  %v4410_v5 = vld [vmem:[%s6817_s3 + $0x70] sm:$0xff]   ;;  %v1669_v10 = vsel %vm6962_vm14, 4294967295, %v4523_v19  ;;  %v4428_v19 = vld [vmem:[%s6817_s3 + $0x40] sm:$0xff]  }
 0x21a   :  { %v1670_v60 = vsel %vm6959_vm15, %v1669_v10, 0 }
 0x21b   :  { %v5582_v12 = vand.u32 %v4427_v48, %v1670_v60  ;;  %v94_v48 = vld [vmem:[%s6818_s5] sm:$0xff] }
 0x21e   :  { %v1298_v1 = vld [vmem:[#allocation3 + $0x238] sm:$0xff] }
 0x21f   :  { %v1338_v50 = vpack.c.bf16 %v1298_v1, %v1294_v62  ;;  %v1297_v47 = vld [vmem:[#allocation3 + $0x230] sm:$0xff] }
 0x220   :  { %v1295_v6 = vld [vmem:[#allocation3 + $0x220] sm:$0xff]  ;;  %v1337_v35 = vpack.c.bf16 %v1297_v47, %v1293_v22  ;;  %v4429_v62 = vld [vmem:[%s6817_s3] sm:$0xff]  }
 0x221   :  { %1445 = vmatprep.subr.bf16.mxu1 %v1338_v50  ;;  %v1335_v3 = vpack.c.bf16 %v1295_v6, %v1291_v4  ;;  %v4430_v47 = vld [vmem:[%s6817_s3 + $0xc0] sm:$0xff]  }
 0x222   :  { %1446 = vmatpush2.bf16.msra.mxu1 %v1337_v35 }
 0x223   :  { %1405 = vmatpush2.bf16.msra.mxu0 %v1335_v3  ;;  %1714 = vmatprep.subr.bf16.mxu1 %v4522_v43 }
 0x224   :  { %v5482_v26 = vpop.permute.xlu0 %1345  ;;  %4159 = vmatprep.subr.bf16.mxu0 %v4407_v46 }
 0x225   :  { %1448 = vmatmul.mubr.bf16.vlgmr.msra.gmra.mxu1 %v5477_v40 }
 0x226   :  { %1407 = vmatmul.mubr.bf16.vlgmr.msra.gmra.mxu0 %v5477_v40  ;;  %1715 = vmatpush1.bf16.msra.mxu1 %v4405_v45 }
 0x227   :  { %1716 = vmatprep.subr.bf16.mxu1 %v4522_v43  ;;  %4160 = vmatpush3.bf16.msra.mxu0 %v4408_v56 }
 0x228   :  { %4161 = vmatprep.subr.bf16.mxu0 %v4410_v5 }
 0x22a   :  { %1717 = vmatpush1.bf16.msra.mxu1 %v4406_v2 }
 0x22b   :  { %1718 = vmatprep.subr.bf16.mxu1 %v4522_v43  ;;  %4162 = vmatpush3.bf16.msra.mxu0 %v4411_v51 }
 0x22c   :  { %4163 = vmatprep.subr.bf16.mxu0 %v4413_v52 }
 0x22e   :  { %1719 = vmatpush1.bf16.msra.mxu1 %v4409_v42 }
 0x22f   :  { %1720 = vmatprep.subr.bf16.mxu1 %v4522_v43  ;;  %4164 = vmatpush3.bf16.msra.mxu0 %v4414_v55 }
 0x230   :  { %4165 = vmatprep.subr.bf16.mxu0 %v4416_v15 }
 0x232   :  { %1721 = vmatpush1.bf16.msra.mxu1 %v4412_v23 }
 0x233   :  { %1722 = vmatprep.subr.bf16.mxu1 %v4522_v43  ;;  %4166 = vmatpush3.bf16.msra.mxu0 %v4417_v24 }
 0x234   :  { %4167 = vmatprep.subr.bf16.mxu0 %v4419_v32 }
 0x236   :  { %1723 = vmatpush1.bf16.msra.mxu1 %v4415_v53 }
 0x237   :  { %1724 = vmatprep.subr.bf16.mxu1 %v4522_v43  ;;  %4168 = vmatpush3.bf16.msra.mxu0 %v4420_v36 }
 0x238   :  { %4169 = vmatprep.subr.bf16.mxu0 %v4422_v37 }
 0x23a   :  { %1725 = vmatpush1.bf16.msra.mxu1 %v4418_v11 }
 0x23b   :  { %1726 = vmatprep.subr.bf16.mxu1 %v4522_v43  ;;  %4170 = vmatpush3.bf16.msra.mxu0 %v4423_v9 }
 0x23c   :  { %4171 = vmatprep.subr.bf16.mxu0 %v4425_v39  ;;  %v4431_v39 = vld [vmem:[%s6819_s4 + $0x4] ss:$8 sps:$4 sm:$0x1f]  }
 0x23e   :  { %1727 = vmatpush1.bf16.msra.mxu1 %v4421_v54 }
 0x23f   :  { %1728 = vmatprep.subr.bf16.mxu1 %v4522_v43  ;;  %4172 = vmatpush3.bf16.msra.mxu0 %v4426_v61 }
 0x240   :  { %4173 = vmatprep.subr.bf16.mxu0 %v4428_v19 }
 0x242   :  { %1729 = vmatpush1.bf16.msra.mxu1 %v4424_v57  ;;  %v95_v57 = vld [vmem:[%s6818_s5 + $0x8] sm:$0x3]  ;;  %s6974_s5 = smov 4  }
 0x243   :  { %1742 = vmatprep.subr.bf16.mxu1 %v4522_v43  ;;  %4174 = vmatpush3.bf16.msra.mxu0 %v4429_v62 }
 0x244   :  { %1917 = vmatprep.subr.bf16.mxu0 %v4522_v43 }
 0x246   :  { %1743 = vmatpush2.bf16.msra.mxu1 %v5582_v12 }
 0x247   :  { %1744 = vmatprep.subr.bf16.mxu1 %v4522_v43 }
 0x24a   :  { %1745 = vmatpush2.bf16.msra.mxu1 %v4430_v47 }
 0x2e5   :  { %v1449_v8 = vpop.f32.mrf.mxu1 }
 0x2e6   :  { %v1408_v29 = vpop.f32.mrf.mxu0  ;;  %v5485_v7 = vadd.f32 %v1449_v8, %v5482_v26 }
 0x2e7   :  { %v1451_v33 = vpop.f32.mrf.mxu1  ;;  %v5496_v21 = vadd.f32 %v1408_v29, %v5482_v26 }
 0x2e8   :  { %v1410_v27 = vpop.f32.mrf.mxu0  ;;  %v5493_v59 = vadd.f32 %v1451_v33, %v5482_v26 }
 0x2e9   :  { %v5488_v13 = vadd.f32 %v1410_v27, %v5482_v26  ;;  %v1453_v14 = vpop.f32.mrf.mxu1 }
 0x2ea   :  { %v1412_v16 = vpop.f32.mrf.mxu0  ;;  %v4376_v44 = vpack.i.bf16 %v5496_v21, %v5493_v59 }
 0x2eb   :  { %v4371_v41 = vpack.i.bf16 %v5485_v7, %v5488_v13  ;;  %v1454_v25 = vpop.f32.mrf.mxu1 }
 0x2ec   :  { %v1413_v20 = vpop.f32.mrf.mxu0 }
 0x2ed   :  { %4372 = vrot.lane.b32.xlu1 %v4371_v41, %s6941_s21 }
 0x2f1   :  { %4377 = vrot.lane.b32.xlu1 %v4376_v44, %s6941_s21  ;;  %s6950_s21 = smov 88  }
 0x35f   :  { %v4373_v17 = vpop.permute.xlu1 %4372 }
 0x360   :  { %v4375_v18 = vunpack.i.h.bf16 %v4373_v17  ;;  %v4374_v63 = vunpack.i.l.bf16 %v4373_v17 }
 0x362   :  { %v1469_v1 = vsel %vm304_vm0, %v4374_v63, %v4375_v18 }
 0x363   :  { %v4378_v30 = vpop.permute.xlu1 %4377  ;;  %v1476_v35 = vmax.f32 %v5488_v13, %v1469_v1 }
 0x364   :  { %v4380_v50 = vunpack.i.h.bf16 %v4378_v30  ;;  %v4379_v22 = vunpack.i.l.bf16 %v4378_v30 }
 0x366   :  { %v1468_v4 = vsel %vm304_vm0, %v4380_v50, %v4374_v63  ;;  %v1470_v6 = vsel %vm304_vm0, %v4375_v18, %v4379_v22  ;;  %v1478_v33 = vmax.f32 %v5493_v59, %v4379_v22 }
 0x367   :  { %v1477_v3 = vmax.f32 %v5485_v7, %v1470_v6  ;;  %v1475_v8 = vmax.f32 %v5496_v21, %v1468_v4 }
 0x369   :  { %1483 = vrot.lane.b32.xlu1 %v1475_v8, %s4512_s19  ;;  %v4381_v29 = vpack.i.bf16 %v1477_v3, %v1476_v35 }
 0x36b   :  { %4382 = vrot.lane.b32.xlu0 %v4381_v29, %s4512_s19 }
 0x36f   :  { %1489 = vrot.lane.b32.xlu0 %v1478_v33, %s4512_s19 }
 0x3db   :  { %v1484_v41 = vpop.permute.xlu1 %1483 }
 0x3dd   :  { %v4383_v27 = vpop.permute.xlu0 %4382 }
 0x3de   :  { %v4385_v14 = vunpack.i.h.bf16 %v4383_v27  ;;  %v4384_v16 = vunpack.i.l.bf16 %v4383_v27 }
 0x3e0   :  { %v1491_v25 = vsel %vm146_vm4, %v1484_v41, %v4384_v16  ;;  %v1492_v13 = vsel %vm146_vm4, %v4384_v16, %v4385_v14 }
 0x3e1   :  { %v1490_v7 = vpop.permute.xlu0 %1489  ;;  %v1499_v20 = vmax.f32 %v1476_v35, %v1492_v13  ;;  %v1498_v21 = vmax.f32 %v1475_v8, %v1491_v25 }
 0x3e2   :  { %v1493_v44 = vsel %vm146_vm4, %v4385_v14, %v1490_v7  ;;  %v1501_v45 = vmax.f32 %v1478_v33, %v1490_v7 }
 0x3e3   :  { %v1500_v2 = vmax.f32 %v1477_v3, %v1493_v44  ;;  %v1503_v46 = vmax.f32 %v1499_v20, 0.0  ;;  %v1502_v56 = vmax.f32 %v1498_v21, 0.0 }
 0x3e4   :  { %v1505_v59 = vmax.f32 %v1501_v45, 0.0 }
 0x3e5   :  { %v1504_v42 = vmax.f32 %v1500_v2, 0.0  ;;  %v1507_v5 = vpack.c.bf16 %v1503_v46, %v1503_v46  ;;  %v1506_v51 = vpack.c.bf16 %v1502_v56, %v1502_v56 }
 0x3e6   :  { %v1509_v52 = vpack.c.bf16 %v1505_v59, %v1505_v59 }
 0x3e7   :  { %v1508_v55 = vpack.c.bf16 %v1504_v42, %v1504_v42  ;;  %1706 = vmatprep.mubr.bf16.mxu0 %v1507_v5 }
 0x3e8   :  { %1707 = vmatmul.mubr.bf16.vlgmr.msra.gmra.mxu0 %v1506_v51  ;;  %4129 = vmatprep.mubr.msk.bf16.mxu1 %vm6956_vm10, %v1509_v52  ;;  %vm6961_vm10 = vcmask 588800  }
 0x3e9   :  { %1747 = vmatmul.mubr.bf16.vlgmr.msra.gmra.mxu1 %v1508_v55  ;;  %4132 = vmatprep.mubr.msk.bf16.mxu0 %vm6961_vm10, %v4431_v39 }
 0x4a8   :  { %v4175_v23 = vpop.f32.mrf.mxu0 }
 0x4a9   :  { %v1748_v15 = vpop.f32.mrf.mxu1 }
 0x4aa   :  { %v4176_v53 = vpop.f32.mrf.mxu0 }
 0x4ab   :  { %v4177_v24 = vadd.f32 %v4176_v53, %v4175_v23  ;;  %v1750_v32 = vpop.f32.mrf.mxu1 }
 0x4ac   :  { %v4178_v11 = vpop.f32.mrf.mxu0 }
 0x4ad   :  { %v1749_v36 = vadd.f32 %v4177_v24, %v1748_v15  ;;  %v1751_v54 = vpop.f32.mrf.mxu1 }
 0x4ae   :  { %v4179_v37 = vpop.f32.mrf.mxu0 }
 0x4af   :  { %v1752_v9 = vpop.f32.mrf.mxu1  ;;  %1813 = vrot.lane.b32.xlu0 %v1749_v36, %s4501_s26  ;;  %1809 = vrot.lane.b32.xlu1 %v1749_v36, %s4516_s17  ;;  %1755 = vst.msk [vmem:[#allocation4] sm:$0xff] %vm6960_vm1, %v1749_v36 }
 0x4b3   :  { %1805 = vrot.lane.b32.xlu0 %v1749_v36, %s4521_s12  ;;  %1801 = vrot.lane.b32.xlu1 %v1749_v36, %s4520_s13 }
 0x4b6   :  { %v1853_v15 = vld [vmem:[#allocation4] sm:$0xff] }
 0x4b7   :  { %1797 = vrot.lane.b32.xlu0 %v1749_v36, %s4519_s14  ;;  %1793 = vrot.lane.b32.xlu1 %v1749_v36, %s4518_s15 }
 0x4bb   :  { %1789 = vrot.lane.b32.xlu0 %v1749_v36, %s6955_s27  ;;  %1785 = vrot.lane.b32.xlu1 %v1749_v36, %s6952_s29  ;;  %s6975_s27 = smov 3   ;;  %s6976_s29 = smov 2  }
 0x4bf   :  { %1781 = vrot.lane.b32.xlu0 %v1749_v36, %s6951_s25  ;;  %1777 = vrot.lane.b32.xlu1 %v1749_v36, %s6949_s2  ;;  %s6958_s2 = smov 97   ;;  %s6970_s25 = smov 100  }
 0x4c3   :  { %1773 = vrot.lane.b32.xlu0 %v1749_v36, %s4528_s24  ;;  %1769 = vrot.lane.b32.xlu1 %v1749_v36, %s4515_s23 }
 0x4c7   :  { %1765 = vrot.lane.b32.xlu0 %v1749_v36, %s4514_s18  ;;  %1761 = vrot.lane.b32.xlu1 %v1749_v36, %s4513_s20 }
 0x4cb   :  { %1849 = vrot.lane.b32.xlu0 %v1749_v36, %s6950_s21  ;;  %1757 = vrot.lane.b32.xlu1 %v1749_v36, %s4512_s19  ;;  %s6969_s21 = smov 99  }
 0x4cf   :  { %1845 = vrot.lane.b32.xlu0 %v1749_v36, %s6953_s16  ;;  %1841 = vrot.lane.b32.xlu1 %v1749_v36, %s6954_s1  ;;  %s6972_s1 = smov 6   ;;  %s6978_s16 = smov 28  }
 0x4d3   :  { %1837 = vrot.lane.b32.xlu0 %v1749_v36, %s4532_s30  ;;  %1833 = vrot.lane.b32.xlu1 %v1749_v36, %s6957_s28  ;;  %s6973_s28 = smov 5  }
 0x4d7   :  { %1829 = vrot.lane.b32.xlu0 %v1749_v36, %s6958_s2  ;;  %1825 = vrot.lane.b32.xlu1 %v1749_v36, %s6966_s22  ;;  %s6977_s2 = smov 112  }
 0x4db   :  { %1821 = vrot.lane.b32.xlu0 %v1749_v36, %s6969_s21  ;;  %1817 = vrot.lane.b32.xlu1 %v1749_v36, %s6970_s25 }
 0x4df   :  { %1898 = vperm.xlu0 %4370, %v95_v57   ;;  %1893 = vperm.xlu1 %4386, %v94_v48  }
 0x521   :  { %v1814_v10 = vpop.permute.xlu0 %1813  ;;  %v1810_v17 = vpop.permute.xlu1 %1809 }
 0x522   :  { %1816 = vst.msk [vmem:[#allocation4 + $0x78] sm:$0xff] %vm6960_vm1, %v1814_v10  ;;  %1812 = vst.msk [vmem:[#allocation4 + $0x70] sm:$0xff] %vm6960_vm1, %v1810_v17 }
 0x525   :  { %v1806_v61 = vpop.permute.xlu0 %1805  ;;  %v1802_v60 = vpop.permute.xlu1 %1801 }
 0x526   :  { %1808 = vst.msk [vmem:[#allocation4 + $0x68] sm:$0xff] %vm6960_vm1, %v1806_v61  ;;  %1804 = vst.msk [vmem:[#allocation4 + $0x60] sm:$0xff] %vm6960_vm1, %v1802_v60 }
 0x529   :  { %v1798_v18 = vpop.permute.xlu0 %1797  ;;  %v1794_v63 = vpop.permute.xlu1 %1793  ;;  %v1867_v19 = vld [vmem:[#allocation4 + $0x70] sm:$0xff]  ;;  %v1868_v30 = vld [vmem:[#allocation4 + $0x78] sm:$0xff] }
 0x52a   :  { %1800 = vst.msk [vmem:[#allocation4 + $0x58] sm:$0xff] %vm6960_vm1, %v1798_v18  ;;  %1796 = vst.msk [vmem:[#allocation4 + $0x50] sm:$0xff] %vm6960_vm1, %v1794_v63  ;;  %v1885_v62 = vpack.c.bf16 %v1868_v30, %v1867_v19 }
 0x52c   :  { %1918 = vmatpush1.bf16.msra.mxu0 %v1885_v62 }
 0x52d   :  { %v1790_v1 = vpop.permute.xlu0 %1789  ;;  %v1786_v50 = vpop.permute.xlu1 %1785  ;;  %1919 = vmatprep.subr.bf16.mxu0 %v4522_v43  ;;  %v1865_v22 = vld [vmem:[#allocation4 + $0x60] sm:$0xff]  ;;  %v1866_v47 = vld [vmem:[#allocation4 + $0x68] sm:$0xff] }
 0x52e   :  { %1792 = vst.msk [vmem:[#allocation4 + $0x48] sm:$0xff] %vm6960_vm1, %v1790_v1  ;;  %1788 = vst.msk [vmem:[#allocation4 + $0x40] sm:$0xff] %vm6960_vm1, %v1786_v50  ;;  %v1884_v4 = vpack.c.bf16 %v1866_v47, %v1865_v22  ;;  %v4433_v50 = vld [vmem:[%s6819_s4] ss:$8 sps:$4 sm:$0x1f]  }
 0x52f   :  { %v4144_v22 = vld [vmem:[%s6814_s0 + $0x24] sm:$0x7]  ;;  %s6979_s0 = smov 27  }
 0x530   :  { %1920 = vmatpush1.bf16.msra.mxu0 %v1884_v4 }
 0x531   :  { %v1782_v6 = vpop.permute.xlu0 %1781  ;;  %v1778_v35 = vpop.permute.xlu1 %1777  ;;  %1921 = vmatprep.subr.bf16.mxu0 %v4522_v43  ;;  %v1863_v3 = vld [vmem:[#allocation4 + $0x50] sm:$0xff]  ;;  %v1864_v8 = vld [vmem:[#allocation4 + $0x58] sm:$0xff] }
 0x532   :  { %1784 = vst.msk [vmem:[#allocation4 + $0x38] sm:$0xff] %vm6960_vm1, %v1782_v6  ;;  %1780 = vst.msk [vmem:[#allocation4 + $0x30] sm:$0xff] %vm6960_vm1, %v1778_v35  ;;  %v1883_v29 = vpack.c.bf16 %v1864_v8, %v1863_v3 }
 0x534   :  { %1922 = vmatpush1.bf16.msra.mxu0 %v1883_v29 }
 0x535   :  { %v1774_v33 = vpop.permute.xlu0 %1773  ;;  %v1770_v27 = vpop.permute.xlu1 %1769  ;;  %1923 = vmatprep.subr.bf16.mxu0 %v4522_v43  ;;  %v1861_v14 = vld [vmem:[#allocation4 + $0x40] sm:$0xff]  ;;  %v1862_v16 = vld [vmem:[#allocation4 + $0x48] sm:$0xff] }
 0x536   :  { %1776 = vst.msk [vmem:[#allocation4 + $0x28] sm:$0xff] %vm6960_vm1, %v1774_v33  ;;  %1772 = vst.msk [vmem:[#allocation4 + $0x20] sm:$0xff] %vm6960_vm1, %v1770_v27  ;;  %v1882_v41 = vpack.c.bf16 %v1862_v16, %v1861_v14  ;;  %v100_v27 = vld [vmem:[%s6820_s6 + $0x20] sm:$0x7]  ;;  %v99_v14 = vld [vmem:[%s6820_s6 + $0x18] sm:$0xff] }
 0x537   :  { %4239 = vmatprep.subr.msk.mxu1 %vm6962_vm14, %v100_v27  ;;  %v98_v16 = vld [vmem:[%s6820_s6 + $0x10] sm:$0xff] }
 0x538   :  { %1924 = vmatpush1.bf16.msra.mxu0 %v1882_v41  ;;  %4240 = vmatpush3.msk.msra.mxu1 %vm6962_vm14, %v100_v27  ;;  %v97_v41 = vld [vmem:[%s6820_s6 + $0x8] sm:$0xff] }
 0x539   :  { %v1766_v25 = vpop.permute.xlu0 %1765  ;;  %v1762_v13 = vpop.permute.xlu1 %1761  ;;  %1925 = vmatprep.subr.bf16.mxu0 %v4522_v43  ;;  %v1859_v7 = vld [vmem:[#allocation4 + $0x30] sm:$0xff]  ;;  %v1860_v20 = vld [vmem:[#allocation4 + $0x38] sm:$0xff]  ;;  %4241 = vmatprep.subr.mxu1 %v99_v14 }
 0x53a   :  { %1768 = vst.msk [vmem:[#allocation4 + $0x18] sm:$0xff] %vm6960_vm1, %v1766_v25  ;;  %1764 = vst.msk [vmem:[#allocation4 + $0x10] sm:$0xff] %vm6960_vm1, %v1762_v13  ;;  %v1881_v21 = vpack.c.bf16 %v1860_v20, %v1859_v7  ;;  %4242 = vmatpush3.msra.mxu1 %v99_v14  ;;  %v96_v25 = vld [vmem:[%s6820_s6] sm:$0xff]  ;;  %v5721_v20 = vrot.slane %v5414_v31, 1 }
 0x53b   :  { %4243 = vmatprep.subr.mxu1 %v98_v16 }
 0x53c   :  { %1926 = vmatpush1.bf16.msra.mxu0 %v1881_v21  ;;  %4244 = vmatpush3.msra.mxu1 %v98_v16 }
 0x53d   :  { %v1850_v44 = vpop.permute.xlu0 %1849  ;;  %v1758_v45 = vpop.permute.xlu1 %1757  ;;  %1927 = vmatprep.subr.bf16.mxu0 %v4522_v43  ;;  %v1857_v2 = vld [vmem:[#allocation4 + $0x20] sm:$0xff]  ;;  %v1858_v46 = vld [vmem:[#allocation4 + $0x28] sm:$0xff]  ;;  %4245 = vmatprep.subr.mxu1 %v97_v41 }
 0x53e   :  { %1852 = vst.msk [vmem:[#allocation4 + $0xc0] sm:$0xff] %vm6960_vm1, %v1850_v44  ;;  %1760 = vst.msk [vmem:[#allocation4 + $0x8] sm:$0xff] %vm6960_vm1, %v1758_v45  ;;  %v1880_v56 = vpack.c.bf16 %v1858_v46, %v1857_v2  ;;  %4246 = vmatpush3.msra.mxu1 %v97_v41  ;;  %v5730_v45 = vrot.slane %v5425_v58, 1  ;;  %v5733_v2 = vrot.slane %v5432_v28, 1 }
 0x53f   :  { %4247 = vmatprep.subr.mxu1 %v96_v25 }
 0x540   :  { %1928 = vmatpush1.bf16.msra.mxu0 %v1880_v56  ;;  %4248 = vmatpush3.msra.mxu1 %v96_v25 }
 0x541   :  { %v1846_v59 = vpop.permute.xlu0 %1845  ;;  %v1842_v42 = vpop.permute.xlu1 %1841  ;;  %1929 = vmatprep.subr.bf16.mxu0 %v4522_v43  ;;  %v1855_v5 = vld [vmem:[#allocation4 + $0x10] sm:$0xff]  ;;  %v1856_v51 = vld [vmem:[#allocation4 + $0x18] sm:$0xff] }
 0x542   :  { %1848 = vst.msk [vmem:[#allocation4 + $0xb8] sm:$0xff] %vm6960_vm1, %v1846_v59  ;;  %1844 = vst.msk [vmem:[#allocation4 + $0xb0] sm:$0xff] %vm6960_vm1, %v1842_v42  ;;  %v1879_v52 = vpack.c.bf16 %v1856_v51, %v1855_v5  ;;  %v5745_v59 = vrot.slane %v5414_v31, 6  ;;  %v5752_v42 = vrot.slane %v5425_v58, 6  ;;  %v5755_v5 = vrot.slane %v5432_v28, 6 }
 0x544   :  { %1930 = vmatpush1.bf16.msra.mxu0 %v1879_v52  ;;  %v5765_v52 = vrot.slane %v5414_v31, 3 }
 0x545   :  { %v1838_v55 = vpop.permute.xlu0 %1837  ;;  %v1834_v23 = vpop.permute.xlu1 %1833  ;;  %1931 = vmatprep.subr.bf16.mxu0 %v4522_v43  ;;  %v1854_v53 = vld [vmem:[#allocation4 + $0x8] sm:$0xff]  ;;  %v1877_v24 = vld [vmem:[#allocation4 + $0xc0] sm:$0xff] }
 0x546   :  { %1840 = vst.msk [vmem:[#allocation4 + $0xa8] sm:$0xff] %vm6960_vm1, %v1838_v55  ;;  %1836 = vst.msk [vmem:[#allocation4 + $0xa0] sm:$0xff] %vm6960_vm1, %v1834_v23  ;;  %v1878_v32 = vpack.c.bf16 %v1854_v53, %v1853_v15  ;;  %v1890_v11 = vpack.c.bf16 %v1877_v24, %v1877_v24  ;;  %v5772_v55 = vrot.slane %v5425_v58, 3  ;;  %v5775_v23 = vrot.slane %v5432_v28, 3 }
 0x547   :  { %v5793_v53 = vrot.slane %v5414_v31, 5  ;;  %v5800_v24 = vrot.slane %v5425_v58, 5 }
 0x548   :  { %1932 = vmatpush1.bf16.msra.mxu0 %v1878_v32  ;;  %v1915_v37 = vsel %vm6959_vm15, %v1890_v11, 0  ;;  %vm6971_vm15 = vcmask 518144   ;;  %v5803_v32 = vrot.slane %v5432_v28, 5 }
 0x549   :  { %v1830_v36 = vpop.permute.xlu0 %1829  ;;  %v1826_v54 = vpop.permute.xlu1 %1825  ;;  %1939 = vmatprep.subr.bf16.mxu0 %v4522_v43  ;;  %v1875_v9 = vld [vmem:[#allocation4 + $0xb0] sm:$0xff]  ;;  %v1876_v57 = vld [vmem:[#allocation4 + $0xb8] sm:$0xff]  ;;  %2251 = vst.msk [vmem:[#allocation2 + $0x10] sm:$0x7] %vm6971_vm15, %v4144_v22  ;;  %vm6963_vm15 = vcmask 285696  }
 0x54a   :  { %1832 = vst.msk [vmem:[#allocation4 + $0x98] sm:$0xff] %vm6960_vm1, %v1830_v36  ;;  %1828 = vst.msk [vmem:[#allocation4 + $0x90] sm:$0xff] %vm6960_vm1, %v1826_v54  ;;  %v1889_v10 = vpack.c.bf16 %v1876_v57, %v1875_v9  ;;  %v5811_v36 = vrot.slane %v5425_v58, 2  ;;  %v5817_v54 = vrot.slane %v5432_v28, 2  ;;  %v5827_v9 = vrot.slane %v5409_v49, 6 }
 0x54b   :  { %v5830_v57 = vrot.slane %v5409_v49, 3 }
 0x54c   :  { %1940 = vmatpush2.bf16.msra.mxu0 %v1915_v37  ;;  %v5820_v37 = vrot.slane %v5409_v49, 1 }
 0x54d   :  { %v1822_v39 = vpop.permute.xlu0 %1821  ;;  %v1818_v48 = vpop.permute.xlu1 %1817  ;;  %1941 = vmatprep.subr.bf16.mxu0 %v4522_v43  ;;  %v1873_v17 = vld [vmem:[#allocation4 + $0xa0] sm:$0xff]  ;;  %v1874_v61 = vld [vmem:[#allocation4 + $0xa8] sm:$0xff] }
 0x54e   :  { %1824 = vst.msk [vmem:[#allocation4 + $0x88] sm:$0xff] %vm6960_vm1, %v1822_v39  ;;  %1820 = vst.msk [vmem:[#allocation4 + $0x80] sm:$0xff] %vm6960_vm1, %v1818_v48  ;;  %v1888_v60 = vpack.c.bf16 %v1874_v61, %v1873_v17  ;;  %v5837_v39 = vrot.slane %v5409_v49, 5  ;;  %v5844_v48 = vrot.slane %v5414_v31, 2  ;;  %v5873_v17 = vrot.slane %v5414_v31, 7 }
 0x54f   :  { %v5876_v61 = vrot.slane %v5425_v58, 7  ;;  %vm6986_vm1 = vcmask 48128  }
 0x550   :  { %1942 = vmatpush2.bf16.msra.mxu0 %v1889_v10  ;;  %v5735_v46 = vld [vmem:[#allocation2 + $0x10] sm:$0x7]  ;;  %vm6987_vm10 = vmmov %vm6986_vm1 }
 0x551   :  { %1943 = vmatprep.subr.bf16.mxu0 %v4522_v43  ;;  %v1871_v18 = vld [vmem:[#allocation4 + $0x90] sm:$0xff]  ;;  %v1872_v63 = vld [vmem:[#allocation4 + $0x98] sm:$0xff]  ;;  %v5742_v56 = vrot.slane %v5735_v46, 1  ;;  %v5762_v51 = vrot.slane %v5735_v46, 6  ;;  %v5782_v15 = vrot.slane %v5735_v46, 3  ;;  %v2951_v11 = vrot.slane %v5735_v46, 5  ;;  %vm6988_vm14 = vmmov %vm6986_vm1 }
 0x552   :  { %v1887_v19 = vpack.c.bf16 %v1872_v63, %v1871_v18  ;;  %v2974_v10 = vrot.slane %v5735_v46, 2  ;;  %v3001_v18 = vrot.slane %v5735_v46, 7  ;;  %v5893_v63 = vcombine.low %v5425_v58, %v5425_v58 }
 0x554   :  { %1944 = vmatpush2.bf16.msra.mxu0 %v1888_v60  ;;  %v5883_v60 = vrot.slane %v5432_v28, 7 }
 0x555   :  { %1945 = vmatprep.subr.bf16.mxu0 %v4522_v43  ;;  %v1869_v30 = vld [vmem:[#allocation4 + $0x80] sm:$0xff]  ;;  %v1870_v62 = vld [vmem:[#allocation4 + $0x88] sm:$0xff] }
 0x556   :  { %v1886_v1 = vpack.c.bf16 %v1870_v62, %v1869_v30  ;;  %v5912_v30 = vrot.slane %v5409_v49, 2  ;;  %v5915_v62 = vrot.slane %v5409_v49, 7 }
 0x558   :  { %1946 = vmatpush2.bf16.msra.mxu0 %v1887_v19  ;;  %v5901_v19 = vcombine.low %v5735_v46, %v5735_v46 }
 0x559   :  { %1947 = vmatprep.subr.bf16.mxu0 %v4522_v43 }
 0x55a   :  { %v5691_v47 = vpop.permute.xlu1 %1893  ;;  %v5695_v3 = vpop.permute.xlu0 %1898 }
 0x55c   :  { %1948 = vmatpush2.bf16.msra.mxu0 %v1886_v1  ;;  %v5923_v1 = vcombine.low %v5409_v49, %v5409_v49 }
 0x55f   :  { %1950 = vmatmul.mubr.bf16.vlgmr.msra.gmra.mxu0 %v4433_v50 }
 0x560   :  { %4146 = vmatprep.mubr.msk.bf16.mxu0 %vm6964_vm11, %v5371_v34  ;;  %vm7014_vm11 = vcmask 392198  }
 0x61f   :  { %v1951_v4 = vpop.f32.mrf.mxu0 }
 0x620   :  { %v1952_v6 = vadd.f32 %v1951_v4, %v5691_v47 }
 0x621   :  { %v1953_v35 = vpop.f32.mrf.mxu0 }
 0x622   :  { %1960 = vrot.lane.b32.xlu1 %v1952_v6, %s4528_s24 }
 0x623   :  { %v1954_v8 = vpop.f32.mrf.mxu0 }
 0x624   :  { %v1955_v29 = vadd.f32 %v1954_v8, %v5695_v3 }
 0x625   :  { %v1956_v33 = vpop.f32.mrf.mxu0 }
 0x626   :  { %1962 = vrot.lane.b32.xlu0 %v1955_v29, %s4528_s24 }
 0x694   :  { %v1961_v13 = vpop.permute.xlu1 %1960 }
 0x695   :  { %v5716_v7 = vmax.f32 %v1952_v6, %v1961_v13 }
 0x697   :  { %1970 = vrot.lane.b32.xlu1 %v5716_v7, %s4512_s19 }
 0x698   :  { %v1963_v21 = vpop.permute.xlu0 %1962 }
 0x699   :  { %v5723_v44 = vmax.f32 %v1955_v29, %v1963_v21 }
 0x69b   :  { %1972 = vrot.lane.b32.xlu0 %v5723_v44, %s4512_s19  ;;  %3048 = vrot.lane.b32.xlu1 %v5721_v20, %s6972_s1 }
 0x69f   :  { %3050 = vrot.lane.b32.xlu0 %v5730_v45, %s6972_s1  ;;  %3052 = vrot.lane.b32.xlu1 %v5733_v2, %s6972_s1 }
 0x6a3   :  { %3054 = vrot.lane.b32.xlu0 %v5742_v56, %s6972_s1  ;;  %3074 = vrot.lane.b32.xlu1 %v5745_v59, %s6973_s28 }
 0x6a7   :  { %3076 = vrot.lane.b32.xlu0 %v5752_v42, %s6973_s28  ;;  %3078 = vrot.lane.b32.xlu1 %v5755_v5, %s6973_s28 }
 0x6ab   :  { %3080 = vrot.lane.b32.xlu0 %v5762_v51, %s6973_s28  ;;  %3096 = vrot.lane.b32.xlu1 %v5765_v52, %s6974_s5 }
 0x6af   :  { %3098 = vrot.lane.b32.xlu0 %v5772_v55, %s6974_s5  ;;  %3100 = vrot.lane.b32.xlu1 %v5775_v23, %s6974_s5 }
 0x6b3   :  { %3102 = vrot.lane.b32.xlu0 %v5782_v15, %s6974_s5  ;;  %3118 = vrot.lane.b32.xlu1 %v5414_v31, %s6975_s27 }
 0x6b7   :  { %3120 = vrot.lane.b32.xlu0 %v5425_v58, %s6975_s27  ;;  %3122 = vrot.lane.b32.xlu1 %v5432_v28, %s6975_s27 }
 0x6bb   :  { %3124 = vrot.lane.b32.xlu0 %v5735_v46, %s6975_s27  ;;  %3140 = vrot.lane.b32.xlu1 %v5793_v53, %s6976_s29 }
 0x6bf   :  { %3142 = vrot.lane.b32.xlu0 %v5800_v24, %s6976_s29  ;;  %3144 = vrot.lane.b32.xlu1 %v5803_v32, %s6976_s29 }
 0x6c3   :  { %3146 = vrot.lane.b32.xlu0 %v2951_v11, %s6976_s29  ;;  %3162 = vrot.lane.b32.xlu1 %v5811_v36, %s6977_s2 }
 0x6c7   :  { %3164 = vrot.lane.b32.xlu0 %v5817_v54, %s6977_s2  ;;  %3046 = vrot.lane.b32.xlu1 %v5820_v37, %s6972_s1  ;;  %s6980_s1 = smov 26  }
 0x6cb   :  { %3072 = vrot.lane.b32.xlu0 %v5827_v9, %s6973_s28  ;;  %3094 = vrot.lane.b32.xlu1 %v5830_v57, %s6974_s5  ;;  %s6981_s28 = smov 8   ;;  %s6982_s5 = smov 7  }
 0x6cf   :  { %3116 = vrot.lane.b32.xlu0 %v5409_v49, %s6975_s27  ;;  %3138 = vrot.lane.b32.xlu1 %v5837_v39, %s6976_s29  ;;  %s6983_s27 = smov 51   ;;  %s6984_s29 = smov 50  }
 0x6d3   :  { %3160 = vrot.lane.b32.xlu0 %v5844_v48, %s6977_s2  ;;  %3166 = vrot.lane.b32.xlu1 %v2974_v10, %s6977_s2  ;;  %s6985_s2 = smov 32  }
 0x6d7   :  { %2931 = vrot.lane.b32.xlu0 %v5414_v31, %s6978_s16  ;;  %2933 = vrot.lane.b32.xlu1 %v5425_v58, %s6978_s16 }
 0x6db   :  { %2935 = vrot.lane.b32.xlu0 %v5432_v28, %s6978_s16  ;;  %2937 = vrot.lane.b32.xlu1 %v5735_v46, %s6978_s16 }
 0x6df   :  { %2954 = vrot.lane.b32.xlu0 %v5793_v53, %s6979_s0  ;;  %2956 = vrot.lane.b32.xlu1 %v5800_v24, %s6979_s0 }
 0x6e3   :  { %2958 = vrot.lane.b32.xlu0 %v5803_v32, %s6979_s0  ;;  %2960 = vrot.lane.b32.xlu1 %v2951_v11, %s6979_s0 }
 0x6e7   :  { %2977 = vrot.lane.b32.xlu0 %v5844_v48, %s6980_s1  ;;  %2979 = vrot.lane.b32.xlu1 %v5811_v36, %s6980_s1 }
 0x6eb   :  { %2981 = vrot.lane.b32.xlu0 %v5817_v54, %s6980_s1  ;;  %2983 = vrot.lane.b32.xlu1 %v2974_v10, %s6980_s1 }
 0x6ef   :  { %3004 = vrot.lane.b32.xlu0 %v5873_v17, %s6981_s28  ;;  %3006 = vrot.lane.b32.xlu1 %v5876_v61, %s6981_s28 }
 0x6f3   :  { %3008 = vrot.lane.b32.xlu0 %v5883_v60, %s6981_s28  ;;  %3010 = vrot.lane.b32.xlu1 %v3001_v18, %s6981_s28 }
 0x6f7   :  { %3026 = vrot.lane.b32.xlu0 %v5409_v49, %s6982_s5  ;;  %3028 = vrot.lane.b32.xlu1 %v5893_v63, %s6982_s5 }
 0x6fb   :  { %3030 = vrot.lane.b32.xlu0 %v5425_v58, %s6982_s5  ;;  %3032 = vrot.lane.b32.xlu1 %v5901_v19, %s6982_s5 }
 0x6ff   :  { %2929 = vrot.lane.b32.xlu0 %v5409_v49, %s6978_s16  ;;  %2952 = vrot.lane.b32.xlu1 %v5837_v39, %s6979_s0  ;;  %s6989_s16 = smov 31   ;;  %s6993_s0 = smov 30  }
 0x703   :  { %2975 = vrot.lane.b32.xlu0 %v5912_v30, %s6980_s1  ;;  %3002 = vrot.lane.b32.xlu1 %v5915_v62, %s6981_s28  ;;  %s6997_s1 = smov 29   ;;  %s7008_s28 = smov 56  }
 0x707   :  { %3024 = vrot.lane.b32.xlu0 %v5923_v1, %s6982_s5  ;;  %2792 = vrot.lane.b32.xlu1 %v5844_v48, %s6983_s27  ;;  %s7011_s5 = smov 55  }
 0x709   :  { %v1971_v50 = vpop.permute.xlu1 %1970 }
 0x70a   :  { %v1976_v22 = vmax.f32 %v5716_v7, %v1971_v50 }
 0x70b   :  { %2794 = vrot.lane.b32.xlu0 %v5811_v36, %s6983_s27  ;;  %2815 = vrot.lane.b32.xlu1 %v5873_v17, %s6984_s29 }
 0x70c   :  { %v1978_v4 = vmax.f32 %v1976_v22, 0.0 }
 0x70d   :  { %v1973_v6 = vpop.permute.xlu0 %1972  ;;  %v5934_v35 = vpop.permute.xlu1 %3048 }
 0x70e   :  { %v1977_v8 = vmax.f32 %v5723_v44, %v1973_v6  ;;  %4249 = vmatprep.mubr.msk.f32.mxu1 %vm6963_vm15, %v1978_v4 }
 0x70f   :  { %2817 = vrot.lane.b32.xlu0 %v5876_v61, %s6984_s29  ;;  %2836 = vrot.lane.b32.xlu1 %v5409_v49, %s6985_s2 }
 0x710   :  { %v1979_v29 = vmax.f32 %v1977_v8, 0.0 }
 0x711   :  { %v3051_v33 = vpop.permute.xlu0 %3050  ;;  %v3053_v27 = vpop.permute.xlu1 %3052 }
 0x712   :  { %v3057_v14 = vsel %vm6986_vm1, %v5934_v35, %v3051_v33  ;;  %v3058_v16 = vsel %vm6987_vm10, %v3051_v33, %v3053_v27  ;;  %4250 = vmatmul.mubr.msk.f32.vlgmr.msra.gmra.mxu1 %vm6963_vm15, %v1979_v29  ;;  %vm6990_vm1 = vcmask 39936   ;;  %vm7007_vm15 = vcmask 31744  }
 0x713   :  { %3065 = vst [vmem:[#allocation3 + $0x1c8] ss:$-28 sps:$4 sm:$0x83] %v3057_v14   ;;  %3066 = vst [vmem:[#allocation3 + $0x1d0] ss:$-28 sps:$4 sm:$0x83] %v3058_v16   ;;  %2838 = vrot.lane.b32.xlu0 %v5893_v63, %s6985_s2  ;;  %2840 = vrot.lane.b32.xlu1 %v5425_v58, %s6985_s2 }
 0x714   :  { %vm6991_vm10 = vmmov %vm6990_vm1 }
 0x715   :  { %v3055_v41 = vpop.permute.xlu0 %3054  ;;  %v5950_v25 = vpop.permute.xlu1 %3074 }
 0x716   :  { %v3059_v13 = vsel %vm6988_vm14, %v3053_v27, %v3055_v41  ;;  %vm6992_vm14 = vmmov %vm6990_vm1 }
 0x717   :  { %3067 = vst.msk [vmem:[#allocation3 + $0x1b8] sm:$0x80] %vm260_vm5, %v3059_v13  ;;  %2842 = vrot.lane.b32.xlu0 %v5901_v19, %s6985_s2  ;;  %2859 = vrot.lane.b32.xlu1 %v5721_v20, %s6989_s16 }
 0x718   :  { %3071 = vst.msk [vmem:[#allocation3 + $0x1d8] sm:$0x3] %vm265_vm6, %v3059_v13 }
 0x719   :  { %v3077_v7 = vpop.permute.xlu0 %3076  ;;  %v3079_v21 = vpop.permute.xlu1 %3078 }
 0x71a   :  { %v3083_v44 = vsel %vm6990_vm1, %v5950_v25, %v3077_v7  ;;  %v3084_v11 = vsel %vm6991_vm10, %v3077_v7, %v3079_v21  ;;  %vm6994_vm1 = vcmask 31744  }
 0x71b   :  { %3091 = vst [vmem:[#allocation3 + $0x1c8] sm:$0x1c] %v3083_v44  ;;  %3092 = vst [vmem:[#allocation3 + $0x1d0] sm:$0x1c] %v3084_v11  ;;  %2861 = vrot.lane.b32.xlu0 %v5730_v45, %s6989_s16  ;;  %2863 = vrot.lane.b32.xlu1 %v5733_v2, %s6989_s16 }
 0x71c   :  { %vm6995_vm10 = vmmov %vm6994_vm1 }
 0x71d   :  { %v3081_v10 = vpop.permute.xlu0 %3080  ;;  %v3097_v50 = vpop.permute.xlu1 %3096 }
 0x71e   :  { %v3085_v22 = vsel %vm6992_vm14, %v3079_v21, %v3081_v10  ;;  %vm6996_vm14 = vmmov %vm6994_vm1 }
 0x71f   :  { %3093 = vst.msk [vmem:[#allocation3 + $0x1d8] sm:$0x1c] %vm290_vm7, %v3085_v22  ;;  %2865 = vrot.lane.b32.xlu0 %v5742_v56, %s6989_s16  ;;  %2886 = vrot.lane.b32.xlu1 %v5745_v59, %s6993_s0 }
 0x721   :  { %v3099_v4 = vpop.permute.xlu0 %3098  ;;  %v3101_v6 = vpop.permute.xlu1 %3100 }
 0x722   :  { %v3105_v8 = vsel %vm6994_vm1, %v3097_v50, %v3099_v4  ;;  %v3106_v29 = vsel %vm6995_vm10, %v3099_v4, %v3101_v6  ;;  %vm6998_vm1 = vcmask 23552  }
 0x723   :  { %3113 = vst [vmem:[#allocation3 + $0x1c8] sm:$0xe0] %v3105_v8  ;;  %3114 = vst [vmem:[#allocation3 + $0x1d0] sm:$0xe0] %v3106_v29  ;;  %2888 = vrot.lane.b32.xlu0 %v5752_v42, %s6993_s0  ;;  %2890 = vrot.lane.b32.xlu1 %v5755_v5, %s6993_s0 }
 0x724   :  { %vm6999_vm10 = vmmov %vm6998_vm1 }
 0x725   :  { %v3103_v33 = vpop.permute.xlu0 %3102  ;;  %v3119_v27 = vpop.permute.xlu1 %3118 }
 0x726   :  { %v3107_v14 = vsel %vm6996_vm14, %v3101_v6, %v3103_v33  ;;  %vm7000_vm14 = vmmov %vm6998_vm1 }
 0x727   :  { %3115 = vst.msk [vmem:[#allocation3 + $0x1d8] sm:$0xe0] %vm315_vm9, %v3107_v14  ;;  %2892 = vrot.lane.b32.xlu0 %v5762_v51, %s6993_s0  ;;  %2909 = vrot.lane.b32.xlu1 %v5765_v52, %s6997_s1 }
 0x729   :  { %v3121_v16 = vpop.permute.xlu0 %3120  ;;  %v3123_v41 = vpop.permute.xlu1 %3122 }
 0x72a   :  { %v3127_v13 = vsel %vm6998_vm1, %v3119_v27, %v3121_v16  ;;  %v3128_v7 = vsel %vm6999_vm10, %v3121_v16, %v3123_v41  ;;  %vm7001_vm1 = vcmask 15360  }
 0x72b   :  { %3135 = vst [vmem:[#allocation3 + $0x1e8] sm:$0x7] %v3127_v13  ;;  %3136 = vst [vmem:[#allocation3 + $0x1f0] sm:$0x7] %v3128_v7  ;;  %2911 = vrot.lane.b32.xlu0 %v5772_v55, %s6997_s1  ;;  %2913 = vrot.lane.b32.xlu1 %v5775_v23, %s6997_s1 }
 0x72c   :  { %vm7002_vm10 = vmmov %vm7001_vm1 }
 0x72d   :  { %v3125_v21 = vpop.permute.xlu0 %3124  ;;  %v3141_v44 = vpop.permute.xlu1 %3140 }
 0x72e   :  { %v3129_v11 = vsel %vm7000_vm14, %v3123_v41, %v3125_v21  ;;  %vm7003_vm14 = vmmov %vm7001_vm1 }
 0x72f   :  { %3137 = vst.msk [vmem:[#allocation3 + $0x1f8] sm:$0x7] %vm132_vm2, %v3129_v11  ;;  %2915 = vrot.lane.b32.xlu0 %v5782_v15, %s6997_s1  ;;  %2790 = vrot.lane.b32.xlu1 %v5912_v30, %s6983_s27 }
 0x731   :  { %v3143_v10 = vpop.permute.xlu0 %3142  ;;  %v3145_v22 = vpop.permute.xlu1 %3144 }
 0x732   :  { %v3149_v4 = vsel %vm7001_vm1, %v3141_v44, %v3143_v10  ;;  %v3150_v6 = vsel %vm7002_vm10, %v3143_v10, %v3145_v22  ;;  %vm7004_vm1 = vcmask 916480   ;;  %vm7005_vm10 = vcmask 48128  }
 0x733   :  { %3157 = vst [vmem:[#allocation3 + $0x1e8] sm:$0x38] %v3149_v4  ;;  %3158 = vst [vmem:[#allocation3 + $0x1f0] sm:$0x38] %v3150_v6  ;;  %2796 = vrot.lane.b32.xlu0 %v5817_v54, %s6983_s27  ;;  %2813 = vrot.lane.b32.xlu1 %v5915_v62, %s6984_s29  ;;  %s7016_s27 = smov 54  }
 0x735   :  { %v3147_v8 = vpop.permute.xlu0 %3146  ;;  %v3163_v29 = vpop.permute.xlu1 %3162 }
 0x736   :  { %v3151_v33 = vsel %vm7003_vm14, %v3145_v22, %v3147_v8  ;;  %vm7006_vm14 = vcmask 39936  }
 0x737   :  { %3159 = vst.msk [vmem:[#allocation3 + $0x1f8] sm:$0x38] %vm157_vm12, %v3151_v33  ;;  %2819 = vrot.lane.b32.xlu0 %v5883_v60, %s6984_s29  ;;  %2834 = vrot.lane.b32.xlu1 %v5923_v1, %s6985_s2  ;;  %s7018_s29 = smov 53   ;;  %s7021_s2 = smov 52  }
 0x739   :  { %v3165_v14 = vpop.permute.xlu0 %3164  ;;  %v3047_v16 = vpop.permute.xlu1 %3046 }
 0x73a   :  { %v3169_v41 = vsel %vm7004_vm1, %v3163_v29, %v3165_v14  ;;  %v3056_v13 = vsel %vm7005_vm10, %v3047_v16, %v5934_v35  ;;  %vm7009_vm1 = vcmask 23552   ;;  %vm7010_vm10 = vcmask 15360  }
 0x73b   :  { %3176 = vst [vmem:[#allocation3 + $0x208] ss:$-28 sps:$4 sm:$0xc1] %v3169_v41   ;;  %3064 = vst [vmem:[#allocation3 + $0x1c0] ss:$-28 sps:$4 sm:$0x83] %v3056_v13   ;;  %2857 = vrot.lane.b32.xlu0 %v5820_v37, %s6989_s16  ;;  %2884 = vrot.lane.b32.xlu1 %v5827_v9, %s6993_s0 }
 0x73c   :  { %v3360_v41 = vld [vmem:[#allocation3 + $0x1d8] sm:$0xff]  ;;  %s7061_s16 = smov 79   ;;  %s7074_s0 = smov 123  }
 0x73d   :  { %v3073_v7 = vpop.permute.xlu0 %3072  ;;  %v3095_v21 = vpop.permute.xlu1 %3094 }
 0x73e   :  { %v3082_v11 = vsel %vm7006_vm14, %v3073_v7, %v5950_v25  ;;  %v3104_v10 = vsel %vm7007_vm15, %v3095_v21, %v3097_v50  ;;  %vm7012_vm15 = vcmask 916480  }
 0x73f   :  { %3090 = vst [vmem:[#allocation3 + $0x1c0] sm:$0x1c] %v3082_v11  ;;  %3112 = vst [vmem:[#allocation3 + $0x1c0] sm:$0xe0] %v3104_v10  ;;  %2907 = vrot.lane.b32.xlu0 %v5830_v57, %s6997_s1  ;;  %2693 = vrot.lane.b32.xlu1 %v5721_v20, %s7008_s28  ;;  %v3359_v10 = vld [vmem:[#allocation3 + $0x1d0] sm:$0xff]  ;;  %s7033_s1 = smov 78  }
 0x740   :  { %vm7013_vm14 = vmmov %vm7012_vm15 }
 0x741   :  { %v3117_v35 = vpop.permute.xlu0 %3116  ;;  %v3139_v22 = vpop.permute.xlu1 %3138 }
 0x742   :  { %v3126_v4 = vsel %vm7009_vm1, %v3117_v35, %v3119_v27  ;;  %v3148_v6 = vsel %vm7010_vm10, %v3139_v22, %v3141_v44  ;;  %vm7017_vm1 = vcmask 228352   ;;  %vm7022_vm10 = vcmask 220160  }
 0x743   :  { %3134 = vst [vmem:[#allocation3 + $0x1e0] sm:$0x7] %v3126_v4  ;;  %3156 = vst [vmem:[#allocation3 + $0x1e0] sm:$0x38] %v3148_v6  ;;  %2695 = vrot.lane.b32.xlu0 %v5730_v45, %s7008_s28  ;;  %2716 = vrot.lane.b32.xlu1 %v5745_v59, %s7011_s5 }
 0x745   :  { %v3161_v25 = vpop.permute.xlu0 %3160  ;;  %v3167_v50 = vpop.permute.xlu1 %3166 }
 0x746   :  { %v3168_v8 = vsel %vm7012_vm15, %v3161_v25, %v3163_v29  ;;  %v3170_v33 = vsel %vm7013_vm14, %v3165_v14, %v3167_v50  ;;  %3178 = vst.msk [vmem:[#allocation3 + $0x1f8] sm:$0xc0] %vm7014_vm11, %v3167_v50  ;;  %vm7019_vm11 = vmmov %vm7017_vm1 }
 0x747   :  { %3182 = vst.msk [vmem:[#allocation3 + $0x218] sm:$0x1] %vm7015_vm13, %v3167_v50  ;;  %3175 = vst [vmem:[#allocation3 + $0x200] ss:$-28 sps:$4 sm:$0xc1] %v3168_v8   ;;  %2718 = vrot.lane.b32.xlu0 %v5752_v42, %s7011_s5  ;;  %2735 = vrot.lane.b32.xlu1 %v5765_v52, %s7016_s27 }
 0x748   :  { %3177 = vst [vmem:[#allocation3 + $0x210] ss:$-28 sps:$4 sm:$0xc1] %v3170_v33   ;;  %vm7020_vm13 = vmmov %vm7017_vm1 }
 0x749   :  { %v6036_v27 = vpop.permute.xlu0 %2931  ;;  %v2934_v44 = vpop.permute.xlu1 %2933  ;;  %vm7023_vm15 = vmmov %vm7022_vm10 }
 0x74a   :  { %v2940_v29 = vsel %vm7017_vm1, %v6036_v27, %v2934_v44  ;;  %vm7024_vm14 = vmmov %vm7022_vm10  ;;  %vm6967_vm1 = vcmask 80896  }
 0x74b   :  { %2948 = vst [vmem:[#allocation3 + $0x188] sm:$0x7] %v2940_v29  ;;  %2737 = vrot.lane.b32.xlu0 %v5772_v55, %s7016_s27  ;;  %2754 = vrot.lane.b32.xlu1 %v5414_v31, %s7018_s29  ;;  %v101_v29 = vld [vmem:[%s6821_s7] sm:$0xff] }
 0x74c   :  { %4256 = vmatprep.mubr.msk.f32.mxu1 %vm6967_vm1, %v101_v29 }
 0x74d   :  { %v2936_v14 = vpop.permute.xlu0 %2935  ;;  %v2938_v16 = vpop.permute.xlu1 %2937  ;;  %v3364_v13 = vld [vmem:[#allocation3 + $0x1f8] sm:$0xff] }
 0x74e   :  { %v2941_v7 = vsel %vm7019_vm11, %v2934_v44, %v2936_v14  ;;  %v2942_v21 = vsel %vm7020_vm13, %v2936_v14, %v2938_v16  ;;  %v3408_v11 = vpack.c.bf16 %v3364_v13, %v3360_v41  ;;  %vm7025_vm11 = vcmask 211968  }
 0x74f   :  { %v3363_v35 = vld [vmem:[#allocation3 + $0x1f0] sm:$0xff]  ;;  %2949 = vst [vmem:[#allocation3 + $0x190] sm:$0x7] %v2941_v7  ;;  %2950 = vst.msk [vmem:[#allocation3 + $0x198] sm:$0x7] %vm132_vm2, %v2942_v21  ;;  %2756 = vrot.lane.b32.xlu0 %v5425_v58, %s7018_s29  ;;  %2773 = vrot.lane.b32.xlu1 %v5793_v53, %s7021_s2 }
 0x750   :  { %v3407_v22 = vpack.c.bf16 %v3363_v35, %v3359_v10  ;;  %3470 = vmatprep.subr.bf16.mxu0 %v3408_v11  ;;  %vm7026_vm13 = vmmov %vm7025_vm11 }
 0x751   :  { %v6051_v4 = vpop.permute.xlu0 %2954  ;;  %v2957_v6 = vpop.permute.xlu1 %2956 }
 0x752   :  { %3471 = vmatpush1.bf16.msra.mxu0 %v3407_v22  ;;  %v2963_v25 = vsel %vm7022_vm10, %v6051_v4, %v2957_v6  ;;  %vm7027_vm10 = vmmov %vm7025_vm11 }
 0x753   :  { %2971 = vst [vmem:[#allocation3 + $0x188] sm:$0x38] %v2963_v25  ;;  %2775 = vrot.lane.b32.xlu0 %v5800_v24, %s7021_s2  ;;  %2691 = vrot.lane.b32.xlu1 %v5820_v37, %s7008_s28 }
 0x755   :  { %v2959_v50 = vpop.permute.xlu0 %2958  ;;  %v2961_v8 = vpop.permute.xlu1 %2960 }
 0x756   :  { %v2964_v33 = vsel %vm7023_vm15, %v2957_v6, %v2959_v50  ;;  %v2965_v44 = vsel %vm7024_vm14, %v2959_v50, %v2961_v8  ;;  %vm7028_vm15 = vcmask 392198   ;;  %vm7029_vm14 = vcmask 385024  }
 0x757   :  { %2972 = vst [vmem:[#allocation3 + $0x190] sm:$0x38] %v2964_v33  ;;  %2973 = vst.msk [vmem:[#allocation3 + $0x198] sm:$0x38] %vm157_vm12, %v2965_v44  ;;  %2697 = vrot.lane.b32.xlu0 %v5733_v2, %s7008_s28  ;;  %2714 = vrot.lane.b32.xlu1 %v5827_v9, %s7011_s5  ;;  %s7035_s28 = smov 77  }
 0x759   :  { %v2978_v14 = vpop.permute.xlu0 %2977  ;;  %v2980_v16 = vpop.permute.xlu1 %2979 }
 0x75a   :  { %v2986_v41 = vsel %vm7025_vm11, %v2978_v14, %v2980_v16  ;;  %vm7030_vm11 = vcmask 64512  }
 0x75b   :  { %2994 = vst [vmem:[#allocation3 + $0x1a8] ss:$-28 sps:$4 sm:$0xc1] %v2986_v41   ;;  %2720 = vrot.lane.b32.xlu0 %v5755_v5, %s7011_s5  ;;  %2733 = vrot.lane.b32.xlu1 %v5830_v57, %s7016_s27  ;;  %s7038_s5 = smov 76  }
 0x75d   :  { %v2982_v13 = vpop.permute.xlu0 %2981  ;;  %v2984_v7 = vpop.permute.xlu1 %2983 }
 0x75e   :  { %v2987_v21 = vsel %vm7026_vm13, %v2980_v16, %v2982_v13  ;;  %v2988_v11 = vsel %vm7027_vm10, %v2982_v13, %v2984_v7  ;;  %vm7031_vm13 = vmmov %vm7030_vm11 }
 0x75f   :  { %2995 = vst [vmem:[#allocation3 + $0x1b0] ss:$-28 sps:$4 sm:$0xc1] %v2987_v21   ;;  %2996 = vst.msk [vmem:[#allocation3 + $0x198] sm:$0xc0] %vm7028_vm15, %v2988_v11  ;;  %2739 = vrot.lane.b32.xlu0 %v5775_v23, %s7016_s27  ;;  %2752 = vrot.lane.b32.xlu1 %v5409_v49, %s7018_s29  ;;  %vm7034_vm15 = vcmask 56320  }
 0x760   :  { %3000 = vst.msk [vmem:[#allocation3 + $0x1b8] sm:$0x1] %vm7029_vm14, %v2988_v11  ;;  %vm7032_vm10 = vmmov %vm7030_vm11  ;;  %s7041_s27 = smov 75  }
 0x761   :  { %v3005_v10 = vpop.permute.xlu0 %3004  ;;  %v3007_v35 = vpop.permute.xlu1 %3006  ;;  %vm7036_vm14 = vmmov %vm7034_vm15 }
 0x762   :  { %v3013_v22 = vsel %vm7030_vm11, %v3005_v10, %v3007_v35  ;;  %vm7037_vm11 = vmmov %vm7036_vm14 }
 0x763   :  { %3021 = vst [vmem:[#allocation3 + $0x1a8] sm:$0xe] %v3013_v22  ;;  %2758 = vrot.lane.b32.xlu0 %v5432_v28, %s7018_s29  ;;  %2771 = vrot.lane.b32.xlu1 %v5837_v39, %s7021_s2  ;;  %s7044_s29 = smov 74  }
 0x765   :  { %v3009_v6 = vpop.permute.xlu0 %3008  ;;  %v3011_v25 = vpop.permute.xlu1 %3010 }
 0x766   :  { %v3014_v50 = vsel %vm7031_vm13, %v3007_v35, %v3009_v6  ;;  %v3015_v8 = vsel %vm7032_vm10, %v3009_v6, %v3011_v25  ;;  %vm7039_vm13 = vcmask 228352   ;;  %vm7040_vm10 = vcmask 220160  }
 0x767   :  { %3022 = vst [vmem:[#allocation3 + $0x1b0] sm:$0xe] %v3014_v50  ;;  %3023 = vst.msk [vmem:[#allocation3 + $0x1b8] sm:$0xe] %vm212_vm8, %v3015_v8  ;;  %2777 = vrot.lane.b32.xlu0 %v5803_v32, %s7021_s2  ;;  %2594 = vrot.lane.b32.xlu1 %v5414_v31, %s7033_s1  ;;  %v3352_v50 = vld [vmem:[#allocation3 + $0x198] sm:$0xff]  ;;  %s7058_s2 = smov 80  }
 0x769   :  { %v3027_v33 = vpop.permute.xlu0 %3026  ;;  %v3029_v44 = vpop.permute.xlu1 %3028 }
 0x76a   :  { %v3035_v29 = vsel %vm7034_vm15, %v3027_v33, %v3029_v44  ;;  %vm7042_vm15 = vcmask 211968  }
 0x76b   :  { %3043 = vst [vmem:[#allocation3 + $0x1a8] sm:$0x70] %v3035_v29  ;;  %2596 = vrot.lane.b32.xlu0 %v5425_v58, %s7033_s1  ;;  %2613 = vrot.lane.b32.xlu1 %v5793_v53, %s7035_s28 }
 0x76d   :  { %v3031_v16 = vpop.permute.xlu0 %3030  ;;  %v3033_v41 = vpop.permute.xlu1 %3032 }
 0x76e   :  { %v3036_v13 = vsel %vm7036_vm14, %v3029_v44, %v3031_v16  ;;  %v3037_v7 = vsel %vm7037_vm11, %v3031_v16, %v3033_v41  ;;  %vm7043_vm14 = vcmask 64512  }
 0x76f   :  { %3044 = vst [vmem:[#allocation3 + $0x1b0] sm:$0x70] %v3036_v13  ;;  %3045 = vst.msk [vmem:[#allocation3 + $0x1b8] sm:$0x70] %vm235_vm3, %v3037_v7  ;;  %2615 = vrot.lane.b32.xlu0 %v5800_v24, %s7035_s28  ;;  %2632 = vrot.lane.b32.xlu1 %v5844_v48, %s7038_s5 }
 0x771   :  { %v2930_v21 = vpop.permute.xlu0 %2929  ;;  %v2953_v11 = vpop.permute.xlu1 %2952 }
 0x772   :  { %v2939_v35 = vsel %vm7039_vm13, %v2930_v21, %v6036_v27  ;;  %v2962_v22 = vsel %vm7040_vm10, %v2953_v11, %v6051_v4  ;;  %v3351_v27 = vld [vmem:[#allocation3 + $0x190] sm:$0xff]  ;;  %vm7045_vm13 = vcmask 416768   ;;  %vm7046_vm10 = vcmask 408576  }
 0x773   :  { %2947 = vst [vmem:[#allocation3 + $0x180] sm:$0x7] %v2939_v35  ;;  %2970 = vst [vmem:[#allocation3 + $0x180] sm:$0x38] %v2962_v22  ;;  %2634 = vrot.lane.b32.xlu0 %v5811_v36, %s7038_s5  ;;  %2655 = vrot.lane.b32.xlu1 %v5873_v17, %s7041_s27 }
 0x775   :  { %v2976_v6 = vpop.permute.xlu0 %2975  ;;  %v3003_v25 = vpop.permute.xlu1 %3002 }
 0x776   :  { %v2985_v8 = vsel %vm7042_vm15, %v2976_v6, %v2978_v14  ;;  %v3012_v44 = vsel %vm7043_vm14, %v3003_v25, %v3005_v10  ;;  %v3356_v29 = vld [vmem:[#allocation3 + $0x1b8] sm:$0xff]  ;;  %v3355_v16 = vld [vmem:[#allocation3 + $0x1b0] sm:$0xff]  ;;  %vm7047_vm15 = vcmask 261120  }
 0x777   :  { %2993 = vst [vmem:[#allocation3 + $0x1a0] ss:$-28 sps:$4 sm:$0xc1] %v2985_v8   ;;  %3020 = vst [vmem:[#allocation3 + $0x1a0] sm:$0xe] %v3012_v44  ;;  %2657 = vrot.lane.b32.xlu0 %v5876_v61, %s7041_s27  ;;  %2674 = vrot.lane.b32.xlu1 %v5409_v49, %s7044_s29  ;;  %v3404_v4 = vpack.c.bf16 %v3356_v29, %v3352_v50  ;;  %v3403_v41 = vpack.c.bf16 %v3355_v16, %v3351_v27 }
 0x778   :  { %vm7048_vm14 = vmmov %vm7047_vm15 }
 0x779   :  { %v3025_v13 = vpop.permute.xlu0 %3024  ;;  %3472 = vmatprep.subr.bf16.mxu0 %v3404_v4  ;;  %v6121_v7 = vpop.permute.xlu1 %2792 }
 0x77a   :  { %v3034_v14 = vsel %vm7037_vm11, %v3025_v13, %v3027_v33  ;;  %3473 = vmatpush1.bf16.msra.mxu0 %v3403_v41  ;;  %vm7049_vm11 = vmmov %vm7048_vm14 }
 0x77b   :  { %3042 = vst [vmem:[#allocation3 + $0x1a0] sm:$0x70] %v3034_v14  ;;  %2676 = vrot.lane.b32.xlu0 %v5893_v63, %s7044_s29  ;;  %2592 = vrot.lane.b32.xlu1 %v5409_v49, %s7033_s1 }
 0x77d   :  { %v6128_v10 = vpop.permute.xlu0 %2794  ;;  %v6130_v21 = vpop.permute.xlu1 %2815 }
 0x77e   :  { %v2799_v11 = vsel %vm7045_vm13, %v6121_v7, %v6128_v10  ;;  %vm7050_vm13 = vcmask 252928  }
 0x77f   :  { %2806 = vst [vmem:[#allocation3 + $0x148] ss:$-28 sps:$4 sm:$0xc1] %v2799_v11   ;;  %2598 = vrot.lane.b32.xlu0 %v5432_v28, %s7033_s1  ;;  %2611 = vrot.lane.b32.xlu1 %v5837_v39, %s7035_s28  ;;  %s7076_s1 = smov 122  }
 0x781   :  { %v6139_v33 = vpop.permute.xlu0 %2817  ;;  %v6141_v35 = vpop.permute.xlu1 %2836 }
 0x782   :  { %v2822_v22 = vsel %vm7046_vm10, %v6130_v21, %v6139_v33  ;;  %vm7051_vm10 = vmmov %vm7050_vm13 }
 0x783   :  { %2829 = vst [vmem:[#allocation3 + $0x148] sm:$0xe] %v2822_v22  ;;  %2617 = vrot.lane.b32.xlu0 %v5803_v32, %s7035_s28  ;;  %2630 = vrot.lane.b32.xlu1 %v5912_v30, %s7038_s5  ;;  %s7078_s28 = smov 104  }
 0x785   :  { %v2839_v6 = vpop.permute.xlu0 %2838  ;;  %v2841_v25 = vpop.permute.xlu1 %2840 }
 0x786   :  { %v2845_v50 = vsel %vm7047_vm15, %v6141_v35, %v2839_v6  ;;  %v2846_v8 = vsel %vm7048_vm14, %v2839_v6, %v2841_v25  ;;  %vm7052_vm15 = vmmov %vm7051_vm10  ;;  %vm7053_vm14 = vcmask 244736  }
 0x787   :  { %2853 = vst [vmem:[#allocation3 + $0x148] sm:$0x70] %v2845_v50  ;;  %2854 = vst [vmem:[#allocation3 + $0x150] sm:$0x70] %v2846_v8  ;;  %2636 = vrot.lane.b32.xlu0 %v5817_v54, %s7038_s5  ;;  %2653 = vrot.lane.b32.xlu1 %v5915_v62, %s7041_s27  ;;  %s7081_s5 = smov 103  }
 0x789   :  { %v2843_v44 = vpop.permute.xlu0 %2842  ;;  %v6157_v29 = vpop.permute.xlu1 %2859 }
 0x78a   :  { %v2847_v27 = vsel %vm7049_vm11, %v2841_v25, %v2843_v44  ;;  %vm7054_vm11 = vmmov %vm7053_vm14 }
 0x78b   :  { %2855 = vst.msk [vmem:[#allocation3 + $0x158] sm:$0x70] %vm235_vm3, %v2847_v27  ;;  %2659 = vrot.lane.b32.xlu0 %v5883_v60, %s7041_s27  ;;  %2672 = vrot.lane.b32.xlu1 %v5923_v1, %s7044_s29  ;;  %s7084_s27 = smov 102  }
 0x78d   :  { %v2862_v16 = vpop.permute.xlu0 %2861  ;;  %v2864_v4 = vpop.permute.xlu1 %2863 }
 0x78e   :  { %v2868_v41 = vsel %vm7050_vm13, %v6157_v29, %v2862_v16  ;;  %v2869_v13 = vsel %vm7051_vm10, %v2862_v16, %v2864_v4  ;;  %vm7055_vm13 = vmmov %vm7054_vm11  ;;  %vm7056_vm10 = vcmask 236544  }
 0x78f   :  { %2876 = vst [vmem:[#allocation3 + $0x168] ss:$-28 sps:$4 sm:$0x83] %v2868_v41   ;;  %2877 = vst [vmem:[#allocation3 + $0x170] ss:$-28 sps:$4 sm:$0x83] %v2869_v13   ;;  %2678 = vrot.lane.b32.xlu0 %v5425_v58, %s7044_s29  ;;  %2472 = vrot.lane.b32.xlu1 %v5844_v48, %s4501_s26 }
 0x791   :  { %v2866_v14 = vpop.permute.xlu0 %2865  ;;  %v2887_v11 = vpop.permute.xlu1 %2886 }
 0x792   :  { %v2870_v22 = vsel %vm7052_vm15, %v2864_v4, %v2866_v14  ;;  %vm7057_vm15 = vmmov %vm7056_vm10 }
 0x793   :  { %2878 = vst.msk [vmem:[#allocation3 + $0x158] sm:$0x80] %vm260_vm5, %v2870_v22  ;;  %2474 = vrot.lane.b32.xlu0 %v5811_v36, %s4501_s26  ;;  %2495 = vrot.lane.b32.xlu1 %v5873_v17, %s6970_s25 }
 0x794   :  { %2882 = vst.msk [vmem:[#allocation3 + $0x178] sm:$0x3] %vm265_vm6, %v2870_v22 }
 0x795   :  { %v2889_v6 = vpop.permute.xlu0 %2888  ;;  %v2891_v25 = vpop.permute.xlu1 %2890 }
 0x796   :  { %v2895_v50 = vsel %vm7053_vm14, %v2887_v11, %v2889_v6  ;;  %v2896_v8 = vsel %vm7054_vm11, %v2889_v6, %v2891_v25  ;;  %vm7059_vm14 = vmmov %vm7056_vm10  ;;  %vm7060_vm11 = vcmask 416768  }
 0x797   :  { %2903 = vst [vmem:[#allocation3 + $0x168] sm:$0x1c] %v2895_v50  ;;  %2904 = vst [vmem:[#allocation3 + $0x170] sm:$0x1c] %v2896_v8  ;;  %2497 = vrot.lane.b32.xlu0 %v5876_v61, %s6970_s25  ;;  %2514 = vrot.lane.b32.xlu1 %v5409_v49, %s6969_s21 }
 0x799   :  { %v2893_v44 = vpop.permute.xlu0 %2892  ;;  %v2910_v27 = vpop.permute.xlu1 %2909 }
 0x79a   :  { %v2897_v16 = vsel %vm7055_vm13, %v2891_v25, %v2893_v44  ;;  %vm7062_vm13 = vmmov %vm7060_vm11 }
 0x79b   :  { %2905 = vst.msk [vmem:[#allocation3 + $0x178] sm:$0x1c] %vm290_vm7, %v2897_v16  ;;  %2516 = vrot.lane.b32.xlu0 %v5893_v63, %s6969_s21  ;;  %2533 = vrot.lane.b32.xlu1 %v5721_v20, %s6966_s22 }
 0x79d   :  { %v2912_v4 = vpop.permute.xlu0 %2911  ;;  %v2914_v41 = vpop.permute.xlu1 %2913 }
 0x79e   :  { %v2918_v13 = vsel %vm7056_vm10, %v2910_v27, %v2912_v4  ;;  %v2919_v14 = vsel %vm7057_vm15, %v2912_v4, %v2914_v41  ;;  %vm7063_vm10 = vcmask 392198   ;;  %vm7064_vm15 = vcmask 385024  }
 0x79f   :  { %2926 = vst [vmem:[#allocation3 + $0x168] sm:$0xe0] %v2918_v13  ;;  %2927 = vst [vmem:[#allocation3 + $0x170] sm:$0xe0] %v2919_v14  ;;  %2535 = vrot.lane.b32.xlu0 %v5730_v45, %s6966_s22  ;;  %2556 = vrot.lane.b32.xlu1 %v5745_v59, %s7058_s2 }
 0x7a1   :  { %v2916_v22 = vpop.permute.xlu0 %2915  ;;  %v2791_v6 = vpop.permute.xlu1 %2790 }
 0x7a2   :  { %v2920_v25 = vsel %vm7059_vm14, %v2914_v41, %v2916_v22  ;;  %v2798_v50 = vsel %vm7060_vm11, %v2791_v6, %v6121_v7  ;;  %vm7065_vm14 = vcmask 408576  }
 0x7a3   :  { %2928 = vst.msk [vmem:[#allocation3 + $0x178] sm:$0xe0] %vm315_vm9, %v2920_v25  ;;  %2805 = vst [vmem:[#allocation3 + $0x140] ss:$-28 sps:$4 sm:$0xc1] %v2798_v50   ;;  %2558 = vrot.lane.b32.xlu0 %v5752_v42, %s7058_s2  ;;  %2575 = vrot.lane.b32.xlu1 %v5765_v52, %s7061_s16 }
 0x7a4   :  { %vm7066_vm11 = vmmov %vm7065_vm14 }
 0x7a5   :  { %v2797_v8 = vpop.permute.xlu0 %2796  ;;  %v2814_v44 = vpop.permute.xlu1 %2813 }
 0x7a6   :  { %v2800_v16 = vsel %vm7062_vm13, %v6128_v10, %v2797_v8  ;;  %2808 = vst.msk [vmem:[#allocation3 + $0x138] sm:$0xc0] %vm7063_vm10, %v2797_v8  ;;  %v2821_v7 = vsel %vm7065_vm14, %v2814_v44, %v6130_v21  ;;  %vm7067_vm13 = vcmask 261120   ;;  %vm7068_vm10 = vcmask 252928  }
 0x7a7   :  { %2812 = vst.msk [vmem:[#allocation3 + $0x158] sm:$0x1] %vm7064_vm15, %v2797_v8  ;;  %2807 = vst [vmem:[#allocation3 + $0x150] ss:$-28 sps:$4 sm:$0xc1] %v2800_v16   ;;  %2577 = vrot.lane.b32.xlu0 %v5772_v55, %s7061_s16  ;;  %2470 = vrot.lane.b32.xlu1 %v5912_v30, %s4501_s26  ;;  %vm7069_vm15 = vcmask 244736  }
 0x7a8   :  { %2828 = vst [vmem:[#allocation3 + $0x140] sm:$0xe] %v2821_v7  ;;  %vm7070_vm14 = vcmask 236544   ;;  %v3347_v7 = vld [vmem:[#allocation3 + $0x170] sm:$0xff] }
 0x7a9   :  { %v2820_v4 = vpop.permute.xlu0 %2819  ;;  %v2835_v41 = vpop.permute.xlu1 %2834 }
 0x7aa   :  { %v2823_v10 = vsel %vm7066_vm11, %v6139_v33, %v2820_v4  ;;  %2831 = vst.msk [vmem:[#allocation3 + $0x158] sm:$0xe] %vm212_vm8, %v2820_v4  ;;  %v2844_v13 = vsel %vm7067_vm13, %v2835_v41, %v6141_v35  ;;  %v3348_v35 = vld [vmem:[#allocation3 + $0x178] sm:$0xff]  ;;  %vm7071_vm11 = vcmask 457728   ;;  %vm7072_vm13 = vcmask 449536  }
 0x7ab   :  { %2830 = vst [vmem:[#allocation3 + $0x150] sm:$0xe] %v2823_v10  ;;  %2852 = vst [vmem:[#allocation3 + $0x140] sm:$0x70] %v2844_v13  ;;  %2476 = vrot.lane.b32.xlu0 %v5817_v54, %s4501_s26  ;;  %2493 = vrot.lane.b32.xlu1 %v5915_v62, %s6970_s25 }
 0x7ad   :  { %v2858_v21 = vpop.permute.xlu0 %2857  ;;  %v2885_v14 = vpop.permute.xlu1 %2884 }
 0x7ae   :  { %v2867_v22 = vsel %vm7068_vm10, %v2858_v21, %v6157_v29  ;;  %v2894_v33 = vsel %vm7069_vm15, %v2885_v14, %v2887_v11  ;;  %vm7073_vm10 = vcmask 441344   ;;  %vm7075_vm15 = vcmask 433152  }
 0x7af   :  { %2875 = vst [vmem:[#allocation3 + $0x160] ss:$-28 sps:$4 sm:$0x83] %v2867_v22   ;;  %2902 = vst [vmem:[#allocation3 + $0x160] sm:$0x1c] %v2894_v33  ;;  %2499 = vrot.lane.b32.xlu0 %v5883_v60, %s6970_s25  ;;  %2512 = vrot.lane.b32.xlu1 %v5923_v1, %s6969_s21 }
 0x7b1   :  { %v2908_v6 = vpop.permute.xlu0 %2907  ;;  %v2694_v25 = vpop.permute.xlu1 %2693  ;;  %v3344_v50 = vld [vmem:[#allocation3 + $0x158] sm:$0xff] }
 0x7b2   :  { %v2917_v8 = vsel %vm7070_vm14, %v2908_v6, %v2910_v27  ;;  %v3400_v44 = vpack.c.bf16 %v3348_v35, %v3344_v50  ;;  %v3343_v16 = vld [vmem:[#allocation3 + $0x150] sm:$0xff]  ;;  %vm7077_vm14 = vcmask 424960  }
 0x7b3   :  { %2925 = vst [vmem:[#allocation3 + $0x160] sm:$0xe0] %v2917_v8  ;;  %2518 = vrot.lane.b32.xlu0 %v5425_v58, %s6969_s21  ;;  %2531 = vrot.lane.b32.xlu1 %v5820_v37, %s6966_s22  ;;  %v3399_v29 = vpack.c.bf16 %v3347_v7, %v3343_v16 }
 0x7b4   :  { %3474 = vmatprep.subr.bf16.mxu0 %v3400_v44 }
 0x7b5   :  { %v2696_v11 = vpop.permute.xlu0 %2695  ;;  %3475 = vmatpush1.bf16.msra.mxu0 %v3399_v29  ;;  %v2717_v4 = vpop.permute.xlu1 %2716 }
 0x7b6   :  { %v2700_v41 = vsel %vm7071_vm11, %v2694_v25, %v2696_v11 }
 0x7b7   :  { %2707 = vst [vmem:[#allocation3 + $0x108] ss:$-28 sps:$4 sm:$0x83] %v2700_v41   ;;  %2537 = vrot.lane.b32.xlu0 %v5733_v2, %s6966_s22  ;;  %2554 = vrot.lane.b32.xlu1 %v5827_v9, %s7058_s2  ;;  %s7179_s22 = smov 118  }
 0x7b9   :  { %v2719_v27 = vpop.permute.xlu0 %2718  ;;  %v2736_v10 = vpop.permute.xlu1 %2735 }
 0x7ba   :  { %v2723_v13 = vsel %vm7072_vm13, %v2717_v4, %v2719_v27  ;;  %vm7079_vm13 = vmmov %vm7071_vm11 }
 0x7bb   :  { %2730 = vst [vmem:[#allocation3 + $0x108] sm:$0x1c] %v2723_v13  ;;  %2560 = vrot.lane.b32.xlu0 %v5755_v5, %s7058_s2  ;;  %2573 = vrot.lane.b32.xlu1 %v5830_v57, %s7061_s16  ;;  %s7177_s2 = smov 116  }
 0x7bd   :  { %v2738_v21 = vpop.permute.xlu0 %2737  ;;  %v2755_v14 = vpop.permute.xlu1 %2754 }
 0x7be   :  { %v2742_v22 = vsel %vm7073_vm10, %v2736_v10, %v2738_v21  ;;  %vm7080_vm10 = vcmask 449536  }
 0x7bf   :  { %2749 = vst [vmem:[#allocation3 + $0x108] sm:$0xe0] %v2742_v22  ;;  %2579 = vrot.lane.b32.xlu0 %v5775_v23, %s7061_s16  ;;  %2365 = vrot.lane.b32.xlu1 %v5721_v20, %s7074_s0  ;;  %s7178_s16 = smov 117  }
 0x7c1   :  { %v2757_v33 = vpop.permute.xlu0 %2756  ;;  %v2774_v35 = vpop.permute.xlu1 %2773 }
 0x7c2   :  { %v2761_v6 = vsel %vm7075_vm15, %v2755_v14, %v2757_v33  ;;  %vm7082_vm15 = vmmov %vm7080_vm10 }
 0x7c3   :  { %2768 = vst [vmem:[#allocation3 + $0x128] sm:$0x7] %v2761_v6  ;;  %2367 = vrot.lane.b32.xlu0 %v5730_v45, %s7074_s0  ;;  %2392 = vrot.lane.b32.xlu1 %v5745_v59, %s7076_s1 }
 0x7c5   :  { %v2776_v50 = vpop.permute.xlu0 %2775  ;;  %v2692_v8 = vpop.permute.xlu1 %2691 }
 0x7c6   :  { %v2780_v44 = vsel %vm7077_vm14, %v2774_v35, %v2776_v50  ;;  %v2699_v16 = vsel %vm7071_vm11, %v2692_v8, %v2694_v25  ;;  %vm7083_vm14 = vcmask 441344  }
 0x7c7   :  { %2787 = vst [vmem:[#allocation3 + $0x128] sm:$0x38] %v2780_v44  ;;  %2706 = vst [vmem:[#allocation3 + $0x100] ss:$-28 sps:$4 sm:$0x83] %v2699_v16   ;;  %2394 = vrot.lane.b32.xlu0 %v5752_v42, %s7076_s1  ;;  %2415 = vrot.lane.b32.xlu1 %v5765_v52, %s7078_s28 }
 0x7c8   :  { %vm7085_vm11 = vmmov %vm7083_vm14 }
 0x7c9   :  { %v2698_v7 = vpop.permute.xlu0 %2697  ;;  %v2715_v29 = vpop.permute.xlu1 %2714 }
 0x7ca   :  { %v2701_v41 = vsel %vm7079_vm13, %v2696_v11, %v2698_v7  ;;  %2709 = vst.msk [vmem:[#allocation3 + $0xf8] sm:$0x80] %vm260_vm5, %v2698_v7  ;;  %v2722_v13 = vsel %vm7080_vm10, %v2715_v29, %v2717_v4  ;;  %vm7086_vm13 = vcmask 433152   ;;  %vm7087_vm10 = vcmask 1041408   ;;  %v103_v29 = vld [vmem:[%s6821_s7 + $0x10] sm:$0xff] }
 0x7cb   :  { %2713 = vst.msk [vmem:[#allocation3 + $0x118] sm:$0x3] %vm265_vm6, %v2698_v7  ;;  %2708 = vst [vmem:[#allocation3 + $0x110] ss:$-28 sps:$4 sm:$0x83] %v2701_v41   ;;  %2417 = vrot.lane.b32.xlu0 %v5772_v55, %s7078_s28  ;;  %2434 = vrot.lane.b32.xlu1 %v5414_v31, %s7081_s5 }
 0x7cc   :  { %2729 = vst [vmem:[#allocation3 + $0x100] sm:$0x1c] %v2722_v13 }
 0x7cd   :  { %v2721_v25 = vpop.permute.xlu0 %2720  ;;  %v2734_v22 = vpop.permute.xlu1 %2733 }
 0x7ce   :  { %v2724_v6 = vsel %vm7082_vm15, %v2719_v27, %v2721_v25  ;;  %2732 = vst.msk [vmem:[#allocation3 + $0x118] sm:$0x1c] %vm290_vm7, %v2721_v25  ;;  %v2741_v11 = vsel %vm7083_vm14, %v2734_v22, %v2736_v10  ;;  %vm7088_vm15 = vmmov %vm7087_vm10 }
 0x7cf   :  { %2731 = vst [vmem:[#allocation3 + $0x110] sm:$0x1c] %v2724_v6  ;;  %2748 = vst [vmem:[#allocation3 + $0x100] sm:$0xe0] %v2741_v11  ;;  %2436 = vrot.lane.b32.xlu0 %v5425_v58, %s7081_s5  ;;  %2453 = vrot.lane.b32.xlu1 %v5793_v53, %s7084_s27 }
 0x7d0   :  { %vm7089_vm14 = vmmov %vm7086_vm13 }
 0x7d1   :  { %v2740_v4 = vpop.permute.xlu0 %2739  ;;  %v2753_v8 = vpop.permute.xlu1 %2752 }
 0x7d2   :  { %v2743_v44 = vsel %vm7085_vm11, %v2738_v21, %v2740_v4  ;;  %2751 = vst.msk [vmem:[#allocation3 + $0x118] sm:$0xe0] %vm315_vm9, %v2740_v4  ;;  %v2760_v27 = vsel %vm7086_vm13, %v2753_v8, %v2755_v14  ;;  %v4251_v16 = vpop.f32.mrf.mxu1  ;;  %v102_v21 = vld [vmem:[%s6821_s7 + $0x8] sm:$0xff]  ;;  %vm7090_vm11 = vcmask 424960  }
 0x7d3   :  { %2750 = vst [vmem:[#allocation3 + $0x110] sm:$0xe0] %v2743_v44  ;;  %2767 = vst [vmem:[#allocation3 + $0x120] sm:$0x7] %v2760_v27  ;;  %2455 = vrot.lane.b32.xlu0 %v5800_v24, %s7084_s27  ;;  %4252 = vmatprep.subr.msk.mxu1 %vm7087_vm10, %v4251_v16  ;;  %vm7092_vm10 = vcmask 637952  }
 0x7d4   :  { %2363 = vrot.lane.b32.xlu1 %v5820_v37, %s7074_s0  ;;  %v2056_v10 = vpop.f32.mrf.mxu1  ;;  %4253 = vmatpush3.msk.msra.mxu1 %vm7088_vm15, %v4251_v16  ;;  %vm7091_vm13 = vmmov %vm7090_vm11  ;;  %vm7093_vm15 = vcmask 629760  }
 0x7d5   :  { %v2759_v7 = vpop.permute.xlu0 %2758  ;;  %4254 = vmatprep.subr.mxu1 %v2056_v10  ;;  %v2772_v14 = vpop.permute.xlu1 %2771 }
 0x7d6   :  { %v2762_v41 = vsel %vm7089_vm14, %v2757_v33, %v2759_v7  ;;  %2770 = vst.msk [vmem:[#allocation3 + $0x138] sm:$0x7] %vm132_vm2, %v2759_v7  ;;  %v2779_v37 = vsel %vm7090_vm11, %v2772_v14, %v2774_v35  ;;  %4255 = vmatpush3.msra.mxu1 %v2056_v10  ;;  %v104_v33 = vld [vmem:[%s6821_s7 + $0x18] sm:$0xff]  ;;  %vm7094_vm14 = vcmask 621568   ;;  %vm7095_vm11 = vcmask 613376  }
 0x7d7   :  { %2769 = vst [vmem:[#allocation3 + $0x130] sm:$0x7] %v2762_v41  ;;  %2786 = vst [vmem:[#allocation3 + $0x120] sm:$0x38] %v2779_v37  ;;  %2369 = vrot.lane.b32.xlu0 %v5733_v2, %s7074_s0  ;;  %4257 = vmatmul.mubr.msk.f32.vlgmr.msra.gmra.mxu1 %vm6967_vm1, %v102_v21  ;;  %s7111_s0 = smov 111  }
 0x7d8   :  { %2390 = vrot.lane.b32.xlu1 %v5827_v9, %s7076_s1  ;;  %4259 = vmatprep.mubr.msk.f32.mxu1 %vm6967_vm1, %v103_v29 }
 0x7d9   :  { %v2778_v13 = vpop.permute.xlu0 %2777  ;;  %v2595_v25 = vpop.permute.xlu1 %2594  ;;  %4262 = vmatprep.subr.mxu1 %v4473_v0 }
 0x7da   :  { %v2781_v35 = vsel %vm7091_vm13, %v2776_v50, %v2778_v13  ;;  %2789 = vst.msk [vmem:[#allocation3 + $0x138] sm:$0x38] %vm157_vm12, %v2778_v13  ;;  %v3336_v50 = vld [vmem:[#allocation3 + $0x118] sm:$0xff]  ;;  %v3335_v16 = vld [vmem:[#allocation3 + $0x110] sm:$0xff]  ;;  %vm7096_vm13 = vcmask 605184  }
 0x7db   :  { %2788 = vst [vmem:[#allocation3 + $0x130] sm:$0x38] %v2781_v35  ;;  %2396 = vrot.lane.b32.xlu0 %v5755_v5, %s7076_s1  ;;  %4260 = vmatmul.mubr.msk.f32.gmra.mxu1 %vm6967_vm1, %v104_v33  ;;  %vm7119_vm1 = vcmask 818176  }
 0x7dc   :  { %2413 = vrot.lane.b32.xlu1 %v5830_v57, %s7078_s28 }
 0x7dd   :  { %v2597_v9 = vpop.permute.xlu0 %2596  ;;  %v2614_v22 = vpop.permute.xlu1 %2613 }
 0x7de   :  { %v2601_v6 = vsel %vm7092_vm10, %v2595_v25, %v2597_v9 }
 0x7df   :  { %2608 = vst [vmem:[#allocation3 + $0xc8] sm:$0x7] %v2601_v6  ;;  %2419 = vrot.lane.b32.xlu0 %v5775_v23, %s7078_s28 }
 0x7e0   :  { %2432 = vrot.lane.b32.xlu1 %v5409_v49, %s7081_s5 }
 0x7e1   :  { %v2616_v11 = vpop.permute.xlu0 %2615  ;;  %v2633_v4 = vpop.permute.xlu1 %2632  ;;  %v3340_v8 = vld [vmem:[#allocation3 + $0x138] sm:$0xff] }
 0x7e2   :  { %v2620_v44 = vsel %vm7093_vm15, %v2614_v22, %v2616_v11  ;;  %v3396_v27 = vpack.c.bf16 %v3340_v8, %v3336_v50  ;;  %v3339_v57 = vld [vmem:[#allocation3 + $0x130] sm:$0xff]  ;;  %vm7097_vm15 = vmmov %vm7092_vm10 }
 0x7e3   :  { %2627 = vst [vmem:[#allocation3 + $0xc8] sm:$0x38] %v2620_v44  ;;  %2438 = vrot.lane.b32.xlu0 %v5432_v28, %s7081_s5  ;;  %v3395_v10 = vpack.c.bf16 %v3339_v57, %v3335_v16 }
 0x7e4   :  { %2451 = vrot.lane.b32.xlu1 %v5837_v39, %s7084_s27  ;;  %3476 = vmatprep.subr.bf16.mxu0 %v3396_v27 }
 0x7e5   :  { %v2635_v21 = vpop.permute.xlu0 %2634  ;;  %3477 = vmatpush1.bf16.msra.mxu0 %v3395_v10  ;;  %v2656_v7 = vpop.permute.xlu1 %2655 }
 0x7e6   :  { %v2639_v14 = vsel %vm7094_vm14, %v2633_v4, %v2635_v21  ;;  %vm7098_vm14 = vcmask 629760  }
 0x7e7   :  { %2646 = vst [vmem:[#allocation3 + $0xe8] ss:$-28 sps:$4 sm:$0xc1] %v2639_v14   ;;  %2457 = vrot.lane.b32.xlu0 %v5803_v32, %s7084_s27 }
 0x7e8   :  { %2271 = vrot.lane.b32.xlu1 %v5793_v53, %s4512_s19 }
 0x7e9   :  { %v2658_v29 = vpop.permute.xlu0 %2657  ;;  %v2675_v41 = vpop.permute.xlu1 %2674 }
 0x7ea   :  { %v2662_v37 = vsel %vm7095_vm11, %v2656_v7, %v2658_v29  ;;  %vm7099_vm11 = vmmov %vm7098_vm14 }
 0x7eb   :  { %2669 = vst [vmem:[#allocation3 + $0xe8] sm:$0xe] %v2662_v37  ;;  %2273 = vrot.lane.b32.xlu0 %v5800_v24, %s4512_s19 }
 0x7ec   :  { %2294 = vrot.lane.b32.xlu1 %v5844_v48, %s4513_s20 }
 0x7ed   :  { %v2677_v33 = vpop.permute.xlu0 %2676  ;;  %v2593_v13 = vpop.permute.xlu1 %2592 }
 0x7ee   :  { %v2681_v35 = vsel %vm7096_vm13, %v2675_v41, %v2677_v33  ;;  %v2600_v6 = vsel %vm7092_vm10, %v2593_v13, %v2595_v25  ;;  %vm7100_vm13 = vcmask 621568  }
 0x7ef   :  { %2688 = vst [vmem:[#allocation3 + $0xe8] sm:$0x70] %v2681_v35  ;;  %2607 = vst [vmem:[#allocation3 + $0xc0] sm:$0x7] %v2600_v6  ;;  %2296 = vrot.lane.b32.xlu0 %v5811_v36, %s4513_s20 }
 0x7f0   :  { %2321 = vrot.lane.b32.xlu1 %v5873_v17, %s4514_s18  ;;  %vm7101_vm10 = vmmov %vm7100_vm13 }
 0x7f1   :  { %v2599_v53 = vpop.permute.xlu0 %2598  ;;  %v2612_v50 = vpop.permute.xlu1 %2611 }
 0x7f2   :  { %v2602_v24 = vsel %vm7097_vm15, %v2597_v9, %v2599_v53  ;;  %2610 = vst.msk [vmem:[#allocation3 + $0xd8] sm:$0x7] %vm132_vm2, %v2599_v53  ;;  %v2619_v48 = vsel %vm7098_vm14, %v2612_v50, %v2614_v22  ;;  %vm7102_vm15 = vcmask 392198   ;;  %vm7103_vm14 = vcmask 385024  }
 0x7f3   :  { %2609 = vst [vmem:[#allocation3 + $0xd0] sm:$0x7] %v2602_v24  ;;  %2626 = vst [vmem:[#allocation3 + $0xc0] sm:$0x38] %v2619_v48  ;;  %2323 = vrot.lane.b32.xlu0 %v5876_v61, %s4514_s18  ;;  %v4436_v24 = vld [vmem:[#allocation2 + $0x10] sm:$0x7] }
 0x7f4   :  { %2342 = vrot.lane.b32.xlu1 %v5409_v49, %s4515_s23 }
 0x7f5   :  { %v2618_v36 = vpop.permute.xlu0 %2617  ;;  %v2631_v25 = vpop.permute.xlu1 %2630 }
 0x7f6   :  { %v2621_v8 = vsel %vm7099_vm11, %v2616_v11, %v2618_v36  ;;  %2629 = vst.msk [vmem:[#allocation3 + $0xd8] sm:$0x38] %vm157_vm12, %v2618_v36  ;;  %v2638_v9 = vsel %vm7100_vm13, %v2631_v25, %v2633_v4  ;;  %vm7104_vm11 = vcmask 613376  }
 0x7f7   :  { %2628 = vst [vmem:[#allocation3 + $0xd0] sm:$0x38] %v2621_v8  ;;  %2645 = vst [vmem:[#allocation3 + $0xe0] ss:$-28 sps:$4 sm:$0xc1] %v2638_v9   ;;  %2344 = vrot.lane.b32.xlu0 %v5893_v63, %s4515_s23 }
 0x7f8   :  { %2269 = vrot.lane.b32.xlu1 %v5837_v39, %s4512_s19  ;;  %vm7105_vm13 = vmmov %vm7104_vm11 }
 0x7f9   :  { %v2637_v22 = vpop.permute.xlu0 %2636  ;;  %v2654_v44 = vpop.permute.xlu1 %2653 }
 0x7fa   :  { %v2640_v27 = vsel %vm7101_vm10, %v2635_v21, %v2637_v22  ;;  %2648 = vst.msk [vmem:[#allocation3 + $0xd8] sm:$0xc0] %vm7102_vm15, %v2637_v22  ;;  %v2661_v11 = vsel %vm7104_vm11, %v2654_v44, %v2656_v7  ;;  %vm7106_vm10 = vcmask 605184   ;;  %vm7109_vm11 = vcmask 818176  }
 0x7fb   :  { %2652 = vst.msk [vmem:[#allocation3 + $0xf8] sm:$0x1] %vm7103_vm14, %v2637_v22  ;;  %2647 = vst [vmem:[#allocation3 + $0xf0] ss:$-28 sps:$4 sm:$0xc1] %v2640_v27   ;;  %2275 = vrot.lane.b32.xlu0 %v5803_v32, %s4512_s19  ;;  %vm7108_vm14 = vcmask 826368  }
 0x7fc   :  { %2668 = vst [vmem:[#allocation3 + $0xe0] sm:$0xe] %v2661_v11  ;;  %2292 = vrot.lane.b32.xlu1 %v5912_v30, %s4513_s20  ;;  %vm7107_vm15 = vmmov %vm7106_vm10 }
 0x7fd   :  { %v2660_v4 = vpop.permute.xlu0 %2659  ;;  %v2673_v39 = vpop.permute.xlu1 %2672 }
 0x7fe   :  { %v2663_v16 = vsel %vm7105_vm13, %v2658_v29, %v2660_v4  ;;  %2671 = vst.msk [vmem:[#allocation3 + $0xf8] sm:$0xe] %vm212_vm8, %v2660_v4  ;;  %v2680_v57 = vsel %vm7106_vm10, %v2673_v39, %v2675_v41  ;;  %vm7110_vm13 = vcmask 809984   ;;  %vm7112_vm10 = vcmask 801792  }
 0x7ff   :  { %2670 = vst [vmem:[#allocation3 + $0xf0] sm:$0xe] %v2663_v16  ;;  %2687 = vst [vmem:[#allocation3 + $0xe0] sm:$0x70] %v2680_v57  ;;  %2298 = vrot.lane.b32.xlu0 %v5817_v54, %s4513_s20 }
 0x800   :  { %2319 = vrot.lane.b32.xlu1 %v5915_v62, %s4514_s18 }
 0x801   :  { %v2679_v32 = vpop.permute.xlu0 %2678  ;;  %v2473_v10 = vpop.permute.xlu1 %2472  ;;  %v3328_v62 = vld [vmem:[#allocation3 + $0xd8] sm:$0xff] }
 0x802   :  { %v2682_v30 = vsel %vm7107_vm15, %v2677_v33, %v2679_v32  ;;  %2690 = vst.msk [vmem:[#allocation3 + $0xf8] sm:$0x70] %vm235_vm3, %v2679_v32  ;;  %v3327_v13 = vld [vmem:[#allocation3 + $0xd0] sm:$0xff]  ;;  %vm7113_vm15 = vcmask 654336  }
 0x803   :  { %2689 = vst [vmem:[#allocation3 + $0xf0] sm:$0x70] %v2682_v30  ;;  %2325 = vrot.lane.b32.xlu0 %v5883_v60, %s4514_s18 }
 0x804   :  { %2340 = vrot.lane.b32.xlu1 %v5923_v1, %s4515_s23 }
 0x805   :  { %v2475_v21 = vpop.permute.xlu0 %2474  ;;  %v2496_v7 = vpop.permute.xlu1 %2495 }
 0x806   :  { %v2479_v54 = vsel %vm7108_vm14, %v2473_v10, %v2475_v21  ;;  %vm7114_vm14 = vcmask 646144  }
 0x807   :  { %2486 = vst [vmem:[#allocation3 + $0x88] ss:$-28 sps:$4 sm:$0xc1] %v2479_v54   ;;  %2346 = vrot.lane.b32.xlu0 %v5425_v58, %s4515_s23 }
 0x808   :  { %3284 = vrot.lane.b32.xlu1 %v5425_v58, %s4516_s17 }
 0x809   :  { %v2498_v14 = vpop.permute.xlu0 %2497  ;;  %v2515_v29 = vpop.permute.xlu1 %2514  ;;  %v3332_v41 = vld [vmem:[#allocation3 + $0xf8] sm:$0xff] }
 0x80a   :  { %v2502_v37 = vsel %vm7109_vm11, %v2496_v7, %v2498_v14  ;;  %v3392_v33 = vpack.c.bf16 %v3332_v41, %v3328_v62  ;;  %v3331_v1 = vld [vmem:[#allocation3 + $0xf0] sm:$0xff]  ;;  %vm7115_vm11 = vcmask 826368  }
 0x80b   :  { %2509 = vst [vmem:[#allocation3 + $0x88] sm:$0xe] %v2502_v37  ;;  %3286 = vrot.lane.b32.xlu0 %v5432_v28, %s4516_s17  ;;  %v3391_v35 = vpack.c.bf16 %v3331_v1, %v3327_v13 }
 0x80c   :  { %3282 = vrot.lane.b32.xlu1 %v5414_v31, %s4516_s17  ;;  %3478 = vmatprep.subr.bf16.mxu0 %v3392_v33 }
 0x80d   :  { %v2517_v6 = vpop.permute.xlu0 %2516  ;;  %3479 = vmatpush1.bf16.msra.mxu0 %v3391_v35  ;;  %v2534_v53 = vpop.permute.xlu1 %2533 }
 0x80e   :  { %v2521_v50 = vsel %vm7110_vm13, %v2515_v29, %v2517_v6  ;;  %vm7116_vm13 = vmmov %vm7115_vm11 }
 0x80f   :  { %2528 = vst [vmem:[#allocation3 + $0x88] sm:$0x70] %v2521_v50  ;;  %3288 = vrot.lane.b32.xlu0 %v4436_v24, %s4516_s17 }
 0x810   :  { %3185 = vrot.lane.b32.xlu1 %v5876_v61, %s7111_s0 }
 0x811   :  { %v2536_v48 = vpop.permute.xlu0 %2535  ;;  %v2557_v36 = vpop.permute.xlu1 %2556 }
 0x812   :  { %v2540_v28 = vsel %vm7112_vm10, %v2534_v53, %v2536_v48  ;;  %vm7117_vm10 = vcmask 392198  }
 0x813   :  { %2547 = vst [vmem:[#allocation3 + $0xa8] ss:$-28 sps:$4 sm:$0x83] %v2540_v28   ;;  %3187 = vrot.lane.b32.xlu0 %v5883_v60, %s7111_s0 }
 0x814   :  { %3204 = vrot.lane.b32.xlu1 %v5893_v63, %s4518_s15 }
 0x815   :  { %v2559_v31 = vpop.permute.xlu0 %2558  ;;  %v2576_v25 = vpop.permute.xlu1 %2575 }
 0x816   :  { %v2563_v8 = vsel %vm7113_vm15, %v2557_v36, %v2559_v31  ;;  %vm7118_vm15 = vcmask 385024  }
 0x817   :  { %2570 = vst [vmem:[#allocation3 + $0xa8] sm:$0x1c] %v2563_v8  ;;  %3206 = vrot.lane.b32.xlu0 %v5425_v58, %s4518_s15 }
 0x818   :  { %3223 = vrot.lane.b32.xlu1 %v5730_v45, %s4519_s14 }
 0x819   :  { %v2578_v61 = vpop.permute.xlu0 %2577  ;;  %v2471_v9 = vpop.permute.xlu1 %2470 }
 0x81a   :  { %v2582_v22 = vsel %vm7114_vm14, %v2576_v25, %v2578_v61  ;;  %v2478_v60 = vsel %vm7115_vm11, %v2471_v9, %v2473_v10  ;;  %vm7120_vm14 = vmmov %vm7119_vm1  ;;  %vm7121_vm11 = vcmask 809984  }
 0x81b   :  { %2589 = vst [vmem:[#allocation3 + $0xa8] sm:$0xe0] %v2582_v22  ;;  %2485 = vst [vmem:[#allocation3 + $0x80] ss:$-28 sps:$4 sm:$0xc1] %v2478_v60   ;;  %3225 = vrot.lane.b32.xlu0 %v5733_v2, %s4519_s14 }
 0x81c   :  { %3246 = vrot.lane.b32.xlu1 %v5752_v42, %s4520_s13 }
 0x81d   :  { %v2477_v63 = vpop.permute.xlu0 %2476  ;;  %v2494_v44 = vpop.permute.xlu1 %2493 }
 0x81e   :  { %v2480_v58 = vsel %vm7116_vm13, %v2475_v21, %v2477_v63  ;;  %2488 = vst.msk [vmem:[#allocation3 + $0x78] sm:$0xc0] %vm7117_vm10, %v2477_v63  ;;  %v2501_v45 = vsel %vm7119_vm1, %v2494_v44, %v2496_v7  ;;  %vm7122_vm1 = vmmov %vm7121_vm11  ;;  %vm7123_vm13 = vcmask 801792   ;;  %vm6968_vm10 = vmmov 0  }
 0x81f   :  { %2492 = vst.msk [vmem:[#allocation3 + $0x98] sm:$0x1] %vm7118_vm15, %v2477_v63  ;;  %2487 = vst [vmem:[#allocation3 + $0x90] ss:$-28 sps:$4 sm:$0xc1] %v2480_v58   ;;  %3248 = vrot.lane.b32.xlu0 %v5755_v5, %s4520_s13  ;;  %4270 = vmatprep.mubr.msk.f32.mxu1 %vm6968_vm10, %v4473_v0 }
 0x820   :  { %2508 = vst [vmem:[#allocation3 + $0x80] sm:$0xe] %v2501_v45  ;;  %3265 = vrot.lane.b32.xlu1 %v5772_v55, %s4521_s12  ;;  %vm7124_vm15 = vmmov %vm7123_vm13 }
 0x821   :  { %v2500_v2 = vpop.permute.xlu0 %2499  ;;  %v2513_v42 = vpop.permute.xlu1 %2512 }
 0x822   :  { %v2503_v27 = vsel %vm7120_vm14, %v2498_v14, %v2500_v2  ;;  %2511 = vst.msk [vmem:[#allocation3 + $0x98] sm:$0xe] %vm212_vm8, %v2500_v2  ;;  %v2520_v11 = vsel %vm7121_vm11, %v2513_v42, %v2515_v29  ;;  %vm7125_vm14 = vcmask 654336  }
 0x823   :  { %2510 = vst [vmem:[#allocation3 + $0x90] sm:$0xe] %v2503_v27  ;;  %2527 = vst [vmem:[#allocation3 + $0x80] sm:$0x70] %v2520_v11  ;;  %3267 = vrot.lane.b32.xlu0 %v5775_v23, %s4521_s12 }
 0x824   :  { %3183 = vrot.lane.b32.xlu1 %v5873_v17, %s7111_s0  ;;  %vm7126_vm11 = vmmov %vm7125_vm14 }
 0x825   :  { %v2519_v5 = vpop.permute.xlu0 %2518  ;;  %v2532_v4 = vpop.permute.xlu1 %2531 }
 0x826   :  { %v2522_v55 = vsel %vm7122_vm1, %v2517_v6, %v2519_v5  ;;  %2530 = vst.msk [vmem:[#allocation3 + $0x98] sm:$0x70] %vm235_vm3, %v2519_v5  ;;  %v2539_v39 = vsel %vm7123_vm13, %v2532_v4, %v2534_v53  ;;  %vm7127_vm1 = vcmask 646144  }
 0x827   :  { %2529 = vst [vmem:[#allocation3 + $0x90] sm:$0x70] %v2522_v55  ;;  %2546 = vst [vmem:[#allocation3 + $0xa0] ss:$-28 sps:$4 sm:$0x83] %v2539_v39   ;;  %3189 = vrot.lane.b32.xlu0 %v3001_v18, %s7111_s0 }
 0x828   :  { %3202 = vrot.lane.b32.xlu1 %v5409_v49, %s4518_s15  ;;  %vm7128_vm13 = vmmov %vm7127_vm1 }
 0x829   :  { %v2538_v23 = vpop.permute.xlu0 %2537  ;;  %v2555_v17 = vpop.permute.xlu1 %2554 }
 0x82a   :  { %v2541_v16 = vsel %vm7124_vm15, %v2536_v48, %v2538_v23  ;;  %2549 = vst.msk [vmem:[#allocation3 + $0x98] sm:$0x80] %vm260_vm5, %v2538_v23  ;;  %v2562_v57 = vsel %vm7125_vm14, %v2555_v17, %v2557_v36  ;;  %vm7129_vm15 = vcmask 1006592   ;;  %vm7130_vm14 = vcmask 998400  }
 0x82b   :  { %2553 = vst.msk [vmem:[#allocation3 + $0xb8] sm:$0x3] %vm265_vm6, %v2538_v23  ;;  %2548 = vst [vmem:[#allocation3 + $0xb0] ss:$-28 sps:$4 sm:$0x83] %v2541_v16   ;;  %3208 = vrot.lane.b32.xlu0 %v5901_v19, %s4518_s15 }
 0x82c   :  { %2569 = vst [vmem:[#allocation3 + $0xa0] sm:$0x1c] %v2562_v57  ;;  %3221 = vrot.lane.b32.xlu1 %v5721_v20, %s4519_s14 }
 0x82d   :  { %v2561_v46 = vpop.permute.xlu0 %2560  ;;  %v2574_v49 = vpop.permute.xlu1 %2573 }
 0x82e   :  { %v2564_v18 = vsel %vm7126_vm11, %v2559_v31, %v2561_v46  ;;  %2572 = vst.msk [vmem:[#allocation3 + $0xb8] sm:$0x1c] %vm290_vm7, %v2561_v46  ;;  %v2581_v32 = vsel %vm7127_vm1, %v2574_v49, %v2576_v25  ;;  %vm7131_vm11 = vcmask 842752   ;;  %vm7132_vm1 = vcmask 834560  }
 0x82f   :  { %2571 = vst [vmem:[#allocation3 + $0xb0] sm:$0x1c] %v2564_v18  ;;  %2588 = vst [vmem:[#allocation3 + $0xa0] sm:$0xe0] %v2581_v32  ;;  %3227 = vrot.lane.b32.xlu0 %v5742_v56, %s4519_s14 }
 0x830   :  { %3244 = vrot.lane.b32.xlu1 %v5745_v59, %s4520_s13 }
 0x831   :  { %v2580_v19 = vpop.permute.xlu0 %2579  ;;  %v2366_v10 = vpop.permute.xlu1 %2365  ;;  %v3320_v59 = vld [vmem:[#allocation3 + $0x98] sm:$0xff] }
 0x832   :  { %v2583_v20 = vsel %vm7128_vm13, %v2578_v61, %v2580_v19  ;;  %2591 = vst.msk [vmem:[#allocation3 + $0xb8] sm:$0xe0] %vm315_vm9, %v2580_v19  ;;  %v3319_v41 = vld [vmem:[#allocation3 + $0x90] sm:$0xff]  ;;  %vm7133_vm13 = vmmov %vm7129_vm15 }
 0x833   :  { %2590 = vst [vmem:[#allocation3 + $0xb0] sm:$0xe0] %v2583_v20  ;;  %3250 = vrot.lane.b32.xlu0 %v5762_v51, %s4520_s13 }
 0x834   :  { %3263 = vrot.lane.b32.xlu1 %v5765_v52, %s4521_s12 }
 0x835   :  { %v2368_v30 = vpop.permute.xlu0 %2367  ;;  %v2393_v21 = vpop.permute.xlu1 %2392 }
 0x836   :  { %v2372_v56 = vsel %vm7129_vm15, %v2366_v10, %v2368_v30  ;;  %vm7134_vm15 = vmmov %vm7133_vm13 }
 0x837   :  { %2379 = vst [vmem:[#allocation3 + $0x48] ss:$-28 sps:$4 sm:$0x83] %v2372_v56   ;;  %3269 = vrot.lane.b32.xlu0 %v5782_v15, %s4521_s12 }
 0x839   :  { %v2395_v7 = vpop.permute.xlu0 %2394  ;;  %v2416_v54 = vpop.permute.xlu1 %2415  ;;  %v3324_v62 = vld [vmem:[#allocation3 + $0xb8] sm:$0xff] }
 0x83a   :  { %v2399_v14 = vsel %vm7130_vm14, %v2393_v21, %v2395_v7  ;;  %v3388_v29 = vpack.c.bf16 %v3324_v62, %v3320_v59  ;;  %v3323_v51 = vld [vmem:[#allocation3 + $0xb0] sm:$0xff] }
 0x83b   :  { %2406 = vst [vmem:[#allocation3 + $0x48] sm:$0x1c] %v2399_v14  ;;  %v3387_v37 = vpack.c.bf16 %v3323_v51, %v3319_v41 }
 0x83c   :  { %3480 = vmatprep.subr.bf16.mxu0 %v3388_v29 }
 0x83d   :  { %v2418_v52 = vpop.permute.xlu0 %2417  ;;  %3481 = vmatpush1.bf16.msra.mxu0 %v3387_v37  ;;  %v2435_v33 = vpop.permute.xlu1 %2434 }
 0x83e   :  { %v2422_v13 = vsel %vm304_vm0, %v2416_v54, %v2418_v52 }
 0x83f   :  { %2429 = vst [vmem:[#allocation3 + $0x48] sm:$0xe0] %v2422_v13 }
 0x841   :  { %v2437_v1 = vpop.permute.xlu0 %2436  ;;  %v2454_v15 = vpop.permute.xlu1 %2453 }
 0x842   :  { %v2441_v35 = vsel %vm7131_vm11, %v2435_v33, %v2437_v1  ;;  %vm7135_vm11 = vmmov %vm7130_vm14 }
 0x843   :  { %2448 = vst [vmem:[#allocation3 + $0x68] sm:$0x7] %v2441_v35 }
 0x845   :  { %v2456_v6 = vpop.permute.xlu0 %2455 }
 0x846   :  { %v2460_v53 = vsel %vm7132_vm1, %v2454_v15, %v2456_v6  ;;  %v2364_v50 = vpop.permute.xlu1 %2363  ;;  %vm7136_vm1 = vcmask 842752  }
 0x847   :  { %2467 = vst [vmem:[#allocation3 + $0x68] sm:$0x38] %v2460_v53  ;;  %v2371_v24 = vsel %vm7133_vm13, %v2364_v50, %v2366_v10  ;;  %vm7137_vm13 = vmmov %vm7136_vm1 }
 0x848   :  { %2378 = vst [vmem:[#allocation3 + $0x40] ss:$-28 sps:$4 sm:$0x83] %v2371_v24  }
 0x849   :  { %v2370_v48 = vpop.permute.xlu0 %2369 }
 0x84a   :  { %v2373_v36 = vsel %vm7134_vm15, %v2368_v30, %v2370_v48  ;;  %2381 = vst.msk [vmem:[#allocation3 + $0x38] sm:$0x80] %vm260_vm5, %v2370_v48  ;;  %v2391_v28 = vpop.permute.xlu1 %2390  ;;  %vm7138_vm15 = vcmask 834560  }
 0x84b   :  { %2385 = vst.msk [vmem:[#allocation3 + $0x58] sm:$0x3] %vm265_vm6, %v2370_v48  ;;  %2380 = vst [vmem:[#allocation3 + $0x50] ss:$-28 sps:$4 sm:$0x83] %v2373_v36   ;;  %v2398_v31 = vsel %vm7130_vm14, %v2391_v28, %v2393_v21 }
 0x84c   :  { %2405 = vst [vmem:[#allocation3 + $0x40] sm:$0x1c] %v2398_v31  ;;  %vm7139_vm14 = vmmov %vm7138_vm15 }
 0x84d   :  { %v2397_v25 = vpop.permute.xlu0 %2396 }
 0x84e   :  { %v2400_v8 = vsel %vm7135_vm11, %v2395_v7, %v2397_v25  ;;  %2408 = vst.msk [vmem:[#allocation3 + $0x58] sm:$0x1c] %vm290_vm7, %v2397_v25  ;;  %v2414_v61 = vpop.permute.xlu1 %2413  ;;  %vm7140_vm11 = vcmask 1031168  }
 0x84f   :  { %2407 = vst [vmem:[#allocation3 + $0x50] sm:$0x1c] %v2400_v8  ;;  %v2421_v9 = vsel %vm304_vm0, %v2414_v61, %v2416_v54 }
 0x850   :  { %2428 = vst [vmem:[#allocation3 + $0x40] sm:$0xe0] %v2421_v9 }
 0x851   :  { %v2420_v22 = vpop.permute.xlu0 %2419 }
 0x852   :  { %v2423_v60 = vsel %vm304_vm0, %v2418_v52, %v2420_v22  ;;  %2431 = vst.msk [vmem:[#allocation3 + $0x58] sm:$0xe0] %vm315_vm9, %v2420_v22  ;;  %v2433_v63 = vpop.permute.xlu1 %2432 }
 0x853   :  { %2430 = vst [vmem:[#allocation3 + $0x50] sm:$0xe0] %v2423_v60  ;;  %v2440_v44 = vsel %vm7136_vm1, %v2433_v63, %v2435_v33  ;;  %vm7141_vm1 = vcmask 1022976  }
 0x854   :  { %2447 = vst [vmem:[#allocation3 + $0x60] sm:$0x7] %v2440_v44 }
 0x855   :  { %v2439_v58 = vpop.permute.xlu0 %2438 }
 0x856   :  { %v2442_v45 = vsel %vm7137_vm13, %v2437_v1, %v2439_v58  ;;  %2450 = vst.msk [vmem:[#allocation3 + $0x78] sm:$0x7] %vm132_vm2, %v2439_v58  ;;  %v2452_v2 = vpop.permute.xlu1 %2451  ;;  %vm7142_vm13 = vcmask 1014784  }
 0x857   :  { %2449 = vst [vmem:[#allocation3 + $0x70] sm:$0x7] %v2442_v45  ;;  %v2459_v42 = vsel %vm7138_vm15, %v2452_v2, %v2454_v15  ;;  %vm7143_vm15 = vmmov %vm7140_vm11 }
 0x858   :  { %2466 = vst [vmem:[#allocation3 + $0x60] sm:$0x38] %v2459_v42 }
 0x859   :  { %v2458_v27 = vpop.permute.xlu0 %2457  ;;  %v3312_v23 = vld [vmem:[#allocation3 + $0x58] sm:$0xff] }
 0x85a   :  { %v2461_v11 = vsel %vm7139_vm14, %v2456_v6, %v2458_v27  ;;  %2469 = vst.msk [vmem:[#allocation3 + $0x78] sm:$0x38] %vm157_vm12, %v2458_v27  ;;  %v2272_v5 = vpop.permute.xlu1 %2271  ;;  %v3311_v18 = vld [vmem:[#allocation3 + $0x50] sm:$0xff]  ;;  %vm7144_vm14 = vmmov %vm7140_vm11 }
 0x85b   :  { %2468 = vst [vmem:[#allocation3 + $0x70] sm:$0x38] %v2461_v11 }
 0x85d   :  { %v2274_v4 = vpop.permute.xlu0 %2273 }
 0x85e   :  { %v2278_v55 = vsel %vm146_vm4, %v2272_v5, %v2274_v4  ;;  %v2295_v39 = vpop.permute.xlu1 %2294 }
 0x85f   :  { %2285 = vst [vmem:[#allocation3 + $0x8] sm:$0x38] %v2278_v55 }
 0x861   :  { %v2297_v17 = vpop.permute.xlu0 %2296  ;;  %v3316_v16 = vld [vmem:[#allocation3 + $0x78] sm:$0xff] }
 0x862   :  { %v2301_v57 = vsel %vm7140_vm11, %v2295_v39, %v2297_v17  ;;  %v2322_v46 = vpop.permute.xlu1 %2321  ;;  %v3384_v49 = vpack.c.bf16 %v3316_v16, %v3312_v23  ;;  %v3315_v32 = vld [vmem:[#allocation3 + $0x70] sm:$0xff]  ;;  %vm7145_vm11 = vcmask 392198  }
 0x863   :  { %2308 = vst [vmem:[#allocation3 + $0x28] ss:$-28 sps:$4 sm:$0xc1] %v2301_v57   ;;  %v3383_v19 = vpack.c.bf16 %v3315_v32, %v3311_v18 }
 0x864   :  { %3482 = vmatprep.subr.bf16.mxu0 %v3384_v49 }
 0x865   :  { %v2324_v10 = vpop.permute.xlu0 %2323  ;;  %3483 = vmatpush1.bf16.msra.mxu0 %v3383_v19 }
 0x866   :  { %v2328_v20 = vsel %vm7141_vm1, %v2322_v46, %v2324_v10  ;;  %v2343_v30 = vpop.permute.xlu1 %2342  ;;  %vm7146_vm1 = vcmask 385024  }
 0x867   :  { %2335 = vst [vmem:[#allocation3 + $0x28] sm:$0xe] %v2328_v20 }
 0x869   :  { %v2345_v21 = vpop.permute.xlu0 %2344 }
 0x86a   :  { %v2349_v56 = vsel %vm7142_vm13, %v2343_v30, %v2345_v21  ;;  %v2270_v59 = vpop.permute.xlu1 %2269  ;;  %vm7147_vm13 = vcmask 1022976  }
 0x86b   :  { %2356 = vst [vmem:[#allocation3 + $0x28] sm:$0x70] %v2349_v56  ;;  %v2277_v7 = vsel %vm146_vm4, %v2270_v59, %v2272_v5  ;;  %vm7148_vm10 = vmmov %vm7147_vm13  ;;  %v6513_v59 = vld [vmem:[%s6822_s8 + $0x18] sm:$0xff] }
 0x86c   :  { %2284 = vst [vmem:[#allocation3] sm:$0x38] %v2277_v7 }
 0x86d   :  { %v2276_v54 = vpop.permute.xlu0 %2275 }
 0x86e   :  { %v2279_v62 = vsel %vm146_vm4, %v2274_v4, %v2276_v54  ;;  %2287 = vst.msk [vmem:[#allocation3 + $0x18] sm:$0x38] %vm157_vm12, %v2276_v54  ;;  %v2293_v14 = vpop.permute.xlu1 %2292  ;;  %vm7149_vm12 = vcmask 1014784  }
 0x86f   :  { %2286 = vst [vmem:[#allocation3 + $0x10] sm:$0x38] %v2279_v62  ;;  %v2300_v29 = vsel %vm7143_vm15, %v2293_v14, %v2295_v39  ;;  %vm7150_vm15 = vmmov %vm7149_vm12  ;;  %v6520_v62 = vld [vmem:[%s6822_s8 + $0x8] sm:$0xff] }
 0x870   :  { %2307 = vst [vmem:[#allocation3 + $0x20] ss:$-28 sps:$4 sm:$0xc1] %v2300_v29  }
 0x871   :  { %v2299_v41 = vpop.permute.xlu0 %2298 }
 0x872   :  { %v2302_v51 = vsel %vm7144_vm14, %v2297_v17, %v2299_v41  ;;  %2310 = vst.msk [vmem:[#allocation3 + $0x18] sm:$0xc0] %vm7145_vm11, %v2299_v41  ;;  %v2320_v37 = vpop.permute.xlu1 %2319  ;;  %vm7151_vm14 = vcmask 867328  }
 0x873   :  { %2314 = vst.msk [vmem:[#allocation3 + $0x38] sm:$0x1] %vm7146_vm1, %v2299_v41  ;;  %2309 = vst [vmem:[#allocation3 + $0x30] ss:$-28 sps:$4 sm:$0xc1] %v2302_v51   ;;  %v2327_v52 = vsel %vm7147_vm13, %v2320_v37, %v2322_v46  ;;  %vm7154_vm1 = vcmask 908288  }
 0x874   :  { %2334 = vst [vmem:[#allocation3 + $0x20] sm:$0xe] %v2327_v52  ;;  %vm7155_vm13 = vcmask 900096   ;;  %v6526_v41 = vld [vmem:[%s6822_s8 + $0x10] sm:$0xff]  ;;  %v6532_v37 = vld [vmem:[%s6822_s8] sm:$0xff] }
 0x875   :  { %v2326_v33 = vpop.permute.xlu0 %2325 }
 0x876   :  { %v2329_v13 = vsel %vm7148_vm10, %v2324_v10, %v2326_v33  ;;  %2337 = vst.msk [vmem:[#allocation3 + $0x38] sm:$0xe] %vm212_vm8, %v2326_v33  ;;  %v2341_v1 = vpop.permute.xlu1 %2340  ;;  %vm7152_vm10 = vmmov %vm7151_vm14 }
 0x877   :  { %2336 = vst [vmem:[#allocation3 + $0x30] sm:$0xe] %v2329_v13  ;;  %v2348_v15 = vsel %vm7149_vm12, %v2341_v1, %v2343_v30  ;;  %vm7153_vm11 = vmmov %vm7152_vm10  ;;  %vm7157_vm12 = vcmask 883712  }
 0x878   :  { %2355 = vst [vmem:[#allocation3 + $0x20] sm:$0x70] %v2348_v15 }
 0x879   :  { %v2347_v35 = vpop.permute.xlu0 %2346  ;;  %v3304_v28 = vld [vmem:[#allocation3 + $0x18] sm:$0xff] }
 0x87a   :  { %v2350_v6 = vsel %vm7150_vm15, %v2345_v21, %v2347_v35  ;;  %2358 = vst.msk [vmem:[#allocation3 + $0x38] sm:$0x70] %vm235_vm3, %v2347_v35  ;;  %v3285_v53 = vpop.permute.xlu1 %3284  ;;  %v3303_v22 = vld [vmem:[#allocation3 + $0x10] sm:$0xff]  ;;  %vm7158_vm15 = vcmask 875520  }
 0x87b   :  { %2357 = vst [vmem:[#allocation3 + $0x30] sm:$0x70] %v2350_v6 }
 0x87d   :  { %v3287_v50 = vpop.permute.xlu0 %3286 }
 0x87e   :  { %v3291_v24 = vsel %vm7151_vm14, %v3285_v53, %v3287_v50  ;;  %v3283_v48 = vpop.permute.xlu1 %3282  ;;  %vm7159_vm14 = vmmov %vm7154_vm1 }
 0x87f   :  { %3298 = vst [vmem:[#allocation3 + $0x248] sm:$0x7] %v3291_v24  ;;  %v3290_v36 = vsel %vm7152_vm10, %v3283_v48, %v3285_v53  ;;  %vm7160_vm10 = vmmov %vm7154_vm1 }
 0x880   :  { %3297 = vst [vmem:[#allocation3 + $0x240] sm:$0x7] %v3290_v36 }
 0x881   :  { %v3289_v31 = vpop.permute.xlu0 %3288  ;;  %v3308_v25 = vld [vmem:[#allocation3 + $0x38] sm:$0xff] }
 0x882   :  { %v3292_v8 = vsel %vm7153_vm11, %v3287_v50, %v3289_v31  ;;  %3300 = vst.msk [vmem:[#allocation3 + $0x258] sm:$0x7] %vm132_vm2, %v3289_v31  ;;  %v3186_v61 = vpop.permute.xlu1 %3185  ;;  %v3380_v9 = vpack.c.bf16 %v3308_v25, %v3304_v28  ;;  %v3307_v60 = vld [vmem:[#allocation3 + $0x30] sm:$0xff]  ;;  %vm7156_vm2 = vcmask 891904   ;;  %vm7161_vm11 = vmmov %vm7155_vm13  ;;  %v3362_v25 = vld [vmem:[#allocation3 + $0x1e8] sm:$0xff] }
 0x883   :  { %3299 = vst [vmem:[#allocation3 + $0x250] sm:$0x7] %v3292_v8  ;;  %v3379_v63 = vpack.c.bf16 %v3307_v60, %v3303_v22  ;;  %v6549_v22 = vld [vmem:[%s6823_s9] sm:$0x3f] }
 0x884   :  { %3484 = vmatprep.subr.bf16.mxu0 %v3380_v9  ;;  %v3358_v60 = vld [vmem:[#allocation3 + $0x1c8] sm:$0xff] }
 0x885   :  { %v3188_v44 = vpop.permute.xlu0 %3187  ;;  %3485 = vmatpush1.bf16.msra.mxu0 %v3379_v63  ;;  %v3354_v63 = vld [vmem:[#allocation3 + $0x1a8] sm:$0xff] }
 0x886   :  { %v3192_v58 = vsel %vm7154_vm1, %v3186_v61, %v3188_v44  ;;  %v3205_v45 = vpop.permute.xlu1 %3204  ;;  %vm7163_vm1 = vmmov %vm7156_vm2 }
 0x887   :  { %3199 = vst [vmem:[#allocation3 + $0x208] sm:$0xe] %v3192_v58  ;;  %v3406_v58 = vpack.c.bf16 %v3362_v25, %v3358_v60  ;;  %v4437_v25 = vld [vmem:[%s6817_s3 + $0xb8] sm:$0xff]  }
 0x888   :  { %v3302_v60 = vld [vmem:[#allocation3 + $0x8] sm:$0xff] }
 0x889   :  { %v3207_v2 = vpop.permute.xlu0 %3206  ;;  %v3376_v42 = vld [vmem:[#allocation3 + $0x258] sm:$0x7] }
 0x88a   :  { %v3211_v27 = vsel %vm7155_vm13, %v3205_v45, %v3207_v2  ;;  %v3224_v11 = vpop.permute.xlu1 %3223  ;;  %v3416_v5 = vpack.c.bf16 %v3376_v42, %v3376_v42  ;;  %v3375_v4 = vld [vmem:[#allocation3 + $0x250] sm:$0x7]  ;;  %vm7164_vm13 = vmmov %vm7163_vm1 }
 0x88b   :  { %3218 = vst [vmem:[#allocation3 + $0x208] sm:$0x70] %v3211_v27  ;;  %v3415_v55 = vpack.c.bf16 %v3375_v4, %v3375_v4 }
 0x88c   :  { %v3427_v39 = vand.u32 %v3416_v5, %v5449_v38 }
 0x88d   :  { %v3226_v23 = vpop.permute.xlu0 %3225  ;;  %v3424_v17 = vand.u32 %v3415_v55, %v5449_v38  ;;  %v3353_v55 = vld [vmem:[#allocation3 + $0x1a0] sm:$0xff] }
 0x88e   :  { %v3230_v16 = vsel %vm7156_vm2, %v3224_v11, %v3226_v23  ;;  %v3247_v57 = vpop.permute.xlu1 %3246  ;;  %3498 = vmatprep.subr.bf16.mxu0 %v3427_v39  ;;  %vm7168_vm2 = vcmask 261120   ;;  %v3346_v39 = vld [vmem:[#allocation3 + $0x168] sm:$0xff] }
 0x88f   :  { %3237 = vst [vmem:[#allocation3 + $0x228] ss:$-28 sps:$4 sm:$0x83] %v3230_v16   ;;  %3499 = vmatpush2.bf16.msra.mxu0 %v3424_v17  ;;  %v3349_v17 = vld [vmem:[#allocation3 + $0x180] sm:$0xff] }
 0x891   :  { %v6498_v46 = vpop.permute.xlu0 %3248 }
 0x892   :  { %v3253_v49 = vsel %vm7157_vm12, %v3247_v57, %v6498_v46  ;;  %v6502_v18 = vpop.permute.xlu1 %3265 }
 0x893   :  { %3260 = vst [vmem:[#allocation3 + $0x228] sm:$0x1c] %v3253_v49 }
 0x895   :  { %v6504_v32 = vpop.permute.xlu0 %3267 }
 0x896   :  { %v3272_v19 = vsel %vm7158_vm15, %v6502_v18, %v6504_v32  ;;  %v3184_v10 = vpop.permute.xlu1 %3183 }
 0x897   :  { %3279 = vst [vmem:[#allocation3 + $0x228] sm:$0xe0] %v3272_v19  ;;  %v3191_v20 = vsel %vm7159_vm14, %v3184_v10, %v3186_v61  ;;  %v4258_v30 = vpop.f32.mrf.mxu1  ;;  %v3361_v61 = vld [vmem:[#allocation3 + $0x1e0] sm:$0xff]  ;;  %v3334_v19 = vld [vmem:[#allocation3 + $0x108] sm:$0xff] }
 0x898   :  { %3198 = vst [vmem:[#allocation3 + $0x200] sm:$0xe] %v3191_v20  ;;  %v2153_v13 = vadd.f32 %v4258_v30, %v6520_v62  ;;  %v3338_v10 = vld [vmem:[#allocation3 + $0x128] sm:$0xff]  ;;  %v3341_v20 = vld [vmem:[#allocation3 + $0x140] sm:$0xff] }
 0x899   :  { %v3190_v21 = vpop.permute.xlu0 %3189  ;;  %v2147_v56 = vpop.f32.mrf.mxu1 }
 0x89a   :  { %v3193_v7 = vsel %vm7160_vm10, %v3188_v44, %v3190_v21  ;;  %3201 = vst.msk [vmem:[#allocation3 + $0x218] sm:$0xe] %vm212_vm8, %v3190_v21  ;;  %v3203_v54 = vpop.permute.xlu1 %3202  ;;  %vm7162_vm8 = vmmov %vm7161_vm11  ;;  %v2148_v50 = vadd.f32 %v2147_v56, %v6532_v37  ;;  %v2167_v36 = vmax.f32 %v2153_v13, 0.0  ;;  %v3337_v21 = vld [vmem:[#allocation3 + $0x120] sm:$0xff]  ;;  %v3326_v56 = vld [vmem:[#allocation3 + $0xc8] sm:$0xff]  ;;  %vm7175_vm10 = vcmask 367616  }
 0x89b   :  { %3200 = vst [vmem:[#allocation3 + $0x210] sm:$0xe] %v3193_v7  ;;  %v3210_v14 = vsel %vm7161_vm11, %v3203_v54, %v3205_v45  ;;  %v4261_v29 = vpop.f32.mrf.mxu1  ;;  %v3357_v45 = vld [vmem:[#allocation3 + $0x1c0] sm:$0xff]  ;;  %v3330_v7 = vld [vmem:[#allocation3 + $0xe8] sm:$0xff]  ;;  %vm7186_vm11 = vmmov %vm7175_vm10 }
 0x89c   :  { %3217 = vst [vmem:[#allocation3 + $0x200] sm:$0x70] %v3210_v14  ;;  %v2163_v51 = vadd.f32 %v4261_v29, %v6513_v59  ;;  %v2166_v9 = vmax.f32 %v2148_v50, 0.0  ;;  %v3405_v27 = vpack.c.bf16 %v3361_v61, %v3357_v45  ;;  %v3390_v13 = vpack.c.bf16 %v3330_v7, %v3326_v56  ;;  %v4438_v45 = vld [vmem:[%s6817_s3 + $0xb0] sm:$0xff]   ;;  %v4446_v7 = vld [vmem:[%s6817_s3 + $0x88] sm:$0xff]  }
 0x89d   :  { %v3209_v52 = vpop.permute.xlu0 %3208  ;;  %v2157_v33 = vpop.f32.mrf.mxu1  ;;  %v4445_v56 = vld [vmem:[%s6817_s3 + $0x70] sm:$0xff]  }
 0x89e   :  { %v2169_v1 = vmax.f32 %v2163_v51, 0.0  ;;  %v3212_v15 = vsel %vm7162_vm8, %v3207_v2, %v3209_v52  ;;  %3220 = vst.msk [vmem:[#allocation3 + $0x218] sm:$0x70] %vm235_vm3, %v3209_v52  ;;  %v2158_v35 = vadd.f32 %v2157_v33, %v6526_v41  ;;  %v3222_v6 = vpop.permute.xlu1 %3221  ;;  %vm7165_vm3 = vmmov %vm7157_vm12  ;;  %vm7169_vm12 = vcmask 154624  }
 0x89f   :  { %3219 = vst [vmem:[#allocation3 + $0x210] sm:$0x70] %v3212_v15  ;;  %v3229_v53 = vsel %vm7163_vm1, %v3222_v6, %v3224_v11  ;;  %v3350_v11 = vld [vmem:[#allocation3 + $0x188] sm:$0xff]  ;;  %v3329_v15 = vld [vmem:[#allocation3 + $0xe0] sm:$0xff]  ;;  %vm7187_vm8 = vmmov %vm7175_vm10 }
 0x8a0   :  { %v2168_v24 = vmax.f32 %v2158_v35, 0.0  ;;  %3236 = vst [vmem:[#allocation3 + $0x220] ss:$-28 sps:$4 sm:$0x83] %v3229_v53   ;;  %4263 = vmatpush3.msra.mxu1 %v2169_v1  ;;  %v3402_v4 = vpack.c.bf16 %v3354_v63, %v3350_v11  ;;  %v3318_v35 = vld [vmem:[#allocation3 + $0x88] sm:$0xff]  ;;  %v3325_v53 = vld [vmem:[#allocation3 + $0xc0] sm:$0xff]  ;;  %vm7188_vm1 = vmmov %vm7187_vm8 }
 0x8a1   :  { %v3228_v48 = vpop.permute.xlu0 %3227  ;;  %4264 = vmatprep.subr.mxu1 %v4473_v0  ;;  %v3322_v6 = vld [vmem:[#allocation3 + $0xa8] sm:$0xff]  ;;  %v3389_v50 = vpack.c.bf16 %v3329_v15, %v3325_v53  ;;  %v3305_v11 = vld [vmem:[#allocation3 + $0x20] sm:$0xff] }
 0x8a2   :  { %v3231_v28 = vsel %vm7164_vm13, %v3226_v23, %v3228_v48  ;;  %3239 = vst.msk [vmem:[#allocation3 + $0x218] sm:$0x80] %vm260_vm5, %v3228_v48  ;;  %v3245_v31 = vpop.permute.xlu1 %3244  ;;  %4265 = vmatpush3.msra.mxu1 %v2168_v24  ;;  %vm7166_vm5 = vmmov %vm7165_vm3  ;;  %v3386_v24 = vpack.c.bf16 %v3322_v6, %v3318_v35  ;;  %v3306_v63 = vld [vmem:[#allocation3 + $0x28] sm:$0xff]  ;;  %v4458_v15 = vld [vmem:[%s6817_s3 + $0x10] sm:$0xff]  }
 0x8a3   :  { %3243 = vst.msk [vmem:[#allocation3 + $0x238] sm:$0x3] %vm265_vm6, %v3228_v48  ;;  %3238 = vst [vmem:[#allocation3 + $0x230] ss:$-28 sps:$4 sm:$0x83] %v3231_v28   ;;  %v3252_v8 = vsel %vm7165_vm3, %v3245_v31, %v3247_v57  ;;  %4266 = vmatprep.subr.mxu1 %v4473_v0  ;;  %v3401_v57 = vpack.c.bf16 %v3353_v55, %v3349_v17  ;;  %v3321_v48 = vld [vmem:[#allocation3 + $0xa0] sm:$0xff] }
 0x8a4   :  { %3259 = vst [vmem:[#allocation3 + $0x220] sm:$0x1c] %v3252_v8  ;;  %4267 = vmatpush3.msra.mxu1 %v2167_v36  ;;  %vm7167_vm6 = vmmov %vm7158_vm15  ;;  %v3310_v36 = vld [vmem:[#allocation3 + $0x48] sm:$0xff]  ;;  %v3317_v31 = vld [vmem:[#allocation3 + $0x80] sm:$0xff]  ;;  %vm2243_vm15 = vcmask 5120  }
 0x8a5   :  { %v3251_v44 = vpop.permute.xlu0 %3250  ;;  %4268 = vmatprep.subr.mxu1 %v4473_v0  ;;  %v3314_v28 = vld [vmem:[#allocation3 + $0x68] sm:$0xff]  ;;  %v3385_v8 = vpack.c.bf16 %v3321_v48, %v3317_v31  ;;  %v4439_v55 = vld [vmem:[%s6817_s3 + $0xa8] sm:$0xff]   ;;  %vm7189_vm13 = vmmov %vm7188_vm1 }
 0x8a6   :  { %v3254_v2 = vsel %vm7166_vm5, %v6498_v46, %v3251_v44  ;;  %3262 = vst.msk [vmem:[#allocation3 + $0x238] sm:$0x1c] %vm290_vm7, %v3251_v44  ;;  %v3264_v42 = vpop.permute.xlu1 %3263  ;;  %4269 = vmatpush3.msra.mxu1 %v2166_v9  ;;  %vm7170_vm7 = vmmov %vm7167_vm6  ;;  %v3342_v46 = vld [vmem:[#allocation3 + $0x148] sm:$0xff]  ;;  %v3382_v61 = vpack.c.bf16 %v3314_v28, %v3310_v36  ;;  %v3313_v9 = vld [vmem:[#allocation3 + $0x60] sm:$0xff] }
 0x8a7   :  { %3261 = vst [vmem:[#allocation3 + $0x230] sm:$0x1c] %v3254_v2  ;;  %v3271_v5 = vsel %vm7167_vm6, %v3264_v42, %v6502_v18  ;;  %4271 = vmatmul.mubr.msk.f32.vlgmr.msra.gmra.mxu1 %vm7168_vm2, %v6549_v22  ;;  %3429 = vmatprep.subr.bf16.mxu1 %v3406_v58  ;;  %v3398_v49 = vpack.c.bf16 %v3346_v39, %v3342_v46  ;;  %v3345_v18 = vld [vmem:[#allocation3 + $0x160] sm:$0xff]  ;;  %v3374_v44 = vld [vmem:[#allocation3 + $0x248] sm:$0x7]  ;;  %v4459_v35 = vld [vmem:[%s6817_s3 + $0x48] sm:$0xff]  }
 0x8a8   :  { %3278 = vst [vmem:[#allocation3 + $0x220] sm:$0xe0] %v3271_v5  ;;  %3430 = vmatpush1.bf16.msra.mxu1 %v3405_v27  ;;  %4145 = vmatprep.mubr.msk.bf16.mxu1 %vm7169_vm12, %v5371_v34  ;;  %v3397_v30 = vpack.c.bf16 %v3345_v18, %v3341_v20  ;;  %v3394_v34 = vpack.c.bf16 %v3338_v10, %v3334_v19  ;;  %v3309_v58 = vld [vmem:[#allocation3 + $0x40] sm:$0xff]  ;;  %v4460_v6 = vld [vmem:[%s6817_s3 + $0x8] sm:$0xff]   ;;  %v4461_v53 = vld [vmem:[%s6817_s3 + $0x40] sm:$0xff]  }
 0x8a9   :  { %v3270_v23 = vpop.permute.xlu0 %3269  ;;  %3431 = vmatprep.subr.bf16.mxu1 %v3402_v4  ;;  %v3368_v54 = vld [vmem:[#allocation3 + $0x218] sm:$0xff]  ;;  %v3381_v2 = vpack.c.bf16 %v3313_v9, %v3309_v58  ;;  %v3378_v42 = vpack.c.bf16 %v3306_v63, %v3302_v60  ;;  %v3301_v27 = vld [vmem:[#allocation3] sm:$0xff]  ;;  %v3414_v5 = vpack.c.bf16 %v3374_v44, %v3374_v44  ;;  %vm7190_vm3 = vmmov %vm7188_vm1 }
 0x8aa   :  { %v3273_v16 = vsel %vm7170_vm7, %v6504_v32, %v3270_v23  ;;  %3281 = vst.msk [vmem:[#allocation3 + $0x238] sm:$0xe0] %vm315_vm9, %v3270_v23  ;;  %v3333_v32 = vld [vmem:[#allocation3 + $0x100] sm:$0xff]  ;;  %v3367_v52 = vld [vmem:[#allocation3 + $0x210] sm:$0xff]  ;;  %v3377_v39 = vpack.c.bf16 %v3305_v11, %v3301_v27  ;;  %vm7171_vm9 = vcmask 1042432   ;;  %vm7191_vm5 = vmmov %vm7188_vm1 }
 0x8ab   :  { %3280 = vst [vmem:[#allocation3 + $0x230] sm:$0xe0] %v3273_v16  ;;  %v3393_v29 = vpack.c.bf16 %v3337_v21, %v3333_v32  ;;  %v3373_v4 = vld [vmem:[#allocation3 + $0x240] sm:$0x7]  ;;  %v3421_v17 = vand.u32 %v3414_v5, %v5449_v38  ;;  %v3370_v16 = vld [vmem:[#allocation3 + $0x228] sm:$0xff]  ;;  %v4448_v32 = vld [vmem:[%s6817_s3 + $0x68] sm:$0xff]  }
 0x8ac   :  { %3432 = vmatpush1.bf16.msra.mxu1 %v3401_v57  ;;  %v3413_v23 = vpack.c.bf16 %v3373_v4, %v3373_v4  ;;  %v4440_v57 = vld [vmem:[%s6817_s3 + $0xa0] sm:$0xff]   ;;  %v3365_v10 = vld [vmem:[#allocation3 + $0x200] sm:$0xff]  ;;  %vm7174_vm14 = vmmov %vm7171_vm9 }
 0x8ad   :  { %3433 = vmatprep.subr.bf16.mxu1 %v3398_v49  ;;  %v3366_v49 = vld [vmem:[#allocation3 + $0x208] sm:$0xff]  ;;  %vm7192_vm6 = vmmov %vm7188_vm1 }
 0x8ae   :  { %v3418_v46 = vand.u32 %v3413_v23, %v5449_v38  ;;  %v3410_v18 = vpack.c.bf16 %v3370_v16, %v3366_v49  ;;  %v4441_v20 = vld [vmem:[%s6817_s3 + $0x98] sm:$0xff]   ;;  %vm7193_vm2 = vmmov %vm7188_vm1 }
 0x8af   :  { %v3369_v19 = vld [vmem:[#allocation3 + $0x220] sm:$0xff]  ;;  %vm7194_vm12 = vmmov %vm7188_vm1 }
 0x8b0   :  { %3434 = vmatpush1.bf16.msra.mxu1 %v3397_v30  ;;  %v3409_v30 = vpack.c.bf16 %v3369_v19, %v3365_v10  ;;  %v4442_v38 = vld [vmem:[%s6817_s3 + $0x78] sm:$0xff]   ;;  %vm7195_vm7 = vmmov %vm7188_vm1 }
 0x8b1   :  { %3435 = vmatprep.subr.bf16.mxu1 %v3394_v34  ;;  %v3372_v14 = vld [vmem:[#allocation3 + $0x238] sm:$0xff]  ;;  %v4444_v21 = vld [vmem:[%s6817_s3 + $0x38] sm:$0xff]  }
 0x8b2   :  { %v3412_v51 = vpack.c.bf16 %v3372_v14, %v3368_v54  ;;  %v3371_v33 = vld [vmem:[#allocation3 + $0x230] sm:$0xff]  ;;  %v4443_v34 = vld [vmem:[%s6817_s3 + $0x90] sm:$0xff]  }
 0x8b3   :  { %v3411_v1 = vpack.c.bf16 %v3371_v33, %v3367_v52  ;;  %v4449_v54 = vld [vmem:[%s6817_s3 + $0x80] sm:$0xff]   ;;  %v4450_v14 = vld [vmem:[%s6817_s3 + $0x28] sm:$0xff]   ;;  %v4453_v52 = vld [vmem:[%s6817_s3 + $0x58] sm:$0xff]  }
 0x8b4   :  { %3436 = vmatpush1.bf16.msra.mxu1 %v3393_v29  ;;  %3500 = vmatprep.subr.bf16.mxu0 %v3412_v51  ;;  %v4451_v29 = vld [vmem:[%s6817_s3 + $0x60] sm:$0xff]  }
 0x8b5   :  { %3437 = vmatprep.subr.bf16.mxu1 %v3390_v13  ;;  %3501 = vmatpush2.bf16.msra.mxu0 %v3411_v1  ;;  %v4452_v51 = vld [vmem:[%s6817_s3 + $0x20] sm:$0xff]   ;;  %v4456_v13 = vld [vmem:[%s6817_s3 + $0x18] sm:$0xff]   ;;  %v4457_v1 = vld [vmem:[%s6817_s3 + $0x50] sm:$0xff]  }
 0x8b6   :  { %3608 = vmatprep.subr.bf16.mxu0 %v4522_v43  ;;  %v4454_v33 = vld [vmem:[%s6817_s3 + $0xc0] sm:$0xff]  }
 0x8b8   :  { %3438 = vmatpush1.bf16.msra.mxu1 %v3389_v50  ;;  %3503 = vmatmul.mubr.bf16.vlgmr.msra.gmra.mxu0 %v5477_v40  ;;  %v4462_v50 = vld [vmem:[%s6817_s3] sm:$0xff]  }
 0x8b9   :  { %3439 = vmatprep.subr.bf16.mxu1 %v3386_v24  ;;  %3609 = vmatpush1.bf16.msra.mxu0 %v4437_v25  ;;  %v6665_v24 = vld [vmem:[%s6824_s10] sm:$0x3f] }
 0x8ba   :  { %3610 = vmatprep.subr.bf16.mxu0 %v4522_v43 }
 0x8bc   :  { %3440 = vmatpush1.bf16.msra.mxu1 %v3385_v8 }
 0x8bd   :  { %3441 = vmatprep.subr.bf16.mxu1 %v3382_v61  ;;  %3611 = vmatpush1.bf16.msra.mxu0 %v4438_v45 }
 0x8be   :  { %3612 = vmatprep.subr.bf16.mxu0 %v4522_v43 }
 0x8c0   :  { %3442 = vmatpush1.bf16.msra.mxu1 %v3381_v2 }
 0x8c1   :  { %3443 = vmatprep.subr.bf16.mxu1 %v3378_v42  ;;  %3613 = vmatpush1.bf16.msra.mxu0 %v4439_v55 }
 0x8c2   :  { %3614 = vmatprep.subr.bf16.mxu0 %v4522_v43 }
 0x8c4   :  { %3444 = vmatpush1.bf16.msra.mxu1 %v3377_v39 }
 0x8c5   :  { %3457 = vmatprep.subr.bf16.mxu1 %v3421_v17  ;;  %3615 = vmatpush1.bf16.msra.mxu0 %v4440_v57 }
 0x8c6   :  { %3616 = vmatprep.subr.bf16.mxu0 %v4522_v43 }
 0x8c8   :  { %3458 = vmatpush2.bf16.msra.mxu1 %v3418_v46 }
 0x8c9   :  { %3459 = vmatprep.subr.bf16.mxu1 %v3410_v18  ;;  %3617 = vmatpush1.bf16.msra.mxu0 %v4441_v20 }
 0x8ca   :  { %3618 = vmatprep.subr.bf16.mxu0 %v4522_v43 }
 0x8cc   :  { %3460 = vmatpush2.bf16.msra.mxu1 %v3409_v30 }
 0x8cd   :  { %4199 = vmatprep.subr.bf16.mxu1 %v4442_v38  ;;  %3619 = vmatpush1.bf16.msra.mxu0 %v4443_v34 }
 0x8ce   :  { %3620 = vmatprep.subr.bf16.mxu0 %v4522_v43 }
 0x8cf   :  { %3462 = vmatmul.mubr.bf16.vlgmr.msra.gmra.mxu1 %v5477_v40  ;;  %v4447_v40 = vld [vmem:[%s6817_s3 + $0x30] sm:$0xff]  }
 0x8d0   :  { %4200 = vmatpush3.bf16.msra.mxu1 %v4444_v21 }
 0x8d1   :  { %4201 = vmatprep.subr.bf16.mxu1 %v4445_v56  ;;  %3621 = vmatpush1.bf16.msra.mxu0 %v4446_v7 }
 0x8d2   :  { %3622 = vmatprep.subr.bf16.mxu0 %v4522_v43 }
 0x8d4   :  { %4202 = vmatpush3.bf16.msra.mxu1 %v4447_v40 }
 0x8d5   :  { %4203 = vmatprep.subr.bf16.mxu1 %v4448_v32  ;;  %3623 = vmatpush1.bf16.msra.mxu0 %v4449_v54 }
 0x8d6   :  { %3636 = vmatprep.subr.bf16.mxu0 %v4522_v43 }
 0x8d8   :  { %4204 = vmatpush3.bf16.msra.mxu1 %v4450_v14 }
 0x8d9   :  { %4205 = vmatprep.subr.bf16.mxu1 %v4451_v29  ;;  %3637 = vmatpush2.bf16.msra.mxu0 %v5582_v12  ;;  %v6636_v12 = vld [vmem:[%s6820_s6 + $0x20] sm:$0x7] }
 0x8da   :  { %3638 = vmatprep.subr.bf16.mxu0 %v4522_v43 }
 0x8dc   :  { %4206 = vmatpush3.bf16.msra.mxu1 %v4452_v51 }
 0x8dd   :  { %4207 = vmatprep.subr.bf16.mxu1 %v4453_v52  ;;  %3639 = vmatpush2.bf16.msra.mxu0 %v4454_v33 }
 0x8de   :  { %4273 = vmatprep.subr.msk.mxu0 %vm7171_vm9, %v6636_v12  ;;  %vm7196_vm9 = vmmov %vm7188_vm1 }
 0x8e0   :  { %4208 = vmatpush3.bf16.msra.mxu1 %v4456_v13 }
 0x8e1   :  { %4209 = vmatprep.subr.bf16.mxu1 %v4457_v1 }
 0x8e4   :  { %4210 = vmatpush3.bf16.msra.mxu1 %v4458_v15 }
 0x8e5   :  { %4211 = vmatprep.subr.bf16.mxu1 %v4459_v35 }
 0x8e8   :  { %4212 = vmatpush3.bf16.msra.mxu1 %v4460_v6 }
 0x8e9   :  { %4213 = vmatprep.subr.bf16.mxu1 %v4461_v53  ;;  %v4463_v53 = vld [vmem:[%s6819_s4 + $0x4] ss:$8 sps:$4 sm:$0x1f]  }
 0x8ec   :  { %4214 = vmatpush3.bf16.msra.mxu1 %v4462_v50  ;;  %v4464_v50 = vld [vmem:[%s6820_s6 + $0x18] sm:$0xff] }
 0x8ed   :  { %3787 = vmatprep.subr.bf16.mxu1 %v4522_v43 }
 0x967   :  { %v2239_v48 = vpop.f32.mrf.mxu1 }
 0x968   :  { %v2240_v36 = vadd.f32 %v2239_v48, %v6665_v24  ;;  %v4465_v48 = vld [vmem:[%s6820_s6 + $0x10] sm:$0xff] }
 0x969   :  { %v4272_v28 = vpop.f32.mrf.mxu1 }
 0x96a   :  { %2244 = vst.msk [vmem:[%s6825_s11] sm:$0x3f] %vm2243_vm15, %v2240_v36  ;;  %v4466_v36 = vld [vmem:[%s6820_s6 + $0x8] sm:$0xff] }
 0x978   :  { %v3504_v31 = vpop.f32.mrf.mxu0 }
 0x979   :  { %v3505_v58 = vadd.f32 %v3504_v31, %v5482_v26 }
 0x97a   :  { %v3506_v25 = vpop.f32.mrf.mxu0 }
 0x97b   :  { %v3507_v60 = vadd.f32 %v3506_v25, %v5482_v26 }
 0x97c   :  { %v3508_v8 = vpop.f32.mrf.mxu0 }
 0x97e   :  { %v3509_v61 = vpop.f32.mrf.mxu0 }
 0x98f   :  { %v3463_v9 = vpop.f32.mrf.mxu1 }
 0x990   :  { %v3464_v63 = vadd.f32 %v3463_v9, %v5482_v26 }
 0x991   :  { %v3465_v44 = vpop.f32.mrf.mxu1 }
 0x992   :  { %v4392_v45 = vpack.i.bf16 %v3464_v63, %v3507_v60  ;;  %v3466_v2 = vadd.f32 %v3465_v44, %v5482_v26 }
 0x993   :  { %v3467_v42 = vpop.f32.mrf.mxu1 }
 0x994   :  { %v4387_v27 = vpack.i.bf16 %v3505_v58, %v3466_v2  ;;  %4393 = vrot.lane.b32.xlu0 %v4392_v45, %s7078_s28 }
 0x995   :  { %v3468_v11 = vpop.f32.mrf.mxu1 }
 0x996   :  { %4388 = vrot.lane.b32.xlu1 %v4387_v27, %s7078_s28 }
 0xa06   :  { %v4394_v5 = vpop.permute.xlu0 %4393 }
 0xa07   :  { %v4396_v55 = vunpack.i.h.bf16 %v4394_v5  ;;  %v4395_v39 = vunpack.i.l.bf16 %v4394_v5 }
 0xa08   :  { %v4389_v4 = vpop.permute.xlu1 %4388 }
 0xa09   :  { %v4391_v23 = vunpack.i.h.bf16 %v4389_v4  ;;  %v4390_v17 = vunpack.i.l.bf16 %v4389_v4  ;;  %v3533_v10 = vmax.f32 %v3507_v60, %v4395_v39 }
 0xa0b   :  { %v3523_v16 = vsel %vm304_vm0, %v4396_v55, %v4390_v17  ;;  %v3524_v57 = vsel %vm304_vm0, %v4390_v17, %v4391_v23  ;;  %v3525_v46 = vsel %vm304_vm0, %v4391_v23, %v4395_v39  ;;  %vm7172_vm0 = vcmask 187392  }
 0xa0c   :  { %v3530_v26 = vmax.f32 %v3464_v63, %v3523_v16  ;;  %v3531_v49 = vmax.f32 %v3466_v2, %v3524_v57  ;;  %v3532_v18 = vmax.f32 %v3505_v58, %v3525_v46 }
 0xa0e   :  { %3538 = vrot.lane.b32.xlu0 %v3530_v26, %s4512_s19  ;;  %v4397_v19 = vpack.i.bf16 %v3532_v18, %v3531_v49 }
 0xa10   :  { %4398 = vrot.lane.b32.xlu1 %v4397_v19, %s4512_s19 }
 0xa14   :  { %3544 = vrot.lane.b32.xlu1 %v3533_v10, %s4512_s19 }
 0xa80   :  { %v3539_v34 = vpop.permute.xlu0 %3538 }
 0xa82   :  { %v4399_v20 = vpop.permute.xlu1 %4398 }
 0xa83   :  { %v4401_v30 = vunpack.i.h.bf16 %v4399_v20  ;;  %v4400_v38 = vunpack.i.l.bf16 %v4399_v20 }
 0xa85   :  { %v3546_v21 = vsel %vm146_vm4, %v3539_v34, %v4400_v38  ;;  %v3547_v56 = vsel %vm146_vm4, %v4400_v38, %v4401_v30 }
 0xa86   :  { %v3553_v7 = vmax.f32 %v3530_v26, %v3546_v21  ;;  %v3545_v40 = vpop.permute.xlu1 %3544  ;;  %v3554_v32 = vmax.f32 %v3531_v49, %v3547_v56 }
 0xa87   :  { %v3548_v54 = vsel %vm146_vm4, %v4401_v30, %v3545_v40  ;;  %v3556_v14 = vmax.f32 %v3533_v10, %v3545_v40  ;;  %vm7173_vm4 = vcmask 588800  }
 0xa88   :  { %v3557_v29 = vmax.f32 %v3553_v7, 0.0  ;;  %v3555_v51 = vmax.f32 %v3532_v18, %v3548_v54  ;;  %v3558_v52 = vmax.f32 %v3554_v32, 0.0 }
 0xa89   :  { %v3560_v33 = vmax.f32 %v3556_v14, 0.0 }
 0xa8a   :  { %v3559_v13 = vmax.f32 %v3555_v51, 0.0  ;;  %v3562_v1 = vpack.c.bf16 %v3558_v52, %v3558_v52  ;;  %v3561_v15 = vpack.c.bf16 %v3557_v29, %v3557_v29 }
 0xa8b   :  { %v3564_v35 = vpack.c.bf16 %v3560_v33, %v3560_v33 }
 0xa8c   :  { %v3563_v6 = vpack.c.bf16 %v3559_v13, %v3559_v13  ;;  %3600 = vmatprep.mubr.bf16.mxu1 %v3562_v1 }
 0xa8d   :  { %3601 = vmatmul.mubr.bf16.vlgmr.msra.gmra.mxu1 %v3561_v15  ;;  %4147 = vmatprep.mubr.msk.bf16.mxu0 %vm7172_vm0, %v3564_v35  ;;  %vm7197_vm0 = vmmov %vm7188_vm1 }
 0xa8e   :  { %3641 = vmatmul.mubr.bf16.vlgmr.msra.gmra.mxu0 %v3563_v6  ;;  %4148 = vmatprep.mubr.msk.bf16.mxu1 %vm7173_vm4, %v4463_v53  ;;  %vm7198_vm4 = vmmov %vm7197_vm0 }
 0xa8f   :  { %4274 = vmatpush3.msk.msra.mxu0 %vm7174_vm14, %v6636_v12  ;;  %v4467_v12 = vld [vmem:[%s6820_s6] sm:$0xff]  ;;  %s7176_s6 = smov 115   ;;  %vm7199_vm14 = vmmov %vm7197_vm0 }
 0xa90   :  { %4275 = vmatprep.subr.mxu0 %v4464_v50 }
 0xa91   :  { %4276 = vmatpush3.msra.mxu0 %v4464_v50 }
 0xa92   :  { %4277 = vmatprep.subr.mxu0 %v4465_v48 }
 0xa93   :  { %4278 = vmatpush3.msra.mxu0 %v4465_v48 }
 0xa94   :  { %4279 = vmatprep.subr.mxu0 %v4466_v36 }
 0xa95   :  { %4280 = vmatpush3.msra.mxu0 %v4466_v36 }
 0xa96   :  { %4281 = vmatprep.subr.mxu0 %v4467_v12 }
 0xa97   :  { %4282 = vmatpush3.msra.mxu0 %v4467_v12 }
 0xb4d   :  { %v4215_v28 = vpop.f32.mrf.mxu1 }
 0xb4e   :  { %v3642_v31 = vpop.f32.mrf.mxu0 }
 0xb4f   :  { %v4216_v25 = vpop.f32.mrf.mxu1 }
 0xb50   :  { %v4217_v8 = vadd.f32 %v4216_v25, %v4215_v28  ;;  %v3644_v61 = vpop.f32.mrf.mxu0 }
 0xb51   :  { %v4218_v9 = vpop.f32.mrf.mxu1 }
 0xb52   :  { %v3643_v60 = vadd.f32 %v4217_v8, %v3642_v31  ;;  %v3645_v63 = vpop.f32.mrf.mxu0 }
 0xb53   :  { %v4219_v44 = vpop.f32.mrf.mxu1 }
 0xb54   :  { %3648 = vst.msk [vmem:[#allocation4] sm:$0xff] %vm7175_vm10, %v3643_v60  ;;  %v3646_v58 = vpop.f32.mrf.mxu0  ;;  %3706 = vrot.lane.b32.xlu1 %v3643_v60, %s4501_s26  ;;  %3702 = vrot.lane.b32.xlu0 %v3643_v60, %s4516_s17  ;;  %s7184_s17 = smov 97   ;;  %s7185_s26 = smov 98   ;;  %vm7200_vm10 = vmmov %vm7197_vm0 }
 0xb58   :  { %3698 = vrot.lane.b32.xlu1 %v3643_v60, %s4521_s12  ;;  %3694 = vrot.lane.b32.xlu0 %v3643_v60, %s4520_s13  ;;  %s7180_s12 = smov 88   ;;  %s7181_s13 = smov 89  }
 0xb5b   :  { %v3746_v48 = vld [vmem:[#allocation4] sm:$0xff] }
 0xb5c   :  { %3690 = vrot.lane.b32.xlu1 %v3643_v60, %s4519_s14  ;;  %3686 = vrot.lane.b32.xlu0 %v3643_v60, %s4518_s15  ;;  %s7182_s14 = smov 90   ;;  %s7183_s15 = smov 92  }
 0xb60   :  { %3682 = vrot.lane.b32.xlu1 %v3643_v60, %s7176_s6  ;;  %3678 = vrot.lane.b32.xlu0 %v3643_v60, %s7177_s2 }
 0xb64   :  { %3674 = vrot.lane.b32.xlu1 %v3643_v60, %s7178_s16  ;;  %3670 = vrot.lane.b32.xlu0 %v3643_v60, %s7179_s22 }
 0xb68   :  { %3666 = vrot.lane.b32.xlu1 %v3643_v60, %s4528_s24  ;;  %3662 = vrot.lane.b32.xlu0 %v3643_v60, %s4515_s23 }
 0xb6c   :  { %3658 = vrot.lane.b32.xlu1 %v3643_v60, %s4514_s18  ;;  %3654 = vrot.lane.b32.xlu0 %v3643_v60, %s4513_s20 }
 0xb70   :  { %3742 = vrot.lane.b32.xlu1 %v3643_v60, %s7180_s12  ;;  %3650 = vrot.lane.b32.xlu0 %v3643_v60, %s4512_s19 }
 0xb74   :  { %3738 = vrot.lane.b32.xlu1 %v3643_v60, %s7181_s13  ;;  %3734 = vrot.lane.b32.xlu0 %v3643_v60, %s7182_s14 }
 0xb78   :  { %3730 = vrot.lane.b32.xlu1 %v3643_v60, %s4532_s30  ;;  %3726 = vrot.lane.b32.xlu0 %v3643_v60, %s7183_s15 }
 0xb7c   :  { %3722 = vrot.lane.b32.xlu1 %v3643_v60, %s7184_s17  ;;  %3718 = vrot.lane.b32.xlu0 %v3643_v60, %s7185_s26 }
 0xb80   :  { %3714 = vrot.lane.b32.xlu1 %v3643_v60, %s6969_s21  ;;  %3710 = vrot.lane.b32.xlu0 %v3643_v60, %s6970_s25 }
 0xbc6   :  { %v3707_v45 = vpop.permute.xlu1 %3706  ;;  %v3703_v2 = vpop.permute.xlu0 %3702 }
 0xbc7   :  { %3709 = vst.msk [vmem:[#allocation4 + $0x78] sm:$0xff] %vm7186_vm11, %v3707_v45  ;;  %vm7201_vm11 = vmmov %vm7197_vm0 }
 0xbc8   :  { %3705 = vst.msk [vmem:[#allocation4 + $0x70] sm:$0xff] %vm7187_vm8, %v3703_v2  ;;  %vm7202_vm8 = vmmov %vm7197_vm0 }
 0xbca   :  { %v3699_v42 = vpop.permute.xlu1 %3698  ;;  %v3695_v27 = vpop.permute.xlu0 %3694 }
 0xbcb   :  { %3701 = vst.msk [vmem:[#allocation4 + $0x68] sm:$0xff] %vm7188_vm1, %v3699_v42  ;;  %vm7203_vm1 = vmmov %vm7197_vm0 }
 0xbcc   :  { %3697 = vst.msk [vmem:[#allocation4 + $0x60] sm:$0xff] %vm7189_vm13, %v3695_v27  ;;  %vm7204_vm13 = vmmov %vm7197_vm0 }
 0xbce   :  { %v3691_v11 = vpop.permute.xlu1 %3690  ;;  %v3687_v5 = vpop.permute.xlu0 %3686  ;;  %v3761_v55 = vld [vmem:[#allocation4 + $0x78] sm:$0xff] }
 0xbcf   :  { %v3760_v4 = vld [vmem:[#allocation4 + $0x70] sm:$0xff]  ;;  %3693 = vst.msk [vmem:[#allocation4 + $0x58] sm:$0xff] %vm7190_vm3, %v3691_v11  ;;  %vm7205_vm3 = vmmov %vm7197_vm0 }
 0xbd0   :  { %3689 = vst.msk [vmem:[#allocation4 + $0x50] sm:$0xff] %vm7191_vm5, %v3687_v5  ;;  %v3778_v39 = vpack.c.bf16 %v3761_v55, %v3760_v4  ;;  %vm7206_vm5 = vmmov %vm7197_vm0 }
 0xbd2   :  { %3788 = vmatpush1.bf16.msra.mxu1 %v3778_v39  ;;  %v3683_v23 = vpop.permute.xlu1 %3682  ;;  %v3679_v17 = vpop.permute.xlu0 %3678  ;;  %v3759_v57 = vld [vmem:[#allocation4 + $0x68] sm:$0xff] }
 0xbd3   :  { %3789 = vmatprep.subr.bf16.mxu1 %v4522_v43  ;;  %v3758_v16 = vld [vmem:[#allocation4 + $0x60] sm:$0xff]  ;;  %3685 = vst.msk [vmem:[#allocation4 + $0x48] sm:$0xff] %vm7192_vm6, %v3683_v23  ;;  %vm7207_vm6 = vmmov %vm7197_vm0  ;;  %v4468_v23 = vld [vmem:[%s6819_s4] ss:$8 sps:$4 sm:$0x1f]  }
 0xbd4   :  { %3681 = vst.msk [vmem:[#allocation4 + $0x40] sm:$0xff] %vm7193_vm2, %v3679_v17  ;;  %v3777_v46 = vpack.c.bf16 %v3759_v57, %v3758_v16  ;;  %vm7208_vm2 = vcmask 1043456  }
 0xbd6   :  { %3790 = vmatpush1.bf16.msra.mxu1 %v3777_v46  ;;  %v3675_v26 = vpop.permute.xlu1 %3674  ;;  %v3671_v49 = vpop.permute.xlu0 %3670  ;;  %v3757_v19 = vld [vmem:[#allocation4 + $0x58] sm:$0xff] }
 0xbd7   :  { %3791 = vmatprep.subr.bf16.mxu1 %v4522_v43  ;;  %v3756_v18 = vld [vmem:[#allocation4 + $0x50] sm:$0xff]  ;;  %3677 = vst.msk [vmem:[#allocation4 + $0x38] sm:$0xff] %vm7194_vm12, %v3675_v26  ;;  %vm7209_vm12 = vmmov %vm7197_vm0 }
 0xbd8   :  { %3673 = vst.msk [vmem:[#allocation4 + $0x30] sm:$0xff] %vm7195_vm7, %v3671_v49  ;;  %v3776_v10 = vpack.c.bf16 %v3757_v19, %v3756_v18  ;;  %vm7210_vm7 = vmmov %vm7197_vm0 }
 0xbda   :  { %3792 = vmatpush1.bf16.msra.mxu1 %v3776_v10  ;;  %v3667_v20 = vpop.permute.xlu1 %3666  ;;  %v3663_v30 = vpop.permute.xlu0 %3662  ;;  %v3755_v34 = vld [vmem:[#allocation4 + $0x48] sm:$0xff] }
 0xbdb   :  { %3793 = vmatprep.subr.bf16.mxu1 %v4522_v43  ;;  %v3754_v38 = vld [vmem:[#allocation4 + $0x40] sm:$0xff]  ;;  %3669 = vst.msk [vmem:[#allocation4 + $0x28] sm:$0xff] %vm7196_vm9, %v3667_v20  ;;  %vm7211_vm9 = vcmask 285696  }
 0xbdc   :  { %3665 = vst.msk [vmem:[#allocation4 + $0x20] sm:$0xff] %vm7197_vm0, %v3663_v30  ;;  %v3775_v21 = vpack.c.bf16 %v3755_v34, %v3754_v38  ;;  %vm7212_vm0 = vmmov %vm7211_vm9 }
 0xbde   :  { %3794 = vmatpush1.bf16.msra.mxu1 %v3775_v21  ;;  %v3659_v56 = vpop.permute.xlu1 %3658  ;;  %v3655_v7 = vpop.permute.xlu0 %3654  ;;  %v3753_v32 = vld [vmem:[#allocation4 + $0x38] sm:$0xff] }
 0xbdf   :  { %3795 = vmatprep.subr.bf16.mxu1 %v4522_v43  ;;  %v3752_v40 = vld [vmem:[#allocation4 + $0x30] sm:$0xff]  ;;  %3661 = vst.msk [vmem:[#allocation4 + $0x18] sm:$0xff] %vm7198_vm4, %v3659_v56  ;;  %vm7213_vm4 = vcmask 80896  }
 0xbe0   :  { %3657 = vst.msk [vmem:[#allocation4 + $0x10] sm:$0xff] %vm7199_vm14, %v3655_v7  ;;  %v3774_v54 = vpack.c.bf16 %v3753_v32, %v3752_v40  ;;  %vm7214_vm14 = vcmask 1041408   ;;  %v4470_v40 = vld [vmem:[%s6821_s7 + $0x8] sm:$0xff]  ;;  %v4471_v32 = vld [vmem:[%s6821_s7 + $0x10] sm:$0xff] }
 0xbe2   :  { %3796 = vmatpush1.bf16.msra.mxu1 %v3774_v54  ;;  %v3743_v14 = vpop.permute.xlu1 %3742  ;;  %v3651_v29 = vpop.permute.xlu0 %3650  ;;  %v3751_v52 = vld [vmem:[#allocation4 + $0x28] sm:$0xff] }
 0xbe3   :  { %3797 = vmatprep.subr.bf16.mxu1 %v4522_v43  ;;  %v3750_v51 = vld [vmem:[#allocation4 + $0x20] sm:$0xff]  ;;  %3745 = vst.msk [vmem:[#allocation4 + $0xc0] sm:$0xff] %vm7200_vm10, %v3743_v14  ;;  %vm7215_vm10 = vmmov %vm7214_vm14 }
 0xbe4   :  { %3653 = vst.msk [vmem:[#allocation4 + $0x8] sm:$0xff] %vm7201_vm11, %v3651_v29  ;;  %v3773_v33 = vpack.c.bf16 %v3751_v52, %v3750_v51  ;;  %vm7216_vm11 = vmmov %vm7213_vm4  ;;  %v4472_v54 = vld [vmem:[%s6821_s7 + $0x18] sm:$0xff] }
 0xbe6   :  { %3798 = vmatpush1.bf16.msra.mxu1 %v3773_v33  ;;  %v3739_v13 = vpop.permute.xlu1 %3738  ;;  %v3735_v1 = vpop.permute.xlu0 %3734  ;;  %v3749_v35 = vld [vmem:[#allocation4 + $0x18] sm:$0xff] }
 0xbe7   :  { %3799 = vmatprep.subr.bf16.mxu1 %v4522_v43  ;;  %v3748_v15 = vld [vmem:[#allocation4 + $0x10] sm:$0xff]  ;;  %3741 = vst.msk [vmem:[#allocation4 + $0xb8] sm:$0xff] %vm7202_vm8, %v3739_v13  ;;  %vm7217_vm8 = vmmov %vm7213_vm4 }
 0xbe8   :  { %3737 = vst.msk [vmem:[#allocation4 + $0xb0] sm:$0xff] %vm7203_vm1, %v3735_v1  ;;  %v3772_v6 = vpack.c.bf16 %v3749_v35, %v3748_v15  ;;  %vm7218_vm1 = vmmov %vm7213_vm4 }
 0xbea   :  { %3800 = vmatpush1.bf16.msra.mxu1 %v3772_v6  ;;  %v3731_v53 = vpop.permute.xlu1 %3730  ;;  %v3727_v50 = vpop.permute.xlu0 %3726  ;;  %v3770_v12 = vld [vmem:[#allocation4 + $0xc0] sm:$0xff] }
 0xbeb   :  { %3801 = vmatprep.subr.bf16.mxu1 %v4522_v43  ;;  %v3747_v36 = vld [vmem:[#allocation4 + $0x8] sm:$0xff]  ;;  %3733 = vst.msk [vmem:[#allocation4 + $0xa8] sm:$0xff] %vm7204_vm13, %v3731_v53  ;;  %v3783_v31 = vpack.c.bf16 %v3770_v12, %v3770_v12  ;;  %vm7219_vm13 = vmmov 0  }
 0xbec   :  { %3729 = vst.msk [vmem:[#allocation4 + $0xa0] sm:$0xff] %vm7205_vm3, %v3727_v50  ;;  %v3771_v28 = vpack.c.bf16 %v3747_v36, %v3746_v48  ;;  %vm7220_vm3 = vcmask 261120  }
 0xbed   :  { %v3785_v61 = vsel %vm7208_vm2, %v3783_v31, 0 }
 0xbee   :  { %3802 = vmatpush1.bf16.msra.mxu1 %v3771_v28  ;;  %v3723_v25 = vpop.permute.xlu1 %3722  ;;  %v3719_v8 = vpop.permute.xlu0 %3718  ;;  %v3769_v60 = vld [vmem:[#allocation4 + $0xb8] sm:$0xff] }
 0xbef   :  { %3809 = vmatprep.subr.bf16.mxu1 %v4522_v43  ;;  %3725 = vst.msk [vmem:[#allocation4 + $0x98] sm:$0xff] %vm7206_vm5, %v3723_v25  ;;  %v3768_v9 = vld [vmem:[#allocation4 + $0xb0] sm:$0xff] }
 0xbf0   :  { %3721 = vst.msk [vmem:[#allocation4 + $0x90] sm:$0xff] %vm7207_vm6, %v3719_v8  ;;  %v3782_v58 = vpack.c.bf16 %v3769_v60, %v3768_v9 }
 0xbf2   :  { %3810 = vmatpush2.bf16.msra.mxu1 %v3785_v61  ;;  %v3715_v63 = vpop.permute.xlu1 %3714  ;;  %v3711_v44 = vpop.permute.xlu0 %3710  ;;  %v3767_v2 = vld [vmem:[#allocation4 + $0xa8] sm:$0xff] }
 0xbf3   :  { %3811 = vmatprep.subr.bf16.mxu1 %v4522_v43  ;;  %3717 = vst.msk [vmem:[#allocation4 + $0x88] sm:$0xff] %vm7209_vm12, %v3715_v63  ;;  %v3766_v45 = vld [vmem:[#allocation4 + $0xa0] sm:$0xff] }
 0xbf4   :  { %3713 = vst.msk [vmem:[#allocation4 + $0x80] sm:$0xff] %vm7210_vm7, %v3711_v44  ;;  %v3781_v42 = vpack.c.bf16 %v3767_v2, %v3766_v45 }
 0xbf6   :  { %3812 = vmatpush2.bf16.msra.mxu1 %v3782_v58  ;;  %v3765_v11 = vld [vmem:[#allocation4 + $0x98] sm:$0xff] }
 0xbf7   :  { %3813 = vmatprep.subr.bf16.mxu1 %v4522_v43  ;;  %v3764_v27 = vld [vmem:[#allocation4 + $0x90] sm:$0xff] }
 0xbf8   :  { %v3780_v5 = vpack.c.bf16 %v3765_v11, %v3764_v27 }
 0xbfa   :  { %3814 = vmatpush2.bf16.msra.mxu1 %v3781_v42  ;;  %v3763_v55 = vld [vmem:[#allocation4 + $0x88] sm:$0xff] }
 0xbfb   :  { %3815 = vmatprep.subr.bf16.mxu1 %v4522_v43  ;;  %v3762_v4 = vld [vmem:[#allocation4 + $0x80] sm:$0xff] }
 0xbfc   :  { %v3779_v39 = vpack.c.bf16 %v3763_v55, %v3762_v4 }
 0xbfe   :  { %3816 = vmatpush2.bf16.msra.mxu1 %v3780_v5 }
 0xbff   :  { %3817 = vmatprep.subr.bf16.mxu1 %v4522_v43 }
 0xc02   :  { %3818 = vmatpush2.bf16.msra.mxu1 %v3779_v39 }
 0xc05   :  { %3820 = vmatmul.mubr.bf16.vlgmr.msra.gmra.mxu1 %v4468_v23 }
 0xcc5   :  { %v3821_v17 = vpop.f32.mrf.mxu1 }
 0xcc6   :  { %v3822_v16 = vadd.f32 %v3821_v17, %v5691_v47 }
 0xcc7   :  { %v3823_v57 = vpop.f32.mrf.mxu1 }
 0xcc8   :  { %3830 = vrot.lane.b32.xlu0 %v3822_v16, %s4528_s24 }
 0xcc9   :  { %v3824_v46 = vpop.f32.mrf.mxu1 }
 0xcca   :  { %v3825_v26 = vadd.f32 %v3824_v46, %v5695_v3  ;;  %v4469_v3 = vld [vmem:[%s6821_s7] sm:$0xff] }
 0xccb   :  { %v3826_v49 = vpop.f32.mrf.mxu1 }
 0xccc   :  { %3832 = vrot.lane.b32.xlu1 %v3825_v26, %s4528_s24 }
 0xd3a   :  { %v3831_v43 = vpop.permute.xlu0 %3830 }
 0xd3b   :  { %v3836_v18 = vmax.f32 %v3822_v16, %v3831_v43 }
 0xd3d   :  { %3840 = vrot.lane.b32.xlu0 %v3836_v18, %s4512_s19 }
 0xd3e   :  { %v3833_v19 = vpop.permute.xlu1 %3832 }
 0xd3f   :  { %v3837_v10 = vmax.f32 %v3825_v26, %v3833_v19 }
 0xd41   :  { %3842 = vrot.lane.b32.xlu1 %v3837_v10, %s4512_s19 }
 0xdaf   :  { %v3841_v20 = vpop.permute.xlu0 %3840 }
 0xdb0   :  { %v3846_v30 = vmax.f32 %v3836_v18, %v3841_v20 }
 0xdb2   :  { %v3848_v47 = vmax.f32 %v3846_v30, 0.0 }
 0xdb3   :  { %v3843_v38 = vpop.permute.xlu1 %3842 }
 0xdb4   :  { %v3847_v34 = vmax.f32 %v3837_v10, %v3843_v38  ;;  %4283 = vmatprep.mubr.msk.f32.mxu0 %vm7211_vm9, %v3848_v47 }
 0xdb6   :  { %v3849_v21 = vmax.f32 %v3847_v34, 0.0 }
 0xdb8   :  { %4284 = vmatmul.mubr.msk.f32.vlgmr.msra.gmra.mxu0 %vm7212_vm0, %v3849_v21 }
 0xdb9   :  { %4290 = vmatprep.mubr.msk.f32.mxu0 %vm7213_vm4, %v4469_v3 }
 0xe78   :  { %v4285_v56 = vpop.f32.mrf.mxu0 }
 0xe79   :  { %4286 = vmatprep.subr.msk.mxu0 %vm7214_vm14, %v4285_v56 }
 0xe7a   :  { %v3922_v7 = vpop.f32.mrf.mxu0  ;;  %4287 = vmatpush3.msk.msra.mxu0 %vm7215_vm10, %v4285_v56 }
 0xe7b   :  { %4288 = vmatprep.subr.mxu0 %v3922_v7 }
 0xe7c   :  { %4289 = vmatpush3.msra.mxu0 %v3922_v7 }
 0xe7d   :  { %4291 = vmatmul.mubr.msk.f32.vlgmr.msra.gmra.mxu0 %vm7216_vm11, %v4470_v40  ;;  %4296 = vmatprep.subr.mxu0 %v4473_v0 }
 0xe7e   :  { %4293 = vmatprep.mubr.msk.f32.mxu0 %vm7217_vm8, %v4471_v32 }
 0xe81   :  { %4294 = vmatmul.mubr.msk.f32.gmra.mxu0 %vm7218_vm1, %v4472_v54 }
 0xe82   :  { %4304 = vmatprep.mubr.msk.f32.mxu0 %vm7219_vm13, %v4473_v0 }
 0xf3d   :  { %v4292_v14 = vpop.f32.mrf.mxu0 }
 0xf3e   :  { %v4006_v13 = vadd.f32 %v4292_v14, %v6520_v62 }
 0xf3f   :  { %v4000_v29 = vpop.f32.mrf.mxu0 }
 0xf40   :  { %v4001_v35 = vadd.f32 %v4000_v29, %v6532_v37  ;;  %v4020_v53 = vmax.f32 %v4006_v13, 0.0 }
 0xf41   :  { %v4295_v51 = vpop.f32.mrf.mxu0 }
 0xf42   :  { %v4016_v52 = vadd.f32 %v4295_v51, %v6513_v59  ;;  %v4019_v50 = vmax.f32 %v4001_v35, 0.0 }
 0xf43   :  { %v4010_v33 = vpop.f32.mrf.mxu0 }
 0xf44   :  { %v4022_v1 = vmax.f32 %v4016_v52, 0.0  ;;  %v4011_v15 = vadd.f32 %v4010_v33, %v6526_v41 }
 0xf46   :  { %v4021_v6 = vmax.f32 %v4011_v15, 0.0  ;;  %4297 = vmatpush3.msra.mxu0 %v4022_v1 }
 0xf47   :  { %4298 = vmatprep.subr.mxu0 %v4473_v0 }
 0xf48   :  { %4299 = vmatpush3.msra.mxu0 %v4021_v6 }
 0xf49   :  { %4300 = vmatprep.subr.mxu0 %v4473_v0 }
 0xf4a   :  { %4301 = vmatpush3.msra.mxu0 %v4020_v53 }
 0xf4b   :  { %4302 = vmatprep.subr.mxu0 %v4473_v0 }
 0xf4c   :  { %4303 = vmatpush3.msra.mxu0 %v4019_v50 }
 0xf4d   :  { %4305 = vmatmul.mubr.msk.f32.vlgmr.msra.gmra.mxu0 %vm7220_vm3, %v6549_v22 }
0x100d   :  { %v4089_v59 = vpop.f32.mrf.mxu0 }
0x100e   :  { %v4090_v62 = vadd.f32 %v4089_v59, %v6665_v24 }
0x100f   :  { %v4306_v41 = vpop.f32.mrf.mxu0 }
0x1010   :  { %4158 = vst.msk [vmem:[%s6825_s11 + $0x8] sm:$0x3f] %vm2243_vm15, %v4090_v62 }

</bundles_post_ra>
